<compile_context>
chip_gen: v6e
topology: v6e:2x2x1
jax: 0.10.0
libtpu: 0.0.40
codegen_flags: <defaults>
</compile_context>

<pallas_src>
from types import SimpleNamespace

import numpy as np
import jax
import jax.numpy as jnp
from jax import lax
from jax.experimental import pallas as pl
from jax.experimental.pallas import tpu as pltpu


def _ru(n, m):
    return ((n + m - 1) // m) * m


# ----------------------------------------------------------------------------
# Host-built per-tap edge masks (1 = keep, 0 = out-of-image halo position).
# Layout: bb images flattened contiguously along the lane axis, span = bb*h*w.
# 8 rows = the 8 non-center taps in (dy, dx) order, center tap skipped.
# ----------------------------------------------------------------------------
def _tap_masks(h, w, bb):
    hw = h * w
    span = bb * hw
    p = np.arange(span)
    row = (p % hw) // w
    col = p % w
    masks = np.zeros((8, span), np.float32)
    r = 0
    for dy in range(3):
        for dx in range(3):
            if dy == 1 and dx == 1:
                continue
            ok = np.ones(span, bool)
            if dy == 0:
                ok &= row >= 1
            if dy == 2:
                ok &= row <= h - 2
            if dx == 0:
                ok &= col >= 1
            if dx == 2:
                ok &= col <= w - 2
            masks[r] = ok.astype(np.float32)
            r += 1
    return masks


# ----------------------------------------------------------------------------
# Fused kernel builder
# ----------------------------------------------------------------------------
def _make_fused_kernel(layer_dims, spatial, resize_at, guard, bb):
    """Fused MaskHead kernel body.

    layer_dims: tuple of (cin_pad, cout_pad) per conv layer (padded to x8).
    spatial:    tuple of (h, w) per conv layer (post-resize for idx >= resize_at).
    resize_at:  conv index before which the bilinear resize runs, or None.
    guard:      halo lanes kept on each side of the activation slab (for
                in-bounds shifted-window loads).
    bb:         images processed per grid step (side-by-side along lanes).
    """
    n = len(layer_dims)
    n_stages = 2 if resize_at is not None else 1

    h0, w0 = spatial[0]
    hN, wN = spatial[-1]
    hw0, hwN = h0 * w0, hN * wN
    span0, spanN = bb * hw0, bb * hwN

    def kernel(*refs):
        pos = 0
        x_ref = refs[pos]; pos += 1
        w_refs = refs[pos:pos + n]; pos += n
        b_refs = refs[pos:pos + n]; pos += n
        m_refs = refs[pos:pos + n_stages]; pos += n_stages
        if resize_at is not None:
            mt_ref = refs[pos]; pos += 1
        o_ref = refs[pos]; pos += 1
        act = refs[pos]                       # VMEM slab (rows, guard+span+guard)

        rows = act.shape[0]
        lanes = act.shape[1]
        f32 = jnp.float32

        # ---- targeted zeroing (replaces the old full-slab memset) -----------
        # Only the narrow strips that shifted-window loads can touch but that
        # nothing overwrites this step; everything else is masked or rewritten.
        halo_l = max(w0, wN) + 2
        act[0:rows, pl.ds(guard - halo_l, halo_l)] = (
            jnp.zeros((rows, halo_l), f32))
        strip0 = min(w0 + 2, lanes - (guard + span0))
        act[0:rows, pl.ds(guard + span0, strip0)] = (
            jnp.zeros((rows, strip0), f32))
        if resize_at is not None and spanN != span0:
            stripN = min(wN + 2, lanes - (guard + spanN))
            act[0:rows, pl.ds(guard + spanN, stripN)] = (
                jnp.zeros((rows, stripN), f32))

        # ---- load the bb input images side by side along the lane axis ------
        c0 = x_ref.shape[1]
        for i in range(bb):
            act[0:c0, pl.ds(guard + i * hw0, hw0)] = x_ref[i].astype(f32)
        cin_p0 = layer_dims[0][0]
        if cin_p0 > c0:   # zero-padded input channels (zero weights need 0*finite)
            act[c0:cin_p0, pl.ds(guard, span0)] = (
                jnp.zeros((cin_p0 - c0, span0), f32))

        for idx in range(n):
            cin_p, cout_p = layer_dims[idx]
            post = resize_at is not None and idx >= resize_at
            h, w = (hN, wN) if post else (h0, w0)
            hw, span = (hwN, spanN) if post else (hw0, span0)
            m_ref = m_refs[1] if post else m_refs[0]

            # Bilinear upsample: one matmul against kron(Rh, Rw)^T per image.
            # Load all sources first, then store (in-place, no RAW hazard).
            if resize_at is not None and idx == resize_at:
                ups = [jnp.dot(act[0:cin_p, pl.ds(guard + i * hw0, hw0)],
                               mt_ref[...], preferred_element_type=f32)
                       for i in range(bb)]
                for i in range(bb):
                    act[0:cin_p, pl.ds(guard + i * hwN, hwN)] = ups[i]

            # conv3x3 + bias + ReLU: accumulate 9 per-tap matmuls straight
            # from shifted windows of the slab (no im2col scratch round-trip).
            acc = None
            for dy in range(3):
                for dx in range(3):
                    t = dy * 3 + dx
                    s = (dy - 1) * w + (dx - 1)
                    win = act[0:cin_p, pl.ds(guard + s, span)]
                    if t != 4:   # edge taps: zero out-of-image / cross-image lanes
                        r = t if t < 4 else t - 1
                        win = win * m_ref[r:r + 1, :]
                    contrib = jnp.dot(w_refs[idx][t], win,
                                      preferred_element_type=f32)
                    acc = contrib if acc is None else acc + contrib
            res = jnp.maximum(acc + b_refs[idx][...], 0.0)

            if idx == n - 1:
                # Last layer: store straight to the lane-dense output block.
                cl = o_ref.shape[1]
                for i in range(bb):
                    o_ref[i] = res[0:cl, i * hw:(i + 1) * hw].astype(o_ref.dtype)
            else:
                act[0:cout_p, pl.ds(guard, span)] = res

    return kernel


# ----------------------------------------------------------------------------
# Bilinear (PyTorch align_corners=False) interpolation matrices
# ----------------------------------------------------------------------------
def _pt_bilinear_matrix(out_size, in_size):
    scale = in_size / out_size
    idx = np.arange(out_size)
    src = (idx + 0.5) * scale - 0.5
    src = np.maximum(src, 0.0)
    i0f = np.floor(src)
    frac = (src - i0f).astype(np.float32)
    i0 = np.minimum(i0f.astype(np.int64), in_size - 1)
    i1 = np.minimum(i0 + 1, in_size - 1)
    R = np.zeros((out_size, in_size), dtype=np.float32)
    np.add.at(R, (idx, i0), 1.0 - frac)
    np.add.at(R, (idx, i1), frac)
    return R


# ----------------------------------------------------------------------------
# MaskHead
# ----------------------------------------------------------------------------
class MaskHeadPallas:
    def __init__(self, in_channels, args, key):
        self.num_convs = args.mask_head_num_convs
        self.mask_scale_ratio = args.mask_scale_ratio
        hidden = args.mask_head_hidden_channel
        out_ch = args.mask_head_out_channel
        self.in_channels = in_channels

        # Real parameters (HWIO), used by the pure-JAX reference.
        self.params = []
        self.layer_io = []
        for i in range(self.num_convs):
            cin = in_channels if i == 0 else hidden
            cout = hidden if i < self.num_convs - 1 else out_ch
            key, kw, kb = jax.random.split(key, 3)
            fan_in = cin * 9
            w = jax.random.normal(kw, (3, 3, cin, cout), jnp.float32)
            w = w * np.float32(1.0 / np.sqrt(fan_in))
            b = 0.01 * jax.random.normal(kb, (cout,), jnp.float32)
            self.params.append((w, b))
            self.layer_io.append((cin, cout))

        # Kernel-side packed weights: (9, cout_p, cin_p), channels padded to
        # multiples of 8 with zeros (zero weight columns neutralize padded /
        # stale activation rows).
        wk, bk, layer_dims = [], [], []
        for (w, b), (cin, cout) in zip(self.params, self.layer_io):
            cin_p, cout_p = _ru(cin, 8), _ru(cout, 8)
            wt = jnp.transpose(w, (0, 1, 3, 2)).reshape(9, cout, cin)
            wt = jnp.pad(wt, ((0, 0), (0, cout_p - cout), (0, cin_p - cin)))
            wk.append(wt)
            bk.append(jnp.pad(b, (0, cout_p - cout)).reshape(cout_p, 1))
            layer_dims.append((cin_p, cout_p))
        self.wk = tuple(wk)
        self.bk = tuple(bk)
        self.layer_dims = tuple(layer_dims)

        self._cache = {}

    def _build(self, x_shape):
        B, C, H, W = x_shape
        assert C == self.in_channels
        resize_at = 3 if self.num_convs > 3 else None
        if resize_at is not None:
            TH = int(H * self.mask_scale_ratio)
            TW = int(W * self.mask_scale_ratio)
            mt = jnp.asarray(np.kron(_pt_bilinear_matrix(TH, H),
                                     _pt_bilinear_matrix(TW, W)).T)  # (HW, TH*TW)
        else:
            TH, TW, mt = H, W, None

        spatial = tuple((H, W) if (resize_at is None or i < resize_at)
                        else (TH, TW) for i in range(self.num_convs))
        max_hw = max(h * w for h, w in spatial)
        max_w_sp = max(w for _, w in spatial)
        act_rows = max(max(d) for d in self.layer_dims)
        guard = max(128, _ru(max_w_sp + 2, 128))
        cout_last = self.layer_io[-1][1]
        h_f, w_f = spatial[-1]

        # Images per grid step: largest divisor of B within a lane budget
        # (amortizes per-step overhead and raises matmul N).
        bb = 1
        for d in range(1, B + 1):
            if B % d == 0 and d * max_hw <= 8192:
                bb = d

        masks = [jnp.asarray(_tap_masks(H, W, bb))]
        if resize_at is not None:
            masks.append(jnp.asarray(_tap_masks(TH, TW, bb)))
        masks = tuple(masks)

        kernel = _make_fused_kernel(self.layer_dims, spatial, resize_at,
                                    guard, bb)

        in_specs = [pl.BlockSpec((bb, C, H * W), lambda g: (g, 0, 0))]
        in_specs += [pl.BlockSpec(wi.shape, lambda g: (0, 0, 0))
                     for wi in self.wk]
        in_specs += [pl.BlockSpec(bi.shape, lambda g: (0, 0))
                     for bi in self.bk]
        in_specs += [pl.BlockSpec(mi.shape, lambda g: (0, 0)) for mi in masks]
        if resize_at is not None:
            in_specs += [pl.BlockSpec(mt.shape, lambda g: (0, 0))]
        out_specs = pl.BlockSpec((bb, cout_last, h_f * w_f),
                                 lambda g: (g, 0, 0))

        max_span = bb * max_hw
        grid_spec = pltpu.PrefetchScalarGridSpec(
            num_scalar_prefetch=0,
            grid=(B // bb,),
            in_specs=in_specs,
            out_specs=out_specs,
            scratch_shapes=[
                pltpu.VMEM((act_rows, guard + max_span + guard), jnp.float32),
            ],
        )

        def forward(x_nchw, wk, bk, masks_a, mt_arg):
            x3 = x_nchw.reshape(B, C, H * W)          # free: NCHW is row-major
            extra = (mt_arg,) if resize_at is not None else ()
            out = pl.pallas_call(
                kernel,
                out_shape=jax.ShapeDtypeStruct((B, cout_last, h_f * w_f),
                                               x_nchw.dtype),
                grid_spec=grid_spec,
                compiler_params=pltpu.CompilerParams(
                    dimension_semantics=("parallel",)),
            )(x3, *wk, *bk, *masks_a, *extra)
            return out.reshape(B, cout_last, h_f, w_f)

        return jax.jit(forward), masks, mt

    def __call__(self, x_nchw):
        key = tuple(x_nchw.shape)
        if key not in self._cache:
            self._cache[key] = self._build(key)
        fn, masks, mt = self._cache[key]
        return fn(x_nchw, self.wk, self.bk, masks, mt)


# ----------------------------------------------------------------------------
# Pure-JAX reference (for correctness checking of the fused kernel)
# ----------------------------------------------------------------------------
def _conv_ref(x, w, b):
    xp = jnp.pad(x, ((0, 0), (1, 1), (1, 1), (0, 0)))
    out = lax.conv_general_dilated(
        xp, w, window_strides=(1, 1), padding='VALID',
        dimension_numbers=('NHWC', 'HWIO', 'NHWC'),
        precision=lax.Precision.HIGHEST)
    return jnp.maximum(out + b, 0.0)


def _resize_ref(x, th, tw):
    rh = jnp.asarray(_pt_bilinear_matrix(th, x.shape[1]))
    rw = jnp.asarray(_pt_bilinear_matrix(tw, x.shape[2]))
    return jnp.einsum('ph,bhwc,qw->bpqc', rh, x, rw,
                      precision=lax.Precision.HIGHEST)


def _maskhead_ref(head, x_nchw):
    x = jnp.transpose(x_nchw, (0, 2, 3, 1))
    for idx, (w, b) in enumerate(head.params):
        if idx == 3:
            h, wsp = x.shape[1], x.shape[2]
            x = _resize_ref(x, int(h * head.mask_scale_ratio),
                            int(wsp * head.mask_scale_ratio))
        x = _conv_ref(x, w, b)
    return jnp.transpose(x, (0, 3, 1, 2))


# ----------------------------------------------------------------------------
if __name__ == "__main__":
    args = SimpleNamespace(
        mask_head_num_convs=4,
        mask_head_hidden_channel=8,
        mask_head_out_channel=16,
        mask_scale_ratio=2.0,
    )
    key = jax.random.PRNGKey(0)
    key, kparam, kx = jax.random.split(key, 3)

    head = MaskHeadPallas(in_channels=4, args=args, key=kparam)

    # PyTorch-style NCHW input: (batch=2, channels=4, 16, 16)
    x = jax.random.normal(kx, (2, 4, 16, 16), jnp.float32)

    out = jax.block_until_ready(head(x))
    assert out.shape == (2, args.mask_head_out_channel, 32, 32), out.shape

    ref = jax.block_until_ready(_maskhead_ref(head, x))
    np.testing.assert_allclose(np.asarray(out), np.asarray(ref),
                               rtol=1e-3, atol=1e-3)

    print("KERNEL_OK")
</pallas_src>

<mosaic_0001>
module attributes {stable_mosaic.version = 11 : i64} {
  func.func @kernel(%arg0: i32, %arg1: memref<2x4x256xf32, #tpu.memory_space<vmem>>, %arg2: memref<9x8x8xf32, #tpu.memory_space<vmem>>, %arg3: memref<9x8x8xf32, #tpu.memory_space<vmem>>, %arg4: memref<9x8x8xf32, #tpu.memory_space<vmem>>, %arg5: memref<9x16x8xf32, #tpu.memory_space<vmem>>, %arg6: memref<8x1xf32, #tpu.memory_space<vmem>>, %arg7: memref<8x1xf32, #tpu.memory_space<vmem>>, %arg8: memref<8x1xf32, #tpu.memory_space<vmem>>, %arg9: memref<16x1xf32, #tpu.memory_space<vmem>>, %arg10: memref<8x512xf32, #tpu.memory_space<vmem>>, %arg11: memref<8x2048xf32, #tpu.memory_space<vmem>>, %arg12: memref<256x1024xf32, #tpu.memory_space<vmem>>, %arg13: memref<2x16x1024xf32, #tpu.memory_space<vmem>>, %arg14: memref<16x2304xf32, #tpu.memory_space<vmem>>) attributes {dimension_semantics = [#tpu.dimension_semantics<parallel>], iteration_bounds = array<i64: 1>, scalar_prefetch = 0 : i64, scratch_operands = 1 : i64, tpu.core_type = #tpu.core_type<tc>, window_params = [{transform_indices = @transform_0, window_bounds = array<i64: 2, 4, 256>}, {pipeline_mode = #tpu.pipeline_mode<synchronous>, transform_indices = @transform_1, window_bounds = array<i64: 9, 8, 8>}, {pipeline_mode = #tpu.pipeline_mode<synchronous>, transform_indices = @transform_2, window_bounds = array<i64: 9, 8, 8>}, {pipeline_mode = #tpu.pipeline_mode<synchronous>, transform_indices = @transform_3, window_bounds = array<i64: 9, 8, 8>}, {pipeline_mode = #tpu.pipeline_mode<synchronous>, transform_indices = @transform_4, window_bounds = array<i64: 9, 16, 8>}, {pipeline_mode = #tpu.pipeline_mode<synchronous>, transform_indices = @transform_5, window_bounds = array<i64: 8, 1>}, {pipeline_mode = #tpu.pipeline_mode<synchronous>, transform_indices = @transform_6, window_bounds = array<i64: 8, 1>}, {pipeline_mode = #tpu.pipeline_mode<synchronous>, transform_indices = @transform_7, window_bounds = array<i64: 8, 1>}, {pipeline_mode = #tpu.pipeline_mode<synchronous>, transform_indices = @transform_8, window_bounds = array<i64: 16, 1>}, {pipeline_mode = #tpu.pipeline_mode<synchronous>, transform_indices = @transform_9, window_bounds = array<i64: 8, 512>}, {pipeline_mode = #tpu.pipeline_mode<synchronous>, transform_indices = @transform_10, window_bounds = array<i64: 8, 2048>}, {pipeline_mode = #tpu.pipeline_mode<synchronous>, transform_indices = @transform_11, window_bounds = array<i64: 256, 1024>}, {transform_indices = @transform_12, window_bounds = array<i64: 2, 16, 1024>}]} {
    %cst = arith.constant 0.000000e+00 : f32
    %0 = vector.broadcast %cst : f32 to vector<16x34xf32>
    %c0 = arith.constant 0 : index
    %c94 = arith.constant 94 : index
    %1 = vector.load %arg14[%c0, %c94] : memref<16x2304xf32, #tpu.memory_space<vmem>>, vector<16x34xf32>
    tpu.vector_store %arg14[%c0, %c94], %0 {strides = array<i32>} : memref<16x2304xf32, #tpu.memory_space<vmem>>, vector<16x34xf32>,
    %cst_0 = arith.constant 0.000000e+00 : f32
    %2 = vector.broadcast %cst_0 : f32 to vector<16x18xf32>
    %c0_1 = arith.constant 0 : index
    %c640 = arith.constant 640 : index
    %3 = vector.load %arg14[%c0_1, %c640] : memref<16x2304xf32, #tpu.memory_space<vmem>>, vector<16x18xf32>
    tpu.vector_store %arg14[%c0_1, %c640], %2 {strides = array<i32>} : memref<16x2304xf32, #tpu.memory_space<vmem>>, vector<16x18xf32>,
    %cst_2 = arith.constant 0.000000e+00 : f32
    %4 = vector.broadcast %cst_2 : f32 to vector<16x34xf32>
    %c0_3 = arith.constant 0 : index
    %c2176 = arith.constant 2176 : index
    %5 = vector.load %arg14[%c0_3, %c2176] : memref<16x2304xf32, #tpu.memory_space<vmem>>, vector<16x34xf32>
    tpu.vector_store %arg14[%c0_3, %c2176], %4 {strides = array<i32>} : memref<16x2304xf32, #tpu.memory_space<vmem>>, vector<16x34xf32>,
    %c0_4 = arith.constant 0 : index
    %c0_5 = arith.constant 0 : index
    %c0_6 = arith.constant 0 : index
    %6 = vector.load %arg1[%c0_4, %c0_5, %c0_6] : memref<2x4x256xf32, #tpu.memory_space<vmem>>, vector<1x4x256xf32>
    %7 = vector.shape_cast %6 : vector<1x4x256xf32> to vector<4x256xf32>
    %c0_7 = arith.constant 0 : index
    %c128 = arith.constant 128 : index
    %8 = vector.load %arg14[%c0_7, %c128] : memref<16x2304xf32, #tpu.memory_space<vmem>>, vector<4x256xf32>
    tpu.vector_store %arg14[%c0_7, %c128], %7 {strides = array<i32>} : memref<16x2304xf32, #tpu.memory_space<vmem>>, vector<4x256xf32>,
    %c1 = arith.constant 1 : index
    %c0_8 = arith.constant 0 : index
    %c0_9 = arith.constant 0 : index
    %9 = vector.load %arg1[%c1, %c0_8, %c0_9] : memref<2x4x256xf32, #tpu.memory_space<vmem>>, vector<1x4x256xf32>
    %10 = vector.shape_cast %9 : vector<1x4x256xf32> to vector<4x256xf32>
    %c0_10 = arith.constant 0 : index
    %c384 = arith.constant 384 : index
    %11 = vector.load %arg14[%c0_10, %c384] : memref<16x2304xf32, #tpu.memory_space<vmem>>, vector<4x256xf32>
    tpu.vector_store %arg14[%c0_10, %c384], %10 {strides = array<i32>} : memref<16x2304xf32, #tpu.memory_space<vmem>>, vector<4x256xf32>,
    %cst_11 = arith.constant 0.000000e+00 : f32
    %12 = vector.broadcast %cst_11 : f32 to vector<4x512xf32>
    %c4 = arith.constant 4 : index
    %c128_12 = arith.constant 128 : index
    %13 = vector.load %arg14[%c4, %c128_12] : memref<16x2304xf32, #tpu.memory_space<vmem>>, vector<4x512xf32>
    tpu.vector_store %arg14[%c4, %c128_12], %12 {strides = array<i32>} : memref<16x2304xf32, #tpu.memory_space<vmem>>, vector<4x512xf32>,
    %c0_13 = arith.constant 0 : index
    %c111 = arith.constant 111 : index
    %14 = vector.load %arg14[%c0_13, %c111] : memref<16x2304xf32, #tpu.memory_space<vmem>>, vector<8x512xf32>
    %c0_14 = arith.constant 0 : index
    %c0_15 = arith.constant 0 : index
    %15 = vector.load %arg10[%c0_14, %c0_15] : memref<8x512xf32, #tpu.memory_space<vmem>>, vector<1x512xf32>
    %16 = vector.broadcast %15 : vector<1x512xf32> to vector<8x512xf32>
    %17 = arith.mulf %14, %16 : vector<8x512xf32>
    %c0_16 = arith.constant 0 : index
    %c0_17 = arith.constant 0 : index
    %c0_18 = arith.constant 0 : index
    %18 = vector.load %arg2[%c0_16, %c0_17, %c0_18] : memref<9x8x8xf32, #tpu.memory_space<vmem>>, vector<1x8x8xf32>
    %19 = vector.shape_cast %18 : vector<1x8x8xf32> to vector<8x8xf32>
    %cst_19 = arith.constant dense<0.000000e+00> : vector<8x512xf32>
    %20 = tpu.matmul %19, %17, %cst_19 {dimension_numbers = #tpu.dot_dimension_numbers<[1], [0], [0], [1], [0, 0, 1, 1], [], []>} : vector<8x8xf32>, vector<8x512xf32>, vector<8x512xf32> -> vector<8x512xf32>
    %c0_20 = arith.constant 0 : index
    %c112 = arith.constant 112 : index
    %21 = vector.load %arg14[%c0_20, %c112] : memref<16x2304xf32, #tpu.memory_space<vmem>>, vector<8x512xf32>
    %c1_21 = arith.constant 1 : index
    %c0_22 = arith.constant 0 : index
    %22 = vector.load %arg10[%c1_21, %c0_22] : memref<8x512xf32, #tpu.memory_space<vmem>>, vector<1x512xf32>
    %23 = vector.broadcast %22 : vector<1x512xf32> to vector<8x512xf32>
    %24 = arith.mulf %21, %23 : vector<8x512xf32>
    %c1_23 = arith.constant 1 : index
    %c0_24 = arith.constant 0 : index
    %c0_25 = arith.constant 0 : index
    %25 = vector.load %arg2[%c1_23, %c0_24, %c0_25] : memref<9x8x8xf32, #tpu.memory_space<vmem>>, vector<1x8x8xf32>
    %26 = vector.shape_cast %25 : vector<1x8x8xf32> to vector<8x8xf32>
    %cst_26 = arith.constant dense<0.000000e+00> : vector<8x512xf32>
    %27 = tpu.matmul %26, %24, %cst_26 {dimension_numbers = #tpu.dot_dimension_numbers<[1], [0], [0], [1], [0, 0, 1, 1], [], []>} : vector<8x8xf32>, vector<8x512xf32>, vector<8x512xf32> -> vector<8x512xf32>
    %28 = arith.addf %20, %27 : vector<8x512xf32>
    %c0_27 = arith.constant 0 : index
    %c113 = arith.constant 113 : index
    %29 = vector.load %arg14[%c0_27, %c113] : memref<16x2304xf32, #tpu.memory_space<vmem>>, vector<8x512xf32>
    %c2 = arith.constant 2 : index
    %c0_28 = arith.constant 0 : index
    %30 = vector.load %arg10[%c2, %c0_28] : memref<8x512xf32, #tpu.memory_space<vmem>>, vector<1x512xf32>
    %31 = vector.broadcast %30 : vector<1x512xf32> to vector<8x512xf32>
    %32 = arith.mulf %29, %31 : vector<8x512xf32>
    %c2_29 = arith.constant 2 : index
    %c0_30 = arith.constant 0 : index
    %c0_31 = arith.constant 0 : index
    %33 = vector.load %arg2[%c2_29, %c0_30, %c0_31] : memref<9x8x8xf32, #tpu.memory_space<vmem>>, vector<1x8x8xf32>
    %34 = vector.shape_cast %33 : vector<1x8x8xf32> to vector<8x8xf32>
    %cst_32 = arith.constant dense<0.000000e+00> : vector<8x512xf32>
    %35 = tpu.matmul %34, %32, %cst_32 {dimension_numbers = #tpu.dot_dimension_numbers<[1], [0], [0], [1], [0, 0, 1, 1], [], []>} : vector<8x8xf32>, vector<8x512xf32>, vector<8x512xf32> -> vector<8x512xf32>
    %36 = arith.addf %28, %35 : vector<8x512xf32>
    %c0_33 = arith.constant 0 : index
    %c127 = arith.constant 127 : index
    %37 = vector.load %arg14[%c0_33, %c127] : memref<16x2304xf32, #tpu.memory_space<vmem>>, vector<8x512xf32>
    %c3 = arith.constant 3 : index
    %c0_34 = arith.constant 0 : index
    %38 = vector.load %arg10[%c3, %c0_34] : memref<8x512xf32, #tpu.memory_space<vmem>>, vector<1x512xf32>
    %39 = vector.broadcast %38 : vector<1x512xf32> to vector<8x512xf32>
    %40 = arith.mulf %37, %39 : vector<8x512xf32>
    %c3_35 = arith.constant 3 : index
    %c0_36 = arith.constant 0 : index
    %c0_37 = arith.constant 0 : index
    %41 = vector.load %arg2[%c3_35, %c0_36, %c0_37] : memref<9x8x8xf32, #tpu.memory_space<vmem>>, vector<1x8x8xf32>
    %42 = vector.shape_cast %41 : vector<1x8x8xf32> to vector<8x8xf32>
    %cst_38 = arith.constant dense<0.000000e+00> : vector<8x512xf32>
    %43 = tpu.matmul %42, %40, %cst_38 {dimension_numbers = #tpu.dot_dimension_numbers<[1], [0], [0], [1], [0, 0, 1, 1], [], []>} : vector<8x8xf32>, vector<8x512xf32>, vector<8x512xf32> -> vector<8x512xf32>
    %44 = arith.addf %36, %43 : vector<8x512xf32>
    %c0_39 = arith.constant 0 : index
    %c128_40 = arith.constant 128 : index
    %45 = vector.load %arg14[%c0_39, %c128_40] : memref<16x2304xf32, #tpu.memory_space<vmem>>, vector<8x512xf32>
    %c4_41 = arith.constant 4 : index
    %c0_42 = arith.constant 0 : index
    %c0_43 = arith.constant 0 : index
    %46 = vector.load %arg2[%c4_41, %c0_42, %c0_43] : memref<9x8x8xf32, #tpu.memory_space<vmem>>, vector<1x8x8xf32>
    %47 = vector.shape_cast %46 : vector<1x8x8xf32> to vector<8x8xf32>
    %cst_44 = arith.constant dense<0.000000e+00> : vector<8x512xf32>
    %48 = tpu.matmul %47, %45, %cst_44 {dimension_numbers = #tpu.dot_dimension_numbers<[1], [0], [0], [1], [0, 0, 1, 1], [], []>} : vector<8x8xf32>, vector<8x512xf32>, vector<8x512xf32> -> vector<8x512xf32>
    %49 = arith.addf %44, %48 : vector<8x512xf32>
    %c0_45 = arith.constant 0 : index
    %c129 = arith.constant 129 : index
    %50 = vector.load %arg14[%c0_45, %c129] : memref<16x2304xf32, #tpu.memory_space<vmem>>, vector<8x512xf32>
    %c4_46 = arith.constant 4 : index
    %c0_47 = arith.constant 0 : index
    %51 = vector.load %arg10[%c4_46, %c0_47] : memref<8x512xf32, #tpu.memory_space<vmem>>, vector<1x512xf32>
    %52 = vector.broadcast %51 : vector<1x512xf32> to vector<8x512xf32>
    %53 = arith.mulf %50, %52 : vector<8x512xf32>
    %c5 = arith.constant 5 : index
    %c0_48 = arith.constant 0 : index
    %c0_49 = arith.constant 0 : index
    %54 = vector.load %arg2[%c5, %c0_48, %c0_49] : memref<9x8x8xf32, #tpu.memory_space<vmem>>, vector<1x8x8xf32>
    %55 = vector.shape_cast %54 : vector<1x8x8xf32> to vector<8x8xf32>
    %cst_50 = arith.constant dense<0.000000e+00> : vector<8x512xf32>
    %56 = tpu.matmul %55, %53, %cst_50 {dimension_numbers = #tpu.dot_dimension_numbers<[1], [0], [0], [1], [0, 0, 1, 1], [], []>} : vector<8x8xf32>, vector<8x512xf32>, vector<8x512xf32> -> vector<8x512xf32>
    %57 = arith.addf %49, %56 : vector<8x512xf32>
    %c0_51 = arith.constant 0 : index
    %c143 = arith.constant 143 : index
    %58 = vector.load %arg14[%c0_51, %c143] : memref<16x2304xf32, #tpu.memory_space<vmem>>, vector<8x512xf32>
    %c5_52 = arith.constant 5 : index
    %c0_53 = arith.constant 0 : index
    %59 = vector.load %arg10[%c5_52, %c0_53] : memref<8x512xf32, #tpu.memory_space<vmem>>, vector<1x512xf32>
    %60 = vector.broadcast %59 : vector<1x512xf32> to vector<8x512xf32>
    %61 = arith.mulf %58, %60 : vector<8x512xf32>
    %c6 = arith.constant 6 : index
    %c0_54 = arith.constant 0 : index
    %c0_55 = arith.constant 0 : index
    %62 = vector.load %arg2[%c6, %c0_54, %c0_55] : memref<9x8x8xf32, #tpu.memory_space<vmem>>, vector<1x8x8xf32>
    %63 = vector.shape_cast %62 : vector<1x8x8xf32> to vector<8x8xf32>
    %cst_56 = arith.constant dense<0.000000e+00> : vector<8x512xf32>
    %64 = tpu.matmul %63, %61, %cst_56 {dimension_numbers = #tpu.dot_dimension_numbers<[1], [0], [0], [1], [0, 0, 1, 1], [], []>} : vector<8x8xf32>, vector<8x512xf32>, vector<8x512xf32> -> vector<8x512xf32>
    %65 = arith.addf %57, %64 : vector<8x512xf32>
    %c0_57 = arith.constant 0 : index
    %c144 = arith.constant 144 : index
    %66 = vector.load %arg14[%c0_57, %c144] : memref<16x2304xf32, #tpu.memory_space<vmem>>, vector<8x512xf32>
    %c6_58 = arith.constant 6 : index
    %c0_59 = arith.constant 0 : index
    %67 = vector.load %arg10[%c6_58, %c0_59] : memref<8x512xf32, #tpu.memory_space<vmem>>, vector<1x512xf32>
    %68 = vector.broadcast %67 : vector<1x512xf32> to vector<8x512xf32>
    %69 = arith.mulf %66, %68 : vector<8x512xf32>
    %c7 = arith.constant 7 : index
    %c0_60 = arith.constant 0 : index
    %c0_61 = arith.constant 0 : index
    %70 = vector.load %arg2[%c7, %c0_60, %c0_61] : memref<9x8x8xf32, #tpu.memory_space<vmem>>, vector<1x8x8xf32>
    %71 = vector.shape_cast %70 : vector<1x8x8xf32> to vector<8x8xf32>
    %cst_62 = arith.constant dense<0.000000e+00> : vector<8x512xf32>
    %72 = tpu.matmul %71, %69, %cst_62 {dimension_numbers = #tpu.dot_dimension_numbers<[1], [0], [0], [1], [0, 0, 1, 1], [], []>} : vector<8x8xf32>, vector<8x512xf32>, vector<8x512xf32> -> vector<8x512xf32>
    %73 = arith.addf %65, %72 : vector<8x512xf32>
    %c0_63 = arith.constant 0 : index
    %c145 = arith.constant 145 : index
    %74 = vector.load %arg14[%c0_63, %c145] : memref<16x2304xf32, #tpu.memory_space<vmem>>, vector<8x512xf32>
    %c7_64 = arith.constant 7 : index
    %c0_65 = arith.constant 0 : index
    %75 = vector.load %arg10[%c7_64, %c0_65] : memref<8x512xf32, #tpu.memory_space<vmem>>, vector<1x512xf32>
    %76 = vector.broadcast %75 : vector<1x512xf32> to vector<8x512xf32>
    %77 = arith.mulf %74, %76 : vector<8x512xf32>
    %c8 = arith.constant 8 : index
    %c0_66 = arith.constant 0 : index
    %c0_67 = arith.constant 0 : index
    %78 = vector.load %arg2[%c8, %c0_66, %c0_67] : memref<9x8x8xf32, #tpu.memory_space<vmem>>, vector<1x8x8xf32>
    %79 = vector.shape_cast %78 : vector<1x8x8xf32> to vector<8x8xf32>
    %cst_68 = arith.constant dense<0.000000e+00> : vector<8x512xf32>
    %80 = tpu.matmul %79, %77, %cst_68 {dimension_numbers = #tpu.dot_dimension_numbers<[1], [0], [0], [1], [0, 0, 1, 1], [], []>} : vector<8x8xf32>, vector<8x512xf32>, vector<8x512xf32> -> vector<8x512xf32>
    %81 = arith.addf %73, %80 : vector<8x512xf32>
    %c0_69 = arith.constant 0 : index
    %c0_70 = arith.constant 0 : index
    %82 = vector.load %arg6[%c0_69, %c0_70] : memref<8x1xf32, #tpu.memory_space<vmem>>, vector<8x1xf32>
    %83 = vector.broadcast %82 : vector<8x1xf32> to vector<8x512xf32>
    %84 = arith.addf %81, %83 : vector<8x512xf32>
    %cst_71 = arith.constant 0.000000e+00 : f32
    %85 = vector.broadcast %cst_71 : f32 to vector<8x512xf32>
    %86 = arith.maximumf %84, %85 : vector<8x512xf32>
    %c0_72 = arith.constant 0 : index
    %c128_73 = arith.constant 128 : index
    %87 = vector.load %arg14[%c0_72, %c128_73] : memref<16x2304xf32, #tpu.memory_space<vmem>>, vector<8x512xf32>
    tpu.vector_store %arg14[%c0_72, %c128_73], %86 {strides = array<i32>} : memref<16x2304xf32, #tpu.memory_space<vmem>>, vector<8x512xf32>,
    %c0_74 = arith.constant 0 : index
    %c111_75 = arith.constant 111 : index
    %88 = vector.load %arg14[%c0_74, %c111_75] : memref<16x2304xf32, #tpu.memory_space<vmem>>, vector<8x512xf32>
    %c0_76 = arith.constant 0 : index
    %c0_77 = arith.constant 0 : index
    %89 = vector.load %arg10[%c0_76, %c0_77] : memref<8x512xf32, #tpu.memory_space<vmem>>, vector<1x512xf32>
    %90 = vector.broadcast %89 : vector<1x512xf32> to vector<8x512xf32>
    %91 = arith.mulf %88, %90 : vector<8x512xf32>
    %c0_78 = arith.constant 0 : index
    %c0_79 = arith.constant 0 : index
    %c0_80 = arith.constant 0 : index
    %92 = vector.load %arg3[%c0_78, %c0_79, %c0_80] : memref<9x8x8xf32, #tpu.memory_space<vmem>>, vector<1x8x8xf32>
    %93 = vector.shape_cast %92 : vector<1x8x8xf32> to vector<8x8xf32>
    %cst_81 = arith.constant dense<0.000000e+00> : vector<8x512xf32>
    %94 = tpu.matmul %93, %91, %cst_81 {dimension_numbers = #tpu.dot_dimension_numbers<[1], [0], [0], [1], [0, 0, 1, 1], [], []>} : vector<8x8xf32>, vector<8x512xf32>, vector<8x512xf32> -> vector<8x512xf32>
    %c0_82 = arith.constant 0 : index
    %c112_83 = arith.constant 112 : index
    %95 = vector.load %arg14[%c0_82, %c112_83] : memref<16x2304xf32, #tpu.memory_space<vmem>>, vector<8x512xf32>
    %c1_84 = arith.constant 1 : index
    %c0_85 = arith.constant 0 : index
    %96 = vector.load %arg10[%c1_84, %c0_85] : memref<8x512xf32, #tpu.memory_space<vmem>>, vector<1x512xf32>
    %97 = vector.broadcast %96 : vector<1x512xf32> to vector<8x512xf32>
    %98 = arith.mulf %95, %97 : vector<8x512xf32>
    %c1_86 = arith.constant 1 : index
    %c0_87 = arith.constant 0 : index
    %c0_88 = arith.constant 0 : index
    %99 = vector.load %arg3[%c1_86, %c0_87, %c0_88] : memref<9x8x8xf32, #tpu.memory_space<vmem>>, vector<1x8x8xf32>
    %100 = vector.shape_cast %99 : vector<1x8x8xf32> to vector<8x8xf32>
    %cst_89 = arith.constant dense<0.000000e+00> : vector<8x512xf32>
    %101 = tpu.matmul %100, %98, %cst_89 {dimension_numbers = #tpu.dot_dimension_numbers<[1], [0], [0], [1], [0, 0, 1, 1], [], []>} : vector<8x8xf32>, vector<8x512xf32>, vector<8x512xf32> -> vector<8x512xf32>
    %102 = arith.addf %94, %101 : vector<8x512xf32>
    %c0_90 = arith.constant 0 : index
    %c113_91 = arith.constant 113 : index
    %103 = vector.load %arg14[%c0_90, %c113_91] : memref<16x2304xf32, #tpu.memory_space<vmem>>, vector<8x512xf32>
    %c2_92 = arith.constant 2 : index
    %c0_93 = arith.constant 0 : index
    %104 = vector.load %arg10[%c2_92, %c0_93] : memref<8x512xf32, #tpu.memory_space<vmem>>, vector<1x512xf32>
    %105 = vector.broadcast %104 : vector<1x512xf32> to vector<8x512xf32>
    %106 = arith.mulf %103, %105 : vector<8x512xf32>
    %c2_94 = arith.constant 2 : index
    %c0_95 = arith.constant 0 : index
    %c0_96 = arith.constant 0 : index
    %107 = vector.load %arg3[%c2_94, %c0_95, %c0_96] : memref<9x8x8xf32, #tpu.memory_space<vmem>>, vector<1x8x8xf32>
    %108 = vector.shape_cast %107 : vector<1x8x8xf32> to vector<8x8xf32>
    %cst_97 = arith.constant dense<0.000000e+00> : vector<8x512xf32>
    %109 = tpu.matmul %108, %106, %cst_97 {dimension_numbers = #tpu.dot_dimension_numbers<[1], [0], [0], [1], [0, 0, 1, 1], [], []>} : vector<8x8xf32>, vector<8x512xf32>, vector<8x512xf32> -> vector<8x512xf32>
    %110 = arith.addf %102, %109 : vector<8x512xf32>
    %c0_98 = arith.constant 0 : index
    %c127_99 = arith.constant 127 : index
    %111 = vector.load %arg14[%c0_98, %c127_99] : memref<16x2304xf32, #tpu.memory_space<vmem>>, vector<8x512xf32>
    %c3_100 = arith.constant 3 : index
    %c0_101 = arith.constant 0 : index
    %112 = vector.load %arg10[%c3_100, %c0_101] : memref<8x512xf32, #tpu.memory_space<vmem>>, vector<1x512xf32>
    %113 = vector.broadcast %112 : vector<1x512xf32> to vector<8x512xf32>
    %114 = arith.mulf %111, %113 : vector<8x512xf32>
    %c3_102 = arith.constant 3 : index
    %c0_103 = arith.constant 0 : index
    %c0_104 = arith.constant 0 : index
    %115 = vector.load %arg3[%c3_102, %c0_103, %c0_104] : memref<9x8x8xf32, #tpu.memory_space<vmem>>, vector<1x8x8xf32>
    %116 = vector.shape_cast %115 : vector<1x8x8xf32> to vector<8x8xf32>
    %cst_105 = arith.constant dense<0.000000e+00> : vector<8x512xf32>
    %117 = tpu.matmul %116, %114, %cst_105 {dimension_numbers = #tpu.dot_dimension_numbers<[1], [0], [0], [1], [0, 0, 1, 1], [], []>} : vector<8x8xf32>, vector<8x512xf32>, vector<8x512xf32> -> vector<8x512xf32>
    %118 = arith.addf %110, %117 : vector<8x512xf32>
    %c0_106 = arith.constant 0 : index
    %c128_107 = arith.constant 128 : index
    %119 = vector.load %arg14[%c0_106, %c128_107] : memref<16x2304xf32, #tpu.memory_space<vmem>>, vector<8x512xf32>
    %c4_108 = arith.constant 4 : index
    %c0_109 = arith.constant 0 : index
    %c0_110 = arith.constant 0 : index
    %120 = vector.load %arg3[%c4_108, %c0_109, %c0_110] : memref<9x8x8xf32, #tpu.memory_space<vmem>>, vector<1x8x8xf32>
    %121 = vector.shape_cast %120 : vector<1x8x8xf32> to vector<8x8xf32>
    %cst_111 = arith.constant dense<0.000000e+00> : vector<8x512xf32>
    %122 = tpu.matmul %121, %119, %cst_111 {dimension_numbers = #tpu.dot_dimension_numbers<[1], [0], [0], [1], [0, 0, 1, 1], [], []>} : vector<8x8xf32>, vector<8x512xf32>, vector<8x512xf32> -> vector<8x512xf32>
    %123 = arith.addf %118, %122 : vector<8x512xf32>
    %c0_112 = arith.constant 0 : index
    %c129_113 = arith.constant 129 : index
    %124 = vector.load %arg14[%c0_112, %c129_113] : memref<16x2304xf32, #tpu.memory_space<vmem>>, vector<8x512xf32>
    %c4_114 = arith.constant 4 : index
    %c0_115 = arith.constant 0 : index
    %125 = vector.load %arg10[%c4_114, %c0_115] : memref<8x512xf32, #tpu.memory_space<vmem>>, vector<1x512xf32>
    %126 = vector.broadcast %125 : vector<1x512xf32> to vector<8x512xf32>
    %127 = arith.mulf %124, %126 : vector<8x512xf32>
    %c5_116 = arith.constant 5 : index
    %c0_117 = arith.constant 0 : index
    %c0_118 = arith.constant 0 : index
    %128 = vector.load %arg3[%c5_116, %c0_117, %c0_118] : memref<9x8x8xf32, #tpu.memory_space<vmem>>, vector<1x8x8xf32>
    %129 = vector.shape_cast %128 : vector<1x8x8xf32> to vector<8x8xf32>
    %cst_119 = arith.constant dense<0.000000e+00> : vector<8x512xf32>
    %130 = tpu.matmul %129, %127, %cst_119 {dimension_numbers = #tpu.dot_dimension_numbers<[1], [0], [0], [1], [0, 0, 1, 1], [], []>} : vector<8x8xf32>, vector<8x512xf32>, vector<8x512xf32> -> vector<8x512xf32>
    %131 = arith.addf %123, %130 : vector<8x512xf32>
    %c0_120 = arith.constant 0 : index
    %c143_121 = arith.constant 143 : index
    %132 = vector.load %arg14[%c0_120, %c143_121] : memref<16x2304xf32, #tpu.memory_space<vmem>>, vector<8x512xf32>
    %c5_122 = arith.constant 5 : index
    %c0_123 = arith.constant 0 : index
    %133 = vector.load %arg10[%c5_122, %c0_123] : memref<8x512xf32, #tpu.memory_space<vmem>>, vector<1x512xf32>
    %134 = vector.broadcast %133 : vector<1x512xf32> to vector<8x512xf32>
    %135 = arith.mulf %132, %134 : vector<8x512xf32>
    %c6_124 = arith.constant 6 : index
    %c0_125 = arith.constant 0 : index
    %c0_126 = arith.constant 0 : index
    %136 = vector.load %arg3[%c6_124, %c0_125, %c0_126] : memref<9x8x8xf32, #tpu.memory_space<vmem>>, vector<1x8x8xf32>
    %137 = vector.shape_cast %136 : vector<1x8x8xf32> to vector<8x8xf32>
    %cst_127 = arith.constant dense<0.000000e+00> : vector<8x512xf32>
    %138 = tpu.matmul %137, %135, %cst_127 {dimension_numbers = #tpu.dot_dimension_numbers<[1], [0], [0], [1], [0, 0, 1, 1], [], []>} : vector<8x8xf32>, vector<8x512xf32>, vector<8x512xf32> -> vector<8x512xf32>
    %139 = arith.addf %131, %138 : vector<8x512xf32>
    %c0_128 = arith.constant 0 : index
    %c144_129 = arith.constant 144 : index
    %140 = vector.load %arg14[%c0_128, %c144_129] : memref<16x2304xf32, #tpu.memory_space<vmem>>, vector<8x512xf32>
    %c6_130 = arith.constant 6 : index
    %c0_131 = arith.constant 0 : index
    %141 = vector.load %arg10[%c6_130, %c0_131] : memref<8x512xf32, #tpu.memory_space<vmem>>, vector<1x512xf32>
    %142 = vector.broadcast %141 : vector<1x512xf32> to vector<8x512xf32>
    %143 = arith.mulf %140, %142 : vector<8x512xf32>
    %c7_132 = arith.constant 7 : index
    %c0_133 = arith.constant 0 : index
    %c0_134 = arith.constant 0 : index
    %144 = vector.load %arg3[%c7_132, %c0_133, %c0_134] : memref<9x8x8xf32, #tpu.memory_space<vmem>>, vector<1x8x8xf32>
    %145 = vector.shape_cast %144 : vector<1x8x8xf32> to vector<8x8xf32>
    %cst_135 = arith.constant dense<0.000000e+00> : vector<8x512xf32>
    %146 = tpu.matmul %145, %143, %cst_135 {dimension_numbers = #tpu.dot_dimension_numbers<[1], [0], [0], [1], [0, 0, 1, 1], [], []>} : vector<8x8xf32>, vector<8x512xf32>, vector<8x512xf32> -> vector<8x512xf32>
    %147 = arith.addf %139, %146 : vector<8x512xf32>
    %c0_136 = arith.constant 0 : index
    %c145_137 = arith.constant 145 : index
    %148 = vector.load %arg14[%c0_136, %c145_137] : memref<16x2304xf32, #tpu.memory_space<vmem>>, vector<8x512xf32>
    %c7_138 = arith.constant 7 : index
    %c0_139 = arith.constant 0 : index
    %149 = vector.load %arg10[%c7_138, %c0_139] : memref<8x512xf32, #tpu.memory_space<vmem>>, vector<1x512xf32>
    %150 = vector.broadcast %149 : vector<1x512xf32> to vector<8x512xf32>
    %151 = arith.mulf %148, %150 : vector<8x512xf32>
    %c8_140 = arith.constant 8 : index
    %c0_141 = arith.constant 0 : index
    %c0_142 = arith.constant 0 : index
    %152 = vector.load %arg3[%c8_140, %c0_141, %c0_142] : memref<9x8x8xf32, #tpu.memory_space<vmem>>, vector<1x8x8xf32>
    %153 = vector.shape_cast %152 : vector<1x8x8xf32> to vector<8x8xf32>
    %cst_143 = arith.constant dense<0.000000e+00> : vector<8x512xf32>
    %154 = tpu.matmul %153, %151, %cst_143 {dimension_numbers = #tpu.dot_dimension_numbers<[1], [0], [0], [1], [0, 0, 1, 1], [], []>} : vector<8x8xf32>, vector<8x512xf32>, vector<8x512xf32> -> vector<8x512xf32>
    %155 = arith.addf %147, %154 : vector<8x512xf32>
    %c0_144 = arith.constant 0 : index
    %c0_145 = arith.constant 0 : index
    %156 = vector.load %arg7[%c0_144, %c0_145] : memref<8x1xf32, #tpu.memory_space<vmem>>, vector<8x1xf32>
    %157 = vector.broadcast %156 : vector<8x1xf32> to vector<8x512xf32>
    %158 = arith.addf %155, %157 : vector<8x512xf32>
    %cst_146 = arith.constant 0.000000e+00 : f32
    %159 = vector.broadcast %cst_146 : f32 to vector<8x512xf32>
    %160 = arith.maximumf %158, %159 : vector<8x512xf32>
    %c0_147 = arith.constant 0 : index
    %c128_148 = arith.constant 128 : index
    %161 = vector.load %arg14[%c0_147, %c128_148] : memref<16x2304xf32, #tpu.memory_space<vmem>>, vector<8x512xf32>
    tpu.vector_store %arg14[%c0_147, %c128_148], %160 {strides = array<i32>} : memref<16x2304xf32, #tpu.memory_space<vmem>>, vector<8x512xf32>,
    %c0_149 = arith.constant 0 : index
    %c111_150 = arith.constant 111 : index
    %162 = vector.load %arg14[%c0_149, %c111_150] : memref<16x2304xf32, #tpu.memory_space<vmem>>, vector<8x512xf32>
    %c0_151 = arith.constant 0 : index
    %c0_152 = arith.constant 0 : index
    %163 = vector.load %arg10[%c0_151, %c0_152] : memref<8x512xf32, #tpu.memory_space<vmem>>, vector<1x512xf32>
    %164 = vector.broadcast %163 : vector<1x512xf32> to vector<8x512xf32>
    %165 = arith.mulf %162, %164 : vector<8x512xf32>
    %c0_153 = arith.constant 0 : index
    %c0_154 = arith.constant 0 : index
    %c0_155 = arith.constant 0 : index
    %166 = vector.load %arg4[%c0_153, %c0_154, %c0_155] : memref<9x8x8xf32, #tpu.memory_space<vmem>>, vector<1x8x8xf32>
    %167 = vector.shape_cast %166 : vector<1x8x8xf32> to vector<8x8xf32>
    %cst_156 = arith.constant dense<0.000000e+00> : vector<8x512xf32>
    %168 = tpu.matmul %167, %165, %cst_156 {dimension_numbers = #tpu.dot_dimension_numbers<[1], [0], [0], [1], [0, 0, 1, 1], [], []>} : vector<8x8xf32>, vector<8x512xf32>, vector<8x512xf32> -> vector<8x512xf32>
    %c0_157 = arith.constant 0 : index
    %c112_158 = arith.constant 112 : index
    %169 = vector.load %arg14[%c0_157, %c112_158] : memref<16x2304xf32, #tpu.memory_space<vmem>>, vector<8x512xf32>
    %c1_159 = arith.constant 1 : index
    %c0_160 = arith.constant 0 : index
    %170 = vector.load %arg10[%c1_159, %c0_160] : memref<8x512xf32, #tpu.memory_space<vmem>>, vector<1x512xf32>
    %171 = vector.broadcast %170 : vector<1x512xf32> to vector<8x512xf32>
    %172 = arith.mulf %169, %171 : vector<8x512xf32>
    %c1_161 = arith.constant 1 : index
    %c0_162 = arith.constant 0 : index
    %c0_163 = arith.constant 0 : index
    %173 = vector.load %arg4[%c1_161, %c0_162, %c0_163] : memref<9x8x8xf32, #tpu.memory_space<vmem>>, vector<1x8x8xf32>
    %174 = vector.shape_cast %173 : vector<1x8x8xf32> to vector<8x8xf32>
    %cst_164 = arith.constant dense<0.000000e+00> : vector<8x512xf32>
    %175 = tpu.matmul %174, %172, %cst_164 {dimension_numbers = #tpu.dot_dimension_numbers<[1], [0], [0], [1], [0, 0, 1, 1], [], []>} : vector<8x8xf32>, vector<8x512xf32>, vector<8x512xf32> -> vector<8x512xf32>
    %176 = arith.addf %168, %175 : vector<8x512xf32>
    %c0_165 = arith.constant 0 : index
    %c113_166 = arith.constant 113 : index
    %177 = vector.load %arg14[%c0_165, %c113_166] : memref<16x2304xf32, #tpu.memory_space<vmem>>, vector<8x512xf32>
    %c2_167 = arith.constant 2 : index
    %c0_168 = arith.constant 0 : index
    %178 = vector.load %arg10[%c2_167, %c0_168] : memref<8x512xf32, #tpu.memory_space<vmem>>, vector<1x512xf32>
    %179 = vector.broadcast %178 : vector<1x512xf32> to vector<8x512xf32>
    %180 = arith.mulf %177, %179 : vector<8x512xf32>
    %c2_169 = arith.constant 2 : index
    %c0_170 = arith.constant 0 : index
    %c0_171 = arith.constant 0 : index
    %181 = vector.load %arg4[%c2_169, %c0_170, %c0_171] : memref<9x8x8xf32, #tpu.memory_space<vmem>>, vector<1x8x8xf32>
    %182 = vector.shape_cast %181 : vector<1x8x8xf32> to vector<8x8xf32>
    %cst_172 = arith.constant dense<0.000000e+00> : vector<8x512xf32>
    %183 = tpu.matmul %182, %180, %cst_172 {dimension_numbers = #tpu.dot_dimension_numbers<[1], [0], [0], [1], [0, 0, 1, 1], [], []>} : vector<8x8xf32>, vector<8x512xf32>, vector<8x512xf32> -> vector<8x512xf32>
    %184 = arith.addf %176, %183 : vector<8x512xf32>
    %c0_173 = arith.constant 0 : index
    %c127_174 = arith.constant 127 : index
    %185 = vector.load %arg14[%c0_173, %c127_174] : memref<16x2304xf32, #tpu.memory_space<vmem>>, vector<8x512xf32>
    %c3_175 = arith.constant 3 : index
    %c0_176 = arith.constant 0 : index
    %186 = vector.load %arg10[%c3_175, %c0_176] : memref<8x512xf32, #tpu.memory_space<vmem>>, vector<1x512xf32>
    %187 = vector.broadcast %186 : vector<1x512xf32> to vector<8x512xf32>
    %188 = arith.mulf %185, %187 : vector<8x512xf32>
    %c3_177 = arith.constant 3 : index
    %c0_178 = arith.constant 0 : index
    %c0_179 = arith.constant 0 : index
    %189 = vector.load %arg4[%c3_177, %c0_178, %c0_179] : memref<9x8x8xf32, #tpu.memory_space<vmem>>, vector<1x8x8xf32>
    %190 = vector.shape_cast %189 : vector<1x8x8xf32> to vector<8x8xf32>
    %cst_180 = arith.constant dense<0.000000e+00> : vector<8x512xf32>
    %191 = tpu.matmul %190, %188, %cst_180 {dimension_numbers = #tpu.dot_dimension_numbers<[1], [0], [0], [1], [0, 0, 1, 1], [], []>} : vector<8x8xf32>, vector<8x512xf32>, vector<8x512xf32> -> vector<8x512xf32>
    %192 = arith.addf %184, %191 : vector<8x512xf32>
    %c0_181 = arith.constant 0 : index
    %c128_182 = arith.constant 128 : index
    %193 = vector.load %arg14[%c0_181, %c128_182] : memref<16x2304xf32, #tpu.memory_space<vmem>>, vector<8x512xf32>
    %c4_183 = arith.constant 4 : index
    %c0_184 = arith.constant 0 : index
    %c0_185 = arith.constant 0 : index
    %194 = vector.load %arg4[%c4_183, %c0_184, %c0_185] : memref<9x8x8xf32, #tpu.memory_space<vmem>>, vector<1x8x8xf32>
    %195 = vector.shape_cast %194 : vector<1x8x8xf32> to vector<8x8xf32>
    %cst_186 = arith.constant dense<0.000000e+00> : vector<8x512xf32>
    %196 = tpu.matmul %195, %193, %cst_186 {dimension_numbers = #tpu.dot_dimension_numbers<[1], [0], [0], [1], [0, 0, 1, 1], [], []>} : vector<8x8xf32>, vector<8x512xf32>, vector<8x512xf32> -> vector<8x512xf32>
    %197 = arith.addf %192, %196 : vector<8x512xf32>
    %c0_187 = arith.constant 0 : index
    %c129_188 = arith.constant 129 : index
    %198 = vector.load %arg14[%c0_187, %c129_188] : memref<16x2304xf32, #tpu.memory_space<vmem>>, vector<8x512xf32>
    %c4_189 = arith.constant 4 : index
    %c0_190 = arith.constant 0 : index
    %199 = vector.load %arg10[%c4_189, %c0_190] : memref<8x512xf32, #tpu.memory_space<vmem>>, vector<1x512xf32>
    %200 = vector.broadcast %199 : vector<1x512xf32> to vector<8x512xf32>
    %201 = arith.mulf %198, %200 : vector<8x512xf32>
    %c5_191 = arith.constant 5 : index
    %c0_192 = arith.constant 0 : index
    %c0_193 = arith.constant 0 : index
    %202 = vector.load %arg4[%c5_191, %c0_192, %c0_193] : memref<9x8x8xf32, #tpu.memory_space<vmem>>, vector<1x8x8xf32>
    %203 = vector.shape_cast %202 : vector<1x8x8xf32> to vector<8x8xf32>
    %cst_194 = arith.constant dense<0.000000e+00> : vector<8x512xf32>
    %204 = tpu.matmul %203, %201, %cst_194 {dimension_numbers = #tpu.dot_dimension_numbers<[1], [0], [0], [1], [0, 0, 1, 1], [], []>} : vector<8x8xf32>, vector<8x512xf32>, vector<8x512xf32> -> vector<8x512xf32>
    %205 = arith.addf %197, %204 : vector<8x512xf32>
    %c0_195 = arith.constant 0 : index
    %c143_196 = arith.constant 143 : index
    %206 = vector.load %arg14[%c0_195, %c143_196] : memref<16x2304xf32, #tpu.memory_space<vmem>>, vector<8x512xf32>
    %c5_197 = arith.constant 5 : index
    %c0_198 = arith.constant 0 : index
    %207 = vector.load %arg10[%c5_197, %c0_198] : memref<8x512xf32, #tpu.memory_space<vmem>>, vector<1x512xf32>
    %208 = vector.broadcast %207 : vector<1x512xf32> to vector<8x512xf32>
    %209 = arith.mulf %206, %208 : vector<8x512xf32>
    %c6_199 = arith.constant 6 : index
    %c0_200 = arith.constant 0 : index
    %c0_201 = arith.constant 0 : index
    %210 = vector.load %arg4[%c6_199, %c0_200, %c0_201] : memref<9x8x8xf32, #tpu.memory_space<vmem>>, vector<1x8x8xf32>
    %211 = vector.shape_cast %210 : vector<1x8x8xf32> to vector<8x8xf32>
    %cst_202 = arith.constant dense<0.000000e+00> : vector<8x512xf32>
    %212 = tpu.matmul %211, %209, %cst_202 {dimension_numbers = #tpu.dot_dimension_numbers<[1], [0], [0], [1], [0, 0, 1, 1], [], []>} : vector<8x8xf32>, vector<8x512xf32>, vector<8x512xf32> -> vector<8x512xf32>
    %213 = arith.addf %205, %212 : vector<8x512xf32>
    %c0_203 = arith.constant 0 : index
    %c144_204 = arith.constant 144 : index
    %214 = vector.load %arg14[%c0_203, %c144_204] : memref<16x2304xf32, #tpu.memory_space<vmem>>, vector<8x512xf32>
    %c6_205 = arith.constant 6 : index
    %c0_206 = arith.constant 0 : index
    %215 = vector.load %arg10[%c6_205, %c0_206] : memref<8x512xf32, #tpu.memory_space<vmem>>, vector<1x512xf32>
    %216 = vector.broadcast %215 : vector<1x512xf32> to vector<8x512xf32>
    %217 = arith.mulf %214, %216 : vector<8x512xf32>
    %c7_207 = arith.constant 7 : index
    %c0_208 = arith.constant 0 : index
    %c0_209 = arith.constant 0 : index
    %218 = vector.load %arg4[%c7_207, %c0_208, %c0_209] : memref<9x8x8xf32, #tpu.memory_space<vmem>>, vector<1x8x8xf32>
    %219 = vector.shape_cast %218 : vector<1x8x8xf32> to vector<8x8xf32>
    %cst_210 = arith.constant dense<0.000000e+00> : vector<8x512xf32>
    %220 = tpu.matmul %219, %217, %cst_210 {dimension_numbers = #tpu.dot_dimension_numbers<[1], [0], [0], [1], [0, 0, 1, 1], [], []>} : vector<8x8xf32>, vector<8x512xf32>, vector<8x512xf32> -> vector<8x512xf32>
    %221 = arith.addf %213, %220 : vector<8x512xf32>
    %c0_211 = arith.constant 0 : index
    %c145_212 = arith.constant 145 : index
    %222 = vector.load %arg14[%c0_211, %c145_212] : memref<16x2304xf32, #tpu.memory_space<vmem>>, vector<8x512xf32>
    %c7_213 = arith.constant 7 : index
    %c0_214 = arith.constant 0 : index
    %223 = vector.load %arg10[%c7_213, %c0_214] : memref<8x512xf32, #tpu.memory_space<vmem>>, vector<1x512xf32>
    %224 = vector.broadcast %223 : vector<1x512xf32> to vector<8x512xf32>
    %225 = arith.mulf %222, %224 : vector<8x512xf32>
    %c8_215 = arith.constant 8 : index
    %c0_216 = arith.constant 0 : index
    %c0_217 = arith.constant 0 : index
    %226 = vector.load %arg4[%c8_215, %c0_216, %c0_217] : memref<9x8x8xf32, #tpu.memory_space<vmem>>, vector<1x8x8xf32>
    %227 = vector.shape_cast %226 : vector<1x8x8xf32> to vector<8x8xf32>
    %cst_218 = arith.constant dense<0.000000e+00> : vector<8x512xf32>
    %228 = tpu.matmul %227, %225, %cst_218 {dimension_numbers = #tpu.dot_dimension_numbers<[1], [0], [0], [1], [0, 0, 1, 1], [], []>} : vector<8x8xf32>, vector<8x512xf32>, vector<8x512xf32> -> vector<8x512xf32>
    %229 = arith.addf %221, %228 : vector<8x512xf32>
    %c0_219 = arith.constant 0 : index
    %c0_220 = arith.constant 0 : index
    %230 = vector.load %arg8[%c0_219, %c0_220] : memref<8x1xf32, #tpu.memory_space<vmem>>, vector<8x1xf32>
    %231 = vector.broadcast %230 : vector<8x1xf32> to vector<8x512xf32>
    %232 = arith.addf %229, %231 : vector<8x512xf32>
    %cst_221 = arith.constant 0.000000e+00 : f32
    %233 = vector.broadcast %cst_221 : f32 to vector<8x512xf32>
    %234 = arith.maximumf %232, %233 : vector<8x512xf32>
    %c0_222 = arith.constant 0 : index
    %c128_223 = arith.constant 128 : index
    %235 = vector.load %arg14[%c0_222, %c128_223] : memref<16x2304xf32, #tpu.memory_space<vmem>>, vector<8x512xf32>
    tpu.vector_store %arg14[%c0_222, %c128_223], %234 {strides = array<i32>} : memref<16x2304xf32, #tpu.memory_space<vmem>>, vector<8x512xf32>,
    %c0_224 = arith.constant 0 : index
    %c128_225 = arith.constant 128 : index
    %236 = vector.load %arg14[%c0_224, %c128_225] : memref<16x2304xf32, #tpu.memory_space<vmem>>, vector<8x256xf32>
    %c0_226 = arith.constant 0 : index
    %c0_227 = arith.constant 0 : index
    %237 = vector.load %arg12[%c0_226, %c0_227] : memref<256x1024xf32, #tpu.memory_space<vmem>>, vector<256x1024xf32>
    %cst_228 = arith.constant dense<0.000000e+00> : vector<8x1024xf32>
    %238 = tpu.matmul %236, %237, %cst_228 {dimension_numbers = #tpu.dot_dimension_numbers<[1], [0], [0], [1], [0, 0, 1, 1], [], []>} : vector<8x256xf32>, vector<256x1024xf32>, vector<8x1024xf32> -> vector<8x1024xf32>
    %c0_229 = arith.constant 0 : index
    %c384_230 = arith.constant 384 : index
    %239 = vector.load %arg14[%c0_229, %c384_230] : memref<16x2304xf32, #tpu.memory_space<vmem>>, vector<8x256xf32>
    %c0_231 = arith.constant 0 : index
    %c0_232 = arith.constant 0 : index
    %240 = vector.load %arg12[%c0_231, %c0_232] : memref<256x1024xf32, #tpu.memory_space<vmem>>, vector<256x1024xf32>
    %cst_233 = arith.constant dense<0.000000e+00> : vector<8x1024xf32>
    %241 = tpu.matmul %239, %240, %cst_233 {dimension_numbers = #tpu.dot_dimension_numbers<[1], [0], [0], [1], [0, 0, 1, 1], [], []>} : vector<8x256xf32>, vector<256x1024xf32>, vector<8x1024xf32> -> vector<8x1024xf32>
    %c0_234 = arith.constant 0 : index
    %c128_235 = arith.constant 128 : index
    %242 = vector.load %arg14[%c0_234, %c128_235] : memref<16x2304xf32, #tpu.memory_space<vmem>>, vector<8x1024xf32>
    tpu.vector_store %arg14[%c0_234, %c128_235], %238 {strides = array<i32>} : memref<16x2304xf32, #tpu.memory_space<vmem>>, vector<8x1024xf32>,
    %c0_236 = arith.constant 0 : index
    %c1152 = arith.constant 1152 : index
    %243 = vector.load %arg14[%c0_236, %c1152] : memref<16x2304xf32, #tpu.memory_space<vmem>>, vector<8x1024xf32>
    tpu.vector_store %arg14[%c0_236, %c1152], %241 {strides = array<i32>} : memref<16x2304xf32, #tpu.memory_space<vmem>>, vector<8x1024xf32>,
    %c0_237 = arith.constant 0 : index
    %c95 = arith.constant 95 : index
    %244 = vector.load %arg14[%c0_237, %c95] : memref<16x2304xf32, #tpu.memory_space<vmem>>, vector<8x2048xf32>
    %c0_238 = arith.constant 0 : index
    %c0_239 = arith.constant 0 : index
    %245 = vector.load %arg11[%c0_238, %c0_239] : memref<8x2048xf32, #tpu.memory_space<vmem>>, vector<1x2048xf32>
    %246 = vector.broadcast %245 : vector<1x2048xf32> to vector<8x2048xf32>
    %247 = arith.mulf %244, %246 : vector<8x2048xf32>
    %c0_240 = arith.constant 0 : index
    %c0_241 = arith.constant 0 : index
    %c0_242 = arith.constant 0 : index
    %248 = vector.load %arg5[%c0_240, %c0_241, %c0_242] : memref<9x16x8xf32, #tpu.memory_space<vmem>>, vector<1x16x8xf32>
    %249 = vector.shape_cast %248 : vector<1x16x8xf32> to vector<16x8xf32>
    %cst_243 = arith.constant dense<0.000000e+00> : vector<16x2048xf32>
    %250 = tpu.matmul %249, %247, %cst_243 {dimension_numbers = #tpu.dot_dimension_numbers<[1], [0], [0], [1], [0, 0, 1, 1], [], []>} : vector<16x8xf32>, vector<8x2048xf32>, vector<16x2048xf32> -> vector<16x2048xf32>
    %c0_244 = arith.constant 0 : index
    %c96 = arith.constant 96 : index
    %251 = vector.load %arg14[%c0_244, %c96] : memref<16x2304xf32, #tpu.memory_space<vmem>>, vector<8x2048xf32>
    %c1_245 = arith.constant 1 : index
    %c0_246 = arith.constant 0 : index
    %252 = vector.load %arg11[%c1_245, %c0_246] : memref<8x2048xf32, #tpu.memory_space<vmem>>, vector<1x2048xf32>
    %253 = vector.broadcast %252 : vector<1x2048xf32> to vector<8x2048xf32>
    %254 = arith.mulf %251, %253 : vector<8x2048xf32>
    %c1_247 = arith.constant 1 : index
    %c0_248 = arith.constant 0 : index
    %c0_249 = arith.constant 0 : index
    %255 = vector.load %arg5[%c1_247, %c0_248, %c0_249] : memref<9x16x8xf32, #tpu.memory_space<vmem>>, vector<1x16x8xf32>
    %256 = vector.shape_cast %255 : vector<1x16x8xf32> to vector<16x8xf32>
    %cst_250 = arith.constant dense<0.000000e+00> : vector<16x2048xf32>
    %257 = tpu.matmul %256, %254, %cst_250 {dimension_numbers = #tpu.dot_dimension_numbers<[1], [0], [0], [1], [0, 0, 1, 1], [], []>} : vector<16x8xf32>, vector<8x2048xf32>, vector<16x2048xf32> -> vector<16x2048xf32>
    %258 = arith.addf %250, %257 : vector<16x2048xf32>
    %c0_251 = arith.constant 0 : index
    %c97 = arith.constant 97 : index
    %259 = vector.load %arg14[%c0_251, %c97] : memref<16x2304xf32, #tpu.memory_space<vmem>>, vector<8x2048xf32>
    %c2_252 = arith.constant 2 : index
    %c0_253 = arith.constant 0 : index
    %260 = vector.load %arg11[%c2_252, %c0_253] : memref<8x2048xf32, #tpu.memory_space<vmem>>, vector<1x2048xf32>
    %261 = vector.broadcast %260 : vector<1x2048xf32> to vector<8x2048xf32>
    %262 = arith.mulf %259, %261 : vector<8x2048xf32>
    %c2_254 = arith.constant 2 : index
    %c0_255 = arith.constant 0 : index
    %c0_256 = arith.constant 0 : index
    %263 = vector.load %arg5[%c2_254, %c0_255, %c0_256] : memref<9x16x8xf32, #tpu.memory_space<vmem>>, vector<1x16x8xf32>
    %264 = vector.shape_cast %263 : vector<1x16x8xf32> to vector<16x8xf32>
    %cst_257 = arith.constant dense<0.000000e+00> : vector<16x2048xf32>
    %265 = tpu.matmul %264, %262, %cst_257 {dimension_numbers = #tpu.dot_dimension_numbers<[1], [0], [0], [1], [0, 0, 1, 1], [], []>} : vector<16x8xf32>, vector<8x2048xf32>, vector<16x2048xf32> -> vector<16x2048xf32>
    %266 = arith.addf %258, %265 : vector<16x2048xf32>
    %c0_258 = arith.constant 0 : index
    %c127_259 = arith.constant 127 : index
    %267 = vector.load %arg14[%c0_258, %c127_259] : memref<16x2304xf32, #tpu.memory_space<vmem>>, vector<8x2048xf32>
    %c3_260 = arith.constant 3 : index
    %c0_261 = arith.constant 0 : index
    %268 = vector.load %arg11[%c3_260, %c0_261] : memref<8x2048xf32, #tpu.memory_space<vmem>>, vector<1x2048xf32>
    %269 = vector.broadcast %268 : vector<1x2048xf32> to vector<8x2048xf32>
    %270 = arith.mulf %267, %269 : vector<8x2048xf32>
    %c3_262 = arith.constant 3 : index
    %c0_263 = arith.constant 0 : index
    %c0_264 = arith.constant 0 : index
    %271 = vector.load %arg5[%c3_262, %c0_263, %c0_264] : memref<9x16x8xf32, #tpu.memory_space<vmem>>, vector<1x16x8xf32>
    %272 = vector.shape_cast %271 : vector<1x16x8xf32> to vector<16x8xf32>
    %cst_265 = arith.constant dense<0.000000e+00> : vector<16x2048xf32>
    %273 = tpu.matmul %272, %270, %cst_265 {dimension_numbers = #tpu.dot_dimension_numbers<[1], [0], [0], [1], [0, 0, 1, 1], [], []>} : vector<16x8xf32>, vector<8x2048xf32>, vector<16x2048xf32> -> vector<16x2048xf32>
    %274 = arith.addf %266, %273 : vector<16x2048xf32>
    %c0_266 = arith.constant 0 : index
    %c128_267 = arith.constant 128 : index
    %275 = vector.load %arg14[%c0_266, %c128_267] : memref<16x2304xf32, #tpu.memory_space<vmem>>, vector<8x2048xf32>
    %c4_268 = arith.constant 4 : index
    %c0_269 = arith.constant 0 : index
    %c0_270 = arith.constant 0 : index
    %276 = vector.load %arg5[%c4_268, %c0_269, %c0_270] : memref<9x16x8xf32, #tpu.memory_space<vmem>>, vector<1x16x8xf32>
    %277 = vector.shape_cast %276 : vector<1x16x8xf32> to vector<16x8xf32>
    %cst_271 = arith.constant dense<0.000000e+00> : vector<16x2048xf32>
    %278 = tpu.matmul %277, %275, %cst_271 {dimension_numbers = #tpu.dot_dimension_numbers<[1], [0], [0], [1], [0, 0, 1, 1], [], []>} : vector<16x8xf32>, vector<8x2048xf32>, vector<16x2048xf32> -> vector<16x2048xf32>
    %279 = arith.addf %274, %278 : vector<16x2048xf32>
    %c0_272 = arith.constant 0 : index
    %c129_273 = arith.constant 129 : index
    %280 = vector.load %arg14[%c0_272, %c129_273] : memref<16x2304xf32, #tpu.memory_space<vmem>>, vector<8x2048xf32>
    %c4_274 = arith.constant 4 : index
    %c0_275 = arith.constant 0 : index
    %281 = vector.load %arg11[%c4_274, %c0_275] : memref<8x2048xf32, #tpu.memory_space<vmem>>, vector<1x2048xf32>
    %282 = vector.broadcast %281 : vector<1x2048xf32> to vector<8x2048xf32>
    %283 = arith.mulf %280, %282 : vector<8x2048xf32>
    %c5_276 = arith.constant 5 : index
    %c0_277 = arith.constant 0 : index
    %c0_278 = arith.constant 0 : index
    %284 = vector.load %arg5[%c5_276, %c0_277, %c0_278] : memref<9x16x8xf32, #tpu.memory_space<vmem>>, vector<1x16x8xf32>
    %285 = vector.shape_cast %284 : vector<1x16x8xf32> to vector<16x8xf32>
    %cst_279 = arith.constant dense<0.000000e+00> : vector<16x2048xf32>
    %286 = tpu.matmul %285, %283, %cst_279 {dimension_numbers = #tpu.dot_dimension_numbers<[1], [0], [0], [1], [0, 0, 1, 1], [], []>} : vector<16x8xf32>, vector<8x2048xf32>, vector<16x2048xf32> -> vector<16x2048xf32>
    %287 = arith.addf %279, %286 : vector<16x2048xf32>
    %c0_280 = arith.constant 0 : index
    %c159 = arith.constant 159 : index
    %288 = vector.load %arg14[%c0_280, %c159] : memref<16x2304xf32, #tpu.memory_space<vmem>>, vector<8x2048xf32>
    %c5_281 = arith.constant 5 : index
    %c0_282 = arith.constant 0 : index
    %289 = vector.load %arg11[%c5_281, %c0_282] : memref<8x2048xf32, #tpu.memory_space<vmem>>, vector<1x2048xf32>
    %290 = vector.broadcast %289 : vector<1x2048xf32> to vector<8x2048xf32>
    %291 = arith.mulf %288, %290 : vector<8x2048xf32>
    %c6_283 = arith.constant 6 : index
    %c0_284 = arith.constant 0 : index
    %c0_285 = arith.constant 0 : index
    %292 = vector.load %arg5[%c6_283, %c0_284, %c0_285] : memref<9x16x8xf32, #tpu.memory_space<vmem>>, vector<1x16x8xf32>
    %293 = vector.shape_cast %292 : vector<1x16x8xf32> to vector<16x8xf32>
    %cst_286 = arith.constant dense<0.000000e+00> : vector<16x2048xf32>
    %294 = tpu.matmul %293, %291, %cst_286 {dimension_numbers = #tpu.dot_dimension_numbers<[1], [0], [0], [1], [0, 0, 1, 1], [], []>} : vector<16x8xf32>, vector<8x2048xf32>, vector<16x2048xf32> -> vector<16x2048xf32>
    %295 = arith.addf %287, %294 : vector<16x2048xf32>
    %c0_287 = arith.constant 0 : index
    %c160 = arith.constant 160 : index
    %296 = vector.load %arg14[%c0_287, %c160] : memref<16x2304xf32, #tpu.memory_space<vmem>>, vector<8x2048xf32>
    %c6_288 = arith.constant 6 : index
    %c0_289 = arith.constant 0 : index
    %297 = vector.load %arg11[%c6_288, %c0_289] : memref<8x2048xf32, #tpu.memory_space<vmem>>, vector<1x2048xf32>
    %298 = vector.broadcast %297 : vector<1x2048xf32> to vector<8x2048xf32>
    %299 = arith.mulf %296, %298 : vector<8x2048xf32>
    %c7_290 = arith.constant 7 : index
    %c0_291 = arith.constant 0 : index
    %c0_292 = arith.constant 0 : index
    %300 = vector.load %arg5[%c7_290, %c0_291, %c0_292] : memref<9x16x8xf32, #tpu.memory_space<vmem>>, vector<1x16x8xf32>
    %301 = vector.shape_cast %300 : vector<1x16x8xf32> to vector<16x8xf32>
    %cst_293 = arith.constant dense<0.000000e+00> : vector<16x2048xf32>
    %302 = tpu.matmul %301, %299, %cst_293 {dimension_numbers = #tpu.dot_dimension_numbers<[1], [0], [0], [1], [0, 0, 1, 1], [], []>} : vector<16x8xf32>, vector<8x2048xf32>, vector<16x2048xf32> -> vector<16x2048xf32>
    %303 = arith.addf %295, %302 : vector<16x2048xf32>
    %c0_294 = arith.constant 0 : index
    %c161 = arith.constant 161 : index
    %304 = vector.load %arg14[%c0_294, %c161] : memref<16x2304xf32, #tpu.memory_space<vmem>>, vector<8x2048xf32>
    %c7_295 = arith.constant 7 : index
    %c0_296 = arith.constant 0 : index
    %305 = vector.load %arg11[%c7_295, %c0_296] : memref<8x2048xf32, #tpu.memory_space<vmem>>, vector<1x2048xf32>
    %306 = vector.broadcast %305 : vector<1x2048xf32> to vector<8x2048xf32>
    %307 = arith.mulf %304, %306 : vector<8x2048xf32>
    %c8_297 = arith.constant 8 : index
    %c0_298 = arith.constant 0 : index
    %c0_299 = arith.constant 0 : index
    %308 = vector.load %arg5[%c8_297, %c0_298, %c0_299] : memref<9x16x8xf32, #tpu.memory_space<vmem>>, vector<1x16x8xf32>
    %309 = vector.shape_cast %308 : vector<1x16x8xf32> to vector<16x8xf32>
    %cst_300 = arith.constant dense<0.000000e+00> : vector<16x2048xf32>
    %310 = tpu.matmul %309, %307, %cst_300 {dimension_numbers = #tpu.dot_dimension_numbers<[1], [0], [0], [1], [0, 0, 1, 1], [], []>} : vector<16x8xf32>, vector<8x2048xf32>, vector<16x2048xf32> -> vector<16x2048xf32>
    %311 = arith.addf %303, %310 : vector<16x2048xf32>
    %c0_301 = arith.constant 0 : index
    %c0_302 = arith.constant 0 : index
    %312 = vector.load %arg9[%c0_301, %c0_302] : memref<16x1xf32, #tpu.memory_space<vmem>>, vector<16x1xf32>
    %313 = vector.broadcast %312 : vector<16x1xf32> to vector<16x2048xf32>
    %314 = arith.addf %311, %313 : vector<16x2048xf32>
    %cst_303 = arith.constant 0.000000e+00 : f32
    %315 = vector.broadcast %cst_303 : f32 to vector<16x2048xf32>
    %316 = arith.maximumf %314, %315 : vector<16x2048xf32>
    %317 = vector.extract_strided_slice %316 {offsets = [0, 0], sizes = [16, 1024], strides = [1, 1]} : vector<16x2048xf32> to vector<16x1024xf32>
    %c0_304 = arith.constant 0 : index
    %c0_305 = arith.constant 0 : index
    %c0_306 = arith.constant 0 : index
    %318 = vector.load %arg13[%c0_304, %c0_305, %c0_306] : memref<2x16x1024xf32, #tpu.memory_space<vmem>>, vector<1x16x1024xf32>
    %319 = vector.shape_cast %318 : vector<1x16x1024xf32> to vector<16x1024xf32>
    %320 = vector.shape_cast %317 : vector<16x1024xf32> to vector<1x16x1024xf32>
    tpu.vector_store %arg13[%c0_304, %c0_305, %c0_306], %320 {strides = array<i32>} : memref<2x16x1024xf32, #tpu.memory_space<vmem>>, vector<1x16x1024xf32>,
    %321 = vector.extract_strided_slice %316 {offsets = [0, 1024], sizes = [16, 1024], strides = [1, 1]} : vector<16x2048xf32> to vector<16x1024xf32>
    %c1_307 = arith.constant 1 : index
    %c0_308 = arith.constant 0 : index
    %c0_309 = arith.constant 0 : index
    %322 = vector.load %arg13[%c1_307, %c0_308, %c0_309] : memref<2x16x1024xf32, #tpu.memory_space<vmem>>, vector<1x16x1024xf32>
    %323 = vector.shape_cast %322 : vector<1x16x1024xf32> to vector<16x1024xf32>
    %324 = vector.shape_cast %321 : vector<16x1024xf32> to vector<1x16x1024xf32>
    tpu.vector_store %arg13[%c1_307, %c0_308, %c0_309], %324 {strides = array<i32>} : memref<2x16x1024xf32, #tpu.memory_space<vmem>>, vector<1x16x1024xf32>,
    return
  }
  func.func @transform_0(%arg0: i32) -> (i32, i32, i32) {
    %c0_i32 = arith.constant 0 : i32
    %c0_i32_0 = arith.constant 0 : i32
    %c0_i32_1 = arith.constant 0 : i32
    return %arg0, %c0_i32, %c0_i32_0 : i32, i32, i32
  }
  func.func @transform_1(%arg0: i32) -> (i32, i32, i32) {
    %c0_i32 = arith.constant 0 : i32
    %c0_i32_0 = arith.constant 0 : i32
    %c0_i32_1 = arith.constant 0 : i32
    %c0_i32_2 = arith.constant 0 : i32
    return %c0_i32, %c0_i32_0, %c0_i32_1 : i32, i32, i32
  }
  func.func @transform_2(%arg0: i32) -> (i32, i32, i32) {
    %c0_i32 = arith.constant 0 : i32
    %c0_i32_0 = arith.constant 0 : i32
    %c0_i32_1 = arith.constant 0 : i32
    %c0_i32_2 = arith.constant 0 : i32
    return %c0_i32, %c0_i32_0, %c0_i32_1 : i32, i32, i32
  }
  func.func @transform_3(%arg0: i32) -> (i32, i32, i32) {
    %c0_i32 = arith.constant 0 : i32
    %c0_i32_0 = arith.constant 0 : i32
    %c0_i32_1 = arith.constant 0 : i32
    %c0_i32_2 = arith.constant 0 : i32
    return %c0_i32, %c0_i32_0, %c0_i32_1 : i32, i32, i32
  }
  func.func @transform_4(%arg0: i32) -> (i32, i32, i32) {
    %c0_i32 = arith.constant 0 : i32
    %c0_i32_0 = arith.constant 0 : i32
    %c0_i32_1 = arith.constant 0 : i32
    %c0_i32_2 = arith.constant 0 : i32
    return %c0_i32, %c0_i32_0, %c0_i32_1 : i32, i32, i32
  }
  func.func @transform_5(%arg0: i32) -> (i32, i32) {
    %c0_i32 = arith.constant 0 : i32
    %c0_i32_0 = arith.constant 0 : i32
    %c0_i32_1 = arith.constant 0 : i32
    return %c0_i32, %c0_i32_0 : i32, i32
  }
  func.func @transform_6(%arg0: i32) -> (i32, i32) {
    %c0_i32 = arith.constant 0 : i32
    %c0_i32_0 = arith.constant 0 : i32
    %c0_i32_1 = arith.constant 0 : i32
    return %c0_i32, %c0_i32_0 : i32, i32
  }
  func.func @transform_7(%arg0: i32) -> (i32, i32) {
    %c0_i32 = arith.constant 0 : i32
    %c0_i32_0 = arith.constant 0 : i32
    %c0_i32_1 = arith.constant 0 : i32
    return %c0_i32, %c0_i32_0 : i32, i32
  }
  func.func @transform_8(%arg0: i32) -> (i32, i32) {
    %c0_i32 = arith.constant 0 : i32
    %c0_i32_0 = arith.constant 0 : i32
    %c0_i32_1 = arith.constant 0 : i32
    return %c0_i32, %c0_i32_0 : i32, i32
  }
  func.func @transform_9(%arg0: i32) -> (i32, i32) {
    %c0_i32 = arith.constant 0 : i32
    %c0_i32_0 = arith.constant 0 : i32
    %c0_i32_1 = arith.constant 0 : i32
    return %c0_i32, %c0_i32_0 : i32, i32
  }
  func.func @transform_10(%arg0: i32) -> (i32, i32) {
    %c0_i32 = arith.constant 0 : i32
    %c0_i32_0 = arith.constant 0 : i32
    %c0_i32_1 = arith.constant 0 : i32
    return %c0_i32, %c0_i32_0 : i32, i32
  }
  func.func @transform_11(%arg0: i32) -> (i32, i32) {
    %c0_i32 = arith.constant 0 : i32
    %c0_i32_0 = arith.constant 0 : i32
    %c0_i32_1 = arith.constant 0 : i32
    return %c0_i32, %c0_i32_0 : i32, i32
  }
  func.func @transform_12(%arg0: i32) -> (i32, i32, i32) {
    %c0_i32 = arith.constant 0 : i32
    %c0_i32_0 = arith.constant 0 : i32
    %c0_i32_1 = arith.constant 0 : i32
    return %arg0, %c0_i32, %c0_i32_0 : i32, i32, i32
  }
}

</mosaic_0001>

<bundles_post_ra>
// kernel: forward.1
= control target key start
LH: loop header
LB: loop body
LE: loop exit
PB: predicated region body
PF: predicated region fallthrough
CT: control target
= control target key end

     0   :  { %17 = vsyncpa [#allocation4], 0  ;;  %s14939_s21 = smov [#allocation3]   ;;  %s20271_s0 = inlined_call_operand.vmem [shape: f32[2,4,256], index: 0, kind: input, shape index: {}]   ;;  %s20272_s1 = inlined_call_operand.vmem [shape: f32[9,8,8], index: 1, kind: input, shape index: {}]   ;;  %s20273_s2 = inlined_call_operand.vmem [shape: f32[9,8,8], index: 2, kind: input, shape index: {}]   ;;  %s20274_s3 = inlined_call_operand.vmem [shape: f32[9,8,8], index: 3, kind: input, shape index: {}]   ;;  %s20275_s4 = inlined_call_operand.vmem [shape: f32[9,16,8], index: 4, kind: input, shape index: {}]   ;;  %s20276_s5 = inlined_call_operand.vmem [shape: f32[8,1], index: 5, kind: input, shape index: {}]   ;;  %s20277_s6 = inlined_call_operand.vmem [shape: f32[8,1], index: 6, kind: input, shape index: {}]   ;;  %s20278_s7 = inlined_call_operand.vmem [shape: f32[8,1], index: 7, kind: input, shape index: {}]   ;;  %s20279_s8 = inlined_call_operand.vmem [shape: f32[16,1], index: 8, kind: input, shape index: {}]   ;;  %s20280_s9 = inlined_call_operand.vmem [shape: f32[8,512], index: 9, kind: input, shape index: {}]   ;;  %s20281_s10 = inlined_call_operand.vmem [shape: f32[8,2048], index: 10, kind: input, shape index: {}]   ;;  %s20282_s11 = inlined_call_operand.hbm [shape: f32[256,1024], index: 11, kind: input, shape index: {}]   ;;  %s20283_s12 = inlined_call_operand.vmem [shape: f32[2,16,1024], index: 12, kind: output, shape index: {}]  }
   0x1   :  { %s45_s22 = sshll.u32 %s14939_s21, 4  ;;  %s46_s22 = int_to_ptr.vmem [resolvable:$true] %s45_s22 }
   0x2   :  { %s14925_s23 = scalar_lea.vmem %s46_s22, 32768  ;;  %p14930_p1 = scmp.lt.s32.totalorder %s46_s22, %s46_s22 }
   0x3   :  { %p14926_p0 = scmp.ne.s32.totalorder %s46_s22, %s14925_s23  ;;  %p14931_p2 = scmp.lt.s32.totalorder %s14925_s23, %s14925_s23 }
   0x5   :  { %p14932_p3 = por %p14931_p2, %p14930_p1 }
   0x7   :  { %p14933_p4 = pnand %p14932_p3, %p14926_p0 }
   0x9   :  { %14936 = shalt.err (!%p14933_p4)
}
   0xa   :  { %s14940_s24 = smov 1024   ;;  %s14941_s25 = smov 64  }
   0xb   :  { %51 = dma.hbm_to_vmem [thread:$0]  %s20282_s11, 32768, %s46_s22, [#allocation4], %s14940_s24, %s14940_s24, %s14941_s25  }
   0xc   :  { %14937 = dma.done.wait [#allocation4], 32768  }
   0xd   :  { %14938 = vsyncadd [#allocation4], 4294934528  ;;  %v88_v0 = vlaneseq  ;;  %vm55_vm0 = vcmask 1048304   ;;  %v20284_v1 = vmov 0.0   ;;  %s14943_s13 = smov 112   ;;  %v64_v12 = vld [vmem:[%s20271_s0] sm:$0xff] }
   0xe   :  { %56 = vst.msk [vmem:[#allocation2] sm:$0xff] %vm55_vm0, %v20284_v1  ;;  %77 = vst [vmem:[#allocation2 + $0x8] sm:$0xf0] %v20284_v1  ;;  %262 = vmatprep.mubr.f32.mxu0 %v20284_v1  ;;  %333 = vmatprep.mubr.f32.mxu1 %v20284_v1  ;;  %v14469_v6 = vld [vmem:[%s20280_s9 + $0x1] ss:$8 sm:$0xf]  ;;  %v66_v16 = vcombine.high %v64_v12, %v64_v12 }
   0xf   :  { %78 = vst [vmem:[#allocation2 + $0x10] sm:$0xf0] %v20284_v1  ;;  %79 = vst [vmem:[#allocation2 + $0x18] sm:$0xf0] %v20284_v1  ;;  %v15033_v2 = vshrl.u32 %v88_v0, 7  ;;  %s14944_s16 = smov 111  }
  0x10   :  { %80 = vst [vmem:[#allocation2 + $0x20] sm:$0xf0] %v20284_v1  ;;  %v86_v7 = vld [vmem:[%s20280_s9] ss:$8 sm:$0xf]  ;;  %s14945_s23 = smov 113  }
  0x11   :  { %v15036_v3 = vsub.s32 2, %v15033_v2  ;;  %v15039_v4 = vsub.s32 0, %v15033_v2  ;;  %v15042_v5 = vsub.s32 1, %v15033_v2  ;;  %68 = vst [vmem:[#allocation2 + $0x8] sm:$0xf] %v64_v12  ;;  %v14468_v17 = vld [vmem:[%s20271_s0 + $0x8] sm:$0xff] }
  0x12   :  { %v14475_v15 = vld [vmem:[%s20280_s9 + $0x2] ss:$8 sm:$0xf]  ;;  %69 = vst [vmem:[#allocation2 + $0x10] sm:$0xf] %v66_v16  ;;  %v73_v23 = vcombine.high %v14468_v17, %v14468_v17  ;;  %s14946_s0 = smov 127  }
  0x13   :  { %20460 = vst [vmem:[#allocation6_spill] sm:$0xff] %v15036_v3  ;;  %v141_v8 = vrot.slane %v14469_v6, %v15036_v3  ;;  %v133_v9 = vrot.slane %v14469_v6, %v15039_v4  ;;  %v137_v10 = vrot.slane %v14469_v6, %v15042_v5  ;;  %v91_v11 = vrot.slane %v86_v7, %v15039_v4  ;;  %v14479_v20 = vld [vmem:[%s20280_s9 + $0x3] ss:$8 sm:$0xf]  ;;  %s14947_s26 = smov 1   ;;  %s14948_s28 = smov 15  }
  0x14   :  { %v95_v13 = vrot.slane %v86_v7, %v15042_v5  ;;  %v99_v14 = vrot.slane %v86_v7, %v15036_v3  ;;  %v515_v18 = vrot.slane %v14475_v15, %v15039_v4  ;;  %v519_v19 = vrot.slane %v14475_v15, %v15042_v5  ;;  %75 = vst [vmem:[#allocation2 + $0x18] sm:$0xf] %v14468_v17  ;;  %v14486_v26 = vld [vmem:[%s20280_s9 + $0x4] ss:$8 sm:$0xf]  ;;  %s14949_s14 = smov 16  }
  0x15   :  { %150 = vrot.lane.b32.xlu1 %v141_v8, %s14943_s13  ;;  %146 = vrot.lane.b32.xlu0 %v133_v9, %s14943_s13  ;;  %v523_v21 = vrot.slane %v14475_v15, %v15036_v3  ;;  %v731_v22 = vrot.slane %v14479_v20, %v15039_v4  ;;  %76 = vst [vmem:[#allocation2 + $0x20] sm:$0xf] %v73_v23  ;;  %v15092_v29 = vsub.s32 3, %v15033_v2  ;;  %v14490_v32 = vld [vmem:[%s20280_s9 + $0x5] ss:$8 sm:$0xf] }
  0x16   :  { %v735_v24 = vrot.slane %v14479_v20, %v15042_v5  ;;  %v739_v25 = vrot.slane %v14479_v20, %v15036_v3  ;;  %v1103_v27 = vrot.slane %v14486_v26, %v15039_v4  ;;  %v1107_v28 = vrot.slane %v14486_v26, %v15042_v5  ;;  %v14494_v37 = vld [vmem:[%s20280_s9 + $0x6] ss:$8 sm:$0xf]  ;;  %v14498_v42 = vld [vmem:[%s20280_s9 + $0x7] ss:$8 sm:$0xf] }
  0x17   :  { %v1111_v30 = vrot.slane %v14486_v26, %v15036_v3  ;;  %v145_v31 = vrot.slane %v14469_v6, %v15092_v29  ;;  %v1317_v33 = vrot.slane %v14490_v32, %v15039_v4  ;;  %v1321_v34 = vrot.slane %v14490_v32, %v15042_v5  ;;  %s14950_s18 = smov 17   ;;  %v15142_v51 = vld [vmem:[#allocation2] sm:$0xff]  ;;  %s14952_s19 = smov 96  }
  0x18   :  { %v1325_v35 = vrot.slane %v14490_v32, %v15036_v3  ;;  %v103_v36 = vrot.slane %v86_v7, %v15092_v29  ;;  %v1531_v38 = vrot.slane %v14494_v37, %v15039_v4  ;;  %v1535_v39 = vrot.slane %v14494_v37, %v15042_v5  ;;  %s14957_s30 = smov 31  }
  0x19   :  { %148 = vrot.lane.b32.xlu0 %v137_v10, %s14943_s13  ;;  %104 = vrot.lane.b32.xlu1 %v91_v11, %s14944_s16  ;;  %v1539_v40 = vrot.slane %v14494_v37, %v15036_v3  ;;  %v527_v41 = vrot.slane %v14475_v15, %v15092_v29  ;;  %vm58_vm1 = vcmask 146432   ;;  %v1745_v43 = vrot.slane %v14498_v42, %v15039_v4  ;;  %v15160_v10 = vld [vmem:[#allocation2 + $0x8] sm:$0xff] }
  0x1a   :  { %59 = vst.msk [vmem:[#allocation2 + $0x28] sm:$0xff] %vm58_vm1, %v20284_v1  ;;  %v1749_v44 = vrot.slane %v14498_v42, %v15042_v5  ;;  %v1753_v45 = vrot.slane %v14498_v42, %v15036_v3  ;;  %v743_v46 = vrot.slane %v14479_v20, %v15092_v29  ;;  %v1115_v47 = vrot.slane %v14486_v26, %v15092_v29 }
  0x1b   :  { %v1329_v48 = vrot.slane %v14490_v32, %v15092_v29  ;;  %v1543_v49 = vrot.slane %v14494_v37, %v15092_v29  ;;  %v1757_v50 = vrot.slane %v14498_v42, %v15092_v29  ;;  %vm154_vm2 = vcmask 916480  }
  0x1c   :  { %vm112_vm3 = vcmask 908288   ;;  %vm536_vm4 = vcmask 924672   ;;  %vm752_vm5 = vcmask 1039360   ;;  %vm783_vm6 = vcmask 7168  }
  0x1d   :  { %106 = vrot.lane.b32.xlu0 %v95_v13, %s14944_s16  ;;  %108 = vrot.lane.b32.xlu1 %v99_v14, %s14944_s16  ;;  %v15163_v13 = vld [vmem:[#allocation2 + $0x20] sm:$0xff]  ;;  %vm567_vm7 = vcmask 121856   ;;  %vm185_vm8 = vcmask 130048   ;;  %vm355_vm9 = vcmask 138240   ;;  %vm194_vm10 = vcmask 64512  }
  0x1e   :  { %vm6685_vm11 = vcmask 777216   ;;  %vm6843_vm12 = vcmask 785408   ;;  %vm8414_vm13 = vcmask 793600   ;;  %vm6947_vm14 = vcmask 261120  }
  0x1f   :  { %vm61_vm15 = vcmask 277504   ;;  %vm7653_vm0 = vcmask 269312   ;;  %vm8518_vm1 = vcmask 252928  }
  0x21   :  { %528 = vrot.lane.b32.xlu0 %v515_v18, %s14945_s23  ;;  %530 = vrot.lane.b32.xlu1 %v519_v19, %s14945_s23 }
  0x25   :  { %532 = vrot.lane.b32.xlu0 %v523_v21, %s14945_s23  ;;  %744 = vrot.lane.b32.xlu1 %v731_v22, %s14946_s0 }
  0x29   :  { %746 = vrot.lane.b32.xlu0 %v735_v24, %s14946_s0  ;;  %748 = vrot.lane.b32.xlu1 %v739_v25, %s14946_s0 }
  0x2d   :  { %1116 = vrot.lane.b32.xlu0 %v1103_v27, %s14947_s26  ;;  %1118 = vrot.lane.b32.xlu1 %v1107_v28, %s14947_s26 }
  0x31   :  { %1120 = vrot.lane.b32.xlu0 %v1111_v30, %s14947_s26  ;;  %152 = vrot.lane.b32.xlu1 %v145_v31, %s14943_s13 }
  0x35   :  { %1330 = vrot.lane.b32.xlu0 %v1317_v33, %s14948_s28  ;;  %1332 = vrot.lane.b32.xlu1 %v1321_v34, %s14948_s28 }
  0x39   :  { %1334 = vrot.lane.b32.xlu0 %v1325_v35, %s14948_s28  ;;  %110 = vrot.lane.b32.xlu1 %v103_v36, %s14944_s16  ;;  %v15202_v36 = vld [vmem:[#allocation2 + $0x10] sm:$0xff] }
  0x3d   :  { %1544 = vrot.lane.b32.xlu0 %v1531_v38, %s14949_s14  ;;  %1546 = vrot.lane.b32.xlu1 %v1535_v39, %s14949_s14 }
  0x41   :  { %1548 = vrot.lane.b32.xlu0 %v1539_v40, %s14949_s14  ;;  %534 = vrot.lane.b32.xlu1 %v527_v41, %s14945_s23 }
  0x45   :  { %1758 = vrot.lane.b32.xlu0 %v1745_v43, %s14950_s18  ;;  %1760 = vrot.lane.b32.xlu1 %v1749_v44, %s14950_s18 }
  0x49   :  { %1762 = vrot.lane.b32.xlu0 %v1753_v45, %s14950_s18  ;;  %750 = vrot.lane.b32.xlu1 %v743_v46, %s14946_s0 }
  0x4d   :  { %1122 = vrot.lane.b32.xlu0 %v1115_v47, %s14947_s26  ;;  %1336 = vrot.lane.b32.xlu1 %v1329_v48, %s14948_s28 }
  0x51   :  { %1550 = vrot.lane.b32.xlu0 %v1543_v49, %s14949_s14  ;;  %1764 = vrot.lane.b32.xlu1 %v1757_v50, %s14950_s18 }
  0x87   :  { %v15144_v52 = vpop.permute.xlu1 %150  ;;  %v147_v53 = vpop.permute.xlu0 %146 }
  0x88   :  { %v163_v54 = vmul.f32 %v147_v53, %v15142_v51 }
  0x8a   :  { %175 = vrot.lane.b32.xlu0 %v163_v54, %s14949_s14 }
  0x8b   :  { %v149_v55 = vpop.permute.xlu0 %148  ;;  %v105_v56 = vpop.permute.xlu1 %104 }
  0x8c   :  { %v121_v57 = vmul.f32 %v105_v56, %v15142_v51  ;;  %v155_v30 = vsel %vm154_vm2, %v147_v53, %v149_v55  ;;  %v156_v34 = vsel %vm154_vm2, %v149_v55, %v15144_v52  ;;  %v15233_v55 = vld [vmem:[#allocation2 + $0x18] sm:$0xff] }
  0x8d   :  { %v164_v33 = vmul.f32 %v15160_v10, %v155_v30  ;;  %v165_v38 = vmul.f32 %v156_v34, %v15202_v36 }
  0x8e   :  { %345 = vrot.lane.b32.xlu1 %v121_v57, %s14950_s18 }
  0x8f   :  { %v107_v58 = vpop.permute.xlu0 %106  ;;  %v15150_v59 = vpop.permute.xlu1 %108 }
  0x90   :  { %v114_v35 = vsel %vm112_vm3, %v107_v58, %v15150_v59  ;;  %v113_v39 = vsel %vm112_vm3, %v105_v56, %v107_v58 }
  0x91   :  { %v123_v37 = vmul.f32 %v114_v35, %v15202_v36  ;;  %v122_v42 = vmul.f32 %v15160_v10, %v113_v39 }
  0x93   :  { %v529_v60 = vpop.permute.xlu0 %528  ;;  %v531_v61 = vpop.permute.xlu1 %530 }
  0x94   :  { %v545_v62 = vmul.f32 %v529_v60, %v15142_v51  ;;  %v537_v40 = vsel %vm536_vm4, %v529_v60, %v531_v61 }
  0x95   :  { %v546_v41 = vmul.f32 %v15160_v10, %v537_v40  ;;  %v1953_v40 = vld [vmem:[%s20276_s5] sm:$0xff]  ;;  %s14953_s5 = smov 95  }
  0x96   :  { %557 = vrot.lane.b32.xlu0 %v545_v62, %s14948_s28 }
  0x97   :  { %v15154_v63 = vpop.permute.xlu0 %532  ;;  %v745_v0 = vpop.permute.xlu1 %744 }
  0x98   :  { %v761_v6 = vmul.f32 %v745_v0, %v15142_v51  ;;  %v538_v43 = vsel %vm536_vm4, %v531_v61, %v15154_v63 }
  0x99   :  { %v547_v46 = vmul.f32 %v538_v43, %v15202_v36 }
  0x9a   :  { %773 = vrot.lane.b32.xlu1 %v761_v6, %s14947_s26 }
  0x9b   :  { %v747_v7 = vpop.permute.xlu0 %746  ;;  %v15158_v8 = vpop.permute.xlu1 %748 }
  0x9c   :  { %v754_v44 = vsel %vm752_vm5, %v747_v7, %v15158_v8  ;;  %v753_v47 = vsel %vm752_vm5, %v745_v0, %v747_v7 }
  0x9d   :  { %v763_v45 = vmul.f32 %v754_v44, %v15202_v36  ;;  %v762_v50 = vmul.f32 %v15160_v10, %v753_v47 }
  0x9f   :  { %v1117_v9 = vpop.permute.xlu0 %1116  ;;  %v1119_v11 = vpop.permute.xlu1 %1118 }
  0xa0   :  { %v1132_v12 = vmul.f32 %v1117_v9, %v15160_v10  ;;  %v1124_v48 = vsel %vm783_vm6, %v1117_v9, %v1119_v11 }
  0xa1   :  { %v1133_v49 = vmul.f32 %v1124_v48, %v15202_v36  ;;  %v15322_v48 = vld [vmem:[%s20280_s9 + $0x2] ss:$8 sm:$0xf] }
  0xa2   :  { %1144 = vrot.lane.b32.xlu0 %v1132_v12, %s14946_s0 }
  0xa3   :  { %v15166_v14 = vpop.permute.xlu0 %1120  ;;  %v153_v15 = vpop.permute.xlu1 %152 }
  0xa4   :  { %v167_v16 = vmul.f32 %v153_v15, %v15163_v13  ;;  %v1125_v53 = vsel %vm783_vm6, %v1119_v11, %v15166_v14  ;;  %v157_v58 = vsel %vm154_vm2, %v15144_v52, %v153_v15 }
  0xa5   :  { %v1134_v57 = vmul.f32 %v1125_v53, %v15233_v55  ;;  %v166_v0 = vmul.f32 %v15233_v55, %v157_v58 }
  0xa6   :  { %183 = vrot.lane.b32.xlu0 %v167_v16, %s14949_s14 }
  0xa7   :  { %v15170_v17 = vpop.permute.xlu0 %1330  ;;  %v15172_v18 = vpop.permute.xlu1 %1332 }
  0xa8   :  { %v1346_v19 = vmul.f32 %v15170_v17, %v15160_v10  ;;  %v1338_v6 = vsel %vm567_vm7, %v15170_v17, %v15172_v18 }
  0xa9   :  { %v1347_v11 = vmul.f32 %v1338_v6, %v15202_v36 }
  0xaa   :  { %1358 = vrot.lane.b32.xlu1 %v1346_v19, %s14945_s23 }
  0xab   :  { %v15177_v20 = vpop.permute.xlu0 %1334  ;;  %v111_v21 = vpop.permute.xlu1 %110 }
  0xac   :  { %v125_v22 = vmul.f32 %v111_v21, %v15163_v13  ;;  %v1339_v54 = vsel %vm567_vm7, %v15172_v18, %v15177_v20  ;;  %v115_v60 = vsel %vm112_vm3, %v15150_v59, %v111_v21 }
  0xad   :  { %v1348_v56 = vmul.f32 %v1339_v54, %v15233_v55  ;;  %v124_v62 = vmul.f32 %v15233_v55, %v115_v60  ;;  %v2406_v54 = vrot.slane %v15322_v48, %v15036_v3  ;;  %v14519_v60 = vld [vmem:[%s20280_s9 + $0x4] ss:$8 sm:$0xf] }
  0xae   :  { %353 = vrot.lane.b32.xlu1 %v125_v22, %s14950_s18  ;;  %v2988_v6 = vrot.slane %v14519_v60, %v15036_v3 }
  0xaf   :  { %v1545_v23 = vpop.permute.xlu0 %1544  ;;  %v15181_v24 = vpop.permute.xlu1 %1546 }
  0xb0   :  { %v1560_v25 = vmul.f32 %v1545_v23, %v15160_v10  ;;  %v1552_v52 = vsel %vm185_vm8, %v1545_v23, %v15181_v24 }
  0xb1   :  { %v1561_v9 = vmul.f32 %v1552_v52, %v15202_v36  ;;  %v15360_v52 = vld [vmem:[%s20280_s9 + $0x5] ss:$8 sm:$0xf] }
  0xb2   :  { %1572 = vrot.lane.b32.xlu0 %v1560_v25, %s14943_s13 }
  0xb3   :  { %v15185_v26 = vpop.permute.xlu0 %1548  ;;  %v15187_v27 = vpop.permute.xlu1 %534 }
  0xb4   :  { %v549_v28 = vmul.f32 %v15187_v27, %v15163_v13  ;;  %v1553_v12 = vsel %vm185_vm8, %v15181_v24, %v15185_v26  ;;  %v539_v18 = vsel %vm536_vm4, %v15154_v63, %v15187_v27 }
  0xb5   :  { %v1562_v17 = vmul.f32 %v1553_v12, %v15233_v55  ;;  %v548_v23 = vmul.f32 %v15233_v55, %v539_v18  ;;  %v3201_v12 = vrot.slane %v15360_v52, %v15036_v3 }
  0xb6   :  { %565 = vrot.lane.b32.xlu0 %v549_v28, %s14948_s28 }
  0xb7   :  { %v15193_v31 = vpop.permute.xlu0 %1758  ;;  %v1761_v61 = vpop.permute.xlu1 %1760 }
  0xb8   :  { %v1774_v32 = vmul.f32 %v15193_v31, %v15160_v10  ;;  %v1766_v24 = vsel %vm355_vm9, %v15193_v31, %v1761_v61 }
  0xba   :  { %177 = vrot.lane.b32.xlu0 %v164_v33, %s14949_s14  ;;  %1786 = vrot.lane.b32.xlu1 %v1774_v32, %s14944_s16 }
  0xbb   :  { %v1763_v7 = vpop.permute.xlu0 %1762  ;;  %v751_v15 = vpop.permute.xlu1 %750 }
  0xbc   :  { %v1767_v59 = vsel %vm355_vm9, %v1761_v61, %v1763_v7  ;;  %v755_v19 = vsel %vm752_vm5, %v15158_v8, %v751_v15  ;;  %v1775_v8 = vmul.f32 %v1766_v24, %v15202_v36  ;;  %v765_v30 = vmul.f32 %v751_v15, %v15163_v13  ;;  %v14527_v15 = vld [vmem:[%s20280_s9 + $0x6] ss:$8 sm:$0xf]  ;;  %v14531_v24 = vld [vmem:[%s20280_s9 + $0x7] ss:$8 sm:$0xf] }
  0xbd   :  { %v1776_v16 = vmul.f32 %v1767_v59, %v15233_v55  ;;  %v764_v22 = vmul.f32 %v15233_v55, %v755_v19  ;;  %v2402_v61 = vrot.slane %v15322_v48, %v15042_v5  ;;  %v3193_v59 = vrot.slane %v15360_v52, %v15039_v4 }
  0xbe   :  { %349 = vrot.lane.b32.xlu0 %v123_v37, %s14950_s18  ;;  %179 = vrot.lane.b32.xlu1 %v165_v38, %s14949_s14  ;;  %v3406_v18 = vrot.slane %v14527_v15, %v15039_v4 }
  0xbf   :  { %v1123_v21 = vpop.permute.xlu0 %1122  ;;  %v1337_v28 = vpop.permute.xlu1 %1336 }
  0xc0   :  { %v1126_v25 = vsel %vm783_vm6, %v15166_v14, %v1123_v21  ;;  %v1340_v27 = vsel %vm567_vm7, %v15177_v20, %v1337_v28  ;;  %v15286_v14 = vld [vmem:[#allocation2 + $0x28] sm:$0xff] }
  0xc1   :  { %v1135_v63 = vmul.f32 %v1126_v25, %v15163_v13  ;;  %v1349_v31 = vmul.f32 %v1340_v27, %v15163_v13  ;;  %v1136_v34 = vmul.f32 %v1123_v21, %v15286_v14  ;;  %v1350_v38 = vmul.f32 %v1337_v28, %v15286_v14 }
  0xc2   :  { %559 = vrot.lane.b32.xlu0 %v546_v41, %s14948_s28  ;;  %347 = vrot.lane.b32.xlu1 %v122_v42, %s14950_s18  ;;  %v14951_v41 = vmov 0   ;;  %v14502_v42 = vld [vmem:[%s20280_s9 + $0x1] ss:$8 sm:$0xf] }
  0xc3   :  { %v1551_v32 = vpop.permute.xlu0 %1550  ;;  %v1765_v35 = vpop.permute.xlu1 %1764  ;;  %14793 = vset.pattern.permute.xlu0 %v14951_v41  ;;  %v2029_v44 = vrot.slane %v14502_v42, %v15036_v3  ;;  %14794 = vset.pattern.permute.xlu1 %v14951_v41 }
  0xc4   :  { %v1554_v33 = vsel %vm185_vm8, %v15185_v26, %v1551_v32  ;;  %v1768_v37 = vsel %vm355_vm9, %v1763_v7, %v1765_v35  ;;  %v1564_v26 = vmul.f32 %v1551_v32, %v15286_v14  ;;  %v1778_v43 = vmul.f32 %v1765_v35, %v15286_v14 }
  0xc5   :  { %v1563_v20 = vmul.f32 %v1554_v33, %v15163_v13  ;;  %v1777_v39 = vmul.f32 %v1768_v37, %v15163_v13  ;;  %v3627_v32 = vrot.slane %v14531_v24, %v15036_v3  ;;  %v2992_v35 = vrot.slane %v14519_v60, %v15092_v29 }
  0xc6   :  { %777 = vrot.lane.b32.xlu0 %v763_v45, %s14947_s26  ;;  %561 = vrot.lane.b32.xlu1 %v547_v46, %s14948_s28  ;;  %v1976_v45 = vld [vmem:[%s20280_s9] ss:$8 sm:$0xf]  ;;  %v2021_v46 = vrot.slane %v14502_v42, %v15039_v4  ;;  %v3623_v37 = vrot.slane %v14531_v24, %v15042_v5 }
  0xc7   :  { %v1985_v47 = vrot.slane %v1976_v45, %v15042_v5  ;;  %v1981_v53 = vrot.slane %v1976_v45, %v15039_v4 }
  0xca   :  { %1146 = vrot.lane.b32.xlu0 %v1133_v49, %s14946_s0  ;;  %775 = vrot.lane.b32.xlu1 %v762_v50, %s14947_s26  ;;  %v2025_v49 = vrot.slane %v14502_v42, %v15042_v5  ;;  %v2398_v50 = vrot.slane %v15322_v48, %v15039_v4 }
  0xce   :  { %1362 = vrot.lane.b32.xlu0 %v1348_v56, %s14945_s23  ;;  %1148 = vrot.lane.b32.xlu1 %v1134_v57, %s14946_s0  ;;  %v15337_v56 = vld [vmem:[%s20280_s9 + $0x3] ss:$8 sm:$0xf]  ;;  %v1989_v57 = vrot.slane %v1976_v45, %v15036_v3 }
  0xcf   :  { %v2615_v58 = vrot.slane %v15337_v56, %v15042_v5  ;;  %v2619_v7 = vrot.slane %v15337_v56, %v15036_v3 }
  0xd2   :  { %351 = vrot.lane.b32.xlu0 %v124_v62, %s14950_s18  ;;  %181 = vrot.lane.b32.xlu1 %v166_v0, %s14949_s14  ;;  %v2980_v62 = vrot.slane %v14519_v60, %v15039_v4  ;;  %v2611_v0 = vrot.slane %v15337_v56, %v15039_v4 }
  0xd6   :  { %1574 = vrot.lane.b32.xlu0 %v1561_v9, %s14943_s13  ;;  %1360 = vrot.lane.b32.xlu1 %v1347_v11, %s14945_s23  ;;  %v2984_v11 = vrot.slane %v14519_v60, %v15042_v5  ;;  %v15458_v60 = vld [vmem:[%s20272_s1 + $0x10] sm:$0xff] }
  0xda   :  { %1790 = vrot.lane.b32.xlu0 %v1776_v16, %s14944_s16  ;;  %1576 = vrot.lane.b32.xlu1 %v1562_v17, %s14943_s13  ;;  %v2033_v17 = vrot.slane %v14502_v42, %v15092_v29 }
  0xde   :  { %779 = vrot.lane.b32.xlu0 %v764_v22, %s14947_s26  ;;  %563 = vrot.lane.b32.xlu1 %v548_v23, %s14948_s28  ;;  %v3197_v22 = vrot.slane %v15360_v52, %v15042_v5  ;;  %v3414_v23 = vrot.slane %v14527_v15, %v15036_v3 }
  0xe2   :  { %1150 = vrot.lane.b32.xlu0 %v1135_v63, %s14946_s0  ;;  %1788 = vrot.lane.b32.xlu1 %v1775_v8, %s14944_s16  ;;  %v1993_v63 = vrot.slane %v1976_v45, %v15092_v29  ;;  %v3619_v8 = vrot.slane %v14531_v24, %v15039_v4 }
  0xe6   :  { %1364 = vrot.lane.b32.xlu0 %v1349_v31, %s14945_s23  ;;  %781 = vrot.lane.b32.xlu1 %v765_v30, %s14947_s26  ;;  %v3410_v30 = vrot.slane %v14527_v15, %v15042_v5 }
  0xea   :  { %1578 = vrot.lane.b32.xlu0 %v1563_v20, %s14943_s13  ;;  %1152 = vrot.lane.b32.xlu1 %v1136_v34, %s14946_s0  ;;  %v2410_v34 = vrot.slane %v15322_v48, %v15092_v29 }
  0xee   :  { %1792 = vrot.lane.b32.xlu0 %v1777_v39, %s14944_s16  ;;  %1366 = vrot.lane.b32.xlu1 %v1350_v38, %s14945_s23  ;;  %v3418_v38 = vrot.slane %v14527_v15, %v15092_v29 }
  0xf2   :  { %1580 = vrot.lane.b32.xlu1 %v1564_v26, %s14943_s13  ;;  %1956 = vperm.xlu0 %14793, %v1953_v40   ;;  %v2623_v40 = vrot.slane %v15337_v56, %v15092_v29 }
  0xf6   :  { %1794 = vrot.lane.b32.xlu1 %v1778_v43, %s14944_s16  ;;  %2038 = vrot.lane.b32.xlu0 %v2029_v44, %s14943_s13  ;;  %v14470_v44 = vld [vmem:[%s20272_s1 + $0x8] sm:$0xff] }
  0xfa   :  { %2034 = vrot.lane.b32.xlu1 %v2021_v46, %s14943_s13  ;;  %1996 = vrot.lane.b32.xlu0 %v1985_v47, %s14944_s16  ;;  %v3205_v46 = vrot.slane %v15360_v52, %v15092_v29 }
  0xfc   :  { %v176_v9 = vpop.permute.xlu0 %175 }
  0xfe   :  { %2036 = vrot.lane.b32.xlu1 %v2025_v49, %s14943_s13  ;;  %2411 = vrot.lane.b32.xlu0 %v2398_v50, %s14945_s23 }
 0x100   :  { %v346_v19 = vpop.permute.xlu1 %345 }
 0x102   :  { %1994 = vrot.lane.b32.xlu1 %v1981_v53, %s14944_s16  ;;  %2415 = vrot.lane.b32.xlu0 %v2406_v54, %s14945_s23  ;;  %v126_v53 = vld [vmem:[%s20272_s1] sm:$0xff]  ;;  %v3631_v54 = vrot.slane %v14531_v24, %v15092_v29 }
 0x106   :  { %1998 = vrot.lane.b32.xlu1 %v1989_v57, %s14944_s16  ;;  %2626 = vrot.lane.b32.xlu0 %v2615_v58, %s14946_s0 }
 0x108   :  { %v15376_v16 = vpop.permute.xlu0 %557 }
 0x10a   :  { %2413 = vrot.lane.b32.xlu1 %v2402_v61, %s14945_s23  ;;  %2993 = vrot.lane.b32.xlu0 %v2980_v62, %s14947_s26 }
 0x10c   :  { %v15392_v25 = vpop.permute.xlu1 %773 }
 0x10e   :  { %2624 = vrot.lane.b32.xlu1 %v2611_v0, %s14946_s0  ;;  %2997 = vrot.lane.b32.xlu0 %v2988_v6, %s14947_s26 }
 0x112   :  { %2628 = vrot.lane.b32.xlu1 %v2619_v7, %s14946_s0  ;;  %3206 = vrot.lane.b32.xlu0 %v3193_v59, %s14948_s28  ;;  %v15473_v7 = vld [vmem:[%s20272_s1 + $0x18] sm:$0xff] }
 0x114   :  { %v15382_v21 = vpop.permute.xlu0 %1144 }
 0x116   :  { %2995 = vrot.lane.b32.xlu1 %v2984_v11, %s14947_s26  ;;  %3210 = vrot.lane.b32.xlu0 %v3201_v12, %s14948_s28  ;;  %v15489_v12 = vld [vmem:[%s20272_s1 + $0x20] sm:$0xff] }
 0x118   :  { %v15394_v28 = vpop.permute.xlu0 %183 }
 0x11a   :  { %2040 = vrot.lane.b32.xlu1 %v2033_v17, %s14943_s13  ;;  %3419 = vrot.lane.b32.xlu0 %v3406_v18, %s14949_s14  ;;  %v15502_v18 = vld [vmem:[%s20272_s1 + $0x28] sm:$0xff] }
 0x11c   :  { %v15400_v27 = vpop.permute.xlu1 %1358 }
 0x11e   :  { %3208 = vrot.lane.b32.xlu1 %v3197_v22, %s14948_s28  ;;  %3423 = vrot.lane.b32.xlu0 %v3414_v23, %s14949_s14 }
 0x120   :  { %v15408_v33 = vpop.permute.xlu1 %353 }
 0x122   :  { %2000 = vrot.lane.b32.xlu1 %v1993_v63, %s14944_s16  ;;  %3632 = vrot.lane.b32.xlu0 %v3619_v8, %s14950_s18 }
 0x124   :  { %v15406_v31 = vpop.permute.xlu0 %1572 }
 0x126   :  { %3421 = vrot.lane.b32.xlu1 %v3410_v30, %s14949_s14  ;;  %3636 = vrot.lane.b32.xlu0 %v3627_v32, %s14950_s18  ;;  %v14495_v32 = vld [vmem:[%s20272_s1 + $0x38] sm:$0xff] }
 0x128   :  { %v15415_v20 = vpop.permute.xlu0 %565 }
 0x12a   :  { %2417 = vrot.lane.b32.xlu1 %v2410_v34, %s14945_s23  ;;  %2999 = vrot.lane.b32.xlu0 %v2992_v35, %s14947_s26 }
 0x12c   :  { %v178_v39 = vpop.permute.xlu0 %177  ;;  %v15421_v26 = vpop.permute.xlu1 %1786 }
 0x12d   :  { %v186_v45 = vsel %vm185_vm8, %v176_v9, %v178_v39 }
 0x12e   :  { %3634 = vrot.lane.b32.xlu1 %v3623_v37, %s14950_s18  ;;  %3425 = vrot.lane.b32.xlu0 %v3418_v38, %s14949_s14 }
 0x130   :  { %v15427_v41 = vpop.permute.xlu0 %349  ;;  %v180_v42 = vpop.permute.xlu1 %179 }
 0x131   :  { %v187_v43 = vsel %vm185_vm8, %v178_v39, %v180_v42 }
 0x132   :  { %228 = vmatprep.subr.mxu0 %v187_v43  ;;  %2630 = vrot.lane.b32.xlu1 %v2623_v40, %s14946_s0 }
 0x133   :  { %229 = vmatpush1.msra.mxu0 %v186_v45 }
 0x134   :  { %v560_v47 = vpop.permute.xlu0 %559  ;;  %14471 = vmatmul.mubr.msk.f32.vlgmr.msra.gmra.mxu0 %vm194_vm10, %v14470_v44  ;;  %v348_v48 = vpop.permute.xlu1 %347 }
 0x135   :  { %v357_v49 = vsel %vm355_vm9, %v348_v48, %v15427_v41  ;;  %v356_v50 = vsel %vm355_vm9, %v346_v19, %v348_v48  ;;  %431 = vmatprep.mubr.f32.mxu0 %v20284_v1  ;;  %v568_v61 = vsel %vm567_vm7, %v15376_v16, %v560_v47 }
 0x136   :  { %397 = vmatprep.subr.mxu0 %v357_v49  ;;  %3212 = vrot.lane.b32.xlu1 %v3205_v46, %s14948_s28 }
 0x137   :  { %398 = vmatpush1.msra.mxu0 %v356_v50 }
 0x138   :  { %v15447_v56 = vpop.permute.xlu0 %777  ;;  %14473 = vmatmul.mubr.msk.f32.vlgmr.msra.gmra.mxu0 %vm194_vm10, %v126_v53  ;;  %v15450_v57 = vpop.permute.xlu1 %561 }
 0x139   :  { %v569_v58 = vsel %vm567_vm7, %v560_v47, %v15450_v57  ;;  %643 = vmatprep.mubr.f32.mxu0 %v20284_v1 }
 0x13a   :  { %609 = vmatprep.subr.mxu0 %v569_v58  ;;  %3638 = vrot.lane.b32.xlu1 %v3631_v54, %s14950_s18 }
 0x13b   :  { %610 = vmatpush1.msra.mxu0 %v568_v61 }
 0x13c   :  { %v1147_v62 = vpop.permute.xlu0 %1146  ;;  %14477 = vmatmul.mubr.msk.f32.vlgmr.msra.gmra.mxu0 %vm194_vm10, %v15458_v60  ;;  %v776_v0 = vpop.permute.xlu1 %775 }
 0x13d   :  { %v785_v6 = vsel %vm783_vm6, %v776_v0, %v15447_v56  ;;  %v784_v52 = vsel %vm783_vm6, %v15392_v25, %v776_v0  ;;  %859 = vmatprep.mubr.f32.mxu0 %v20284_v1 }
 0x13e   :  { %825 = vmatprep.subr.mxu0 %v785_v6 }
 0x13f   :  { %826 = vmatpush1.msra.mxu0 %v784_v52 }
 0x140   :  { %v15475_v59 = vpop.permute.xlu0 %1362  ;;  %14481 = vmatmul.mubr.msk.f32.vlgmr.msra.gmra.mxu0 %vm194_vm10, %v15473_v7  ;;  %976 = vmatprep.subr.mxu0 %v15202_v36  ;;  %v15480_v9 = vpop.permute.xlu1 %1148  ;;  %v1154_v36 = vsel %vm752_vm5, %v15382_v21, %v1147_v62 }
 0x141   :  { %977 = vmatpush1.msra.mxu0 %v15160_v10  ;;  %v1155_v11 = vsel %vm752_vm5, %v1147_v62, %v15480_v9  ;;  %1010 = vmatprep.mubr.f32.mxu0 %v20284_v1 }
 0x142   :  { %1195 = vmatprep.subr.mxu0 %v1155_v11 }
 0x144   :  { %v352_v15 = vpop.permute.xlu0 %351  ;;  %14484 = vmatmul.mubr.msk.f32.vlgmr.msra.gmra.mxu0 %vm194_vm10, %v15489_v12  ;;  %v182_v16 = vpop.permute.xlu1 %181 }
 0x145   :  { %1196 = vmatpush1.msra.mxu0 %v1154_v36  ;;  %v189_v10 = vsel %vm185_vm8, %v182_v16, %v15394_v28  ;;  %v188_v17 = vsel %vm185_vm8, %v180_v42, %v182_v16  ;;  %1229 = vmatprep.mubr.f32.mxu0 %v20284_v1  ;;  %v359_v19 = vsel %vm355_vm9, %v352_v15, %v15408_v33  ;;  %v14491_v28 = vld [vmem:[%s20272_s1 + $0x30] sm:$0xff] }
 0x146   :  { %299 = vmatprep.subr.mxu1 %v189_v10  ;;  %v358_v23 = vsel %vm355_vm9, %v15427_v41, %v352_v15 }
 0x147   :  { %300 = vmatpush1.msra.mxu1 %v188_v17 }
 0x148   :  { %v1575_v21 = vpop.permute.xlu0 %1574  ;;  %468 = vmatprep.subr.mxu1 %v359_v19  ;;  %v1361_v22 = vpop.permute.xlu1 %1360  ;;  %14472 = vmatmul.mubr.msk.f32.vlgmr.msra.gmra.mxu1 %vm194_vm10, %v14470_v44 }
 0x149   :  { %469 = vmatpush1.msra.mxu1 %v358_v23  ;;  %14488 = vmatmul.mubr.msk.f32.vlgmr.msra.gmra.mxu0 %vm194_vm10, %v15502_v18  ;;  %v1369_v24 = vsel %vm536_vm4, %v1361_v22, %v15475_v59  ;;  %v1368_v25 = vsel %vm536_vm4, %v15400_v27, %v1361_v22  ;;  %v1582_v27 = vsel %vm154_vm2, %v15406_v31, %v1575_v21 }
 0x14a   :  { %1409 = vmatprep.subr.mxu0 %v1369_v24  ;;  %502 = vmatprep.mubr.f32.mxu1 %v20284_v1 }
 0x14b   :  { %1410 = vmatpush1.msra.mxu0 %v1368_v25  ;;  %1443 = vmatprep.mubr.f32.mxu0 %v20284_v1 }
 0x14c   :  { %v15520_v63 = vpop.permute.xlu0 %1790  ;;  %v1577_v8 = vpop.permute.xlu1 %1576  ;;  %14474 = vmatmul.mubr.msk.f32.vlgmr.msra.gmra.mxu1 %vm194_vm10, %v126_v53 }
 0x14d   :  { %14492 = vmatmul.mubr.msk.f32.vlgmr.msra.gmra.mxu0 %vm194_vm10, %v14491_v28  ;;  %v1583_v30 = vsel %vm154_vm2, %v1575_v21, %v1577_v8  ;;  %714 = vmatprep.mubr.f32.mxu1 %v20284_v1 }
 0x14e   :  { %1623 = vmatprep.subr.mxu0 %v1583_v30  ;;  %1657 = vmatprep.mubr.f32.mxu0 %v20284_v1 }
 0x14f   :  { %1624 = vmatpush1.msra.mxu0 %v1582_v27 }
 0x150   :  { %v780_v33 = vpop.permute.xlu0 %779  ;;  %v564_v34 = vpop.permute.xlu1 %563 }
 0x151   :  { %v571_v35 = vsel %vm567_vm7, %v564_v34, %v15415_v20  ;;  %14496 = vmatmul.mubr.msk.f32.vlgmr.msra.gmra.mxu0 %vm194_vm10, %v14495_v32  ;;  %v570_v37 = vsel %vm567_vm7, %v15450_v57, %v564_v34  ;;  %v14499_v20 = vld [vmem:[%s20272_s1 + $0x40] sm:$0xff] }
 0x152   :  { %680 = vmatprep.subr.mxu1 %v571_v35  ;;  %1871 = vmatprep.mubr.f32.mxu0 %v20284_v1 }
 0x153   :  { %681 = vmatpush1.msra.mxu1 %v570_v37 }
 0x154   :  { %14478 = vmatmul.mubr.msk.f32.vlgmr.msra.gmra.mxu1 %vm194_vm10, %v15458_v60  ;;  %v1789_v31 = vpop.permute.xlu1 %1788  ;;  %v1151_v40 = vpop.permute.xlu0 %1150 }
 0x155   :  { %v1797_v38 = vsel %vm112_vm3, %v1789_v31, %v15520_v63  ;;  %v1796_v39 = vsel %vm112_vm3, %v15421_v26, %v1789_v31  ;;  %930 = vmatprep.mubr.f32.mxu1 %v20284_v1  ;;  %v786_v26 = vsel %vm783_vm6, %v15447_v56, %v780_v33  ;;  %v1156_v46 = vsel %vm752_vm5, %v15480_v9, %v1151_v40 }
 0x156   :  { %1837 = vmatprep.subr.mxu0 %v1797_v38 }
 0x157   :  { %1838 = vmatpush1.msra.mxu0 %v1796_v39 }
 0x158   :  { %14500 = vmatmul.mubr.msk.f32.vlgmr.msra.gmra.mxu0 %vm194_vm10, %v14499_v20  ;;  %v782_v41 = vpop.permute.xlu1 %781  ;;  %v1365_v43 = vpop.permute.xlu0 %1364 }
 0x159   :  { %v787_v42 = vsel %vm783_vm6, %v780_v33, %v782_v41  ;;  %2147 = vmatprep.mubr.f32.mxu0 %v20284_v1 }
 0x15a   :  { %896 = vmatprep.subr.mxu1 %v787_v42 }
 0x15b   :  { %897 = vmatpush1.msra.mxu1 %v786_v26 }
 0x15c   :  { %14482 = vmatmul.mubr.msk.f32.vlgmr.msra.gmra.mxu1 %vm194_vm10, %v15473_v7  ;;  %1047 = vmatprep.subr.mxu1 %v15163_v13  ;;  %v1153_v44 = vpop.permute.xlu1 %1152  ;;  %v1579_v13 = vpop.permute.xlu0 %1578 }
 0x15d   :  { %1048 = vmatpush1.msra.mxu1 %v15233_v55  ;;  %v1157_v45 = vsel %vm752_vm5, %v1151_v40, %v1153_v44  ;;  %1081 = vmatprep.mubr.f32.mxu1 %v20284_v1  ;;  %v1370_v55 = vsel %vm536_vm4, %v15475_v59, %v1365_v43  ;;  %v1584_v54 = vsel %vm154_vm2, %v1577_v8, %v1579_v13 }
 0x15e   :  { %1266 = vmatprep.subr.mxu1 %v1157_v45 }
 0x160   :  { %14485 = vmatmul.mubr.msk.f32.vlgmr.msra.gmra.mxu1 %vm194_vm10, %v15489_v12  ;;  %v1367_v47 = vpop.permute.xlu1 %1366  ;;  %v1793_v53 = vpop.permute.xlu0 %1792 }
 0x161   :  { %1267 = vmatpush1.msra.mxu1 %v1156_v46  ;;  %v1371_v48 = vsel %vm536_vm4, %v1365_v43, %v1367_v47  ;;  %1300 = vmatprep.mubr.f32.mxu1 %v20284_v1  ;;  %v1798_v58 = vsel %vm112_vm3, %v15520_v63, %v1793_v53 }
 0x162   :  { %1480 = vmatprep.subr.mxu1 %v1371_v48 }
 0x164   :  { %14489 = vmatmul.mubr.msk.f32.vlgmr.msra.gmra.mxu1 %vm194_vm10, %v15502_v18  ;;  %v1581_v49 = vpop.permute.xlu1 %1580 }
 0x165   :  { %1481 = vmatpush1.msra.mxu1 %v1370_v55  ;;  %v1585_v50 = vsel %vm154_vm2, %v1579_v13, %v1581_v49  ;;  %1514 = vmatprep.mubr.f32.mxu1 %v20284_v1 }
 0x166   :  { %1694 = vmatprep.subr.mxu1 %v1585_v50 }
 0x168   :  { %14493 = vmatmul.mubr.msk.f32.vlgmr.msra.gmra.mxu1 %vm194_vm10, %v14491_v28  ;;  %v1795_v56 = vpop.permute.xlu1 %1794 }
 0x169   :  { %1695 = vmatpush1.msra.mxu1 %v1584_v54  ;;  %v1799_v57 = vsel %vm112_vm3, %v1793_v53, %v1795_v56  ;;  %1728 = vmatprep.mubr.f32.mxu1 %v20284_v1 }
 0x16a   :  { %1908 = vmatprep.subr.mxu1 %v1799_v57 }
 0x16c   :  { %14497 = vmatmul.mubr.msk.f32.vlgmr.msra.gmra.mxu1 %vm194_vm10, %v14495_v32  ;;  %v15578_v60 = vpop.permute.xlu1 %2034 }
 0x16d   :  { %1909 = vmatpush1.msra.mxu1 %v1798_v58  ;;  %1942 = vmatprep.mubr.f32.mxu1 %v20284_v1  ;;  %v2050_v61 = vmul.f32 %v15578_v60, %v15142_v51  ;;  %v15583_v62 = vpop.permute.xlu0 %1956 }
 0x16f   :  { %2062 = vrot.lane.b32.xlu0 %v2050_v61, %s14949_s14 }
 0x170   :  { %14501 = vmatmul.mubr.msk.f32.vlgmr.msra.gmra.mxu1 %vm194_vm10, %v14499_v20  ;;  %v15587_v0 = vpop.permute.xlu1 %2036 }
 0x171   :  { %2218 = vmatprep.mubr.f32.mxu1 %v20284_v1  ;;  %v15590_v6 = vpop.permute.xlu0 %2038  ;;  %v2042_v57 = vsel %vm154_vm2, %v15578_v60, %v15587_v0 }
 0x174   :  { %v1995_v52 = vpop.permute.xlu1 %1994 }
 0x175   :  { %v15592_v7 = vpop.permute.xlu0 %1996  ;;  %v2010_v9 = vmul.f32 %v1995_v52, %v15142_v51 }
 0x176   :  { %v2002_v49 = vsel %vm112_vm3, %v1995_v52, %v15592_v7 }
 0x177   :  { %2230 = vrot.lane.b32.xlu1 %v2010_v9, %s14950_s18 }
 0x178   :  { %v15594_v59 = vpop.permute.xlu1 %1998 }
 0x179   :  { %v2412_v11 = vpop.permute.xlu0 %2411 }
 0x17a   :  { %v2427_v15 = vmul.f32 %v2412_v11, %v15142_v51 }
 0x17c   :  { %v15598_v12 = vpop.permute.xlu1 %2413  ;;  %2439 = vrot.lane.b32.xlu0 %v2427_v15, %s14948_s28 }
 0x17d   :  { %v15606_v40 = vpop.permute.xlu0 %2415  ;;  %v2419_v52 = vsel %vm536_vm4, %v2412_v11, %v15598_v12 }
 0x180   :  { %v2625_v36 = vpop.permute.xlu1 %2624 }
 0x181   :  { %v2640_v16 = vmul.f32 %v2625_v36, %v15142_v51  ;;  %v15610_v47 = vpop.permute.xlu0 %2626 }
 0x183   :  { %2652 = vrot.lane.b32.xlu1 %v2640_v16, %s14947_s26 }
 0x184   :  { %v15617_v53 = vpop.permute.xlu1 %2628 }
 0x185   :  { %v15626_v58 = vpop.permute.xlu0 %2993 }
 0x189   :  { %v15640_v11 = vpop.permute.xlu0 %2997 }
 0x1f4   :  { %v264_v10 = vpop.f32.mrf.mxu0 }
 0x1f6   :  { %v266_v17 = vpop.f32.mrf.mxu0 }
 0x1f8   :  { %v433_v18 = vpop.f32.mrf.mxu0 }
 0x1f9   :  { %v434_v23 = vadd.f32 %v433_v18, %v264_v10  ;;  %v2632_v10 = vsel %vm752_vm5, %v2625_v36, %v15610_v47  ;;  %v15636_v18 = vpop.permute.xlu1 %2995 }
 0x1fa   :  { %v435_v19 = vpop.f32.mrf.mxu0 }
 0x1fb   :  { %v436_v45 = vadd.f32 %v435_v19, %v266_v17 }
 0x1fc   :  { %v645_v21 = vpop.f32.mrf.mxu0 }
 0x1fd   :  { %v721_v28 = vadd.f32 %v645_v21, %v434_v23 }
 0x1fe   :  { %v647_v22 = vpop.f32.mrf.mxu0 }
 0x1ff   :  { %v722_v50 = vadd.f32 %v647_v22, %v436_v45 }
 0x200   :  { %v861_v24 = vpop.f32.mrf.mxu0 }
 0x201   :  { %v937_v30 = vadd.f32 %v861_v24, %v721_v28 }
 0x202   :  { %v863_v25 = vpop.f32.mrf.mxu0 }
 0x203   :  { %v938_v16 = vadd.f32 %v863_v25, %v722_v50 }
 0x204   :  { %v1012_v63 = vpop.f32.mrf.mxu0 }
 0x205   :  { %v1088_v33 = vadd.f32 %v1012_v63, %v937_v30 }
 0x206   :  { %v1014_v8 = vpop.f32.mrf.mxu0 }
 0x207   :  { %v1089_v23 = vadd.f32 %v1014_v8, %v938_v16 }
 0x208   :  { %v335_v27 = vpop.f32.mrf.mxu1 }
 0x209   :  { %v1231_v32 = vpop.f32.mrf.mxu0 }
 0x20a   :  { %v15604_v51 = vpop.f32.mrf.mxu1  ;;  %v1307_v37 = vadd.f32 %v1231_v32, %v1088_v33 }
 0x20b   :  { %v1233_v34 = vpop.f32.mrf.mxu0 }
 0x20c   :  { %v504_v38 = vpop.f32.mrf.mxu1  ;;  %v1308_v30 = vadd.f32 %v1233_v34, %v1089_v23 }
 0x20d   :  { %v1445_v35 = vpop.f32.mrf.mxu0  ;;  %v505_v60 = vadd.f32 %v504_v38, %v335_v27  ;;  %v15646_v27 = vpop.permute.xlu1 %2040 }
 0x20e   :  { %v1521_v20 = vadd.f32 %v1445_v35, %v1307_v37  ;;  %v15608_v41 = vpop.f32.mrf.mxu1  ;;  %v15649_v35 = vpop.permute.xlu0 %3206 }
 0x20f   :  { %v1447_v31 = vpop.f32.mrf.mxu0  ;;  %v507_v16 = vadd.f32 %v15608_v41, %v15604_v51  ;;  %v2043_v51 = vsel %vm154_vm2, %v15587_v0, %v15590_v6 }
 0x210   :  { %v1522_v38 = vadd.f32 %v1447_v31, %v1308_v30  ;;  %v3002_v31 = vsel %vm783_vm6, %v15636_v18, %v15640_v11 }
 0x211   :  { %v1659_v39 = vpop.f32.mrf.mxu0 }
 0x212   :  { %v1735_v43 = vadd.f32 %v1659_v39, %v1521_v20 }
 0x213   :  { %v1661_v26 = vpop.f32.mrf.mxu0 }
 0x214   :  { %v716_v42 = vpop.f32.mrf.mxu1 }
 0x215   :  { %v723_v24 = vadd.f32 %v716_v42, %v505_v60  ;;  %v15651_v42 = vpop.permute.xlu1 %3208 }
 0x216   :  { %v15612_v48 = vpop.f32.mrf.mxu1 }
 0x218   :  { %v1873_v44 = vpop.f32.mrf.mxu0 }
 0x219   :  { %v1949_v46 = vadd.f32 %v1873_v44, %v1735_v43 }
 0x21a   :  { %v1875_v44 = vpop.f32.mrf.mxu0 }
 0x21b   :  { %v1959_v13 = vadd.f32 %v15583_v62, %v1949_v46  ;;  %v1736_v46 = vadd.f32 %v1661_v26, %v1522_v38 }
 0x21c   :  { %v932_v55 = vpop.f32.mrf.mxu1 }
 0x21d   :  { %v15619_v54 = vmax.f32 %v1959_v13, 0.0  ;;  %v939_v36 = vadd.f32 %v932_v55, %v723_v24  ;;  %v15653_v13 = vpop.permute.xlu0 %3210  ;;  %v1950_v55 = vadd.f32 %v1875_v44, %v1736_v46 }
 0x21e   :  { %v15621_v56 = vpop.f32.mrf.mxu1  ;;  %v3215_v50 = vsel %vm567_vm7, %v15651_v42, %v15653_v13 }
 0x21f   :  { %v2051_v9 = vmul.f32 %v2042_v57, %v15619_v54  ;;  %v2011_v15 = vmul.f32 %v2002_v49, %v15619_v54  ;;  %v2428_v21 = vmul.f32 %v2419_v52, %v15619_v54  ;;  %v2641_v22 = vmul.f32 %v2632_v10, %v15619_v54 }
 0x220   :  { %v1083_v61 = vpop.f32.mrf.mxu1  ;;  %v3009_v63 = vmul.f32 %v15626_v58, %v15619_v54  ;;  %v1960_v26 = vadd.f32 %v15583_v62, %v1950_v55  ;;  %v2044_v10 = vsel %vm154_vm2, %v15590_v6, %v15646_v27  ;;  %v3222_v0 = vmul.f32 %v15649_v35, %v15619_v54 }
 0x221   :  { %2064 = vrot.lane.b32.xlu0 %v2051_v9, %s14949_s14  ;;  %2232 = vrot.lane.b32.xlu1 %v2011_v15, %s14950_s18  ;;  %v1090_v32 = vadd.f32 %v1083_v61, %v939_v36  ;;  %v15664_v61 = vpop.permute.xlu1 %2000  ;;  %v3420_v15 = vpop.permute.xlu0 %3419  ;;  %v2420_v6 = vsel %vm536_vm4, %v15598_v12, %v15606_v40 }
 0x222   :  { %v1085_v17 = vpop.f32.mrf.mxu1  ;;  %v15676_v60 = vmax.f32 %v1960_v26, 0.0 }
 0x224   :  { %v1302_v19 = vpop.f32.mrf.mxu1  ;;  %v2429_v38 = vmul.f32 %v2420_v6, %v15676_v60 }
 0x225   :  { %2441 = vrot.lane.b32.xlu0 %v2428_v21, %s14948_s28  ;;  %2654 = vrot.lane.b32.xlu1 %v2641_v22, %s14947_s26  ;;  %v1309_v8 = vadd.f32 %v1302_v19, %v1090_v32  ;;  %v2004_v19 = vsel %vm112_vm3, %v15594_v59, %v15664_v61  ;;  %v724_v22 = vadd.f32 %v15612_v48, %v507_v16  ;;  %v3422_v23 = vpop.permute.xlu1 %3421  ;;  %v15689_v36 = vpop.permute.xlu0 %3423 }
 0x226   :  { %v1304_v25 = vpop.f32.mrf.mxu1  ;;  %v2052_v48 = vmul.f32 %v2043_v51, %v15676_v60 }
 0x227   :  { %v940_v41 = vadd.f32 %v15621_v56, %v724_v22 }
 0x228   :  { %v1516_v28 = vpop.f32.mrf.mxu1 }
 0x229   :  { %3021 = vrot.lane.b32.xlu0 %v3009_v63, %s14946_s0  ;;  %v1523_v39 = vadd.f32 %v1516_v28, %v1309_v8  ;;  %v2003_v28 = vsel %vm112_vm3, %v15592_v7, %v15594_v59  ;;  %v1091_v63 = vadd.f32 %v1085_v17, %v940_v41  ;;  %v2418_v32 = vpop.permute.xlu1 %2417  ;;  %v3435_v7 = vmul.f32 %v3420_v15, %v15619_v54  ;;  %v3633_v59 = vpop.permute.xlu0 %3632 }
 0x22a   :  { %v1518_v33 = vpop.f32.mrf.mxu1  ;;  %v2012_v30 = vmul.f32 %v2003_v28, %v15676_v60  ;;  %v2633_v17 = vsel %vm752_vm5, %v15610_v47, %v15617_v53  ;;  %v2421_v55 = vsel %vm536_vm4, %v15606_v40, %v2418_v32 }
 0x22b   :  { %v1310_v8 = vadd.f32 %v1304_v25, %v1091_v63 }
 0x22c   :  { %v1730_v37 = vpop.f32.mrf.mxu1 }
 0x22d   :  { %v1737_v43 = vadd.f32 %v1730_v37, %v1523_v39  ;;  %v1524_v56 = vadd.f32 %v1518_v33, %v1310_v8  ;;  %v3428_v39 = vsel %vm185_vm8, %v3422_v23, %v15689_v36  ;;  %v3635_v12 = vpop.permute.xlu1 %3634  ;;  %v3637_v44 = vpop.permute.xlu0 %3636  ;;  %v2642_v33 = vmul.f32 %v2633_v17, %v15676_v60 }
 0x22e   :  { %v1732_v20 = vpop.f32.mrf.mxu1 }
 0x22f   :  { %v1738_v25 = vadd.f32 %v1732_v20, %v1524_v56 }
 0x230   :  { %v1944_v45 = vpop.f32.mrf.mxu1 }
 0x231   :  { %v1951_v34 = vadd.f32 %v1944_v45, %v1737_v43  ;;  %v3641_v45 = vsel %vm355_vm9, %v3635_v12, %v3637_v44 }
 0x232   :  { %v1946_v37 = vpop.f32.mrf.mxu1 }
 0x233   :  { %v1961_v49 = vadd.f32 %v15583_v62, %v1951_v34  ;;  %v1952_v43 = vadd.f32 %v1946_v37, %v1738_v25  ;;  %v3001_v34 = vsel %vm783_vm6, %v15626_v58, %v15636_v18  ;;  %v3214_v58 = vsel %vm567_vm7, %v15649_v35, %v15651_v42  ;;  %v15815_v25 = vld [vmem:[%s20280_s9 + $0x2] ss:$8 sm:$0xf] }
 0x234   :  { %v3427_v18 = vsel %vm185_vm8, %v3420_v15, %v3422_v23  ;;  %v3223_v26 = vmul.f32 %v3214_v58, %v15676_v60  ;;  %v3640_v42 = vsel %vm355_vm9, %v3633_v59, %v3635_v12  ;;  %v15826_v12 = vld [vmem:[%s20280_s9 + $0x3] ss:$8 sm:$0xf] }
 0x235   :  { %v15659_v57 = vmax.f32 %v1961_v49, 0.0  ;;  %v1962_v20 = vadd.f32 %v15583_v62, %v1952_v43  ;;  %v3648_v62 = vmul.f32 %v3633_v59, %v15619_v54  ;;  %v4280_v43 = vrot.slane %v15815_v25, %v15036_v3 }
 0x237   :  { %v3011_v9 = vmul.f32 %v3002_v31, %v15659_v57  ;;  %v3224_v52 = vmul.f32 %v3215_v50, %v15659_v57  ;;  %v2053_v21 = vmul.f32 %v2044_v10, %v15659_v57  ;;  %v2013_v24 = vmul.f32 %v2004_v19, %v15659_v57  ;;  %v3000_v19 = vpop.permute.xlu0 %2999 }
 0x238   :  { %v3437_v47 = vmul.f32 %v3428_v39, %v15659_v57  ;;  %v3650_v46 = vmul.f32 %v3641_v45, %v15659_v57  ;;  %v2430_v49 = vmul.f32 %v2421_v55, %v15659_v57  ;;  %v15728_v50 = vmax.f32 %v1962_v20, 0.0 }
 0x239   :  { %3025 = vrot.lane.b32.xlu1 %v3011_v9, %s14946_s0  ;;  %3238 = vrot.lane.b32.xlu0 %v3224_v52, %s14945_s23  ;;  %v3010_v31 = vmul.f32 %v3001_v34, %v15676_v60  ;;  %v3436_v9 = vmul.f32 %v3427_v18, %v15676_v60  ;;  %v3649_v52 = vmul.f32 %v3640_v42, %v15676_v60  ;;  %v15854_v34 = vld [vmem:[%s20280_s9 + $0x5] ss:$8 sm:$0xf] }
 0x23a   :  { %v2054_v40 = vmul.f32 %v15646_v27, %v15728_v50  ;;  %v2014_v35 = vmul.f32 %v15664_v61, %v15728_v50  ;;  %v2631_v27 = vpop.permute.xlu1 %2630  ;;  %v2431_v15 = vmul.f32 %v2418_v32, %v15728_v50  ;;  %v4276_v39 = vrot.slane %v15815_v25, %v15042_v5 }
 0x23b   :  { %v2634_v16 = vsel %vm752_vm5, %v15617_v53, %v2631_v27  ;;  %v2644_v61 = vmul.f32 %v2631_v27, %v15728_v50  ;;  %v3426_v51 = vpop.permute.xlu0 %3425  ;;  %v4493_v45 = vrot.slane %v15826_v12, %v15036_v3  ;;  %v5071_v58 = vrot.slane %v15854_v34, %v15042_v5  ;;  %v15882_v27 = vld [vmem:[%s20280_s9 + $0x7] ss:$8 sm:$0xf] }
 0x23c   :  { %v2643_v10 = vmul.f32 %v2634_v16, %v15659_v57  ;;  %v5075_v18 = vrot.slane %v15854_v34, %v15036_v3  ;;  %v5493_v16 = vrot.slane %v15882_v27, %v15039_v4 }
 0x23d   :  { %2068 = vrot.lane.b32.xlu1 %v2053_v21, %s14949_s14  ;;  %2236 = vrot.lane.b32.xlu0 %v2013_v24, %s14950_s18  ;;  %v3003_v21 = vsel %vm783_vm6, %v15640_v11, %v3000_v19  ;;  %v3013_v24 = vmul.f32 %v3000_v19, %v15286_v14  ;;  %v3429_v11 = vsel %vm185_vm8, %v15689_v36, %v3426_v51  ;;  %v15785_v36 = vld [vmem:[%s20280_s9 + $0x1] ss:$8 sm:$0xf] }
 0x23e   :  { %v3012_v22 = vmul.f32 %v3003_v21, %v15728_v50  ;;  %v3213_v23 = vpop.permute.xlu1 %3212  ;;  %v3438_v63 = vmul.f32 %v3429_v11, %v15728_v50  ;;  %v3895_v6 = vrot.slane %v15785_v36, %v15039_v4  ;;  %v3903_v59 = vrot.slane %v15785_v36, %v15036_v3 }
 0x23f   :  { %v3216_v53 = vsel %vm567_vm7, %v15653_v13, %v3213_v23  ;;  %v3226_v28 = vmul.f32 %v3213_v23, %v15286_v14  ;;  %v3439_v13 = vmul.f32 %v3426_v51, %v15286_v14  ;;  %v2063_v55 = vpop.permute.xlu0 %2062  ;;  %v5497_v19 = vrot.slane %v15882_v27, %v15042_v5 }
 0x240   :  { %v3225_v41 = vmul.f32 %v3216_v53, %v15728_v50  ;;  %v5501_v21 = vrot.slane %v15882_v27, %v15036_v3 }
 0x241   :  { %2066 = vrot.lane.b32.xlu1 %v2052_v48, %s14949_s14  ;;  %2234 = vrot.lane.b32.xlu0 %v2012_v30, %s14950_s18 }
 0x242   :  { %v3639_v48 = vpop.permute.xlu1 %3638 }
 0x243   :  { %v3642_v30 = vsel %vm355_vm9, %v3637_v44, %v3639_v48  ;;  %v3652_v8 = vmul.f32 %v3639_v48, %v15286_v14  ;;  %v3899_v14 = vrot.slane %v15785_v36, %v15042_v5  ;;  %v4485_v44 = vrot.slane %v15826_v12, %v15039_v4 }
 0x244   :  { %v3651_v32 = vmul.f32 %v3642_v30, %v15728_v50 }
 0x245   :  { %3234 = vrot.lane.b32.xlu1 %v3222_v0, %s14945_s23  ;;  %3447 = vrot.lane.b32.xlu0 %v3435_v7, %s14943_s13  ;;  %v3827_v0 = vld [vmem:[%s20277_s6] sm:$0xff]  ;;  %s14956_s6 = smov 33  }
 0x246   :  { %v15798_v7 = vld [vmem:[%s20280_s9] ss:$8 sm:$0xf] }
 0x247   :  { %v3855_v56 = vrot.slane %v15798_v7, %v15039_v4  ;;  %v3859_v17 = vrot.slane %v15798_v7, %v15042_v5  ;;  %v3863_v37 = vrot.slane %v15798_v7, %v15036_v3 }
 0x249   :  { %2443 = vrot.lane.b32.xlu1 %v2429_v38, %s14948_s28  ;;  %2656 = vrot.lane.b32.xlu0 %v2642_v33, %s14947_s26  ;;  %v4272_v38 = vrot.slane %v15815_v25, %v15039_v4  ;;  %v4489_v33 = vrot.slane %v15826_v12, %v15042_v5 }
 0x24d   :  { %3451 = vrot.lane.b32.xlu1 %v3437_v47, %s14943_s13  ;;  %3664 = vrot.lane.b32.xlu0 %v3650_v46, %s14944_s16  ;;  %v15843_v47 = vld [vmem:[%s20280_s9 + $0x4] ss:$8 sm:$0xf] }
 0x24e   :  { %v4854_v20 = vrot.slane %v15843_v47, %v15039_v4  ;;  %v4858_v46 = vrot.slane %v15843_v47, %v15042_v5 }
 0x251   :  { %2445 = vrot.lane.b32.xlu1 %v2430_v49, %s14948_s28  ;;  %3023 = vrot.lane.b32.xlu0 %v3010_v31, %s14946_s0  ;;  %v4862_v49 = vrot.slane %v15843_v47, %v15036_v3  ;;  %v5067_v31 = vrot.slane %v15854_v34, %v15039_v4 }
 0x255   :  { %3660 = vrot.lane.b32.xlu1 %v3648_v62, %s14944_s16  ;;  %2070 = vrot.lane.b32.xlu0 %v2054_v40, %s14949_s14  ;;  %v2231_v62 = vpop.permute.xlu1 %2230  ;;  %v2440_v40 = vpop.permute.xlu0 %2439 }
 0x259   :  { %3236 = vrot.lane.b32.xlu1 %v3223_v26, %s14945_s23  ;;  %3449 = vrot.lane.b32.xlu0 %v3436_v9, %s14943_s13  ;;  %v15871_v26 = vld [vmem:[%s20280_s9 + $0x6] ss:$8 sm:$0xf]  ;;  %v2653_v42 = vpop.permute.xlu1 %2652 }
 0x25a   :  { %v5280_v9 = vrot.slane %v15871_v26, %v15039_v4 }
 0x25d   :  { %2238 = vrot.lane.b32.xlu1 %v2014_v35, %s14950_s18  ;;  %2447 = vrot.lane.b32.xlu0 %v2431_v15, %s14948_s28  ;;  %v5284_v35 = vrot.slane %v15871_v26, %v15042_v5 }
 0x261   :  { %3662 = vrot.lane.b32.xlu1 %v3649_v52, %s14944_s16  ;;  %2658 = vrot.lane.b32.xlu0 %v2643_v10, %s14947_s26  ;;  %v5288_v52 = vrot.slane %v15871_v26, %v15036_v3 }
 0x265   :  { %2660 = vrot.lane.b32.xlu1 %v2644_v61, %s14947_s26  ;;  %3027 = vrot.lane.b32.xlu0 %v3012_v22, %s14946_s0 }
 0x269   :  { %3029 = vrot.lane.b32.xlu1 %v3013_v24, %s14946_s0  ;;  %3240 = vrot.lane.b32.xlu0 %v3225_v41, %s14945_s23 }
 0x26d   :  { %3242 = vrot.lane.b32.xlu1 %v3226_v28, %s14945_s23  ;;  %3453 = vrot.lane.b32.xlu0 %v3438_v63, %s14943_s13  ;;  %v14503_v63 = vld [vmem:[%s20273_s2 + $0x8] sm:$0xff] }
 0x271   :  { %3455 = vrot.lane.b32.xlu1 %v3439_v13, %s14943_s13  ;;  %3666 = vrot.lane.b32.xlu0 %v3651_v32, %s14944_s16 }
 0x275   :  { %3668 = vrot.lane.b32.xlu1 %v3652_v8, %s14944_s16  ;;  %3830 = vperm.xlu0 %14793, %v3827_v0  }
 0x279   :  { %3908 = vrot.lane.b32.xlu1 %v3895_v6, %s14943_s13  ;;  %3910 = vrot.lane.b32.xlu0 %v3899_v14, %s14943_s13  ;;  %v15919_v6 = vld [vmem:[%s20273_s2] sm:$0xff] }
 0x27d   :  { %3912 = vrot.lane.b32.xlu1 %v3903_v59, %s14943_s13  ;;  %3868 = vrot.lane.b32.xlu0 %v3855_v56, %s14944_s16 }
 0x281   :  { %3870 = vrot.lane.b32.xlu1 %v3859_v17, %s14944_s16  ;;  %3872 = vrot.lane.b32.xlu0 %v3863_v37, %s14944_s16  ;;  %v15933_v17 = vld [vmem:[%s20273_s2 + $0x10] sm:$0xff] }
 0x285   :  { %4285 = vrot.lane.b32.xlu1 %v4272_v38, %s14945_s23  ;;  %4287 = vrot.lane.b32.xlu0 %v4276_v39, %s14945_s23 }
 0x289   :  { %4289 = vrot.lane.b32.xlu1 %v4280_v43, %s14945_s23  ;;  %4498 = vrot.lane.b32.xlu0 %v4485_v44, %s14946_s0 }
 0x28d   :  { %4500 = vrot.lane.b32.xlu1 %v4489_v33, %s14946_s0  ;;  %4502 = vrot.lane.b32.xlu0 %v4493_v45, %s14946_s0  ;;  %v15949_v33 = vld [vmem:[%s20273_s2 + $0x18] sm:$0xff] }
 0x291   :  { %4867 = vrot.lane.b32.xlu1 %v4854_v20, %s14947_s26  ;;  %4869 = vrot.lane.b32.xlu0 %v4858_v46, %s14947_s26  ;;  %v15959_v46 = vld [vmem:[%s20273_s2 + $0x20] sm:$0xff] }
 0x293   :  { %v2065_v15 = vpop.permute.xlu0 %2064  ;;  %v2233_v10 = vpop.permute.xlu1 %2232 }
 0x294   :  { %v2072_v13 = vsel %vm185_vm8, %v2063_v55, %v2065_v15  ;;  %v2240_v8 = vsel %vm355_vm9, %v2231_v62, %v2233_v10 }
 0x295   :  { %4871 = vrot.lane.b32.xlu1 %v4862_v49, %s14947_s26  ;;  %5080 = vrot.lane.b32.xlu0 %v5067_v31, %s14948_s28 }
 0x297   :  { %v2442_v61 = vpop.permute.xlu0 %2441  ;;  %v2655_v22 = vpop.permute.xlu1 %2654 }
 0x298   :  { %v2449_v37 = vsel %vm567_vm7, %v2440_v40, %v2442_v61  ;;  %v2662_v43 = vsel %vm783_vm6, %v2653_v42, %v2655_v22  ;;  %v15984_v42 = vld [vmem:[%s20273_s2 + $0x30] sm:$0xff] }
 0x299   :  { %5082 = vrot.lane.b32.xlu1 %v5071_v58, %s14948_s28  ;;  %5084 = vrot.lane.b32.xlu0 %v5075_v18, %s14948_s28 }
 0x29b   :  { %v3022_v23 = vpop.permute.xlu0 %3021 }
 0x29d   :  { %5293 = vrot.lane.b32.xlu1 %v5280_v9, %s14949_s14  ;;  %5295 = vrot.lane.b32.xlu0 %v5284_v35, %s14949_s14 }
 0x2a1   :  { %5297 = vrot.lane.b32.xlu1 %v5288_v52, %s14949_s14  ;;  %5506 = vrot.lane.b32.xlu0 %v5493_v16, %s14950_s18 }
 0x2a5   :  { %5508 = vrot.lane.b32.xlu1 %v5497_v19, %s14950_s18  ;;  %5510 = vrot.lane.b32.xlu0 %v5501_v21, %s14950_s18  ;;  %v14528_v21 = vld [vmem:[%s20273_s2 + $0x38] sm:$0xff] }
 0x2ab   :  { %v15898_v24 = vpop.permute.xlu1 %3025  ;;  %v15900_v53 = vpop.permute.xlu0 %3238 }
 0x2af   :  { %v2069_v51 = vpop.permute.xlu1 %2068  ;;  %v15902_v41 = vpop.permute.xlu0 %2236 }
 0x2b3   :  { %v2067_v28 = vpop.permute.xlu1 %2066  ;;  %v15904_v11 = vpop.permute.xlu0 %2234 }
 0x2b4   :  { %v2073_v48 = vsel %vm185_vm8, %v2065_v15, %v2067_v28  ;;  %v2241_v30 = vsel %vm355_vm9, %v2233_v10, %v15904_v11  ;;  %v2074_v58 = vsel %vm185_vm8, %v2067_v28, %v2069_v51 }
 0x2b5   :  { %2113 = vmatprep.subr.mxu0 %v2073_v48  ;;  %v14532_v48 = vld [vmem:[%s20273_s2 + $0x40] sm:$0xff] }
 0x2b6   :  { %2114 = vmatpush1.msra.mxu0 %v2072_v13 }
 0x2b7   :  { %14504 = vmatmul.mubr.msk.f32.vlgmr.msra.gmra.mxu0 %vm194_vm10, %v14503_v63  ;;  %2281 = vmatprep.subr.mxu0 %v2241_v30  ;;  %v3235_v32 = vpop.permute.xlu1 %3234  ;;  %v3448_v0 = vpop.permute.xlu0 %3447 }
 0x2b8   :  { %2282 = vmatpush1.msra.mxu0 %v2240_v8  ;;  %2315 = vmatprep.mubr.f32.mxu0 %v20284_v1 }
 0x2bb   :  { %14506 = vmatmul.mubr.msk.f32.vlgmr.msra.gmra.mxu0 %vm194_vm10, %v15919_v6  ;;  %v15923_v14 = vpop.permute.xlu1 %2443  ;;  %v15925_v59 = vpop.permute.xlu0 %2656 }
 0x2bc   :  { %v2450_v56 = vsel %vm567_vm7, %v2442_v61, %v15923_v14  ;;  %2524 = vmatprep.mubr.f32.mxu0 %v20284_v1  ;;  %v2663_v38 = vsel %vm783_vm6, %v2655_v22, %v15925_v59  ;;  %v2242_v61 = vsel %vm355_vm9, %v15904_v11, %v15902_v41 }
 0x2bd   :  { %2490 = vmatprep.subr.mxu0 %v2450_v56 }
 0x2be   :  { %2491 = vmatpush1.msra.mxu0 %v2449_v37 }
 0x2bf   :  { %14510 = vmatmul.mubr.msk.f32.vlgmr.msra.gmra.mxu0 %vm194_vm10, %v15933_v17  ;;  %2703 = vmatprep.subr.mxu0 %v2663_v38  ;;  %v15940_v39 = vpop.permute.xlu1 %3451  ;;  %v15943_v44 = vpop.permute.xlu0 %3664 }
 0x2c0   :  { %2704 = vmatpush1.msra.mxu0 %v2662_v43  ;;  %2737 = vmatprep.mubr.f32.mxu0 %v20284_v1 }
 0x2c1   :  { %2854 = vmatprep.subr.mxu0 %v15676_v60 }
 0x2c3   :  { %14514 = vmatmul.mubr.msk.f32.vlgmr.msra.gmra.mxu0 %vm194_vm10, %v15949_v33  ;;  %v2446_v45 = vpop.permute.xlu1 %2445  ;;  %v3024_v20 = vpop.permute.xlu0 %3023 }
 0x2c4   :  { %2855 = vmatpush1.msra.mxu0 %v15619_v54  ;;  %2888 = vmatprep.mubr.f32.mxu0 %v20284_v1  ;;  %v3032_v55 = vsel %vm752_vm5, %v3024_v20, %v15898_v24  ;;  %v3031_v60 = vsel %vm752_vm5, %v3022_v23, %v3024_v20  ;;  %v15970_v54 = vld [vmem:[%s20273_s2 + $0x28] sm:$0xff]  ;;  %v16057_v20 = vld [vmem:[#allocation2] sm:$0xff]  ;;  %s14954_s2 = smov 97  }
 0x2c5   :  { %3072 = vmatprep.subr.mxu0 %v3032_v55 }
 0x2c7   :  { %14517 = vmatmul.mubr.msk.f32.vlgmr.msra.gmra.mxu0 %vm194_vm10, %v15959_v46  ;;  %v3661_v49 = vpop.permute.xlu1 %3660  ;;  %v2071_v31 = vpop.permute.xlu0 %2070 }
 0x2c8   :  { %3073 = vmatpush1.msra.mxu0 %v3031_v60  ;;  %3106 = vmatprep.mubr.f32.mxu0 %v20284_v1  ;;  %v2075_v62 = vsel %vm185_vm8, %v2069_v51, %v2071_v31  ;;  %v2451_v51 = vsel %vm567_vm7, %v15923_v14, %v2446_v45 }
 0x2c9   :  { %2184 = vmatprep.subr.mxu1 %v2075_v62 }
 0x2ca   :  { %2185 = vmatpush1.msra.mxu1 %v2074_v58 }
 0x2cb   :  { %14521 = vmatmul.mubr.msk.f32.vlgmr.msra.gmra.mxu0 %vm194_vm10, %v15970_v54  ;;  %v3237_v40 = vpop.permute.xlu1 %3236  ;;  %v3450_v18 = vpop.permute.xlu0 %3449  ;;  %14505 = vmatmul.mubr.msk.f32.vlgmr.msra.gmra.mxu1 %vm194_vm10, %v14503_v63 }
 0x2cc   :  { %v3245_v9 = vsel %vm536_vm4, %v3237_v40, %v15900_v53  ;;  %v3244_v35 = vsel %vm536_vm4, %v3235_v32, %v3237_v40  ;;  %3319 = vmatprep.mubr.f32.mxu0 %v20284_v1  ;;  %2386 = vmatprep.mubr.f32.mxu1 %v20284_v1  ;;  %v3458_v15 = vsel %vm154_vm2, %v3450_v18, %v15940_v39 }
 0x2cd   :  { %3285 = vmatprep.subr.mxu0 %v3245_v9  ;;  %v3457_v16 = vsel %vm154_vm2, %v3448_v0, %v3450_v18 }
 0x2ce   :  { %3286 = vmatpush1.msra.mxu0 %v3244_v35 }
 0x2cf   :  { %14525 = vmatmul.mubr.msk.f32.vlgmr.msra.gmra.mxu0 %vm194_vm10, %v15984_v42  ;;  %3498 = vmatprep.subr.mxu0 %v3458_v15  ;;  %v2239_v52 = vpop.permute.xlu1 %2238  ;;  %v2448_v10 = vpop.permute.xlu0 %2447 }
 0x2d0   :  { %3499 = vmatpush1.msra.mxu0 %v3457_v16  ;;  %v2243_v19 = vsel %vm355_vm9, %v15902_v41, %v2239_v52  ;;  %3532 = vmatprep.mubr.f32.mxu0 %v20284_v1  ;;  %v2452_v22 = vsel %vm567_vm7, %v2446_v45, %v2448_v10 }
 0x2d1   :  { %2352 = vmatprep.subr.mxu1 %v2243_v19 }
 0x2d2   :  { %2353 = vmatpush1.msra.mxu1 %v2242_v61 }
 0x2d3   :  { %14507 = vmatmul.mubr.msk.f32.vlgmr.msra.gmra.mxu1 %vm194_vm10, %v15919_v6  ;;  %2561 = vmatprep.subr.mxu1 %v2452_v22  ;;  %v3663_v23 = vpop.permute.xlu1 %3662  ;;  %v2659_v28 = vpop.permute.xlu0 %2658 }
 0x2d4   :  { %14529 = vmatmul.mubr.msk.f32.vlgmr.msra.gmra.mxu0 %vm194_vm10, %v14528_v21  ;;  %2562 = vmatpush1.msra.mxu1 %v2451_v51  ;;  %v3671_v41 = vsel %vm112_vm3, %v3663_v23, %v15943_v44  ;;  %v3670_v11 = vsel %vm112_vm3, %v3661_v49, %v3663_v23  ;;  %v2664_v32 = vsel %vm783_vm6, %v15925_v59, %v2659_v28 }
 0x2d5   :  { %3711 = vmatprep.subr.mxu0 %v3671_v41  ;;  %2595 = vmatprep.mubr.f32.mxu1 %v20284_v1 }
 0x2d6   :  { %3712 = vmatpush1.msra.mxu0 %v3670_v11  ;;  %3745 = vmatprep.mubr.f32.mxu0 %v20284_v1 }
 0x2d7   :  { %14511 = vmatmul.mubr.msk.f32.vlgmr.msra.gmra.mxu1 %vm194_vm10, %v15933_v17  ;;  %v2661_v63 = vpop.permute.xlu1 %2660  ;;  %v3028_v13 = vpop.permute.xlu0 %3027 }
 0x2d8   :  { %14533 = vmatmul.mubr.msk.f32.vlgmr.msra.gmra.mxu0 %vm194_vm10, %v14532_v48  ;;  %v2665_v30 = vsel %vm783_vm6, %v2659_v28, %v2661_v63  ;;  %2808 = vmatprep.mubr.f32.mxu1 %v20284_v1  ;;  %v3033_v14 = vsel %vm752_vm5, %v15898_v24, %v3028_v13 }
 0x2d9   :  { %2774 = vmatprep.subr.mxu1 %v2665_v30  ;;  %4021 = vmatprep.mubr.f32.mxu0 %v20284_v1 }
 0x2da   :  { %2775 = vmatpush1.msra.mxu1 %v2664_v32 }
 0x2db   :  { %14515 = vmatmul.mubr.msk.f32.vlgmr.msra.gmra.mxu1 %vm194_vm10, %v15949_v33  ;;  %2925 = vmatprep.subr.mxu1 %v15728_v50  ;;  %v3030_v8 = vpop.permute.xlu1 %3029  ;;  %v3241_v0 = vpop.permute.xlu0 %3240 }
 0x2dc   :  { %2926 = vmatpush1.msra.mxu1 %v15659_v57  ;;  %v3034_v6 = vsel %vm752_vm5, %v3028_v13, %v3030_v8  ;;  %2959 = vmatprep.mubr.f32.mxu1 %v20284_v1  ;;  %v3246_v57 = vsel %vm536_vm4, %v15900_v53, %v3241_v0 }
 0x2dd   :  { %3143 = vmatprep.subr.mxu1 %v3034_v6 }
 0x2df   :  { %14518 = vmatmul.mubr.msk.f32.vlgmr.msra.gmra.mxu1 %vm194_vm10, %v15959_v46  ;;  %v3243_v59 = vpop.permute.xlu1 %3242  ;;  %v3454_v50 = vpop.permute.xlu0 %3453 }
 0x2e0   :  { %3144 = vmatpush1.msra.mxu1 %v3033_v14  ;;  %v3247_v56 = vsel %vm536_vm4, %v3241_v0, %v3243_v59  ;;  %3177 = vmatprep.mubr.f32.mxu1 %v20284_v1  ;;  %v3459_v38 = vsel %vm154_vm2, %v15940_v39, %v3454_v50 }
 0x2e1   :  { %3356 = vmatprep.subr.mxu1 %v3247_v56 }
 0x2e3   :  { %14522 = vmatmul.mubr.msk.f32.vlgmr.msra.gmra.mxu1 %vm194_vm10, %v15970_v54  ;;  %v3456_v17 = vpop.permute.xlu1 %3455  ;;  %v3667_v24 = vpop.permute.xlu0 %3666 }
 0x2e4   :  { %3357 = vmatpush1.msra.mxu1 %v3246_v57  ;;  %v3460_v37 = vsel %vm154_vm2, %v3454_v50, %v3456_v17  ;;  %3390 = vmatprep.mubr.f32.mxu1 %v20284_v1  ;;  %v3672_v53 = vsel %vm112_vm3, %v15943_v44, %v3667_v24 }
 0x2e5   :  { %3569 = vmatprep.subr.mxu1 %v3460_v37 }
 0x2e7   :  { %14526 = vmatmul.mubr.msk.f32.vlgmr.msra.gmra.mxu1 %vm194_vm10, %v15984_v42  ;;  %v3669_v43 = vpop.permute.xlu1 %3668 }
 0x2e8   :  { %3570 = vmatpush1.msra.mxu1 %v3459_v38  ;;  %v3673_v33 = vsel %vm112_vm3, %v3667_v24, %v3669_v43  ;;  %3603 = vmatprep.mubr.f32.mxu1 %v20284_v1 }
 0x2e9   :  { %3782 = vmatprep.subr.mxu1 %v3673_v33 }
 0x2eb   :  { %14530 = vmatmul.mubr.msk.f32.vlgmr.msra.gmra.mxu1 %vm194_vm10, %v14528_v21  ;;  %v16055_v45 = vpop.permute.xlu1 %3908 }
 0x2ec   :  { %3783 = vmatpush1.msra.mxu1 %v3672_v53  ;;  %3816 = vmatprep.mubr.f32.mxu1 %v20284_v1  ;;  %v3924_v44 = vmul.f32 %v16055_v45, %v16057_v20 }
 0x2ee   :  { %3936 = vrot.lane.b32.xlu1 %v3924_v44, %s14949_s14 }
 0x2ef   :  { %14534 = vmatmul.mubr.msk.f32.vlgmr.msra.gmra.mxu1 %vm194_vm10, %v14532_v48  ;;  %v16061_v55 = vpop.permute.xlu1 %3912 }
 0x2f0   :  { %4092 = vmatprep.mubr.f32.mxu1 %v20284_v1  ;;  %v16053_v39 = vpop.permute.xlu0 %3830 }
 0x2f3   :  { %v16066_v49 = vpop.permute.xlu1 %3870 }
 0x2f4   :  { %v16059_v46 = vpop.permute.xlu0 %3910 }
 0x2f7   :  { %v4286_v54 = vpop.permute.xlu1 %4285 }
 0x2f8   :  { %v3869_v60 = vpop.permute.xlu0 %3868  ;;  %v4301_v62 = vmul.f32 %v4286_v54, %v16057_v20 }
 0x2f9   :  { %v3884_v31 = vmul.f32 %v3869_v60, %v16057_v20 }
 0x2fa   :  { %4313 = vrot.lane.b32.xlu1 %v4301_v62, %s14948_s28 }
 0x2fb   :  { %4104 = vrot.lane.b32.xlu0 %v3884_v31, %s14950_s18  ;;  %v16078_v17 = vpop.permute.xlu1 %4289 }
 0x2fc   :  { %v16072_v21 = vpop.permute.xlu0 %3872 }
 0x300   :  { %v4288_v8 = vpop.permute.xlu0 %4287 }
 0x304   :  { %v4499_v33 = vpop.permute.xlu0 %4498 }
 0x377   :  { %v2149_v58 = vpop.f32.mrf.mxu0 }
 0x379   :  { %v2151_v40 = vpop.f32.mrf.mxu0 }
 0x37b   :  { %v2317_v18 = vpop.f32.mrf.mxu0 }
 0x37c   :  { %v2318_v19 = vadd.f32 %v2317_v18, %v2149_v58 }
 0x37d   :  { %v2319_v9 = vpop.f32.mrf.mxu0 }
 0x37e   :  { %v2320_v22 = vadd.f32 %v2319_v9, %v2151_v40 }
 0x37f   :  { %v2526_v35 = vpop.f32.mrf.mxu0 }
 0x380   :  { %v2602_v23 = vadd.f32 %v2526_v35, %v2318_v19  ;;  %v4501_v35 = vpop.permute.xlu1 %4500  ;;  %v3876_v19 = vsel %vm112_vm3, %v3869_v60, %v16066_v49 }
 0x381   :  { %v2528_v42 = vpop.f32.mrf.mxu0 }
 0x382   :  { %v2603_v41 = vadd.f32 %v2528_v42, %v2320_v22 }
 0x383   :  { %v2739_v15 = vpop.f32.mrf.mxu0 }
 0x384   :  { %v2815_v11 = vadd.f32 %v2739_v15, %v2602_v23 }
 0x385   :  { %v2741_v52 = vpop.f32.mrf.mxu0 }
 0x386   :  { %v2816_v63 = vadd.f32 %v2741_v52, %v2603_v41  ;;  %v4293_v41 = vsel %vm536_vm4, %v4286_v54, %v4288_v8  ;;  %v4506_v54 = vsel %vm752_vm5, %v4499_v33, %v4501_v35 }
 0x387   :  { %v2890_v16 = vpop.f32.mrf.mxu0 }
 0x388   :  { %v2966_v13 = vadd.f32 %v2890_v16, %v2815_v11  ;;  %v16088_v16 = vpop.permute.xlu0 %4502 }
 0x389   :  { %v2892_v10 = vpop.f32.mrf.mxu0 }
 0x38a   :  { %v2967_v0 = vadd.f32 %v2892_v10, %v2816_v63  ;;  %v3916_v10 = vsel %vm154_vm2, %v16055_v45, %v16059_v46  ;;  %v3917_v45 = vsel %vm154_vm2, %v16059_v46, %v16061_v55  ;;  %v3877_v46 = vsel %vm112_vm3, %v16066_v49, %v16072_v21 }
 0x38b   :  { %v3108_v61 = vpop.f32.mrf.mxu0  ;;  %v2220_v51 = vpop.f32.mrf.mxu1 }
 0x38c   :  { %v3184_v6 = vadd.f32 %v3108_v61, %v2966_v13  ;;  %v4870_v13 = vpop.permute.xlu0 %4869 }
 0x38d   :  { %v3110_v28 = vpop.f32.mrf.mxu0  ;;  %v16074_v30 = vpop.f32.mrf.mxu1 }
 0x38e   :  { %v3185_v56 = vadd.f32 %v3110_v28, %v2967_v0 }
 0x38f   :  { %v3321_v48 = vpop.f32.mrf.mxu0 }
 0x390   :  { %v3397_v50 = vadd.f32 %v3321_v48, %v3184_v6  ;;  %v4868_v48 = vpop.permute.xlu1 %4867 }
 0x391   :  { %v3323_v32 = vpop.f32.mrf.mxu0 }
 0x392   :  { %v3398_v24 = vadd.f32 %v3323_v32, %v3185_v56 }
 0x393   :  { %v2388_v14 = vpop.f32.mrf.mxu1 }
 0x394   :  { %v3534_v59 = vpop.f32.mrf.mxu0  ;;  %v2389_v63 = vadd.f32 %v2388_v14, %v2220_v51  ;;  %v16117_v56 = vpop.permute.xlu1 %4871 }
 0x395   :  { %v16076_v57 = vpop.f32.mrf.mxu1  ;;  %v3610_v38 = vadd.f32 %v3534_v59, %v3397_v50 }
 0x396   :  { %v3536_v37 = vpop.f32.mrf.mxu0 }
 0x397   :  { %v2597_v43 = vpop.f32.mrf.mxu1  ;;  %v3611_v44 = vadd.f32 %v3536_v37, %v3398_v24 }
 0x398   :  { %v3747_v53 = vpop.f32.mrf.mxu0  ;;  %v2604_v32 = vadd.f32 %v2597_v43, %v2389_v63 }
 0x399   :  { %v3823_v31 = vadd.f32 %v3747_v53, %v3610_v38  ;;  %v16080_v62 = vpop.f32.mrf.mxu1  ;;  %v4294_v38 = vsel %vm536_vm4, %v4288_v8, %v16078_v17  ;;  %v5081_v53 = vpop.permute.xlu0 %5080 }
 0x39a   :  { %v3749_v58 = vpop.f32.mrf.mxu0  ;;  %v5083_v8 = vpop.permute.xlu1 %5082 }
 0x39b   :  { %v3833_v40 = vadd.f32 %v16053_v39, %v3823_v31  ;;  %v3824_v18 = vadd.f32 %v3749_v58, %v3611_v44  ;;  %v2810_v9 = vpop.f32.mrf.mxu1 }
 0x39c   :  { %v2817_v51 = vadd.f32 %v2810_v9, %v2604_v32 }
 0x39d   :  { %v16083_v42 = vmax.f32 %v3833_v40, 0.0  ;;  %v3834_v15 = vadd.f32 %v16053_v39, %v3824_v18  ;;  %v16086_v52 = vpop.f32.mrf.mxu1  ;;  %v4507_v18 = vsel %vm752_vm5, %v4501_v35, %v16088_v16 }
 0x39e   :  { %v5294_v63 = vpop.permute.xlu1 %5293 }
 0x39f   :  { %v2961_v61 = vpop.f32.mrf.mxu1  ;;  %v16095_v22 = vmax.f32 %v3834_v15, 0.0  ;;  %v3885_v23 = vmul.f32 %v3876_v19, %v16083_v42  ;;  %v3925_v28 = vmul.f32 %v3916_v10, %v16083_v42  ;;  %v4302_v6 = vmul.f32 %v4293_v41, %v16083_v42 }
 0x3a0   :  { %v2968_v50 = vadd.f32 %v2961_v61, %v2817_v51  ;;  %v4515_v24 = vmul.f32 %v4506_v54, %v16083_v42  ;;  %v4883_v40 = vmul.f32 %v4868_v48, %v16083_v42  ;;  %v4514_v19 = vmul.f32 %v4499_v33, %v16057_v20  ;;  %v16136_v61 = vpop.permute.xlu0 %5084 }
 0x3a1   :  { %v16100_v11 = vpop.f32.mrf.mxu1  ;;  %4106 = vrot.lane.b32.xlu0 %v3885_v23, %s14950_s18  ;;  %3938 = vrot.lane.b32.xlu1 %v3925_v28, %s14949_s14  ;;  %v3926_v0 = vmul.f32 %v3917_v45, %v16095_v22  ;;  %v3886_v37 = vmul.f32 %v3877_v46, %v16095_v22  ;;  %v4303_v58 = vmul.f32 %v4294_v38, %v16095_v22 }
 0x3a2   :  { %v4516_v28 = vmul.f32 %v4507_v18, %v16095_v22  ;;  %v5089_v35 = vsel %vm567_vm7, %v5083_v8, %v16136_v61  ;;  %v4876_v20 = vsel %vm783_vm6, %v4870_v13, %v16117_v56  ;;  %v16154_v54 = vpop.permute.xlu1 %5297  ;;  %v5088_v46 = vsel %vm567_vm7, %v5081_v53, %v5083_v8 }
 0x3a3   :  { %v3179_v60 = vpop.f32.mrf.mxu1  ;;  %v3907_v18 = vrot.slane %v15785_v36, %v15092_v29  ;;  %v4497_v36 = vrot.slane %v15826_v12, %v15092_v29 }
 0x3a4   :  { %v3186_v44 = vadd.f32 %v3179_v60, %v2968_v50  ;;  %v5296_v33 = vpop.permute.xlu0 %5295  ;;  %v5097_v50 = vmul.f32 %v5088_v46, %v16095_v22 }
 0x3a5   :  { %v16110_v59 = vpop.f32.mrf.mxu1  ;;  %3940 = vrot.lane.b32.xlu0 %v3926_v0, %s14949_s14  ;;  %4315 = vrot.lane.b32.xlu1 %v4302_v6, %s14948_s28  ;;  %v4875_v0 = vsel %vm783_vm6, %v4868_v48, %v4870_v13  ;;  %v5096_v6 = vmul.f32 %v5081_v53, %v16083_v42  ;;  %v5309_v48 = vmul.f32 %v5294_v63, %v16083_v42 }
 0x3a6   :  { %v4884_v51 = vmul.f32 %v4875_v0, %v16095_v22  ;;  %v5301_v13 = vsel %vm185_vm8, %v5294_v63, %v5296_v33  ;;  %v16226_v0 = vld [vmem:[%s20274_s3] sm:$0xff] }
 0x3a7   :  { %v3392_v14 = vpop.f32.mrf.mxu1  ;;  %v5310_v53 = vmul.f32 %v5301_v13, %v16095_v22 }
 0x3a8   :  { %v3399_v31 = vadd.f32 %v3392_v14, %v3186_v44  ;;  %v5507_v14 = vpop.permute.xlu0 %5506 }
 0x3a9   :  { %v16123_v43 = vpop.f32.mrf.mxu1  ;;  %4108 = vrot.lane.b32.xlu1 %v3886_v37, %s14950_s18  ;;  %4528 = vrot.lane.b32.xlu0 %v4515_v24, %s14947_s26  ;;  %v5302_v37 = vsel %vm185_vm8, %v5296_v33, %v16154_v54  ;;  %v5509_v24 = vpop.permute.xlu1 %5508  ;;  %v5522_v8 = vmul.f32 %v5507_v14, %v16083_v42 }
 0x3ab   :  { %v3605_v49 = vpop.f32.mrf.mxu1 }
 0x3ac   :  { %v3612_v15 = vadd.f32 %v3605_v49, %v3399_v31  ;;  %v16165_v38 = vpop.permute.xlu0 %5510  ;;  %v5514_v49 = vsel %vm355_vm9, %v5507_v14, %v5509_v24 }
 0x3ad   :  { %v16131_v9 = vpop.f32.mrf.mxu1  ;;  %4317 = vrot.lane.b32.xlu0 %v4303_v58, %s14948_s28  ;;  %4895 = vrot.lane.b32.xlu1 %v4883_v40, %s14946_s0  ;;  %v5515_v31 = vsel %vm355_vm9, %v5509_v24, %v16165_v38  ;;  %v5523_v58 = vmul.f32 %v5514_v49, %v16095_v22  ;;  %v3937_v12 = vpop.permute.xlu1 %3936  ;;  %v2391_v49 = vadd.f32 %v16076_v57, %v16074_v30 }
 0x3af   :  { %v3818_v10 = vpop.f32.mrf.mxu1 }
 0x3b0   :  { %v3825_v23 = vadd.f32 %v3818_v10, %v3612_v15  ;;  %v4284_v15 = vrot.slane %v15815_v25, %v15092_v29  ;;  %v3867_v10 = vrot.slane %v15798_v7, %v15092_v29  ;;  %v5292_v25 = vrot.slane %v15871_v26, %v15092_v29 }
 0x3b1   :  { %4526 = vrot.lane.b32.xlu0 %v4514_v19, %s14947_s26  ;;  %4530 = vrot.lane.b32.xlu1 %v4516_v28, %s14947_s26  ;;  %v4866_v19 = vrot.slane %v15843_v47, %v15092_v29  ;;  %v5079_v7 = vrot.slane %v15854_v34, %v15092_v29  ;;  %v5505_v47 = vrot.slane %v15882_v27, %v15092_v29  ;;  %v4314_v28 = vpop.permute.xlu1 %4313 }
 0x3b2   :  { %v3835_v41 = vadd.f32 %v16053_v39, %v3825_v23  ;;  %v4105_v23 = vpop.permute.xlu0 %4104 }
 0x3b4   :  { %v16144_v45 = vmax.f32 %v3835_v41, 0.0 }
 0x3b6   :  { %v4885_v60 = vmul.f32 %v4876_v20, %v16144_v45  ;;  %v5098_v32 = vmul.f32 %v5089_v35, %v16144_v45  ;;  %v5311_v44 = vmul.f32 %v5302_v37, %v16144_v45  ;;  %v5524_v40 = vmul.f32 %v5515_v31, %v16144_v45  ;;  %v16213_v20 = vld [vmem:[%s20274_s3 + $0x8] sm:$0xff] }
 0x3b7   :  { %v2605_v31 = vadd.f32 %v16080_v62, %v2391_v49 }
 0x3b8   :  { %4899 = vrot.lane.b32.xlu0 %v4885_v60, %s14946_s0  ;;  %5112 = vrot.lane.b32.xlu1 %v5098_v32, %s14945_s23 }
 0x3b9   :  { %v2818_v57 = vadd.f32 %v16086_v52, %v2605_v31  ;;  %v16284_v52 = vld [vmem:[%s20274_s3 + $0x28] sm:$0xff] }
 0x3bb   :  { %v2969_v62 = vadd.f32 %v16100_v11, %v2818_v57  ;;  %v3820_v11 = vpop.f32.mrf.mxu1 }
 0x3bc   :  { %5108 = vrot.lane.b32.xlu0 %v5096_v6, %s14945_s23  ;;  %4897 = vrot.lane.b32.xlu1 %v4884_v51, %s14946_s0 }
 0x3c0   :  { %5110 = vrot.lane.b32.xlu0 %v5097_v50, %s14945_s23  ;;  %5321 = vrot.lane.b32.xlu1 %v5309_v48, %s14943_s13  ;;  %v16239_v50 = vld [vmem:[%s20274_s3 + $0x10] sm:$0xff] }
 0x3c4   :  { %5323 = vrot.lane.b32.xlu1 %v5310_v53, %s14943_s13  ;;  %5325 = vrot.lane.b32.xlu0 %v5311_v44, %s14943_s13  ;;  %v16253_v44 = vld [vmem:[%s20274_s3 + $0x18] sm:$0xff] }
 0x3c8   :  { %5538 = vrot.lane.b32.xlu1 %v5524_v40, %s14944_s16  ;;  %5536 = vrot.lane.b32.xlu0 %v5523_v58, %s14944_s16  ;;  %v16266_v58 = vld [vmem:[%s20274_s3 + $0x20] sm:$0xff] }
 0x3cc   :  { %3914 = vrot.lane.b32.xlu1 %v3907_v18, %s14943_s13  ;;  %5534 = vrot.lane.b32.xlu0 %v5522_v8, %s14944_s16  ;;  %v3187_v18 = vadd.f32 %v16110_v59, %v2969_v62 }
 0x3d0   :  { %4291 = vrot.lane.b32.xlu1 %v4284_v15, %s14945_s23  ;;  %3874 = vrot.lane.b32.xlu0 %v3867_v10, %s14944_s16  ;;  %v3400_v10 = vadd.f32 %v16123_v43, %v3187_v18  ;;  %v16297_v43 = vld [vmem:[%s20274_s3 + $0x30] sm:$0xff] }
 0x3d2   :  { %v3613_v59 = vadd.f32 %v16131_v9, %v3400_v10 }
 0x3d4   :  { %4873 = vrot.lane.b32.xlu1 %v4866_v19, %s14947_s26  ;;  %4504 = vrot.lane.b32.xlu0 %v4497_v36, %s14946_s0 }
 0x3d8   :  { %5299 = vrot.lane.b32.xlu1 %v5292_v25, %s14949_s14  ;;  %5086 = vrot.lane.b32.xlu0 %v5079_v7, %s14948_s28 }
 0x3dc   :  { %5512 = vrot.lane.b32.xlu0 %v5505_v47, %s14950_s18  ;;  %v3826_v47 = vadd.f32 %v3820_v11, %v3613_v59 }
 0x413   :  { %v4107_v41 = vpop.permute.xlu0 %4106  ;;  %v3939_v35 = vpop.permute.xlu1 %3938 }
 0x414   :  { %v3946_v27 = vsel %vm185_vm8, %v3937_v12, %v3939_v35  ;;  %v4114_v6 = vsel %vm355_vm9, %v4105_v23, %v4107_v41 }
 0x417   :  { %v16206_v63 = vpop.permute.xlu0 %3940  ;;  %v4316_v26 = vpop.permute.xlu1 %4315 }
 0x418   :  { %v3947_v34 = vsel %vm185_vm8, %v3939_v35, %v16206_v63  ;;  %v4323_v48 = vsel %vm567_vm7, %v4314_v28, %v4316_v26  ;;  %v3836_v35 = vadd.f32 %v16053_v39, %v3826_v47  ;;  %v16325_v39 = vld [vmem:[%s20274_s3 + $0x40] sm:$0xff] }
 0x419   :  { %3987 = vmatprep.subr.mxu0 %v3947_v34 }
 0x41a   :  { %3988 = vmatpush1.msra.mxu0 %v3946_v27 }
 0x41b   :  { %v4529_v33 = vpop.permute.xlu0 %4528  ;;  %v16216_v60 = vpop.permute.xlu1 %4108  ;;  %14537 = vmatmul.mubr.msk.f32.vlgmr.msra.gmra.mxu0 %vm194_vm10, %v16213_v20 }
 0x41c   :  { %v4115_v32 = vsel %vm355_vm9, %v4107_v41, %v16216_v60  ;;  %4189 = vmatprep.mubr.f32.mxu0 %v20284_v1  ;;  %v16310_v41 = vld [vmem:[%s20274_s3 + $0x38] sm:$0xff] }
 0x41d   :  { %4155 = vmatprep.subr.mxu0 %v4115_v32 }
 0x41e   :  { %4156 = vmatpush1.msra.mxu0 %v4114_v6 }
 0x41f   :  { %v16229_v51 = vpop.permute.xlu0 %4317  ;;  %v4896_v46 = vpop.permute.xlu1 %4895  ;;  %14539 = vmatmul.mubr.msk.f32.vlgmr.msra.gmra.mxu0 %vm194_vm10, %v16226_v0 }
 0x420   :  { %v4324_v14 = vsel %vm567_vm7, %v4316_v26, %v16229_v51  ;;  %4398 = vmatprep.mubr.f32.mxu0 %v20284_v1 }
 0x421   :  { %4364 = vmatprep.subr.mxu0 %v4324_v14 }
 0x422   :  { %4365 = vmatpush1.msra.mxu0 %v4323_v48 }
 0x423   :  { %v4527_v13 = vpop.permute.xlu0 %4526  ;;  %v16242_v37 = vpop.permute.xlu1 %4530  ;;  %14543 = vmatmul.mubr.msk.f32.vlgmr.msra.gmra.mxu0 %vm194_vm10, %v16239_v50 }
 0x424   :  { %v4536_v24 = vsel %vm783_vm6, %v4527_v13, %v4529_v33  ;;  %v4537_v53 = vsel %vm783_vm6, %v4529_v33, %v16242_v37  ;;  %4611 = vmatprep.mubr.f32.mxu0 %v20284_v1  ;;  %v16320_v33 = vmax.f32 %v3836_v35, 0.0 }
 0x425   :  { %4577 = vmatprep.subr.mxu0 %v4537_v53 }
 0x426   :  { %4578 = vmatpush1.msra.mxu0 %v4536_v24 }
 0x427   :  { %4728 = vmatprep.subr.mxu0 %v16095_v22  ;;  %14547 = vmatmul.mubr.msk.f32.vlgmr.msra.gmra.mxu0 %vm194_vm10, %v16253_v44 }
 0x428   :  { %4729 = vmatpush1.msra.mxu0 %v16083_v42  ;;  %4762 = vmatprep.mubr.f32.mxu0 %v20284_v1 }
 0x42a   :  { %v16268_v40 = vpop.permute.xlu0 %4899  ;;  %v16270_v30 = vpop.permute.xlu1 %5112 }
 0x42b   :  { %14550 = vmatmul.mubr.msk.f32.vlgmr.msra.gmra.mxu0 %vm194_vm10, %v16266_v58 }
 0x42c   :  { %4980 = vmatprep.mubr.f32.mxu0 %v20284_v1 }
 0x42e   :  { %v5109_v42 = vpop.permute.xlu0 %5108  ;;  %v4898_v22 = vpop.permute.xlu1 %4897 }
 0x42f   :  { %v4906_v8 = vsel %vm752_vm5, %v4898_v22, %v16268_v40  ;;  %v4905_v15 = vsel %vm752_vm5, %v4896_v46, %v4898_v22 }
 0x430   :  { %4946 = vmatprep.subr.mxu0 %v4906_v8 }
 0x431   :  { %4947 = vmatpush1.msra.mxu0 %v4905_v15 }
 0x432   :  { %v5111_v19 = vpop.permute.xlu0 %5110  ;;  %v5322_v36 = vpop.permute.xlu1 %5321  ;;  %14554 = vmatmul.mubr.msk.f32.vlgmr.msra.gmra.mxu0 %vm194_vm10, %v16284_v52 }
 0x433   :  { %v5119_v25 = vsel %vm536_vm4, %v5111_v19, %v16270_v30  ;;  %v5118_v7 = vsel %vm536_vm4, %v5109_v42, %v5111_v19  ;;  %5193 = vmatprep.mubr.f32.mxu0 %v20284_v1 }
 0x434   :  { %5159 = vmatprep.subr.mxu0 %v5119_v25  ;;  %v5834_v25 = vld [vmem:[#allocation3 + $0x388] sm:$0xff] }
 0x435   :  { %5160 = vmatpush1.msra.mxu0 %v5118_v7 }
 0x436   :  { %v16299_v12 = vpop.permute.xlu0 %5325  ;;  %v5324_v23 = vpop.permute.xlu1 %5323  ;;  %14558 = vmatmul.mubr.msk.f32.vlgmr.msra.gmra.mxu0 %vm194_vm10, %v16297_v43 }
 0x437   :  { %v5332_v9 = vsel %vm154_vm2, %v5324_v23, %v16299_v12  ;;  %v5331_v28 = vsel %vm154_vm2, %v5322_v36, %v5324_v23  ;;  %5406 = vmatprep.mubr.f32.mxu0 %v20284_v1  ;;  %v5841_v36 = vld [vmem:[#allocation3 + $0x3c0] sm:$0xff] }
 0x438   :  { %5372 = vmatprep.subr.mxu0 %v5332_v9  ;;  %v5826_v9 = vld [vmem:[#allocation3 + $0x348] sm:$0xff] }
 0x439   :  { %5373 = vmatpush1.msra.mxu0 %v5331_v28  ;;  %v5825_v28 = vld [vmem:[#allocation3 + $0x340] sm:$0xff] }
 0x43a   :  { %v5537_v26 = vpop.permute.xlu0 %5536  ;;  %v16313_v34 = vpop.permute.xlu1 %5538  ;;  %14562 = vmatmul.mubr.msk.f32.vlgmr.msra.gmra.mxu0 %vm194_vm10, %v16310_v41 }
 0x43b   :  { %v5545_v27 = vsel %vm112_vm3, %v5537_v26, %v16313_v34  ;;  %5619 = vmatprep.mubr.f32.mxu0 %v20284_v1 }
 0x43c   :  { %5585 = vmatprep.subr.mxu0 %v5545_v27 }
 0x43e   :  { %v5535_v32 = vpop.permute.xlu0 %5534  ;;  %v3915_v6 = vpop.permute.xlu1 %3914 }
 0x43f   :  { %v5544_v46 = vsel %vm112_vm3, %v5535_v32, %v5537_v26  ;;  %v3918_v14 = vsel %vm154_vm2, %v16061_v55, %v3915_v6  ;;  %v3928_v48 = vmul.f32 %v3915_v6, %v16320_v33  ;;  %v5818_v26 = vld [vmem:[#allocation3 + $0x308] sm:$0xff]  ;;  %v5817_v6 = vld [vmem:[#allocation3 + $0x300] sm:$0xff] }
 0x440   :  { %v3927_v13 = vmul.f32 %v3918_v14, %v16144_v45  ;;  %5586 = vmatpush1.msra.mxu0 %v5544_v46  ;;  %v14570_v32 = vld [vmem:[%s20281_s10 + $0x1] ss:$8 sm:$0xf] }
 0x441   :  { %14566 = vmatmul.mubr.msk.f32.vlgmr.msra.gmra.mxu0 %vm194_vm10, %v16325_v39  ;;  %3944 = vrot.lane.b32.xlu0 %v3928_v48, %s14949_s14  ;;  %v14571_v14 = vld [vmem:[%s20281_s10 + $0x1] ss:$8 sm:$0xf0] }
 0x442   :  { %v3875_v24 = vpop.permute.xlu0 %3874  ;;  %3942 = vrot.lane.b32.xlu1 %v3927_v13, %s14949_s14  ;;  %v4292_v53 = vpop.permute.xlu1 %4291  ;;  %v5810_v48 = vld [vmem:[#allocation3 + $0x2c8] sm:$0xff] }
 0x443   :  { %v3878_v49 = vsel %vm112_vm3, %v16072_v21, %v3875_v24  ;;  %v3888_v31 = vmul.f32 %v3875_v24, %v16320_v33  ;;  %v4295_v57 = vsel %vm536_vm4, %v16078_v17, %v4292_v53  ;;  %v4305_v42 = vmul.f32 %v4292_v53, %v16320_v33  ;;  %v4848_v21 = vld [vmem:[#allocation2 + $0x28] sm:$0xff] }
 0x444   :  { %v3887_v55 = vmul.f32 %v3878_v49, %v16144_v45  ;;  %v4304_v22 = vmul.f32 %v4295_v57, %v16144_v45  ;;  %v5802_v24 = vld [vmem:[#allocation3 + $0x288] sm:$0xff] }
 0x445   :  { %4112 = vrot.lane.b32.xlu0 %v3888_v31, %s14950_s18  ;;  %v16376_v31 = vor.u32 %v14571_v14, %v14570_v32  ;;  %v5794_v57 = vld [vmem:[#allocation3 + $0x248] sm:$0xff] }
 0x446   :  { %v4505_v62 = vpop.permute.xlu0 %4504  ;;  %4110 = vrot.lane.b32.xlu1 %v3887_v55, %s14950_s18  ;;  %v4874_v8 = vpop.permute.xlu1 %4873  ;;  %v5801_v55 = vld [vmem:[#allocation3 + $0x280] sm:$0xff] }
 0x447   :  { %v4508_v18 = vsel %vm752_vm5, %v16088_v16, %v4505_v62  ;;  %v4518_v17 = vmul.f32 %v4505_v62, %v16320_v33  ;;  %v4877_v10 = vsel %vm783_vm6, %v16117_v56, %v4874_v8  ;;  %v4887_v11 = vmul.f32 %v4874_v8, %v4848_v21  ;;  %v5842_v16 = vld [vmem:[#allocation3 + $0x3c8] sm:$0xff]  ;;  %v5833_v56 = vld [vmem:[#allocation3 + $0x380] sm:$0xff] }
 0x448   :  { %v4517_v15 = vmul.f32 %v4508_v18, %v16144_v45  ;;  %5977 = vmatprep.subr.mxu0 %v5842_v16  ;;  %v4886_v59 = vmul.f32 %v4877_v10, %v16320_v33  ;;  %v5785_v18 = vld [vmem:[#allocation3 + $0x200] sm:$0xff]  ;;  %v6758_v10 = vrot.slane %v16376_v31, %v15036_v3  ;;  %v6754_v16 = vrot.slane %v16376_v31, %v15042_v5 }
 0x449   :  { %4321 = vrot.lane.b32.xlu0 %v4305_v42, %s14948_s28  ;;  %5978 = vmatpush1.msra.mxu0 %v5841_v36  ;;  %v5793_v42 = vld [vmem:[#allocation3 + $0x240] sm:$0xff]  ;;  %v5762_v36 = vld [vmem:[#allocation3 + $0x148] sm:$0xff] }
 0x44a   :  { %4319 = vrot.lane.b32.xlu1 %v4304_v22, %s14948_s28  ;;  %v5087_v19 = vpop.permute.xlu0 %5086  ;;  %5979 = vmatprep.subr.mxu0 %v5834_v25  ;;  %v5300_v23 = vpop.permute.xlu1 %5299  ;;  %v5786_v22 = vld [vmem:[#allocation3 + $0x208] sm:$0xff]  ;;  %v5701_v8 = vld [vmem:[%s20278_s7] sm:$0xff] }
 0x44b   :  { %v5090_v7 = vsel %vm567_vm7, %v16136_v61, %v5087_v19  ;;  %v5100_v47 = vmul.f32 %v5087_v19, %v4848_v21  ;;  %5980 = vmatpush1.msra.mxu0 %v5833_v56  ;;  %v5303_v27 = vsel %vm185_vm8, %v16154_v54, %v5300_v23  ;;  %v5313_v61 = vmul.f32 %v5300_v23, %v4848_v21  ;;  %v5809_v54 = vld [vmem:[#allocation3 + $0x2c0] sm:$0xff]  ;;  %v5754_v25 = vld [vmem:[#allocation3 + $0x108] sm:$0xff] }
 0x44c   :  { %5981 = vmatprep.subr.mxu0 %v5826_v9  ;;  %v5099_v35 = vmul.f32 %v5090_v7, %v16320_v33  ;;  %v5312_v13 = vmul.f32 %v5303_v27, %v16320_v33  ;;  %v5769_v19 = vld [vmem:[#allocation3 + $0x180] sm:$0xff] }
 0x44d   :  { %4534 = vrot.lane.b32.xlu0 %v4518_v17, %s14947_s26  ;;  %5982 = vmatpush1.msra.mxu0 %v5825_v28  ;;  %v5777_v17 = vld [vmem:[#allocation3 + $0x1c0] sm:$0xff]  ;;  %v6762_v28 = vrot.slane %v16376_v31, %v15092_v29 }
 0x44e   :  { %4532 = vrot.lane.b32.xlu1 %v4517_v15, %s14947_s26  ;;  %5983 = vmatprep.subr.mxu0 %v5818_v26  ;;  %v5513_v46 = vpop.permute.xlu0 %5512  ;;  %v5770_v15 = vld [vmem:[#allocation3 + $0x188] sm:$0xff]  ;;  %v5753_v23 = vld [vmem:[#allocation3 + $0x100] sm:$0xff] }
 0x44f   :  { %5984 = vmatpush1.msra.mxu0 %v5817_v6  ;;  %v5516_v53 = vsel %vm355_vm9, %v16165_v38, %v5513_v46  ;;  %v5526_v49 = vmul.f32 %v5513_v46, %v4848_v21  ;;  %v6750_v38 = vrot.slane %v16376_v31, %v15039_v4  ;;  %v5778_v21 = vld [vmem:[#allocation3 + $0x1c8] sm:$0xff]  ;;  %v5745_v27 = vld [vmem:[#allocation3 + $0xc0] sm:$0xff] }
 0x450   :  { %5985 = vmatprep.subr.mxu0 %v5810_v48  ;;  %v5525_v62 = vmul.f32 %v5516_v53, %v16320_v33  ;;  %v14572_v56 = vld [vmem:[%s20281_s10 + $0x41] ss:$8 sm:$0xf]  ;;  %v16422_v48 = vsub.s32 7, %v15033_v2 }
 0x451   :  { %4903 = vrot.lane.b32.xlu0 %v4887_v11, %s14946_s0  ;;  %5986 = vmatpush1.msra.mxu0 %v5809_v54  ;;  %v16391_v11 = vsub.s32 4, %v15033_v2  ;;  %v14573_v9 = vld [vmem:[%s20281_s10 + $0x41] ss:$8 sm:$0xf0] }
 0x452   :  { %4901 = vrot.lane.b32.xlu1 %v4886_v59, %s14946_s0  ;;  %5987 = vmatprep.subr.mxu0 %v5802_v24  ;;  %v5761_v59 = vld [vmem:[#allocation3 + $0x140] sm:$0xff]  ;;  %v5746_v26 = vld [vmem:[#allocation3 + $0xc8] sm:$0xff]  ;;  %v16416_v6 = vor.u32 %v14573_v9, %v14572_v56 }
 0x453   :  { %5988 = vmatpush1.msra.mxu0 %v5801_v55  ;;  %v6766_v7 = vrot.slane %v16376_v31, %v16391_v11  ;;  %v5737_v46 = vld [vmem:[#allocation3 + $0x80] sm:$0xff]  ;;  %v5730_v54 = vld [vmem:[#allocation3 + $0x48] sm:$0xff]  ;;  %v6778_v55 = vrot.slane %v16376_v31, %v16422_v48 }
 0x454   :  { %5989 = vmatprep.subr.mxu0 %v5794_v57  ;;  %v5722_v24 = vld [vmem:[#allocation3 + $0x8] sm:$0xff]  ;;  %v6782_v53 = vrot.slane %v16416_v6, %v15039_v4  ;;  %v5969_v57 = vld [vmem:[#allocation3 + $0x7c0] sm:$0xff] }
 0x455   :  { %5116 = vrot.lane.b32.xlu0 %v5100_v47, %s14945_s23  ;;  %5990 = vmatpush1.msra.mxu0 %v5793_v42  ;;  %v16399_v47 = vsub.s32 6, %v15033_v2  ;;  %v6790_v42 = vrot.slane %v16416_v6, %v15036_v3  ;;  %v5929_v56 = vld [vmem:[#allocation3 + $0x680] sm:$0xff]  ;;  %v5922_v9 = vld [vmem:[#allocation3 + $0x648] sm:$0xff] }
 0x456   :  { %5114 = vrot.lane.b32.xlu1 %v5099_v35, %s14945_s23  ;;  %5991 = vmatprep.subr.mxu0 %v5786_v22  ;;  %v16411_v35 = vsub.s32 5, %v15033_v2  ;;  %v5970_v2 = vld [vmem:[#allocation3 + $0x7c8] sm:$0xff]  ;;  %v5961_v22 = vld [vmem:[#allocation3 + $0x780] sm:$0xff]  ;;  %s14955_s23 = smov 32  }
 0x457   :  { %5992 = vmatpush1.msra.mxu0 %v5785_v18  ;;  %v6774_v32 = vrot.slane %v16376_v31, %v16399_v47  ;;  %v5953_v18 = vld [vmem:[#allocation3 + $0x740] sm:$0xff] }
 0x458   :  { %5993 = vmatprep.subr.mxu0 %v5778_v21  ;;  %v6770_v14 = vrot.slane %v16376_v31, %v16411_v35  ;;  %v5954_v31 = vld [vmem:[#allocation3 + $0x748] sm:$0xff] }
 0x459   :  { %5329 = vrot.lane.b32.xlu0 %v5313_v61, %s14943_s13  ;;  %5994 = vmatpush1.msra.mxu0 %v5777_v17  ;;  %v5738_v61 = vld [vmem:[#allocation3 + $0x88] sm:$0xff] }
 0x45a   :  { %5327 = vrot.lane.b32.xlu1 %v5312_v13, %s14943_s13  ;;  %5995 = vmatprep.subr.mxu0 %v5770_v15  ;;  %v5729_v13 = vld [vmem:[#allocation3 + $0x40] sm:$0xff]  ;;  %v5946_v21 = vld [vmem:[#allocation3 + $0x708] sm:$0xff] }
 0x45b   :  { %5996 = vmatpush1.msra.mxu0 %v5769_v19  ;;  %v6580_v17 = vld [vmem:[%s20281_s10] ss:$8 sm:$0xf]  ;;  %v6794_v19 = vrot.slane %v16416_v6, %v15092_v29 }
 0x45c   :  { %5997 = vmatprep.subr.mxu0 %v5762_v36  ;;  %v5945_v15 = vld [vmem:[#allocation3 + $0x700] sm:$0xff] }
 0x45d   :  { %5542 = vrot.lane.b32.xlu0 %v5526_v49, %s14944_s16  ;;  %5998 = vmatpush1.msra.mxu0 %v5761_v59  ;;  %v5721_v49 = vld [vmem:[#allocation3] sm:$0xff]  ;;  %v5930_v59 = vld [vmem:[#allocation3 + $0x688] sm:$0xff] }
 0x45e   :  { %5540 = vrot.lane.b32.xlu1 %v5525_v62, %s14944_s16  ;;  %5999 = vmatprep.subr.mxu0 %v5754_v25  ;;  %v5962_v62 = vld [vmem:[#allocation3 + $0x788] sm:$0xff]  ;;  %v5937_v36 = vld [vmem:[#allocation3 + $0x6c0] sm:$0xff]  ;;  %v6806_v25 = vrot.slane %v16416_v6, %v16399_v47 }
 0x45f   :  { %6000 = vmatpush1.msra.mxu0 %v5753_v23  ;;  %v6802_v23 = vrot.slane %v16416_v6, %v16411_v35 }
 0x460   :  { %6001 = vmatprep.subr.mxu0 %v5746_v26  ;;  %v5914_v26 = vld [vmem:[#allocation3 + $0x608] sm:$0xff] }
 0x461   :  { %6811 = vrot.lane.b32.xlu0 %v6750_v38, %s14952_s19  ;;  %6002 = vmatpush1.msra.mxu0 %v5745_v27  ;;  %v6786_v38 = vrot.slane %v16416_v6, %v15042_v5 }
 0x462   :  { %5704 = vperm.xlu1 %14794, %v5701_v8   ;;  %6003 = vmatprep.subr.mxu0 %v5738_v61  ;;  %v6798_v8 = vrot.slane %v16416_v6, %v16391_v11  ;;  %v5913_v61 = vld [vmem:[#allocation3 + $0x600] sm:$0xff] }
 0x463   :  { %6004 = vmatpush1.msra.mxu0 %v5737_v46  ;;  %v5906_v46 = vld [vmem:[#allocation3 + $0x5c8] sm:$0xff] }
 0x464   :  { %6005 = vmatprep.subr.mxu0 %v5730_v54  ;;  %v5898_v54 = vld [vmem:[#allocation3 + $0x588] sm:$0xff] }
 0x465   :  { %6815 = vrot.lane.b32.xlu0 %v6758_v10, %s14952_s19  ;;  %6006 = vmatpush1.msra.mxu0 %v5729_v13  ;;  %v6581_v10 = vld [vmem:[%s20281_s10] ss:$8 sm:$0xf0] }
 0x466   :  { %6813 = vrot.lane.b32.xlu1 %v6754_v16, %s14952_s19  ;;  %6007 = vmatprep.subr.mxu0 %v5722_v24  ;;  %v5938_v16 = vld [vmem:[#allocation3 + $0x6c8] sm:$0xff]  ;;  %v5897_v24 = vld [vmem:[#allocation3 + $0x580] sm:$0xff] }
 0x467   :  { %6008 = vmatpush1.msra.mxu0 %v5721_v49  ;;  %v5889_v49 = vld [vmem:[#allocation3 + $0x540] sm:$0xff] }
 0x468   :  { %6009 = vmatprep.subr.mxu0 %v5970_v2 }
 0x469   :  { %6819 = vrot.lane.b32.xlu0 %v6766_v7, %s14952_s19  ;;  %6010 = vmatpush2.msra.mxu0 %v5969_v57  ;;  %v16451_v7 = vor.u32 %v6581_v10, %v6580_v17  ;;  %v14568_v57 = vld [vmem:[%s20281_s10 + $0x40] ss:$8 sm:$0xf] }
 0x46a   :  { %6817 = vrot.lane.b32.xlu1 %v6762_v28, %s14952_s19  ;;  %6011 = vmatprep.subr.mxu0 %v5962_v62  ;;  %v5921_v28 = vld [vmem:[#allocation3 + $0x640] sm:$0xff]  ;;  %v5858_v10 = vld [vmem:[#allocation3 + $0x448] sm:$0xff] }
 0x46b   :  { %6012 = vmatpush2.msra.mxu0 %v5961_v22  ;;  %v6592_v27 = vrot.slane %v16451_v7, %v15039_v4  ;;  %v6600_v13 = vrot.slane %v16451_v7, %v15036_v3  ;;  %v6608_v2 = vrot.slane %v16451_v7, %v16391_v11  ;;  %v5881_v62 = vld [vmem:[#allocation3 + $0x500] sm:$0xff]  ;;  %v6604_v22 = vrot.slane %v16451_v7, %v15092_v29 }
 0x46c   :  { %6013 = vmatprep.subr.mxu0 %v5954_v31  ;;  %v5873_v31 = vld [vmem:[#allocation3 + $0x4c0] sm:$0xff] }
 0x46d   :  { %6823 = vrot.lane.b32.xlu0 %v6774_v32, %s14952_s19  ;;  %6014 = vmatpush2.msra.mxu0 %v5953_v18  ;;  %v6810_v32 = vrot.slane %v16416_v6, %v16422_v48  ;;  %v5890_v6 = vld [vmem:[#allocation3 + $0x548] sm:$0xff]  ;;  %v6616_v18 = vrot.slane %v16451_v7, %v16399_v47  ;;  %v5865_v17 = vld [vmem:[#allocation3 + $0x480] sm:$0xff] }
 0x46e   :  { %6821 = vrot.lane.b32.xlu1 %v6770_v14, %s14952_s19  ;;  %6015 = vmatprep.subr.mxu0 %v5946_v21  ;;  %v5905_v14 = vld [vmem:[#allocation3 + $0x5c0] sm:$0xff] }
 0x46f   :  { %6016 = vmatpush2.msra.mxu0 %v5945_v15  ;;  %v6612_v15 = vrot.slane %v16451_v7, %v16411_v35 }
 0x470   :  { %6017 = vmatprep.subr.mxu0 %v5938_v16  ;;  %v5850_v16 = vld [vmem:[#allocation3 + $0x408] sm:$0xff] }
 0x471   :  { %6827 = vrot.lane.b32.xlu0 %v6782_v53, %s14952_s19  ;;  %6018 = vmatpush2.msra.mxu0 %v5937_v36  ;;  %v6596_v53 = vrot.slane %v16451_v7, %v15042_v5 }
 0x472   :  { %6825 = vrot.lane.b32.xlu1 %v6778_v55, %s14952_s19  ;;  %6019 = vmatprep.subr.mxu0 %v5930_v59  ;;  %v5882_v55 = vld [vmem:[#allocation3 + $0x508] sm:$0xff]  ;;  %v5849_v59 = vld [vmem:[#allocation3 + $0x400] sm:$0xff] }
 0x473   :  { %6020 = vmatpush2.msra.mxu0 %v5929_v56  ;;  %v5846_v56 = vld [vmem:[#allocation3 + $0x3e8] sm:$0xff] }
 0x474   :  { %6021 = vmatprep.subr.mxu0 %v5922_v9 }
 0x475   :  { %6831 = vrot.lane.b32.xlu0 %v6790_v42, %s14952_s19  ;;  %6022 = vmatpush2.msra.mxu0 %v5921_v28  ;;  %v14569_v42 = vld [vmem:[%s20281_s10 + $0x40] ss:$8 sm:$0xf0] }
 0x476   :  { %6829 = vrot.lane.b32.xlu1 %v6786_v38, %s14952_s19  ;;  %6023 = vmatprep.subr.mxu0 %v5914_v26  ;;  %v5874_v38 = vld [vmem:[#allocation3 + $0x4c8] sm:$0xff]  ;;  %v6586_v21 = vor.u32 %v14569_v42, %v14568_v57 }
 0x477   :  { %6024 = vmatpush2.msra.mxu0 %v5913_v61  ;;  %v14608_v61 = vld [vmem:[%s20281_s10 + $0x2] ss:$8 sm:$0xf] }
 0x478   :  { %6025 = vmatprep.subr.mxu0 %v5906_v46  ;;  %v6624_v36 = vrot.slane %v6586_v21, %v15039_v4  ;;  %v6628_v9 = vrot.slane %v6586_v21, %v15042_v5  ;;  %v6640_v28 = vrot.slane %v6586_v21, %v16391_v11  ;;  %v6648_v26 = vrot.slane %v6586_v21, %v16399_v47  ;;  %v14611_v57 = vld [vmem:[%s20281_s10 + $0x42] ss:$8 sm:$0xf0] }
 0x479   :  { %6835 = vrot.lane.b32.xlu0 %v6798_v8, %s14952_s19  ;;  %6026 = vmatpush2.msra.mxu0 %v5905_v14  ;;  %v5866_v8 = vld [vmem:[#allocation3 + $0x488] sm:$0xff]  ;;  %v6652_v46 = vrot.slane %v6586_v21, %v16422_v48 }
 0x47a   :  { %6833 = vrot.lane.b32.xlu1 %v6794_v19, %s14952_s19  ;;  %6027 = vmatprep.subr.mxu0 %v5898_v54  ;;  %v5857_v19 = vld [vmem:[#allocation3 + $0x440] sm:$0xff] }
 0x47b   :  { %6028 = vmatpush2.msra.mxu0 %v5897_v24 }
 0x47c   :  { %6029 = vmatprep.subr.mxu0 %v5890_v6 }
 0x47d   :  { %6839 = vrot.lane.b32.xlu0 %v6806_v25, %s14952_s19  ;;  %6030 = vmatpush2.msra.mxu0 %v5889_v49  ;;  %v6620_v25 = vrot.slane %v16451_v7, %v16422_v48  ;;  %v6636_v7 = vrot.slane %v6586_v21, %v15092_v29 }
 0x47e   :  { %6837 = vrot.lane.b32.xlu1 %v6802_v23, %s14952_s19  ;;  %6031 = vmatprep.subr.mxu0 %v5882_v55  ;;  %v6632_v23 = vrot.slane %v6586_v21, %v15036_v3 }
 0x47f   :  { %6032 = vmatpush2.msra.mxu0 %v5881_v62 }
 0x480   :  { %6033 = vmatprep.subr.mxu0 %v5874_v38 }
 0x481   :  { %6653 = vrot.lane.b32.xlu0 %v6592_v27, %s14953_s5  ;;  %6034 = vmatpush2.msra.mxu0 %v5873_v31  ;;  %v6644_v27 = vrot.slane %v6586_v21, %v16411_v35 }
 0x482   :  { %6841 = vrot.lane.b32.xlu1 %v6810_v32, %s14952_s19  ;;  %6035 = vmatprep.subr.mxu0 %v5866_v8  ;;  %v14609_v32 = vld [vmem:[%s20281_s10 + $0x2] ss:$8 sm:$0xf0] }
 0x483   :  { %6036 = vmatpush2.msra.mxu0 %v5865_v17  ;;  %v16512_v14 = vor.u32 %v14609_v32, %v14608_v61  ;;  %v5836_v32 = vld [vmem:[#allocation3 + $0x398] sm:$0xff] }
 0x484   :  { %6037 = vmatprep.subr.mxu0 %v5858_v10 }
 0x485   :  { %6657 = vrot.lane.b32.xlu0 %v6600_v13, %s14953_s5  ;;  %6038 = vmatpush2.msra.mxu0 %v5857_v19  ;;  %v8321_v54 = vrot.slane %v16512_v14, %v15039_v4  ;;  %v8329_v13 = vrot.slane %v16512_v14, %v15036_v3  ;;  %v8345_v42 = vrot.slane %v16512_v14, %v16399_v47 }
 0x486   :  { %6655 = vrot.lane.b32.xlu1 %v6596_v53, %s14953_s5  ;;  %6039 = vmatprep.subr.mxu0 %v5850_v16  ;;  %v8337_v53 = vrot.slane %v16512_v14, %v16391_v11  ;;  %v8325_v61 = vrot.slane %v16512_v14, %v15042_v5 }
 0x487   :  { %6040 = vmatpush2.msra.mxu0 %v5849_v59 }
 0x488   :  { %6119 = vmatprep.subr.mxu0 %v5846_v56 }
 0x489   :  { %6661 = vrot.lane.b32.xlu0 %v6608_v2, %s14953_s5  ;;  %v14610_v2 = vld [vmem:[%s20281_s10 + $0x42] ss:$8 sm:$0xf] }
 0x48a   :  { %6659 = vrot.lane.b32.xlu1 %v6604_v22, %s14953_s5  ;;  %v16541_v31 = vor.u32 %v14611_v57, %v14610_v2  ;;  %v8341_v2 = vrot.slane %v16512_v14, %v16411_v35 }
 0x48c   :  { %v8353_v21 = vrot.slane %v16541_v31, %v15039_v4  ;;  %v8369_v16 = vrot.slane %v16541_v31, %v16391_v11  ;;  %v8377_v59 = vrot.slane %v16541_v31, %v16399_v47 }
 0x48d   :  { %6665 = vrot.lane.b32.xlu0 %v6616_v18, %s14953_s5 }
 0x48e   :  { %6663 = vrot.lane.b32.xlu1 %v6612_v15, %s14953_s5  ;;  %v8361_v15 = vrot.slane %v16541_v31, %v15036_v3 }
 0x491   :  { %6669 = vrot.lane.b32.xlu0 %v6624_v36, %s14953_s5 }
 0x492   :  { %6667 = vrot.lane.b32.xlu1 %v6620_v25, %s14953_s5 }
 0x495   :  { %6673 = vrot.lane.b32.xlu0 %v6632_v23, %s14953_s5 }
 0x496   :  { %6671 = vrot.lane.b32.xlu1 %v6628_v9, %s14953_s5 }
 0x499   :  { %6677 = vrot.lane.b32.xlu0 %v6640_v28, %s14953_s5 }
 0x49a   :  { %6675 = vrot.lane.b32.xlu1 %v6636_v7, %s14953_s5  ;;  %v5844_v7 = vld [vmem:[#allocation3 + $0x3d8] sm:$0xff] }
 0x49d   :  { %6681 = vrot.lane.b32.xlu0 %v6648_v26, %s14953_s5  ;;  %v16594_v26 = vld [vmem:[#allocation2] sm:$0xff] }
 0x49e   :  { %6679 = vrot.lane.b32.xlu1 %v6644_v27, %s14953_s5 }
 0x4a2   :  { %6683 = vrot.lane.b32.xlu1 %v6652_v46, %s14953_s5 }
 0x4a6   :  { %8382 = vrot.lane.b32.xlu1 %v8321_v54, %s14954_s2  ;;  %v5827_v54 = vld [vmem:[#allocation3 + $0x350] sm:$0xff] }
 0x4aa   :  { %8386 = vrot.lane.b32.xlu1 %v8329_v13, %s14954_s2  ;;  %v8333_v13 = vrot.slane %v16512_v14, %v15092_v29 }
 0x4ae   :  { %8390 = vrot.lane.b32.xlu1 %v8337_v53, %s14954_s2 }
 0x4b2   :  { %8394 = vrot.lane.b32.xlu1 %v8345_v42, %s14954_s2 }
 0x4b3   :  { %v3945_v24 = vpop.permute.xlu0 %3944 }
 0x4b4   :  { %v3943_v6 = vpop.permute.xlu1 %3942 }
 0x4b5   :  { %v3949_v49 = vsel %vm185_vm8, %v3943_v6, %v3945_v24  ;;  %v3948_v55 = vsel %vm185_vm8, %v16206_v63, %v3943_v6  ;;  %v5820_v24 = vld [vmem:[#allocation3 + $0x318] sm:$0xff]  ;;  %v5819_v6 = vld [vmem:[#allocation3 + $0x310] sm:$0xff] }
 0x4b6   :  { %4058 = vmatprep.subr.mxu1 %v3949_v49  ;;  %8398 = vrot.lane.b32.xlu1 %v8353_v21, %s14954_s2  ;;  %v8349_v21 = vrot.slane %v16512_v14, %v16422_v48  ;;  %v5772_v14 = vld [vmem:[#allocation3 + $0x198] sm:$0xff] }
 0x4b7   :  { %v4113_v62 = vpop.permute.xlu0 %4112  ;;  %4059 = vmatpush1.msra.mxu1 %v3948_v55  ;;  %v5812_v55 = vld [vmem:[#allocation3 + $0x2d8] sm:$0xff] }
 0x4b8   :  { %14538 = vmatmul.mubr.msk.f32.vlgmr.msra.gmra.mxu1 %vm194_vm10, %v16213_v20  ;;  %v4111_v63 = vpop.permute.xlu1 %4110 }
 0x4b9   :  { %v4117_v22 = vsel %vm355_vm9, %v4111_v63, %v4113_v62  ;;  %v4116_v38 = vsel %vm355_vm9, %v16216_v60, %v4111_v63  ;;  %4260 = vmatprep.mubr.f32.mxu1 %v20284_v1  ;;  %v5804_v62 = vld [vmem:[#allocation3 + $0x298] sm:$0xff]  ;;  %v5803_v63 = vld [vmem:[#allocation3 + $0x290] sm:$0xff] }
 0x4ba   :  { %4226 = vmatprep.subr.mxu1 %v4117_v22  ;;  %8402 = vrot.lane.b32.xlu1 %v8361_v15, %s14954_s2 }
 0x4bb   :  { %v4322_v18 = vpop.permute.xlu0 %4321  ;;  %4227 = vmatpush1.msra.mxu1 %v4116_v38  ;;  %v5796_v38 = vld [vmem:[#allocation3 + $0x258] sm:$0xff] }
 0x4bc   :  { %14540 = vmatmul.mubr.msk.f32.vlgmr.msra.gmra.mxu1 %vm194_vm10, %v16226_v0  ;;  %v4320_v20 = vpop.permute.xlu1 %4319 }
 0x4bd   :  { %v4326_v8 = vsel %vm567_vm7, %v4320_v20, %v4322_v18  ;;  %v4325_v60 = vsel %vm567_vm7, %v16229_v51, %v4320_v20  ;;  %4469 = vmatprep.mubr.f32.mxu1 %v20284_v1  ;;  %v5795_v18 = vld [vmem:[#allocation3 + $0x250] sm:$0xff] }
 0x4be   :  { %4435 = vmatprep.subr.mxu1 %v4326_v8  ;;  %8406 = vrot.lane.b32.xlu1 %v8369_v16, %s14954_s2  ;;  %v5788_v8 = vld [vmem:[#allocation3 + $0x218] sm:$0xff] }
 0x4bf   :  { %v4535_v17 = vpop.permute.xlu0 %4534  ;;  %4436 = vmatpush1.msra.mxu1 %v4325_v60 }
 0x4c0   :  { %14544 = vmatmul.mubr.msk.f32.vlgmr.msra.gmra.mxu1 %vm194_vm10, %v16239_v50  ;;  %v4533_v0 = vpop.permute.xlu1 %4532 }
 0x4c1   :  { %v4539_v10 = vsel %vm783_vm6, %v4533_v0, %v4535_v17  ;;  %v4538_v19 = vsel %vm783_vm6, %v16242_v37, %v4533_v0  ;;  %4682 = vmatprep.mubr.f32.mxu1 %v20284_v1  ;;  %v5787_v17 = vld [vmem:[#allocation3 + $0x210] sm:$0xff]  ;;  %v5780_v0 = vld [vmem:[#allocation3 + $0x1d8] sm:$0xff] }
 0x4c2   :  { %4648 = vmatprep.subr.mxu1 %v4539_v10  ;;  %8410 = vrot.lane.b32.xlu1 %v8377_v59, %s14954_s2 }
 0x4c3   :  { %v4904_v51 = vpop.permute.xlu0 %4903  ;;  %4649 = vmatpush1.msra.mxu1 %v4538_v19  ;;  %v5779_v19 = vld [vmem:[#allocation3 + $0x1d0] sm:$0xff] }
 0x4c4   :  { %14548 = vmatmul.mubr.msk.f32.vlgmr.msra.gmra.mxu1 %vm194_vm10, %v16253_v44  ;;  %4799 = vmatprep.subr.mxu1 %v16320_v33  ;;  %v4902_v50 = vpop.permute.xlu1 %4901 }
 0x4c5   :  { %4800 = vmatpush1.msra.mxu1 %v16144_v45  ;;  %v4908_v37 = vsel %vm752_vm5, %v4902_v50, %v4904_v51  ;;  %4833 = vmatprep.mubr.f32.mxu1 %v20284_v1  ;;  %v4907_v44 = vsel %vm752_vm5, %v16268_v40, %v4902_v50  ;;  %v8357_v51 = vrot.slane %v16541_v31, %v15042_v5 }
 0x4c6   :  { %5017 = vmatprep.subr.mxu1 %v4908_v37 }
 0x4c7   :  { %v5117_v36 = vpop.permute.xlu0 %5116 }
 0x4c8   :  { %14551 = vmatmul.mubr.msk.f32.vlgmr.msra.gmra.mxu1 %vm194_vm10, %v16266_v58  ;;  %v5115_v33 = vpop.permute.xlu1 %5114 }
 0x4c9   :  { %5018 = vmatpush1.msra.mxu1 %v4907_v44  ;;  %v5121_v45 = vsel %vm536_vm4, %v5115_v33, %v5117_v36  ;;  %5051 = vmatprep.mubr.f32.mxu1 %v20284_v1  ;;  %v5120_v56 = vsel %vm536_vm4, %v16270_v30, %v5115_v33  ;;  %v5771_v36 = vld [vmem:[#allocation3 + $0x190] sm:$0xff]  ;;  %v5764_v44 = vld [vmem:[#allocation3 + $0x158] sm:$0xff] }
 0x4ca   :  { %5230 = vmatprep.subr.mxu1 %v5121_v45  ;;  %v5763_v45 = vld [vmem:[#allocation3 + $0x150] sm:$0xff] }
 0x4cb   :  { %v5330_v25 = vpop.permute.xlu0 %5329 }
 0x4cc   :  { %14555 = vmatmul.mubr.msk.f32.vlgmr.msra.gmra.mxu1 %vm194_vm10, %v16284_v52  ;;  %v5328_v58 = vpop.permute.xlu1 %5327 }
 0x4cd   :  { %5231 = vmatpush1.msra.mxu1 %v5120_v56  ;;  %v5334_v40 = vsel %vm154_vm2, %v5328_v58, %v5330_v25  ;;  %5264 = vmatprep.mubr.f32.mxu1 %v20284_v1  ;;  %v5333_v9 = vsel %vm154_vm2, %v16299_v12, %v5328_v58  ;;  %v5843_v12 = vld [vmem:[#allocation3 + $0x3d0] sm:$0xff]  ;;  %v8365_v25 = vrot.slane %v16541_v31, %v15092_v29  ;;  %v5756_v58 = vld [vmem:[#allocation3 + $0x118] sm:$0xff] }
 0x4ce   :  { %5443 = vmatprep.subr.mxu1 %v5334_v40 }
 0x4cf   :  { %v5543_v23 = vpop.permute.xlu0 %5542 }
 0x4d0   :  { %14559 = vmatmul.mubr.msk.f32.vlgmr.msra.gmra.mxu1 %vm194_vm10, %v16297_v43  ;;  %v5541_v28 = vpop.permute.xlu1 %5540 }
 0x4d1   :  { %5444 = vmatpush1.msra.mxu1 %v5333_v9  ;;  %v5547_v52 = vsel %vm112_vm3, %v5541_v28, %v5543_v23  ;;  %5477 = vmatprep.mubr.f32.mxu1 %v20284_v1  ;;  %v5546_v43 = vsel %vm112_vm3, %v16313_v34, %v5541_v28  ;;  %v5828_v34 = vld [vmem:[#allocation3 + $0x358] sm:$0xff]  ;;  %v5755_v9 = vld [vmem:[#allocation3 + $0x110] sm:$0xff] }
 0x4d2   :  { %5656 = vmatprep.subr.mxu1 %v5547_v52  ;;  %v5748_v52 = vld [vmem:[#allocation3 + $0xd8] sm:$0xff] }
 0x4d3   :  { %v16592_v30 = vpop.permute.xlu0 %6811 }
 0x4d4   :  { %20461 = vst [vmem:[#allocation7_spill] sm:$0xff] %v16592_v30  ;;  %v6876_v27 = vmul.f32 %v16594_v26, %v16592_v30  ;;  %14563 = vmatmul.mubr.msk.f32.vlgmr.msra.gmra.mxu1 %vm194_vm10, %v16310_v41  ;;  %v5835_v41 = vld [vmem:[#allocation3 + $0x390] sm:$0xff]  ;;  %v16855_v30 = vld [vmem:[#allocation3 + $0x1e8] sm:$0xff] }
 0x4d5   :  { %5657 = vmatpush1.msra.mxu1 %v5546_v43  ;;  %5690 = vmatprep.mubr.f32.mxu1 %v20284_v1  ;;  %v5740_v43 = vld [vmem:[#allocation3 + $0x98] sm:$0xff]  ;;  %20488 = vst [vmem:[#allocation34_spill] sm:$0xff] %v16855_v30 }
 0x4d6   :  { %6913 = vrot.lane.b32.xlu0 %v6876_v27, %s14955_s23  ;;  %6048 = vmatprep.subr.mxu1 %v5844_v7  ;;  %v5747_v27 = vld [vmem:[#allocation3 + $0xd0] sm:$0xff] }
 0x4d7   :  { %v16606_v46 = vpop.permute.xlu0 %6815 }
 0x4d8   :  { %20462 = vst [vmem:[#allocation8_spill] sm:$0xff] %v16606_v46  ;;  %14567 = vmatmul.mubr.msk.f32.vlgmr.msra.gmra.mxu1 %vm194_vm10, %v16325_v39  ;;  %v5811_v39 = vld [vmem:[#allocation3 + $0x2d0] sm:$0xff]  ;;  %v16846_v46 = vld [vmem:[#allocation3 + $0x338] sm:$0xff] }
 0x4d9   :  { %6049 = vmatpush1.msra.mxu1 %v5843_v12  ;;  %v8373_v12 = vrot.slane %v16541_v31, %v16411_v35  ;;  %20485 = vst [vmem:[#allocation31_spill] sm:$0xff] %v16846_v46 }
 0x4da   :  { %6050 = vmatprep.subr.mxu1 %v5836_v32  ;;  %8384 = vrot.lane.b32.xlu0 %v8325_v61, %s14954_s2  ;;  %v14630_v32 = vld [vmem:[%s20281_s10 + $0x3] ss:$8 sm:$0xf] }
 0x4db   :  { %6051 = vmatpush1.msra.mxu1 %v5835_v41  ;;  %v16613_v53 = vpop.permute.xlu0 %6819  ;;  %v4023_v49 = vpop.f32.mrf.mxu0  ;;  %v14631_v41 = vld [vmem:[%s20281_s10 + $0x3] ss:$8 sm:$0xf0] }
 0x4dc   :  { %20463 = vst [vmem:[#allocation9_spill] sm:$0xff] %v16613_v53  ;;  %6052 = vmatprep.subr.mxu1 %v5828_v34  ;;  %v16840_v53 = vld [vmem:[#allocation3 + $0x370] sm:$0xff] }
 0x4dd   :  { %6053 = vmatpush1.msra.mxu1 %v5827_v54  ;;  %v4025_v57 = vpop.f32.mrf.mxu0  ;;  %20483 = vst [vmem:[#allocation29_spill] sm:$0xff] %v16840_v53 }
 0x4de   :  { %6054 = vmatprep.subr.mxu1 %v5820_v24  ;;  %8388 = vrot.lane.b32.xlu0 %v8333_v13, %s14954_s2  ;;  %v16646_v13 = vld [vmem:[#allocation3 + $0x90] sm:$0xff]  ;;  %v16648_v24 = vld [vmem:[#allocation3 + $0x58] sm:$0xff] }
 0x4df   :  { %6055 = vmatpush1.msra.mxu1 %v5819_v6  ;;  %v16618_v42 = vpop.permute.xlu0 %6823  ;;  %v4191_v22 = vpop.f32.mrf.mxu0 }
 0x4e0   :  { %20464 = vst [vmem:[#allocation10_spill] sm:$0xff] %v16618_v42  ;;  %6056 = vmatprep.subr.mxu1 %v5812_v55  ;;  %v4192_v10 = vadd.f32 %v4191_v22, %v4023_v49  ;;  %v16651_v49 = vld [vmem:[#allocation3 + $0x50] sm:$0xff]  ;;  %v16823_v42 = vld [vmem:[#allocation3 + $0x2a0] sm:$0xff] }
 0x4e1   :  { %6057 = vmatpush1.msra.mxu1 %v5811_v39  ;;  %v4193_v20 = vpop.f32.mrf.mxu0  ;;  %v8381_v39 = vrot.slane %v16541_v31, %v16422_v48  ;;  %v16663_v22 = vld [vmem:[#allocation3 + $0x10] sm:$0xff]  ;;  %v16668_v31 = vld [vmem:[#allocation3 + $0x7d8] sm:$0xff]  ;;  %20477 = vst [vmem:[#allocation23_spill] sm:$0xff] %v16823_v42 }
 0x4e2   :  { %6058 = vmatprep.subr.mxu1 %v5804_v62  ;;  %8392 = vrot.lane.b32.xlu0 %v8341_v2, %s14954_s2  ;;  %v4194_v37 = vadd.f32 %v4193_v20, %v4025_v57  ;;  %v16655_v2 = vor.u32 %v14631_v41, %v14630_v32  ;;  %v16658_v57 = vld [vmem:[#allocation3 + $0x18] sm:$0xff] }
 0x4e3   :  { %6059 = vmatpush1.msra.mxu1 %v5803_v63  ;;  %v16623_v60 = vpop.permute.xlu0 %6827  ;;  %v4400_v15 = vpop.f32.mrf.mxu0  ;;  %v16728_v41 = vld [vmem:[#allocation3 + $0x658] sm:$0xff] }
 0x4e4   :  { %20465 = vst [vmem:[#allocation11_spill] sm:$0xff] %v16623_v60  ;;  %6060 = vmatprep.subr.mxu1 %v5796_v38  ;;  %v4476_v33 = vadd.f32 %v4400_v15, %v4192_v10  ;;  %v9218_v15 = vrot.slane %v16655_v2, %v15039_v4  ;;  %v16809_v60 = vld [vmem:[#allocation3 + $0x410] sm:$0xff] }
 0x4e5   :  { %6061 = vmatpush1.msra.mxu1 %v5795_v18  ;;  %v4402_v16 = vpop.f32.mrf.mxu0 }
 0x4e6   :  { %6062 = vmatprep.subr.mxu1 %v5788_v8  ;;  %8396 = vrot.lane.b32.xlu0 %v8349_v21, %s14954_s2  ;;  %v4477_v23 = vadd.f32 %v4402_v16, %v4194_v37  ;;  %v16670_v21 = vpop.permute.xlu1 %5704  ;;  %v16674_v8 = vld [vmem:[#allocation3 + $0x7d0] sm:$0xff]  ;;  %v16688_v16 = vld [vmem:[#allocation3 + $0x758] sm:$0xff] }
 0x4e7   :  { %6063 = vmatpush1.msra.mxu1 %v5787_v17  ;;  %v16628_v50 = vpop.permute.xlu0 %6831  ;;  %v4613_v59 = vpop.f32.mrf.mxu0 }
 0x4e8   :  { %20466 = vst [vmem:[#allocation12_spill] sm:$0xff] %v16628_v50  ;;  %6064 = vmatprep.subr.mxu1 %v5780_v0  ;;  %v4689_v7 = vadd.f32 %v4613_v59, %v4476_v33  ;;  %v9222_v0 = vrot.slane %v16655_v2, %v15042_v5  ;;  %v16699_v33 = vld [vmem:[#allocation3 + $0x718] sm:$0xff]  ;;  %v5813_v50 = vld [vmem:[#allocation3 + $0x2e0] sm:$0xff] }
 0x4e9   :  { %6065 = vmatpush1.msra.mxu1 %v5779_v19  ;;  %v4615_v56 = vpop.f32.mrf.mxu0  ;;  %v16685_v19 = vld [vmem:[#allocation3 + $0x790] sm:$0xff] }
 0x4ea   :  { %6066 = vmatprep.subr.mxu1 %v5772_v14  ;;  %8400 = vrot.lane.b32.xlu0 %v8357_v51, %s14954_s2  ;;  %v4690_v54 = vadd.f32 %v4615_v56, %v4477_v23  ;;  %v16690_v14 = vpop.permute.xlu1 %6813  ;;  %v16705_v56 = vld [vmem:[#allocation3 + $0x710] sm:$0xff]  ;;  %v16708_v23 = vld [vmem:[#allocation3 + $0x6d8] sm:$0xff] }
 0x4eb   :  { %6067 = vmatpush1.msra.mxu1 %v5771_v36  ;;  %v16633_v40 = vpop.permute.xlu0 %6835  ;;  %v4764_v28 = vpop.f32.mrf.mxu0  ;;  %20470 = vst [vmem:[#allocation16_spill] sm:$0xff] %v16690_v14  ;;  %v16694_v36 = vld [vmem:[#allocation3 + $0x750] sm:$0xff]  ;;  %v16858_v14 = vld [vmem:[#allocation3 + $0x2f8] sm:$0xff] }
 0x4ec   :  { %20467 = vst [vmem:[#allocation13_spill] sm:$0xff] %v16633_v40  ;;  %6068 = vmatprep.subr.mxu1 %v5764_v44  ;;  %v4840_v6 = vadd.f32 %v4764_v28, %v4689_v7  ;;  %v9226_v44 = vrot.slane %v16655_v2, %v15036_v3  ;;  %v16711_v28 = vld [vmem:[#allocation3 + $0x6d0] sm:$0xff]  ;;  %v16717_v7 = vld [vmem:[#allocation3 + $0x698] sm:$0xff]  ;;  %20489 = vst [vmem:[#allocation35_spill] sm:$0xff] %v16858_v14 }
 0x4ed   :  { %6069 = vmatpush1.msra.mxu1 %v5763_v45  ;;  %v4766_v61 = vpop.f32.mrf.mxu0  ;;  %v9230_v45 = vrot.slane %v16655_v2, %v15092_v29  ;;  %v16806_v40 = vld [vmem:[#allocation3 + $0x418] sm:$0xff] }
 0x4ee   :  { %6070 = vmatprep.subr.mxu1 %v5756_v58  ;;  %8404 = vrot.lane.b32.xlu0 %v8365_v25, %s14954_s2  ;;  %v4841_v63 = vadd.f32 %v4766_v61, %v4690_v54  ;;  %v16725_v61 = vld [vmem:[#allocation3 + $0x690] sm:$0xff] }
 0x4ef   :  { %6071 = vmatpush1.msra.mxu1 %v5755_v9  ;;  %v16644_v34 = vpop.permute.xlu0 %6839 }
 0x4f0   :  { %20468 = vst [vmem:[#allocation14_spill] sm:$0xff] %v16644_v34  ;;  %6072 = vmatprep.subr.mxu1 %v5748_v52  ;;  %v9234_v52 = vrot.slane %v16655_v2, %v16391_v11  ;;  %v16803_v34 = vld [vmem:[#allocation3 + $0x450] sm:$0xff] }
 0x4f1   :  { %6073 = vmatpush1.msra.mxu1 %v5747_v27  ;;  %v16719_v27 = vpop.permute.xlu1 %6817 }
 0x4f2   :  { %6074 = vmatprep.subr.mxu1 %v5740_v43  ;;  %8408 = vrot.lane.b32.xlu0 %v8373_v12, %s14954_s2  ;;  %v4982_v55 = vpop.f32.mrf.mxu0  ;;  %20471 = vst [vmem:[#allocation17_spill] sm:$0xff] %v16719_v27  ;;  %v9238_v43 = vrot.slane %v16655_v2, %v16411_v35  ;;  %v16849_v27 = vld [vmem:[#allocation3 + $0x220] sm:$0xff] }
 0x4f3   :  { %6075 = vmatpush1.msra.mxu1 %v16646_v13  ;;  %v16660_v62 = vpop.permute.xlu0 %6653  ;;  %v5058_v20 = vadd.f32 %v4982_v55, %v4840_v6  ;;  %v16731_v6 = vld [vmem:[#allocation3 + $0x650] sm:$0xff]  ;;  %v9242_v55 = vrot.slane %v16655_v2, %v16399_v47  ;;  %20486 = vst [vmem:[#allocation32_spill] sm:$0xff] %v16849_v27 }
 0x4f4   :  { %20469 = vst [vmem:[#allocation15_spill] sm:$0xff] %v16660_v62  ;;  %6076 = vmatprep.subr.mxu1 %v16648_v24  ;;  %v4984_v38 = vpop.f32.mrf.mxu0  ;;  %v6718_v18 = vmul.f32 %v16594_v26, %v16660_v62  ;;  %v16679_v26 = vld [vmem:[#allocation3 + $0x798] sm:$0xff]  ;;  %v16861_v62 = vld [vmem:[#allocation3 + $0x1e0] sm:$0xff] }
 0x4f5   :  { %6077 = vmatpush1.msra.mxu1 %v16651_v49  ;;  %v5059_v10 = vadd.f32 %v4984_v38, %v4841_v63  ;;  %v16737_v63 = vld [vmem:[#allocation3 + $0x618] sm:$0xff]  ;;  %v9246_v38 = vrot.slane %v16655_v2, %v16422_v48  ;;  %20490 = vst [vmem:[#allocation36_spill] sm:$0xff] %v16861_v62 }
 0x4f6   :  { %6078 = vmatprep.subr.mxu1 %v16658_v57  ;;  %8412 = vrot.lane.b32.xlu0 %v8381_v39, %s14954_s2  ;;  %v5195_v17 = vpop.f32.mrf.mxu0 }
 0x4f7   :  { %6079 = vmatpush1.msra.mxu1 %v16663_v22  ;;  %7619 = vrot.lane.b32.xlu1 %v6718_v18, %s14956_s6  ;;  %v5271_v37 = vadd.f32 %v5195_v17, %v5058_v20  ;;  %v16744_v17 = vld [vmem:[#allocation3 + $0x610] sm:$0xff] }
 0x4f8   :  { %6080 = vmatprep.subr.mxu1 %v16668_v31  ;;  %v5197_v51 = vpop.f32.mrf.mxu0 }
 0x4f9   :  { %6081 = vmatpush2.msra.mxu1 %v16674_v8  ;;  %v5272_v25 = vadd.f32 %v5197_v51, %v5059_v10  ;;  %v16753_v51 = vld [vmem:[#allocation3 + $0x5d0] sm:$0xff] }
 0x4fa   :  { %6082 = vmatprep.subr.mxu1 %v16679_v26  ;;  %9279 = vrot.lane.b32.xlu0 %v9218_v15, %s14946_s0  ;;  %v5408_v59 = vpop.f32.mrf.mxu0  ;;  %v16747_v15 = vld [vmem:[#allocation3 + $0x5d8] sm:$0xff] }
 0x4fb   :  { %6083 = vmatpush2.msra.mxu1 %v16685_v19  ;;  %9281 = vrot.lane.b32.xlu1 %v9222_v0, %s14946_s0  ;;  %v5484_v9 = vadd.f32 %v5408_v59, %v5271_v37  ;;  %v16749_v0 = vpop.permute.xlu1 %6821  ;;  %v16759_v37 = vld [vmem:[#allocation3 + $0x598] sm:$0xff] }
 0x4fc   :  { %6084 = vmatprep.subr.mxu1 %v16688_v16  ;;  %v5410_v58 = vpop.f32.mrf.mxu0  ;;  %20472 = vst [vmem:[#allocation18_spill] sm:$0xff] %v16749_v0  ;;  %v16837_v0 = vld [vmem:[#allocation3 + $0x260] sm:$0xff] }
 0x4fd   :  { %6085 = vmatpush2.msra.mxu1 %v16694_v36  ;;  %v5485_v12 = vadd.f32 %v5410_v58, %v5272_v25  ;;  %v5845_v25 = vld [vmem:[#allocation3 + $0x3e0] sm:$0xff]  ;;  %v16771_v58 = vld [vmem:[#allocation3 + $0x550] sm:$0xff]  ;;  %20482 = vst [vmem:[#allocation28_spill] sm:$0xff] %v16837_v0 }
 0x4fe   :  { %6086 = vmatprep.subr.mxu1 %v16699_v33  ;;  %9283 = vrot.lane.b32.xlu0 %v9226_v44, %s14946_s0  ;;  %v16765_v44 = vld [vmem:[#allocation3 + $0x590] sm:$0xff] }
 0x4ff   :  { %6087 = vmatpush2.msra.mxu1 %v16705_v56  ;;  %9285 = vrot.lane.b32.xlu1 %v9230_v45, %s14946_s0  ;;  %v16768_v45 = vld [vmem:[#allocation3 + $0x558] sm:$0xff] }
 0x500   :  { %6088 = vmatprep.subr.mxu1 %v16708_v23 }
 0x501   :  { %6089 = vmatpush2.msra.mxu1 %v16711_v28  ;;  %v5621_v32 = vpop.f32.mrf.mxu0 }
 0x502   :  { %v5697_v54 = vadd.f32 %v5621_v32, %v5484_v9  ;;  %6090 = vmatprep.subr.mxu1 %v16717_v7  ;;  %9287 = vrot.lane.b32.xlu0 %v9234_v52, %s14946_s0  ;;  %v5838_v9 = vld [vmem:[#allocation3 + $0x3a8] sm:$0xff]  ;;  %v16775_v52 = vld [vmem:[#allocation3 + $0x518] sm:$0xff]  ;;  %v5837_v32 = vld [vmem:[#allocation3 + $0x3a0] sm:$0xff] }
 0x503   :  { %6091 = vmatpush2.msra.mxu1 %v16725_v61  ;;  %v5623_v39 = vpop.f32.mrf.mxu0  ;;  %9289 = vrot.lane.b32.xlu1 %v9238_v43, %s14946_s0  ;;  %v16778_v43 = vpop.permute.xlu1 %6825 }
 0x504   :  { %v5698_v18 = vadd.f32 %v5623_v39, %v5485_v12  ;;  %6092 = vmatprep.subr.mxu1 %v16728_v41  ;;  %v5707_v20 = vadd.f32 %v16670_v21, %v5697_v54  ;;  %20473 = vst [vmem:[#allocation19_spill] sm:$0xff] %v16778_v43  ;;  %v16781_v12 = vld [vmem:[#allocation3 + $0x510] sm:$0xff]  ;;  %v16784_v54 = vld [vmem:[#allocation3 + $0x4d8] sm:$0xff]  ;;  %v5830_v39 = vld [vmem:[#allocation3 + $0x368] sm:$0xff] }
 0x505   :  { %6093 = vmatpush2.msra.mxu1 %v16731_v6  ;;  %v16831_v43 = vld [vmem:[#allocation3 + $0x268] sm:$0xff] }
 0x506   :  { %6094 = vmatprep.subr.mxu1 %v16737_v63  ;;  %v5708_v10 = vadd.f32 %v16670_v21, %v5698_v18  ;;  %9291 = vrot.lane.b32.xlu0 %v9242_v55, %s14946_s0  ;;  %v16756_v2 = vmax.f32 %v5707_v20, 0.0  ;;  %v16787_v55 = vld [vmem:[#allocation3 + $0x4d0] sm:$0xff]  ;;  %v5829_v18 = vld [vmem:[#allocation3 + $0x360] sm:$0xff]  ;;  %20480 = vst [vmem:[#allocation26_spill] sm:$0xff] %v16831_v43 }
 0x507   :  { %6095 = vmatpush2.msra.mxu1 %v16744_v17  ;;  %9293 = vrot.lane.b32.xlu1 %v9246_v38, %s14946_s0  ;;  %v16791_v38 = vld [vmem:[#allocation3 + $0x498] sm:$0xff]  ;;  %v16794_v20 = vld [vmem:[#allocation3 + $0x490] sm:$0xff]  ;;  %v16800_v1 = vpop.permute.xlu1 %6829 }
 0x508   :  { %v16762_v59 = vmax.f32 %v5708_v10, 0.0  ;;  %6096 = vmatprep.subr.mxu1 %v16747_v15  ;;  %v5822_v10 = vld [vmem:[#allocation3 + $0x328] sm:$0xff]  ;;  %20474 = vst [vmem:[#allocation20_spill] sm:$0xff] %v16800_v1  ;;  %v16814_v1 = vld [vmem:[#allocation3 + $0x3f8] sm:$0xff] }
 0x509   :  { %6097 = vmatpush2.msra.mxu1 %v16753_v51 }
 0x50a   :  { %6098 = vmatprep.subr.mxu1 %v16759_v37  ;;  %6041 = vmatprep.mubr.f32.mxu0 %v16762_v59 }
 0x50b   :  { %6099 = vmatpush2.msra.mxu1 %v16765_v44  ;;  %6042 = vmatmul.mubr.f32.vlgmr.msra.gmra.mxu0 %v16756_v2 }
 0x50c   :  { %6100 = vmatprep.subr.mxu1 %v16768_v45  ;;  %6120 = vmatpush1.msra.mxu0 %v5845_v25  ;;  %v16798_v25 = vld [vmem:[#allocation3 + $0x458] sm:$0xff] }
 0x50d   :  { %6101 = vmatpush2.msra.mxu1 %v16771_v58  ;;  %6121 = vmatprep.subr.mxu0 %v5838_v9  ;;  %v5821_v9 = vld [vmem:[#allocation3 + $0x320] sm:$0xff] }
 0x50e   :  { %6102 = vmatprep.subr.mxu1 %v16775_v52  ;;  %6112 = vmatprep.mubr.f32.mxu1 %v16762_v59 }
 0x50f   :  { %6103 = vmatpush2.msra.mxu1 %v16781_v12  ;;  %6122 = vmatpush1.msra.mxu0 %v5837_v32  ;;  %v5814_v32 = vld [vmem:[#allocation3 + $0x2e8] sm:$0xff] }
 0x510   :  { %6104 = vmatprep.subr.mxu1 %v16784_v54  ;;  %6183 = vmatprep.mubr.f32.mxu0 %v16762_v59 }
 0x511   :  { %6105 = vmatpush2.msra.mxu1 %v16787_v55  ;;  %6123 = vmatprep.subr.mxu0 %v5830_v39  ;;  %v16811_v39 = vld [vmem:[#allocation3 + $0x2a8] sm:$0xff] }
 0x512   :  { %6106 = vmatprep.subr.mxu1 %v16791_v38  ;;  %6124 = vmatpush1.msra.mxu0 %v5829_v18  ;;  %20475 = vst [vmem:[#allocation21_spill] sm:$0xff] %v16811_v39  ;;  %v16817_v18 = vld [vmem:[#allocation3 + $0x3f0] sm:$0xff] }
 0x513   :  { %6107 = vmatpush2.msra.mxu1 %v16794_v20  ;;  %6125 = vmatprep.subr.mxu0 %v5822_v10  ;;  %v16820_v10 = vld [vmem:[#allocation3 + $0x3b8] sm:$0xff] }
 0x514   :  { %6108 = vmatprep.subr.mxu1 %v16798_v25  ;;  %6126 = vmatpush1.msra.mxu0 %v5821_v9  ;;  %20476 = vst [vmem:[#allocation22_spill] sm:$0xff] %v16820_v10  ;;  %v16825_v9 = vpop.permute.xlu1 %6833 }
 0x515   :  { %6109 = vmatpush2.msra.mxu1 %v16803_v34  ;;  %6127 = vmatprep.subr.mxu0 %v5814_v32  ;;  %20478 = vst [vmem:[#allocation24_spill] sm:$0xff] %v16825_v9  ;;  %v16829_v32 = vld [vmem:[#allocation3 + $0x3b0] sm:$0xff]  ;;  %v16843_v9 = vld [vmem:[#allocation3 + $0x228] sm:$0xff] }
 0x516   :  { %6110 = vmatprep.subr.mxu1 %v16806_v40  ;;  %6128 = vmatpush1.msra.mxu0 %v5813_v50  ;;  %20479 = vst [vmem:[#allocation25_spill] sm:$0xff] %v16829_v32  ;;  %v16835_v50 = vld [vmem:[#allocation3 + $0x378] sm:$0xff]  ;;  %20484 = vst [vmem:[#allocation30_spill] sm:$0xff] %v16843_v9 }
 0x517   :  { %6111 = vmatpush2.msra.mxu1 %v16809_v60  ;;  %6129 = vmatprep.subr.mxu0 %v16811_v39  ;;  %20481 = vst [vmem:[#allocation27_spill] sm:$0xff] %v16835_v50  ;;  %v16869_v39 = vld [vmem:[#allocation3 + $0x1a8] sm:$0xff] }
 0x518   :  { %6113 = vmatmul.mubr.f32.vlgmr.msra.gmra.mxu1 %v16756_v2  ;;  %6190 = vmatprep.subr.mxu1 %v16814_v1  ;;  %20493 = vst [vmem:[#allocation39_spill] sm:$0xff] %v16869_v39 }
 0x519   :  { %6191 = vmatpush1.msra.mxu1 %v16817_v18  ;;  %6254 = vmatprep.mubr.f32.mxu1 %v16762_v59  ;;  %v16852_v59 = vld [vmem:[#allocation3 + $0x330] sm:$0xff] }
 0x51a   :  { %6192 = vmatprep.subr.mxu1 %v16820_v10  ;;  %6130 = vmatpush1.msra.mxu0 %v16823_v42  ;;  %20487 = vst [vmem:[#allocation33_spill] sm:$0xff] %v16852_v59  ;;  %v16863_v42 = vpop.permute.xlu1 %6837 }
 0x51b   :  { %6193 = vmatpush1.msra.mxu1 %v16829_v32  ;;  %6131 = vmatprep.subr.mxu0 %v16831_v43  ;;  %20491 = vst [vmem:[#allocation37_spill] sm:$0xff] %v16863_v42  ;;  %v16866_v43 = vld [vmem:[#allocation3 + $0x2f0] sm:$0xff] }
 0x51c   :  { %6194 = vmatprep.subr.mxu1 %v16835_v50  ;;  %6132 = vmatpush1.msra.mxu0 %v16837_v0  ;;  %20492 = vst [vmem:[#allocation38_spill] sm:$0xff] %v16866_v43  ;;  %v16871_v0 = vpop.permute.xlu0 %6657  ;;  %v16880_v42 = vld [vmem:[#allocation3 + $0x2b0] sm:$0xff]  ;;  %v17119_v50 = vld [vmem:[#allocation3 + $0x520] sm:$0xff] }
 0x51d   :  { %6195 = vmatpush1.msra.mxu1 %v16840_v53  ;;  %6133 = vmatprep.subr.mxu0 %v16843_v9  ;;  %20494 = vst [vmem:[#allocation40_spill] sm:$0xff] %v16871_v0  ;;  %v16874_v53 = vld [vmem:[#allocation3 + $0x2b8] sm:$0xff]  ;;  %v16877_v9 = vld [vmem:[#allocation3 + $0x1a0] sm:$0xff]  ;;  %20497 = vst [vmem:[#allocation43_spill] sm:$0xff] %v16880_v42 }
 0x51e   :  { %6196 = vmatprep.subr.mxu1 %v16846_v46  ;;  %6134 = vmatpush1.msra.mxu0 %v16849_v27  ;;  %20495 = vst [vmem:[#allocation41_spill] sm:$0xff] %v16874_v53  ;;  %20496 = vst [vmem:[#allocation42_spill] sm:$0xff] %v16877_v9  ;;  %v16883_v46 = vld [vmem:[#allocation3 + $0x168] sm:$0xff]  ;;  %v16886_v27 = vld [vmem:[#allocation3 + $0x278] sm:$0xff] }
 0x51f   :  { %6197 = vmatpush1.msra.mxu1 %v16852_v59  ;;  %6135 = vmatprep.subr.mxu0 %v16855_v30  ;;  %20498 = vst [vmem:[#allocation44_spill] sm:$0xff] %v16883_v46  ;;  %20499 = vst [vmem:[#allocation45_spill] sm:$0xff] %v16886_v27  ;;  %v16889_v0 = vld [vmem:[#allocation3 + $0x160] sm:$0xff]  ;;  %v16892_v30 = vld [vmem:[#allocation3 + $0x270] sm:$0xff]  ;;  %v16903_v59 = vpop.permute.xlu1 %6841 }
 0x520   :  { %6198 = vmatprep.subr.mxu1 %v16858_v14  ;;  %6136 = vmatpush1.msra.mxu0 %v16861_v62  ;;  %20500 = vst [vmem:[#allocation46_spill] sm:$0xff] %v16889_v0  ;;  %20501 = vst [vmem:[#allocation47_spill] sm:$0xff] %v16892_v30  ;;  %v16895_v14 = vld [vmem:[#allocation3 + $0x128] sm:$0xff]  ;;  %v16898_v62 = vld [vmem:[#allocation3 + $0x238] sm:$0xff] }
 0x521   :  { %6199 = vmatpush1.msra.mxu1 %v16866_v43  ;;  %6137 = vmatprep.subr.mxu0 %v16869_v39  ;;  %20502 = vst [vmem:[#allocation48_spill] sm:$0xff] %v16895_v14  ;;  %20503 = vst [vmem:[#allocation49_spill] sm:$0xff] %v16898_v62  ;;  %v16901_v43 = vld [vmem:[#allocation3 + $0x120] sm:$0xff]  ;;  %v16906_v39 = vld [vmem:[#allocation3 + $0x230] sm:$0xff] }
 0x522   :  { %6200 = vmatprep.subr.mxu1 %v16874_v53  ;;  %6138 = vmatpush1.msra.mxu0 %v16877_v9  ;;  %20504 = vst [vmem:[#allocation50_spill] sm:$0xff] %v16901_v43  ;;  %20505 = vst [vmem:[#allocation51_spill] sm:$0xff] %v16903_v59  ;;  %v16909_v53 = vld [vmem:[#allocation3 + $0xe8] sm:$0xff]  ;;  %v16911_v9 = vpop.permute.xlu0 %6661  ;;  %v16920_v59 = vld [vmem:[#allocation3 + $0x1f0] sm:$0xff] }
 0x523   :  { %6201 = vmatpush1.msra.mxu1 %v16880_v42  ;;  %6139 = vmatprep.subr.mxu0 %v16883_v46  ;;  %20506 = vst [vmem:[#allocation52_spill] sm:$0xff] %v16906_v39  ;;  %20507 = vst [vmem:[#allocation53_spill] sm:$0xff] %v16909_v53  ;;  %v16914_v42 = vld [vmem:[#allocation3 + $0x1f8] sm:$0xff]  ;;  %v16917_v46 = vld [vmem:[#allocation3 + $0xe0] sm:$0xff] }
 0x524   :  { %6202 = vmatprep.subr.mxu1 %v16886_v27  ;;  %6140 = vmatpush1.msra.mxu0 %v16889_v0  ;;  %20508 = vst [vmem:[#allocation54_spill] sm:$0xff] %v16911_v9  ;;  %20509 = vst [vmem:[#allocation55_spill] sm:$0xff] %v16914_v42  ;;  %v16923_v27 = vld [vmem:[#allocation3 + $0xa8] sm:$0xff]  ;;  %v16926_v0 = vld [vmem:[#allocation3 + $0x1b8] sm:$0xff] }
 0x525   :  { %6203 = vmatpush1.msra.mxu1 %v16892_v30  ;;  %6141 = vmatprep.subr.mxu0 %v16895_v14  ;;  %20510 = vst [vmem:[#allocation56_spill] sm:$0xff] %v16917_v46  ;;  %20511 = vst [vmem:[#allocation57_spill] sm:$0xff] %v16920_v59  ;;  %v16929_v9 = vld [vmem:[#allocation3 + $0xa0] sm:$0xff]  ;;  %v16932_v14 = vld [vmem:[#allocation3 + $0x1b0] sm:$0xff]  ;;  %v16943_v30 = vpop.permute.xlu1 %6655 }
 0x526   :  { %6204 = vmatprep.subr.mxu1 %v16898_v62  ;;  %6142 = vmatpush1.msra.mxu0 %v16901_v43  ;;  %20512 = vst [vmem:[#allocation58_spill] sm:$0xff] %v16923_v27  ;;  %20513 = vst [vmem:[#allocation59_spill] sm:$0xff] %v16926_v0  ;;  %v16935_v62 = vld [vmem:[#allocation3 + $0x68] sm:$0xff]  ;;  %v16938_v43 = vld [vmem:[#allocation3 + $0x178] sm:$0xff] }
 0x527   :  { %6205 = vmatpush1.msra.mxu1 %v16906_v39  ;;  %6143 = vmatprep.subr.mxu0 %v16909_v53  ;;  %20514 = vst [vmem:[#allocation60_spill] sm:$0xff] %v16929_v9  ;;  %20515 = vst [vmem:[#allocation61_spill] sm:$0xff] %v16932_v14  ;;  %v16941_v39 = vld [vmem:[#allocation3 + $0x60] sm:$0xff]  ;;  %v16946_v53 = vld [vmem:[#allocation3 + $0x170] sm:$0xff] }
 0x528   :  { %6206 = vmatprep.subr.mxu1 %v16914_v42  ;;  %6144 = vmatpush1.msra.mxu0 %v16917_v46  ;;  %20516 = vst [vmem:[#allocation62_spill] sm:$0xff] %v16935_v62  ;;  %20517 = vst [vmem:[#allocation63_spill] sm:$0xff] %v16938_v43  ;;  %v16949_v42 = vld [vmem:[#allocation3 + $0x28] sm:$0xff]  ;;  %v16951_v46 = vpop.permute.xlu0 %6665 }
 0x529   :  { %6207 = vmatpush1.msra.mxu1 %v16920_v59  ;;  %6145 = vmatprep.subr.mxu0 %v16923_v27  ;;  %20518 = vst [vmem:[#allocation64_spill] sm:$0xff] %v16941_v39  ;;  %20519 = vst [vmem:[#allocation65_spill] sm:$0xff] %v16943_v30  ;;  %v16954_v59 = vld [vmem:[#allocation3 + $0x138] sm:$0xff]  ;;  %v16957_v27 = vld [vmem:[#allocation3 + $0x20] sm:$0xff] }
 0x52a   :  { %6208 = vmatprep.subr.mxu1 %v16926_v0  ;;  %20520 = vst [vmem:[#allocation66_spill] sm:$0xff] %v16946_v53  ;;  %6146 = vmatpush1.msra.mxu0 %v16929_v9  ;;  %20521 = vst [vmem:[#allocation67_spill] sm:$0xff] %v16949_v42  ;;  %v16960_v30 = vld [vmem:[#allocation3 + $0x130] sm:$0xff]  ;;  %v16963_v0 = vld [vmem:[#allocation3 + $0x7e8] sm:$0xff] }
 0x52b   :  { %20522 = vst [vmem:[#allocation68_spill] sm:$0xff] %v16951_v46  ;;  %6209 = vmatpush1.msra.mxu1 %v16932_v14  ;;  %20523 = vst [vmem:[#allocation69_spill] sm:$0xff] %v16954_v59  ;;  %6147 = vmatprep.subr.mxu0 %v16935_v62  ;;  %v16966_v9 = vld [vmem:[#allocation3 + $0xf8] sm:$0xff]  ;;  %v16969_v46 = vld [vmem:[#allocation3 + $0x7e0] sm:$0xff]  ;;  %v16983_v14 = vpop.permute.xlu1 %6659 }
 0x52c   :  { %20524 = vst [vmem:[#allocation70_spill] sm:$0xff] %v16957_v27  ;;  %6210 = vmatprep.subr.mxu1 %v16938_v43  ;;  %20525 = vst [vmem:[#allocation71_spill] sm:$0xff] %v16960_v30  ;;  %6148 = vmatpush1.msra.mxu0 %v16941_v39  ;;  %v16972_v62 = vld [vmem:[#allocation3 + $0xf0] sm:$0xff]  ;;  %v16975_v43 = vld [vmem:[#allocation3 + $0x7a8] sm:$0xff] }
 0x52d   :  { %20526 = vst [vmem:[#allocation72_spill] sm:$0xff] %v16963_v0  ;;  %6211 = vmatpush1.msra.mxu1 %v16946_v53  ;;  %20527 = vst [vmem:[#allocation73_spill] sm:$0xff] %v16966_v9  ;;  %6149 = vmatprep.subr.mxu0 %v16949_v42  ;;  %v16978_v39 = vld [vmem:[#allocation3 + $0xb8] sm:$0xff]  ;;  %v16981_v53 = vld [vmem:[#allocation3 + $0x7a0] sm:$0xff] }
 0x52e   :  { %20528 = vst [vmem:[#allocation74_spill] sm:$0xff] %v16969_v46  ;;  %6212 = vmatprep.subr.mxu1 %v16954_v59  ;;  %20529 = vst [vmem:[#allocation75_spill] sm:$0xff] %v16972_v62  ;;  %6150 = vmatpush1.msra.mxu0 %v16957_v27  ;;  %v16986_v42 = vld [vmem:[#allocation3 + $0xb0] sm:$0xff]  ;;  %v16989_v59 = vld [vmem:[#allocation3 + $0x768] sm:$0xff]  ;;  %v16991_v27 = vpop.permute.xlu0 %6669 }
 0x52f   :  { %20530 = vst [vmem:[#allocation76_spill] sm:$0xff] %v16975_v43  ;;  %6213 = vmatpush1.msra.mxu1 %v16960_v30  ;;  %20531 = vst [vmem:[#allocation77_spill] sm:$0xff] %v16978_v39  ;;  %6151 = vmatprep.subr.mxu0 %v16963_v0  ;;  %v16994_v30 = vld [vmem:[#allocation3 + $0x78] sm:$0xff]  ;;  %v16997_v0 = vld [vmem:[#allocation3 + $0x760] sm:$0xff] }
 0x530   :  { %20532 = vst [vmem:[#allocation78_spill] sm:$0xff] %v16981_v53  ;;  %20533 = vst [vmem:[#allocation79_spill] sm:$0xff] %v16983_v14  ;;  %6214 = vmatprep.subr.mxu1 %v16966_v9  ;;  %6152 = vmatpush2.msra.mxu0 %v16969_v46  ;;  %v17000_v14 = vld [vmem:[#allocation3 + $0x70] sm:$0xff]  ;;  %v17003_v9 = vld [vmem:[#allocation3 + $0x728] sm:$0xff] }
 0x531   :  { %20534 = vst [vmem:[#allocation80_spill] sm:$0xff] %v16986_v42  ;;  %20535 = vst [vmem:[#allocation81_spill] sm:$0xff] %v16989_v59  ;;  %6215 = vmatpush1.msra.mxu1 %v16972_v62  ;;  %6153 = vmatprep.subr.mxu0 %v16975_v43  ;;  %v17006_v46 = vld [vmem:[#allocation3 + $0x38] sm:$0xff]  ;;  %v17012_v43 = vld [vmem:[#allocation3 + $0x30] sm:$0xff]  ;;  %v17023_v62 = vpop.permute.xlu1 %6663 }
 0x532   :  { %20536 = vst [vmem:[#allocation82_spill] sm:$0xff] %v16991_v27  ;;  %20537 = vst [vmem:[#allocation83_spill] sm:$0xff] %v16994_v30  ;;  %6216 = vmatprep.subr.mxu1 %v16978_v39  ;;  %6154 = vmatpush2.msra.mxu0 %v16981_v53  ;;  %v17009_v27 = vld [vmem:[#allocation3 + $0x720] sm:$0xff]  ;;  %v17015_v39 = vld [vmem:[#allocation3 + $0x6e8] sm:$0xff] }
 0x533   :  { %20538 = vst [vmem:[#allocation84_spill] sm:$0xff] %v16997_v0  ;;  %20539 = vst [vmem:[#allocation85_spill] sm:$0xff] %v17000_v14  ;;  %6217 = vmatpush1.msra.mxu1 %v16986_v42  ;;  %6155 = vmatprep.subr.mxu0 %v16989_v59  ;;  %v17018_v53 = vld [vmem:[#allocation3 + $0x7f8] sm:$0xff]  ;;  %v17021_v42 = vld [vmem:[#allocation3 + $0x6e0] sm:$0xff] }
 0x534   :  { %20540 = vst [vmem:[#allocation86_spill] sm:$0xff] %v17003_v9  ;;  %20541 = vst [vmem:[#allocation87_spill] sm:$0xff] %v17006_v46  ;;  %6218 = vmatprep.subr.mxu1 %v16994_v30  ;;  %6156 = vmatpush2.msra.mxu0 %v16997_v0  ;;  %v17026_v59 = vld [vmem:[#allocation3 + $0x7f0] sm:$0xff]  ;;  %v17029_v30 = vpop.permute.xlu0 %6673  ;;  %v17031_v0 = vld [vmem:[#allocation3 + $0x6a8] sm:$0xff] }
 0x535   :  { %20542 = vst [vmem:[#allocation88_spill] sm:$0xff] %v17009_v27  ;;  %20543 = vst [vmem:[#allocation89_spill] sm:$0xff] %v17012_v43  ;;  %6219 = vmatpush1.msra.mxu1 %v17000_v14  ;;  %6157 = vmatprep.subr.mxu0 %v17003_v9  ;;  %v17034_v14 = vld [vmem:[#allocation3 + $0x7b8] sm:$0xff]  ;;  %v17037_v9 = vld [vmem:[#allocation3 + $0x6a0] sm:$0xff] }
 0x536   :  { %20544 = vst [vmem:[#allocation90_spill] sm:$0xff] %v17015_v39  ;;  %20545 = vst [vmem:[#allocation91_spill] sm:$0xff] %v17018_v53  ;;  %6220 = vmatprep.subr.mxu1 %v17006_v46  ;;  %6158 = vmatpush2.msra.mxu0 %v17009_v27  ;;  %v17043_v46 = vld [vmem:[#allocation3 + $0x668] sm:$0xff]  ;;  %v17049_v27 = vld [vmem:[#allocation3 + $0x660] sm:$0xff] }
 0x537   :  { %20546 = vst [vmem:[#allocation92_spill] sm:$0xff] %v17021_v42  ;;  %20547 = vst [vmem:[#allocation93_spill] sm:$0xff] %v17023_v62  ;;  %6221 = vmatpush1.msra.mxu1 %v17012_v43  ;;  %6159 = vmatprep.subr.mxu0 %v17015_v39  ;;  %v17040_v62 = vld [vmem:[#allocation3 + $0x7b0] sm:$0xff]  ;;  %v17063_v43 = vpop.permute.xlu1 %6667 }
 0x538   :  { %20548 = vst [vmem:[#allocation94_spill] sm:$0xff] %v17026_v59  ;;  %20549 = vst [vmem:[#allocation95_spill] sm:$0xff] %v17029_v30  ;;  %6222 = vmatprep.subr.mxu1 %v17018_v53  ;;  %6160 = vmatpush2.msra.mxu0 %v17021_v42  ;;  %v17046_v30 = vld [vmem:[#allocation3 + $0x778] sm:$0xff]  ;;  %v17052_v39 = vld [vmem:[#allocation3 + $0x770] sm:$0xff] }
 0x539   :  { %20550 = vst [vmem:[#allocation96_spill] sm:$0xff] %v17031_v0  ;;  %20551 = vst [vmem:[#allocation97_spill] sm:$0xff] %v17034_v14  ;;  %6223 = vmatpush2.msra.mxu1 %v17026_v59  ;;  %6161 = vmatprep.subr.mxu0 %v17031_v0  ;;  %v17055_v53 = vld [vmem:[#allocation3 + $0x628] sm:$0xff]  ;;  %v17058_v42 = vld [vmem:[#allocation3 + $0x738] sm:$0xff] }
 0x53a   :  { %20552 = vst [vmem:[#allocation98_spill] sm:$0xff] %v17037_v9  ;;  %20553 = vst [vmem:[#allocation99_spill] sm:$0xff] %v17040_v62  ;;  %6224 = vmatprep.subr.mxu1 %v17034_v14  ;;  %6162 = vmatpush2.msra.mxu0 %v17037_v9  ;;  %v17061_v59 = vld [vmem:[#allocation3 + $0x620] sm:$0xff]  ;;  %v17066_v0 = vld [vmem:[#allocation3 + $0x730] sm:$0xff]  ;;  %v17069_v14 = vpop.permute.xlu0 %6677 }
 0x53b   :  { %20554 = vst [vmem:[#allocation100_spill] sm:$0xff] %v17043_v46  ;;  %20555 = vst [vmem:[#allocation101_spill] sm:$0xff] %v17046_v30  ;;  %6225 = vmatpush2.msra.mxu1 %v17040_v62  ;;  %6163 = vmatprep.subr.mxu0 %v17043_v46  ;;  %v17071_v9 = vld [vmem:[#allocation3 + $0x5e8] sm:$0xff]  ;;  %v17074_v62 = vld [vmem:[#allocation3 + $0x6f8] sm:$0xff] }
 0x53c   :  { %20556 = vst [vmem:[#allocation102_spill] sm:$0xff] %v17049_v27  ;;  %20557 = vst [vmem:[#allocation103_spill] sm:$0xff] %v17052_v39  ;;  %6226 = vmatprep.subr.mxu1 %v17046_v30  ;;  %6164 = vmatpush2.msra.mxu0 %v17049_v27  ;;  %v17077_v46 = vld [vmem:[#allocation3 + $0x5e0] sm:$0xff]  ;;  %v17083_v30 = vld [vmem:[#allocation3 + $0x5a8] sm:$0xff] }
 0x53d   :  { %20558 = vst [vmem:[#allocation104_spill] sm:$0xff] %v17055_v53  ;;  %20559 = vst [vmem:[#allocation105_spill] sm:$0xff] %v17058_v42  ;;  %6227 = vmatpush2.msra.mxu1 %v17052_v39  ;;  %6165 = vmatprep.subr.mxu0 %v17055_v53  ;;  %v17089_v27 = vld [vmem:[#allocation3 + $0x5a0] sm:$0xff]  ;;  %v17092_v53 = vld [vmem:[#allocation3 + $0x6b0] sm:$0xff]  ;;  %v17103_v39 = vpop.permute.xlu1 %6671 }
 0x53e   :  { %20560 = vst [vmem:[#allocation106_spill] sm:$0xff] %v17061_v59  ;;  %20561 = vst [vmem:[#allocation107_spill] sm:$0xff] %v17063_v43  ;;  %6228 = vmatprep.subr.mxu1 %v17058_v42  ;;  %v17080_v43 = vld [vmem:[#allocation3 + $0x6f0] sm:$0xff]  ;;  %6166 = vmatpush2.msra.mxu0 %v17061_v59  ;;  %v17095_v42 = vld [vmem:[#allocation3 + $0x568] sm:$0xff] }
 0x53f   :  { %20562 = vst [vmem:[#allocation108_spill] sm:$0xff] %v17066_v0  ;;  %20563 = vst [vmem:[#allocation109_spill] sm:$0xff] %v17069_v14  ;;  %6229 = vmatpush2.msra.mxu1 %v17066_v0  ;;  %v17086_v14 = vld [vmem:[#allocation3 + $0x6b8] sm:$0xff]  ;;  %6167 = vmatprep.subr.mxu0 %v17071_v9  ;;  %v17101_v0 = vld [vmem:[#allocation3 + $0x560] sm:$0xff] }
 0x540   :  { %20564 = vst [vmem:[#allocation110_spill] sm:$0xff] %v17071_v9  ;;  %20565 = vst [vmem:[#allocation111_spill] sm:$0xff] %v17074_v62  ;;  %6230 = vmatprep.subr.mxu1 %v17074_v62  ;;  %6168 = vmatpush2.msra.mxu0 %v17077_v46  ;;  %v17098_v59 = vld [vmem:[#allocation3 + $0x678] sm:$0xff]  ;;  %v17106_v9 = vpop.permute.xlu0 %6681  ;;  %v17108_v62 = vld [vmem:[#allocation3 + $0x670] sm:$0xff] }
 0x541   :  { %20566 = vst [vmem:[#allocation112_spill] sm:$0xff] %v17077_v46  ;;  %20567 = vst [vmem:[#allocation113_spill] sm:$0xff] %v17080_v43  ;;  %6231 = vmatpush2.msra.mxu1 %v17080_v43  ;;  %6169 = vmatprep.subr.mxu0 %v17083_v30  ;;  %v17111_v46 = vld [vmem:[#allocation3 + $0x528] sm:$0xff]  ;;  %v17114_v43 = vld [vmem:[#allocation3 + $0x638] sm:$0xff] }
 0x542   :  { %20568 = vst [vmem:[#allocation114_spill] sm:$0xff] %v17083_v30  ;;  %20569 = vst [vmem:[#allocation115_spill] sm:$0xff] %v17086_v14  ;;  %6232 = vmatprep.subr.mxu1 %v17086_v14  ;;  %6170 = vmatpush2.msra.mxu0 %v17089_v27  ;;  %v17117_v30 = vld [vmem:[#allocation3 + $0x630] sm:$0xff]  ;;  %v17149_v14 = vpop.permute.xlu1 %6675 }
 0x543   :  { %20570 = vst [vmem:[#allocation116_spill] sm:$0xff] %v17089_v27  ;;  %20571 = vst [vmem:[#allocation117_spill] sm:$0xff] %v17092_v53  ;;  %6233 = vmatpush2.msra.mxu1 %v17092_v53  ;;  %6171 = vmatprep.subr.mxu0 %v17095_v42  ;;  %v17127_v27 = vld [vmem:[#allocation3 + $0x4e0] sm:$0xff]  ;;  %v17141_v53 = vld [vmem:[#allocation3 + $0x4a8] sm:$0xff] }
 0x544   :  { %20572 = vst [vmem:[#allocation118_spill] sm:$0xff] %v17095_v42  ;;  %20573 = vst [vmem:[#allocation119_spill] sm:$0xff] %v17098_v59  ;;  %6234 = vmatprep.subr.mxu1 %v17098_v59  ;;  %6172 = vmatpush2.msra.mxu0 %v17101_v0  ;;  %v14632_v42 = vld [vmem:[%s20281_s10 + $0x43] ss:$8 sm:$0xf] }
 0x545   :  { %20574 = vst [vmem:[#allocation120_spill] sm:$0xff] %v17101_v0  ;;  %20575 = vst [vmem:[#allocation121_spill] sm:$0xff] %v17103_v39  ;;  %v17125_v39 = vld [vmem:[#allocation3 + $0x4e8] sm:$0xff]  ;;  %6235 = vmatpush2.msra.mxu1 %v17108_v62  ;;  %6173 = vmatprep.subr.mxu0 %v17111_v46  ;;  %v17138_v0 = vld [vmem:[#allocation3 + $0x5f0] sm:$0xff] }
 0x546   :  { %20576 = vst [vmem:[#allocation122_spill] sm:$0xff] %v17106_v9  ;;  %20577 = vst [vmem:[#allocation123_spill] sm:$0xff] %v17108_v62  ;;  %v17123_v9 = vld [vmem:[#allocation3 + $0x5f8] sm:$0xff]  ;;  %6236 = vmatprep.subr.mxu1 %v17114_v43  ;;  %6174 = vmatpush2.msra.mxu0 %v17119_v50 }
 0x547   :  { %20578 = vst [vmem:[#allocation124_spill] sm:$0xff] %v17111_v46  ;;  %20579 = vst [vmem:[#allocation125_spill] sm:$0xff] %v17114_v43  ;;  %v14633_v59 = vld [vmem:[%s20281_s10 + $0x43] ss:$8 sm:$0xf0]  ;;  %6237 = vmatpush2.msra.mxu1 %v17117_v30  ;;  %6175 = vmatprep.subr.mxu0 %v17125_v39 }
 0x548   :  { %20580 = vst [vmem:[#allocation126_spill] sm:$0xff] %v17117_v30  ;;  %20581 = vst [vmem:[#allocation127_spill] sm:$0xff] %v17119_v50  ;;  %v17144_v62 = vld [vmem:[#allocation3 + $0x5b8] sm:$0xff]  ;;  %v17147_v46 = vld [vmem:[#allocation3 + $0x4a0] sm:$0xff]  ;;  %6238 = vmatprep.subr.mxu1 %v17123_v9  ;;  %v17152_v32 = vpop.permute.xlu0 %6913  ;;  %6176 = vmatpush2.msra.mxu0 %v17127_v27  ;;  %v17159_v10 = vor.u32 %v14633_v59, %v14632_v42 }
 0x549   :  { %20582 = vst [vmem:[#allocation128_spill] sm:$0xff] %v17125_v39  ;;  %20583 = vst [vmem:[#allocation129_spill] sm:$0xff] %v17127_v27  ;;  %v17154_v43 = vld [vmem:[#allocation3 + $0x5b0] sm:$0xff]  ;;  %v17157_v50 = vld [vmem:[#allocation3 + $0x468] sm:$0xff]  ;;  %6239 = vmatpush2.msra.mxu1 %v17138_v0  ;;  %6177 = vmatprep.subr.mxu0 %v17141_v53 }
 0x54a   :  { %20584 = vst [vmem:[#allocation130_spill] sm:$0xff] %v17141_v53  ;;  %20585 = vst [vmem:[#allocation131_spill] sm:$0xff] %v17144_v62  ;;  %v17162_v30 = vld [vmem:[#allocation3 + $0x578] sm:$0xff]  ;;  %v17165_v39 = vld [vmem:[#allocation3 + $0x460] sm:$0xff]  ;;  %6240 = vmatprep.subr.mxu1 %v17144_v62  ;;  %6178 = vmatpush2.msra.mxu0 %v17147_v46 }
 0x54b   :  { %20586 = vst [vmem:[#allocation132_spill] sm:$0xff] %v17147_v46  ;;  %20587 = vst [vmem:[#allocation133_spill] sm:$0xff] %v17149_v14  ;;  %v17168_v14 = vld [vmem:[#allocation3 + $0x570] sm:$0xff]  ;;  %6241 = vmatpush2.msra.mxu1 %v17154_v43  ;;  %v17174_v42 = vld [vmem:[#allocation3 + $0x538] sm:$0xff]  ;;  %6179 = vmatprep.subr.mxu0 %v17157_v50  ;;  %v9250_v46 = vrot.slane %v17159_v10, %v15039_v4 }
 0x54c   :  { %20588 = vst [vmem:[#allocation134_spill] sm:$0xff] %v17152_v32  ;;  %20589 = vst [vmem:[#allocation135_spill] sm:$0xff] %v17154_v43  ;;  %v17171_v32 = vld [vmem:[#allocation3 + $0x428] sm:$0xff]  ;;  %v17177_v59 = vld [vmem:[#allocation3 + $0x420] sm:$0xff]  ;;  %6242 = vmatprep.subr.mxu1 %v17162_v30  ;;  %v17180_v53 = vpop.permute.xlu0 %8384  ;;  %6180 = vmatpush2.msra.mxu0 %v17165_v39 }
 0x54d   :  { %20590 = vst [vmem:[#allocation136_spill] sm:$0xff] %v17157_v50  ;;  %20591 = vst [vmem:[#allocation137_spill] sm:$0xff] %v17162_v30  ;;  %v17182_v27 = vld [vmem:[#allocation3 + $0x530] sm:$0xff]  ;;  %6243 = vmatpush2.msra.mxu1 %v17168_v14  ;;  %v17188_v43 = vld [vmem:[#allocation3 + $0x4f8] sm:$0xff]  ;;  %6181 = vmatprep.subr.mxu0 %v17171_v32  ;;  %v17191_v50 = vpop.permute.xlu1 %6679  ;;  %v9254_v30 = vrot.slane %v17159_v10, %v15042_v5 }
 0x54e   :  { %20592 = vst [vmem:[#allocation138_spill] sm:$0xff] %v17165_v39  ;;  %20593 = vst [vmem:[#allocation139_spill] sm:$0xff] %v17168_v14  ;;  %6244 = vmatprep.subr.mxu1 %v17174_v42  ;;  %6182 = vmatpush2.msra.mxu0 %v17177_v59  ;;  %v17200_v39 = vld [vmem:[#allocation3 + $0x4b8] sm:$0xff]  ;;  %v17228_v62 = vld [vmem:[#allocation3 + $0x430] sm:$0xff] }
 0x54f   :  { %20594 = vst [vmem:[#allocation140_spill] sm:$0xff] %v17171_v32  ;;  %20595 = vst [vmem:[#allocation141_spill] sm:$0xff] %v17174_v42  ;;  %6245 = vmatpush2.msra.mxu1 %v17182_v27  ;;  %6184 = vmatmul.mubr.f32.vlgmr.msra.gmra.mxu0 %v16756_v2  ;;  %v9258_v42 = vrot.slane %v17159_v10, %v15036_v3 }
 0x550   :  { %20596 = vst [vmem:[#allocation142_spill] sm:$0xff] %v17177_v59  ;;  %20597 = vst [vmem:[#allocation143_spill] sm:$0xff] %v17180_v53  ;;  %v17196_v53 = vld [vmem:[#allocation3 + $0x4f0] sm:$0xff]  ;;  %6246 = vmatprep.subr.mxu1 %v17188_v43  ;;  %v17204_v32 = vpop.permute.xlu0 %8388  ;;  %9295 = vrot.lane.b32.xlu0 %v9250_v46, %s14946_s0  ;;  %v17212_v59 = vld [vmem:[#allocation3 + $0x478] sm:$0xff] }
 0x551   :  { %20598 = vst [vmem:[#allocation144_spill] sm:$0xff] %v17182_v27  ;;  %20599 = vst [vmem:[#allocation145_spill] sm:$0xff] %v17188_v43  ;;  %6247 = vmatpush2.msra.mxu1 %v17196_v53  ;;  %9297 = vrot.lane.b32.xlu1 %v9254_v30, %s14946_s0  ;;  %v9262_v27 = vrot.slane %v17159_v10, %v15092_v29  ;;  %v17218_v43 = vld [vmem:[#allocation3 + $0x470] sm:$0xff]  ;;  %v17221_v46 = vld [vmem:[#allocation3 + $0x438] sm:$0xff]  ;;  %v17223_v14 = vpop.permute.xlu1 %6683 }
 0x552   :  { %20600 = vst [vmem:[#allocation146_spill] sm:$0xff] %v17191_v50  ;;  %20601 = vst [vmem:[#allocation147_spill] sm:$0xff] %v17196_v53  ;;  %v17206_v50 = vld [vmem:[#allocation3 + $0x4b0] sm:$0xff]  ;;  %6248 = vmatprep.subr.mxu1 %v17200_v39  ;;  %v14799_v53 = vld [vmem:[#allocation3 + $0x3c0] sm:$0xff] }
 0x553   :  { %20602 = vst [vmem:[#allocation148_spill] sm:$0xff] %v17200_v39  ;;  %20603 = vst [vmem:[#allocation149_spill] sm:$0xff] %v17204_v32  ;;  %v14798_v32 = vld [vmem:[#allocation3 + $0x3c8] sm:$0xff]  ;;  %6249 = vmatpush2.msra.mxu1 %v17206_v50  ;;  %v9266_v39 = vrot.slane %v17159_v10, %v16391_v11 }
 0x554   :  { %20604 = vst [vmem:[#allocation150_spill] sm:$0xff] %v17206_v50  ;;  %20605 = vst [vmem:[#allocation151_spill] sm:$0xff] %v17212_v59  ;;  %6263 = vmatprep.subr.mxu0 %v14798_v32  ;;  %6250 = vmatprep.subr.mxu1 %v17212_v59  ;;  %v17226_v30 = vpop.permute.xlu0 %8392  ;;  %v9270_v32 = vrot.slane %v17159_v10, %v16411_v35  ;;  %v14808_v50 = vld [vmem:[#allocation3 + $0x390] sm:$0xff] }
 0x555   :  { %20606 = vst [vmem:[#allocation152_spill] sm:$0xff] %v17218_v43  ;;  %20607 = vst [vmem:[#allocation153_spill] sm:$0xff] %v17221_v46  ;;  %6264 = vmatpush1.msra.mxu0 %v14799_v53  ;;  %9299 = vrot.lane.b32.xlu0 %v9258_v42, %s14946_s0  ;;  %v14800_v53 = vld [vmem:[#allocation3 + $0x388] sm:$0xff] }
 0x556   :  { %20608 = vst [vmem:[#allocation154_spill] sm:$0xff] %v17223_v14  ;;  %20609 = vst [vmem:[#allocation155_spill] sm:$0xff] %v17226_v30  ;;  %6251 = vmatpush2.msra.mxu1 %v17218_v43  ;;  %9301 = vrot.lane.b32.xlu1 %v9262_v27, %s14946_s0  ;;  %v14801_v14 = vld [vmem:[#allocation3 + $0x380] sm:$0xff]  ;;  %v9274_v27 = vrot.slane %v17159_v10, %v16399_v47  ;;  %v17245_v30 = vpop.permute.xlu1 %8382 }
 0x557   :  { %20610 = vst [vmem:[#allocation156_spill] sm:$0xff] %v17228_v62  ;;  %6252 = vmatprep.subr.mxu1 %v17221_v46  ;;  %6265 = vmatprep.subr.mxu0 %v14800_v53  ;;  %v14802_v46 = vld [vmem:[#allocation3 + $0x3d8] sm:$0xff]  ;;  %v9278_v53 = vrot.slane %v17159_v10, %v16422_v48  ;;  %v17259_v10 = vld [vmem:[#allocation2] sm:$0xff] }
 0x558   :  { %6253 = vmatpush2.msra.mxu1 %v17228_v62  ;;  %6266 = vmatpush1.msra.mxu0 %v14801_v14  ;;  %v17240_v42 = vpop.permute.xlu0 %8396  ;;  %v14670_v14 = vld [vmem:[%s20281_s10 + $0x4] ss:$8 sm:$0xf]  ;;  %v8447_v43 = vmul.f32 %v17259_v10, %v17245_v30 }
 0x559   :  { %6255 = vmatmul.mubr.f32.vlgmr.msra.gmra.mxu1 %v16756_v2  ;;  %20611 = vst [vmem:[#allocation157_spill] sm:$0xff] %v17240_v42  ;;  %9303 = vrot.lane.b32.xlu0 %v9266_v39, %s14946_s0  ;;  %v14671_v2 = vld [vmem:[%s20281_s10 + $0x4] ss:$8 sm:$0xf0] }
 0x55a   :  { %9305 = vrot.lane.b32.xlu1 %v9270_v32, %s14946_s0  ;;  %6334 = vmatprep.subr.mxu1 %v14802_v46  ;;  %v14803_v39 = vld [vmem:[#allocation3 + $0x3d0] sm:$0xff]  ;;  %v14804_v42 = vld [vmem:[#allocation3 + $0x348] sm:$0xff]  ;;  %v14805_v62 = vld [vmem:[#allocation3 + $0x398] sm:$0xff]  ;;  %v17263_v59 = vor.u32 %v14671_v2, %v14670_v14 }
 0x55b   :  { %6335 = vmatpush1.msra.mxu1 %v14803_v39  ;;  %6267 = vmatprep.subr.mxu0 %v14804_v42  ;;  %v14806_v32 = vld [vmem:[#allocation3 + $0x340] sm:$0xff]  ;;  %v14809_v42 = vld [vmem:[#allocation3 + $0x358] sm:$0xff]  ;;  %v14811_v39 = vld [vmem:[#allocation3 + $0x308] sm:$0xff] }
 0x55c   :  { %6336 = vmatprep.subr.mxu1 %v14805_v62  ;;  %6268 = vmatpush1.msra.mxu0 %v14806_v32  ;;  %v17256_v46 = vpop.permute.xlu0 %8400  ;;  %v14810_v62 = vld [vmem:[#allocation3 + $0x350] sm:$0xff]  ;;  %v14812_v32 = vld [vmem:[#allocation3 + $0x318] sm:$0xff] }
 0x55d   :  { %20612 = vst [vmem:[#allocation158_spill] sm:$0xff] %v17256_v46  ;;  %9307 = vrot.lane.b32.xlu0 %v9274_v27, %s14946_s0  ;;  %6337 = vmatpush1.msra.mxu1 %v14808_v50  ;;  %v14813_v27 = vld [vmem:[#allocation3 + $0x300] sm:$0xff]  ;;  %v10787_v50 = vrot.slane %v17263_v59, %v15039_v4  ;;  %v14814_v14 = vld [vmem:[#allocation3 + $0x310] sm:$0xff]  ;;  %v14816_v2 = vld [vmem:[#allocation3 + $0x2d8] sm:$0xff] }
 0x55e   :  { %9309 = vrot.lane.b32.xlu1 %v9278_v53, %s14946_s0  ;;  %6338 = vmatprep.subr.mxu1 %v14809_v42  ;;  %v14815_v53 = vld [vmem:[#allocation3 + $0x2c8] sm:$0xff]  ;;  %v14817_v42 = vld [vmem:[#allocation3 + $0x2c0] sm:$0xff] }
 0x55f   :  { %6339 = vmatpush1.msra.mxu1 %v14810_v62  ;;  %6269 = vmatprep.subr.mxu0 %v14811_v39  ;;  %v14818_v62 = vld [vmem:[#allocation3 + $0x2d0] sm:$0xff]  ;;  %v14819_v39 = vld [vmem:[#allocation3 + $0x288] sm:$0xff] }
 0x560   :  { %6340 = vmatprep.subr.mxu1 %v14812_v32  ;;  %6270 = vmatpush1.msra.mxu0 %v14813_v27  ;;  %v17266_v46 = vpop.permute.xlu0 %8404  ;;  %v14820_v32 = vld [vmem:[#allocation3 + $0x298] sm:$0xff] }
 0x561   :  { %8484 = vrot.lane.b32.xlu0 %v8447_v43, %s14957_s30  ;;  %6341 = vmatpush1.msra.mxu1 %v14814_v14  ;;  %v10795_v43 = vrot.slane %v17263_v59, %v15036_v3  ;;  %v14821_v14 = vld [vmem:[#allocation3 + $0x280] sm:$0xff] }
 0x562   :  { %6271 = vmatprep.subr.mxu0 %v14815_v53  ;;  %6342 = vmatprep.subr.mxu1 %v14816_v2  ;;  %v14822_v53 = vld [vmem:[#allocation3 + $0x290] sm:$0xff]  ;;  %v14823_v2 = vld [vmem:[#allocation3 + $0x248] sm:$0xff]  ;;  %v14829_v3 = vld [vmem:[#allocation3 + $0x200] sm:$0xff] }
 0x563   :  { %6272 = vmatpush1.msra.mxu0 %v14817_v42  ;;  %6343 = vmatpush1.msra.mxu1 %v14818_v62  ;;  %v14824_v42 = vld [vmem:[#allocation3 + $0x258] sm:$0xff]  ;;  %v14825_v62 = vld [vmem:[#allocation3 + $0x240] sm:$0xff] }
 0x564   :  { %6273 = vmatprep.subr.mxu0 %v14819_v39  ;;  %6344 = vmatprep.subr.mxu1 %v14820_v32  ;;  %v17271_v27 = vpop.permute.xlu0 %8408  ;;  %v14826_v39 = vld [vmem:[#allocation3 + $0x250] sm:$0xff]  ;;  %v14827_v32 = vld [vmem:[#allocation3 + $0x208] sm:$0xff] }
 0x565   :  { %20613 = vst [vmem:[#allocation159_spill] sm:$0xff] %v17271_v27  ;;  %10848 = vrot.lane.b32.xlu0 %v10787_v50, %s14947_s26  ;;  %6274 = vmatpush1.msra.mxu0 %v14821_v14  ;;  %v14828_v50 = vld [vmem:[#allocation3 + $0x218] sm:$0xff]  ;;  %v14830_v14 = vld [vmem:[#allocation3 + $0x210] sm:$0xff] }
 0x566   :  { %6345 = vmatpush1.msra.mxu1 %v14822_v53  ;;  %6275 = vmatprep.subr.mxu0 %v14823_v2  ;;  %v14831_v53 = vld [vmem:[#allocation3 + $0x1c8] sm:$0xff]  ;;  %v14832_v2 = vld [vmem:[#allocation3 + $0x1d8] sm:$0xff] }
 0x567   :  { %6346 = vmatprep.subr.mxu1 %v14824_v42  ;;  %6276 = vmatpush1.msra.mxu0 %v14825_v62  ;;  %v14833_v42 = vld [vmem:[#allocation3 + $0x1c0] sm:$0xff]  ;;  %v14834_v62 = vld [vmem:[#allocation3 + $0x1d0] sm:$0xff] }
 0x568   :  { %6347 = vmatpush1.msra.mxu1 %v14826_v39  ;;  %6277 = vmatprep.subr.mxu0 %v14827_v32  ;;  %v17276_v27 = vpop.permute.xlu0 %8412  ;;  %v14835_v32 = vld [vmem:[#allocation3 + $0x188] sm:$0xff] }
 0x569   :  { %20614 = vst [vmem:[#allocation160_spill] sm:$0xff] %v17276_v27  ;;  %10852 = vrot.lane.b32.xlu0 %v10795_v43, %s14947_s26  ;;  %6348 = vmatprep.subr.mxu1 %v14828_v50  ;;  %v14836_v27 = vld [vmem:[#allocation3 + $0x198] sm:$0xff]  ;;  %v14838_v50 = vld [vmem:[#allocation3 + $0x190] sm:$0xff] }
 0x56a   :  { %6278 = vmatpush1.msra.mxu0 %v14829_v3  ;;  %6349 = vmatpush1.msra.mxu1 %v14830_v14  ;;  %v14837_v3 = vld [vmem:[#allocation3 + $0x180] sm:$0xff]  ;;  %v14839_v14 = vld [vmem:[#allocation3 + $0x148] sm:$0xff] }
 0x56b   :  { %6279 = vmatprep.subr.mxu0 %v14831_v53  ;;  %6350 = vmatprep.subr.mxu1 %v14832_v2  ;;  %v14840_v53 = vld [vmem:[#allocation3 + $0x158] sm:$0xff]  ;;  %v10791_v2 = vrot.slane %v17263_v59, %v15042_v5 }
 0x56c   :  { %6280 = vmatpush1.msra.mxu0 %v14833_v42  ;;  %6351 = vmatpush1.msra.mxu1 %v14834_v62  ;;  %v17279_v39 = vpop.permute.xlu0 %9279  ;;  %v14841_v42 = vld [vmem:[#allocation3 + $0x140] sm:$0xff]  ;;  %v14842_v62 = vld [vmem:[#allocation3 + $0x150] sm:$0xff] }
 0x56d   :  { %6281 = vmatprep.subr.mxu0 %v14835_v32  ;;  %6352 = vmatprep.subr.mxu1 %v14836_v27  ;;  %v9343_v43 = vmul.f32 %v17259_v10, %v17279_v39  ;;  %v14843_v27 = vld [vmem:[#allocation3 + $0x108] sm:$0xff]  ;;  %v14844_v10 = vld [vmem:[#allocation3 + $0x118] sm:$0xff]  ;;  %v14845_v32 = vld [vmem:[#allocation3 + $0x100] sm:$0xff] }
 0x56e   :  { %6282 = vmatpush1.msra.mxu0 %v14837_v3  ;;  %6353 = vmatpush1.msra.mxu1 %v14838_v50  ;;  %v14846_v3 = vld [vmem:[#allocation3 + $0x110] sm:$0xff]  ;;  %v14847_v50 = vld [vmem:[#allocation3 + $0xc8] sm:$0xff] }
 0x56f   :  { %6283 = vmatprep.subr.mxu0 %v14839_v14  ;;  %6354 = vmatprep.subr.mxu1 %v14840_v53  ;;  %v14848_v14 = vld [vmem:[#allocation3 + $0xd8] sm:$0xff]  ;;  %v14849_v53 = vld [vmem:[#allocation3 + $0xc0] sm:$0xff] }
 0x570   :  { %9380 = vrot.lane.b32.xlu1 %v9343_v43, %s14947_s26  ;;  %6284 = vmatpush1.msra.mxu0 %v14841_v42  ;;  %v10799_v43 = vrot.slane %v17263_v59, %v15092_v29  ;;  %v14850_v42 = vld [vmem:[#allocation3 + $0xd0] sm:$0xff] }
 0x571   :  { %6355 = vmatpush1.msra.mxu1 %v14842_v62  ;;  %6285 = vmatprep.subr.mxu0 %v14843_v27  ;;  %v14851_v62 = vld [vmem:[#allocation3 + $0x88] sm:$0xff]  ;;  %v14852_v27 = vld [vmem:[#allocation3 + $0x98] sm:$0xff] }
 0x572   :  { %6356 = vmatprep.subr.mxu1 %v14844_v10  ;;  %6286 = vmatpush1.msra.mxu0 %v14845_v32  ;;  %v14853_v10 = vld [vmem:[#allocation3 + $0x80] sm:$0xff] }
 0x573   :  { %6357 = vmatpush1.msra.mxu1 %v14846_v3  ;;  %6287 = vmatprep.subr.mxu0 %v14847_v50  ;;  %v14855_v3 = vld [vmem:[#allocation3 + $0x40] sm:$0xff]  ;;  %v14856_v50 = vld [vmem:[#allocation3 + $0x8] sm:$0xff] }
 0x574   :  { %10850 = vrot.lane.b32.xlu1 %v10791_v2, %s14947_s26  ;;  %6358 = vmatprep.subr.mxu1 %v14848_v14  ;;  %v14854_v2 = vld [vmem:[#allocation3 + $0x48] sm:$0xff] }
 0x575   :  { %6288 = vmatpush1.msra.mxu0 %v14849_v53  ;;  %6359 = vmatpush1.msra.mxu1 %v14850_v42  ;;  %v14857_v53 = vld [vmem:[#allocation3] sm:$0xff] }
 0x576   :  { %6289 = vmatprep.subr.mxu0 %v14851_v62  ;;  %6360 = vmatprep.subr.mxu1 %v14852_v27  ;;  %v14861_v62 = vld [vmem:[#allocation3 + $0x780] sm:$0xff] }
 0x577   :  { %6290 = vmatpush1.msra.mxu0 %v14853_v10  ;;  %6361 = vmatpush1.msra.mxu1 %v16646_v13  ;;  %v14858_v13 = vld [vmem:[#allocation3 + $0x7c8] sm:$0xff]  ;;  %v14863_v27 = vld [vmem:[#allocation3 + $0x740] sm:$0xff] }
 0x578   :  { %10854 = vrot.lane.b32.xlu1 %v10799_v43, %s14947_s26  ;;  %6291 = vmatprep.subr.mxu0 %v14854_v2  ;;  %v17291_v32 = vpop.f32.mrf.mxu1  ;;  %v14865_v10 = vld [vmem:[#allocation3 + $0x700] sm:$0xff] }
 0x579   :  { %6362 = vmatprep.subr.mxu1 %v16648_v24  ;;  %6292 = vmatpush1.msra.mxu0 %v14855_v3  ;;  %v14859_v24 = vld [vmem:[#allocation3 + $0x7c0] sm:$0xff] }
 0x57a   :  { %6363 = vmatpush1.msra.mxu1 %v16651_v49  ;;  %6293 = vmatprep.subr.mxu0 %v14856_v50  ;;  %v17295_v14 = vpop.f32.mrf.mxu1  ;;  %v14860_v49 = vld [vmem:[#allocation3 + $0x788] sm:$0xff]  ;;  %v14867_v2 = vld [vmem:[#allocation3 + $0x6c0] sm:$0xff] }
 0x57b   :  { %6364 = vmatprep.subr.mxu1 %v16658_v57  ;;  %6294 = vmatpush1.msra.mxu0 %v14857_v53  ;;  %v14862_v57 = vld [vmem:[#allocation3 + $0x748] sm:$0xff]  ;;  %v14869_v3 = vld [vmem:[#allocation3 + $0x680] sm:$0xff] }
 0x57c   :  { %6365 = vmatpush1.msra.mxu1 %v16663_v22  ;;  %6295 = vmatprep.subr.mxu0 %v14858_v13  ;;  %v4262_v43 = vpop.f32.mrf.mxu1  ;;  %v14871_v50 = vld [vmem:[#allocation3 + $0x640] sm:$0xff] }
 0x57d   :  { %6366 = vmatprep.subr.mxu1 %v16668_v31  ;;  %6296 = vmatpush2.msra.mxu0 %v14859_v24  ;;  %v14864_v31 = vld [vmem:[#allocation3 + $0x708] sm:$0xff]  ;;  %v14873_v53 = vld [vmem:[#allocation3 + $0x600] sm:$0xff] }
 0x57e   :  { %6367 = vmatpush2.msra.mxu1 %v16674_v8  ;;  %6297 = vmatprep.subr.mxu0 %v14860_v49  ;;  %v4264_v42 = vpop.f32.mrf.mxu1  ;;  %v14876_v49 = vld [vmem:[#allocation3 + $0x588] sm:$0xff] }
 0x57f   :  { %6368 = vmatprep.subr.mxu1 %v16679_v26  ;;  %6298 = vmatpush2.msra.mxu0 %v14861_v62  ;;  %v14866_v26 = vld [vmem:[#allocation3 + $0x6c8] sm:$0xff] }
 0x580   :  { %6369 = vmatpush2.msra.mxu1 %v16685_v19  ;;  %6299 = vmatprep.subr.mxu0 %v14862_v57  ;;  %v4471_v22 = vpop.f32.mrf.mxu1  ;;  %v14878_v62 = vld [vmem:[#allocation3 + $0x548] sm:$0xff] }
 0x581   :  { %6370 = vmatprep.subr.mxu1 %v16688_v16  ;;  %6300 = vmatpush2.msra.mxu0 %v14863_v27  ;;  %v14868_v16 = vld [vmem:[#allocation3 + $0x688] sm:$0xff] }
 0x582   :  { %6371 = vmatpush2.msra.mxu1 %v16694_v36  ;;  %6301 = vmatprep.subr.mxu0 %v14864_v31  ;;  %v4473_v8 = vpop.f32.mrf.mxu1  ;;  %v14880_v57 = vld [vmem:[#allocation3 + $0x508] sm:$0xff] }
 0x583   :  { %6372 = vmatprep.subr.mxu1 %v16699_v33  ;;  %6302 = vmatpush2.msra.mxu0 %v14865_v10  ;;  %v14870_v33 = vld [vmem:[#allocation3 + $0x648] sm:$0xff] }
 0x584   :  { %6373 = vmatpush2.msra.mxu1 %v16705_v56  ;;  %6303 = vmatprep.subr.mxu0 %v14866_v26  ;;  %v4684_v19 = vpop.f32.mrf.mxu1  ;;  %v14882_v31 = vld [vmem:[#allocation3 + $0x4c8] sm:$0xff] }
 0x585   :  { %6374 = vmatprep.subr.mxu1 %v16708_v23  ;;  %6304 = vmatpush2.msra.mxu0 %v14867_v2  ;;  %v14872_v23 = vld [vmem:[#allocation3 + $0x608] sm:$0xff] }
 0x586   :  { %6375 = vmatpush2.msra.mxu1 %v16711_v28  ;;  %6305 = vmatprep.subr.mxu0 %v14868_v16  ;;  %v4686_v36 = vpop.f32.mrf.mxu1  ;;  %v14884_v26 = vld [vmem:[#allocation3 + $0x488] sm:$0xff] }
 0x587   :  { %6376 = vmatprep.subr.mxu1 %v16717_v7  ;;  %6306 = vmatpush2.msra.mxu0 %v14869_v3  ;;  %v4263_v7 = vadd.f32 %v4262_v43, %v17291_v32  ;;  %v14877_v32 = vld [vmem:[#allocation3 + $0x580] sm:$0xff]  ;;  %v10807_v3 = vrot.slane %v17263_v59, %v16411_v35 }
 0x588   :  { %6377 = vmatpush2.msra.mxu1 %v16725_v61  ;;  %6307 = vmatprep.subr.mxu0 %v14870_v33  ;;  %v4835_v56 = vpop.f32.mrf.mxu1  ;;  %v14874_v61 = vld [vmem:[#allocation3 + $0x5c8] sm:$0xff] }
 0x589   :  { %6378 = vmatprep.subr.mxu1 %v16728_v41  ;;  %6308 = vmatpush2.msra.mxu0 %v14871_v50  ;;  %v14875_v41 = vld [vmem:[#allocation3 + $0x5c0] sm:$0xff]  ;;  %v4478_v24 = vadd.f32 %v4471_v22, %v4263_v7 }
 0x58a   :  { %6379 = vmatpush2.msra.mxu1 %v16731_v6  ;;  %6309 = vmatprep.subr.mxu0 %v14872_v23  ;;  %v4837_v28 = vpop.f32.mrf.mxu1  ;;  %v4265_v6 = vadd.f32 %v4264_v42, %v17295_v14  ;;  %v14879_v14 = vld [vmem:[#allocation3 + $0x540] sm:$0xff] }
 0x58b   :  { %6380 = vmatprep.subr.mxu1 %v16737_v63  ;;  %6310 = vmatpush2.msra.mxu0 %v14873_v53  ;;  %v4691_v43 = vadd.f32 %v4684_v19, %v4478_v24  ;;  %v14881_v22 = vld [vmem:[#allocation3 + $0x500] sm:$0xff]  ;;  %v10815_v53 = vrot.slane %v17263_v59, %v16422_v48 }
 0x58c   :  { %6381 = vmatpush2.msra.mxu1 %v16744_v17  ;;  %6311 = vmatprep.subr.mxu0 %v14874_v61  ;;  %v5053_v13 = vpop.f32.mrf.mxu1  ;;  %v4479_v17 = vadd.f32 %v4473_v8, %v4265_v6  ;;  %v14883_v8 = vld [vmem:[#allocation3 + $0x4c0] sm:$0xff]  ;;  %v20617_v6 = vld [vmem:[#allocation27_spill] sm:$0xff] }
 0x58d   :  { %6382 = vmatprep.subr.mxu1 %v16747_v15  ;;  %6312 = vmatpush2.msra.mxu0 %v14875_v41  ;;  %v14885_v19 = vld [vmem:[#allocation3 + $0x480] sm:$0xff]  ;;  %v14894_v41 = vld [vmem:[#allocation3 + $0x368] sm:$0xff] }
 0x58e   :  { %6383 = vmatpush2.msra.mxu1 %v16753_v51  ;;  %6313 = vmatprep.subr.mxu0 %v14876_v49  ;;  %v5055_v63 = vpop.f32.mrf.mxu1  ;;  %v4692_v42 = vadd.f32 %v4686_v36, %v4479_v17  ;;  %v4842_v51 = vadd.f32 %v4835_v56, %v4691_v43  ;;  %v14888_v56 = vld [vmem:[#allocation3 + $0x408] sm:$0xff]  ;;  %v14889_v23 = vld [vmem:[#allocation3 + $0x400] sm:$0xff]  ;;  %v20618_v49 = vld [vmem:[#allocation29_spill] sm:$0xff] }
 0x58f   :  { %6384 = vmatprep.subr.mxu1 %v16759_v37  ;;  %6314 = vmatpush2.msra.mxu0 %v14877_v32  ;;  %v14895_v24 = vld [vmem:[#allocation3 + $0x360] sm:$0xff]  ;;  %v20620_v17 = vld [vmem:[#allocation33_spill] sm:$0xff]  ;;  %v14898_v43 = vld [vmem:[#allocation3 + $0x2e8] sm:$0xff] }
 0x590   :  { %6385 = vmatpush2.msra.mxu1 %v16765_v44  ;;  %6315 = vmatprep.subr.mxu0 %v14878_v62  ;;  %v5266_v15 = vpop.f32.mrf.mxu1  ;;  %v4843_v27 = vadd.f32 %v4837_v28, %v4692_v42  ;;  %v5060_v44 = vadd.f32 %v5053_v13, %v4842_v51  ;;  %v20616_v13 = vld [vmem:[#allocation25_spill] sm:$0xff]  ;;  %v14897_v32 = vld [vmem:[#allocation3 + $0x320] sm:$0xff]  ;;  %v20621_v62 = vld [vmem:[#allocation35_spill] sm:$0xff] }
 0x591   :  { %6386 = vmatprep.subr.mxu1 %v16768_v45  ;;  %6316 = vmatpush2.msra.mxu0 %v14879_v14  ;;  %v14899_v14 = vld [vmem:[#allocation3 + $0x2e0] sm:$0xff]  ;;  %v20623_v51 = vld [vmem:[#allocation21_spill] sm:$0xff] }
 0x592   :  { %6387 = vmatpush2.msra.mxu1 %v16771_v58  ;;  %6317 = vmatprep.subr.mxu0 %v14880_v57  ;;  %v5268_v37 = vpop.f32.mrf.mxu1  ;;  %v5061_v10 = vadd.f32 %v5055_v63, %v4843_v27  ;;  %v5273_v58 = vadd.f32 %v5266_v15, %v5060_v44  ;;  %v14896_v63 = vld [vmem:[#allocation3 + $0x328] sm:$0xff]  ;;  %v17360_v15 = vpop.permute.xlu1 %8386  ;;  %v20622_v42 = vld [vmem:[#allocation38_spill] sm:$0xff]  ;;  %v20624_v57 = vld [vmem:[#allocation41_spill] sm:$0xff] }
 0x593   :  { %6388 = vmatprep.subr.mxu1 %v16775_v52  ;;  %6318 = vmatpush2.msra.mxu0 %v14881_v22  ;;  %v20626_v22 = vld [vmem:[#allocation43_spill] sm:$0xff]  ;;  %v20627_v27 = vld [vmem:[#allocation26_spill] sm:$0xff]  ;;  %v20628_v44 = vld [vmem:[#allocation45_spill] sm:$0xff] }
 0x594   :  { %6389 = vmatpush2.msra.mxu1 %v16781_v12  ;;  %6319 = vmatprep.subr.mxu0 %v14882_v31  ;;  %v5479_v45 = vpop.f32.mrf.mxu1  ;;  %v10803_v12 = vrot.slane %v17263_v59, %v16391_v11  ;;  %v5274_v2 = vadd.f32 %v5268_v37, %v5061_v10  ;;  %v20625_v37 = vld [vmem:[#allocation23_spill] sm:$0xff]  ;;  %v20629_v31 = vld [vmem:[#allocation28_spill] sm:$0xff]  ;;  %v20632_v10 = vld [vmem:[#allocation49_spill] sm:$0xff] }
 0x595   :  { %6390 = vmatprep.subr.mxu1 %v16784_v54  ;;  %6320 = vmatpush2.msra.mxu0 %v14883_v8  ;;  %v5486_v16 = vadd.f32 %v5479_v45, %v5273_v58  ;;  %v14886_v54 = vld [vmem:[#allocation3 + $0x448] sm:$0xff]  ;;  %v20631_v8 = vld [vmem:[#allocation30_spill] sm:$0xff] }
 0x596   :  { %6391 = vmatpush2.msra.mxu1 %v16787_v55  ;;  %6321 = vmatprep.subr.mxu0 %v14884_v26  ;;  %v5481_v52 = vpop.f32.mrf.mxu1  ;;  %v14887_v55 = vld [vmem:[#allocation3 + $0x440] sm:$0xff]  ;;  %v20630_v45 = vld [vmem:[#allocation47_spill] sm:$0xff]  ;;  %v17373_v58 = vpop.permute.xlu1 %8390  ;;  %v20633_v26 = vld [vmem:[#allocation32_spill] sm:$0xff] }
 0x597   :  { %6392 = vmatprep.subr.mxu1 %v16791_v38  ;;  %6322 = vmatpush2.msra.mxu0 %v14885_v19  ;;  %v5487_v38 = vadd.f32 %v5481_v52, %v5274_v2  ;;  %v20634_v52 = vld [vmem:[#allocation52_spill] sm:$0xff]  ;;  %v20635_v19 = vld [vmem:[#allocation34_spill] sm:$0xff] }
 0x598   :  { %6393 = vmatpush2.msra.mxu1 %v16794_v20  ;;  %6323 = vmatprep.subr.mxu0 %v14886_v54  ;;  %v5692_v36 = vpop.f32.mrf.mxu1  ;;  %v10811_v20 = vrot.slane %v17263_v59, %v16399_v47  ;;  %v14893_v59 = vld [vmem:[#allocation3 + $0x3a0] sm:$0xff]  ;;  %v20637_v2 = vld [vmem:[#allocation36_spill] sm:$0xff]  ;;  %v20639_v54 = vld [vmem:[#allocation39_spill] sm:$0xff] }
 0x599   :  { %6394 = vmatprep.subr.mxu1 %v16798_v25  ;;  %6324 = vmatpush2.msra.mxu0 %v14887_v55  ;;  %v5699_v33 = vadd.f32 %v5692_v36, %v5486_v16  ;;  %v20638_v16 = vld [vmem:[#allocation57_spill] sm:$0xff]  ;;  %v20640_v36 = vld [vmem:[#allocation59_spill] sm:$0xff]  ;;  %v20641_v55 = vld [vmem:[#allocation42_spill] sm:$0xff] }
 0x59a   :  { %6395 = vmatpush2.msra.mxu1 %v16803_v34  ;;  %6325 = vmatprep.subr.mxu0 %v14888_v56  ;;  %v5694_v50 = vpop.f32.mrf.mxu1  ;;  %v14890_v34 = vld [vmem:[#allocation3 + $0x3e8] sm:$0xff]  ;;  %v17387_v56 = vpop.permute.xlu1 %8394 }
 0x59b   :  { %6396 = vmatprep.subr.mxu1 %v16806_v40  ;;  %10856 = vrot.lane.b32.xlu0 %v10803_v12, %s14947_s26  ;;  %v5700_v25 = vadd.f32 %v5694_v50, %v5487_v38  ;;  %v5709_v28 = vadd.f32 %v16670_v21, %v5699_v33  ;;  %v20636_v12 = vld [vmem:[#allocation55_spill] sm:$0xff]  ;;  %v20643_v38 = vld [vmem:[#allocation44_spill] sm:$0xff]  ;;  %v20645_v50 = vld [vmem:[#allocation46_spill] sm:$0xff] }
 0x59c   :  { %6326 = vmatpush2.msra.mxu0 %v14889_v23  ;;  %6397 = vmatpush2.msra.mxu1 %v16809_v60  ;;  %v14891_v60 = vld [vmem:[#allocation3 + $0x3e0] sm:$0xff]  ;;  %v20644_v33 = vld [vmem:[#allocation63_spill] sm:$0xff]  ;;  %v20648_v23 = vld [vmem:[#allocation69_spill] sm:$0xff] }
 0x59d   :  { %10858 = vrot.lane.b32.xlu1 %v10807_v3, %s14947_s26  ;;  %6405 = vmatprep.subr.mxu0 %v14890_v34  ;;  %v5710_v40 = vadd.f32 %v16670_v21, %v5700_v25  ;;  %v17347_v61 = vmax.f32 %v5709_v28, 0.0  ;;  %v14892_v21 = vld [vmem:[#allocation3 + $0x3a8] sm:$0xff]  ;;  %v20642_v3 = vld [vmem:[#allocation61_spill] sm:$0xff]  ;;  %v20647_v25 = vld [vmem:[#allocation48_spill] sm:$0xff] }
 0x59e   :  { %6476 = vmatprep.subr.mxu1 %v16814_v1  ;;  %v20615_v1 = vld [vmem:[#allocation22_spill] sm:$0xff]  ;;  %v20650_v34 = vld [vmem:[#allocation71_spill] sm:$0xff] }
 0x59f   :  { %10860 = vrot.lane.b32.xlu0 %v10811_v20, %s14947_s26  ;;  %v5714_v7 = vmax.f32 %v5710_v40, 0.0  ;;  %v20646_v20 = vld [vmem:[#allocation66_spill] sm:$0xff]  ;;  %v20652_v40 = vld [vmem:[#allocation73_spill] sm:$0xff] }
 0x5a0   :  { %v20649_v28 = vld [vmem:[#allocation50_spill] sm:$0xff] }
 0x5a1   :  { %10862 = vrot.lane.b32.xlu1 %v10815_v53, %s14947_s26  ;;  %6327 = vmatprep.mubr.f32.mxu0 %v5714_v7  ;;  %v20651_v53 = vld [vmem:[#allocation53_spill] sm:$0xff] }
 0x5a2   :  { %6398 = vmatprep.mubr.f32.mxu1 %v5714_v7  ;;  %6328 = vmatmul.mubr.f32.vlgmr.msra.gmra.mxu0 %v17347_v61 }
 0x5a3   :  { %6399 = vmatmul.mubr.f32.vlgmr.msra.gmra.mxu1 %v17347_v61  ;;  %6406 = vmatpush1.msra.mxu0 %v14891_v60  ;;  %v20654_v60 = vld [vmem:[#allocation75_spill] sm:$0xff] }
 0x5a4   :  { %6477 = vmatpush1.msra.mxu1 %v16817_v18  ;;  %6407 = vmatprep.subr.mxu0 %v14892_v21  ;;  %v20619_v18 = vld [vmem:[#allocation31_spill] sm:$0xff]  ;;  %v20655_v21 = vld [vmem:[#allocation58_spill] sm:$0xff] }
 0x5a5   :  { %6469 = vmatprep.mubr.f32.mxu0 %v5714_v7  ;;  %6478 = vmatprep.subr.mxu1 %v20615_v1  ;;  %v20656_v1 = vld [vmem:[#allocation77_spill] sm:$0xff] }
 0x5a6   :  { %6540 = vmatprep.mubr.f32.mxu1 %v5714_v7  ;;  %6408 = vmatpush1.msra.mxu0 %v14893_v59  ;;  %v20653_v7 = vld [vmem:[#allocation56_spill] sm:$0xff]  ;;  %v17401_v59 = vpop.permute.xlu1 %8398 }
 0x5a7   :  { %6479 = vmatpush1.msra.mxu1 %v20616_v13  ;;  %6409 = vmatprep.subr.mxu0 %v14894_v41  ;;  %v20657_v13 = vld [vmem:[#allocation60_spill] sm:$0xff] }
 0x5a8   :  { %6480 = vmatprep.subr.mxu1 %v20617_v6  ;;  %6410 = vmatpush1.msra.mxu0 %v14895_v24  ;;  %v20658_v41 = vld [vmem:[#allocation80_spill] sm:$0xff]  ;;  %v20659_v6 = vld [vmem:[#allocation62_spill] sm:$0xff]  ;;  %v20660_v24 = vld [vmem:[#allocation83_spill] sm:$0xff] }
 0x5a9   :  { %6481 = vmatpush1.msra.mxu1 %v20618_v49  ;;  %6411 = vmatprep.subr.mxu0 %v14896_v63  ;;  %v20661_v49 = vld [vmem:[#allocation64_spill] sm:$0xff]  ;;  %v20662_v63 = vld [vmem:[#allocation85_spill] sm:$0xff] }
 0x5aa   :  { %6482 = vmatprep.subr.mxu1 %v20619_v18  ;;  %6412 = vmatpush1.msra.mxu0 %v14897_v32  ;;  %v20663_v18 = vld [vmem:[#allocation67_spill] sm:$0xff] }
 0x5ab   :  { %6483 = vmatpush1.msra.mxu1 %v20620_v17  ;;  %6413 = vmatprep.subr.mxu0 %v14898_v43  ;;  %v20664_v32 = vld [vmem:[#allocation87_spill] sm:$0xff]  ;;  %v20665_v17 = vld [vmem:[#allocation70_spill] sm:$0xff]  ;;  %v20666_v43 = vld [vmem:[#allocation89_spill] sm:$0xff] }
 0x5ac   :  { %6484 = vmatprep.subr.mxu1 %v20621_v62  ;;  %6414 = vmatpush1.msra.mxu0 %v14899_v14  ;;  %v20667_v62 = vld [vmem:[#allocation72_spill] sm:$0xff]  ;;  %v20668_v14 = vld [vmem:[#allocation91_spill] sm:$0xff] }
 0x5ad   :  { %6485 = vmatpush1.msra.mxu1 %v20622_v42  ;;  %6415 = vmatprep.subr.mxu0 %v20623_v51  ;;  %v17415_v42 = vpop.permute.xlu1 %8402  ;;  %v20669_v51 = vld [vmem:[#allocation74_spill] sm:$0xff] }
 0x5ae   :  { %6486 = vmatprep.subr.mxu1 %v20624_v57  ;;  %6416 = vmatpush1.msra.mxu0 %v20625_v37  ;;  %v20670_v57 = vld [vmem:[#allocation94_spill] sm:$0xff]  ;;  %v20671_v37 = vld [vmem:[#allocation76_spill] sm:$0xff] }
 0x5af   :  { %6487 = vmatpush1.msra.mxu1 %v20626_v22  ;;  %6417 = vmatprep.subr.mxu0 %v20627_v27  ;;  %v20672_v22 = vld [vmem:[#allocation97_spill] sm:$0xff]  ;;  %v20673_v27 = vld [vmem:[#allocation78_spill] sm:$0xff] }
 0x5b0   :  { %6488 = vmatprep.subr.mxu1 %v20628_v44  ;;  %6418 = vmatpush1.msra.mxu0 %v20629_v31  ;;  %v20674_v44 = vld [vmem:[#allocation99_spill] sm:$0xff]  ;;  %v20675_v31 = vld [vmem:[#allocation81_spill] sm:$0xff] }
 0x5b1   :  { %6489 = vmatpush1.msra.mxu1 %v20630_v45  ;;  %6419 = vmatprep.subr.mxu0 %v20631_v8  ;;  %v20676_v45 = vld [vmem:[#allocation101_spill] sm:$0xff]  ;;  %v20677_v8 = vld [vmem:[#allocation84_spill] sm:$0xff] }
 0x5b2   :  { %6490 = vmatprep.subr.mxu1 %v20632_v10  ;;  %6420 = vmatpush1.msra.mxu0 %v20633_v26  ;;  %v20678_v10 = vld [vmem:[#allocation103_spill] sm:$0xff]  ;;  %v20679_v26 = vld [vmem:[#allocation86_spill] sm:$0xff] }
 0x5b3   :  { %6491 = vmatpush1.msra.mxu1 %v20634_v52  ;;  %6421 = vmatprep.subr.mxu0 %v20635_v19  ;;  %v20680_v52 = vld [vmem:[#allocation105_spill] sm:$0xff]  ;;  %v17429_v19 = vpop.permute.xlu1 %8406 }
 0x5b4   :  { %6492 = vmatprep.subr.mxu1 %v20636_v12  ;;  %6422 = vmatpush1.msra.mxu0 %v20637_v2  ;;  %v20681_v12 = vld [vmem:[#allocation88_spill] sm:$0xff] }
 0x5b5   :  { %6493 = vmatpush1.msra.mxu1 %v20638_v16  ;;  %6423 = vmatprep.subr.mxu0 %v20639_v54  ;;  %v20682_v2 = vld [vmem:[#allocation108_spill] sm:$0xff] }
 0x5b6   :  { %6494 = vmatprep.subr.mxu1 %v20640_v36  ;;  %6424 = vmatpush1.msra.mxu0 %v20641_v55  ;;  %v14672_v16 = vld [vmem:[%s20281_s10 + $0x44] ss:$8 sm:$0xf] }
 0x5b7   :  { %6495 = vmatpush1.msra.mxu1 %v20642_v3  ;;  %6425 = vmatprep.subr.mxu0 %v20643_v38  ;;  %v14673_v54 = vld [vmem:[%s20281_s10 + $0x44] ss:$8 sm:$0xf0] }
 0x5b8   :  { %6496 = vmatprep.subr.mxu1 %v20644_v33  ;;  %6426 = vmatpush1.msra.mxu0 %v20645_v50  ;;  %v20683_v36 = vld [vmem:[#allocation90_spill] sm:$0xff]  ;;  %v20684_v55 = vld [vmem:[#allocation111_spill] sm:$0xff]  ;;  %v20685_v38 = vld [vmem:[#allocation92_spill] sm:$0xff] }
 0x5b9   :  { %6497 = vmatpush1.msra.mxu1 %v20646_v20  ;;  %6427 = vmatprep.subr.mxu0 %v20647_v25  ;;  %v20686_v33 = vld [vmem:[#allocation113_spill] sm:$0xff]  ;;  %v20687_v50 = vld [vmem:[#allocation96_spill] sm:$0xff]  ;;  %v20688_v20 = vld [vmem:[#allocation115_spill] sm:$0xff] }
 0x5ba   :  { %6498 = vmatprep.subr.mxu1 %v20648_v23  ;;  %6428 = vmatpush1.msra.mxu0 %v20649_v28  ;;  %v17450_v23 = vor.u32 %v14673_v54, %v14672_v16  ;;  %v20689_v28 = vld [vmem:[#allocation98_spill] sm:$0xff]  ;;  %v20716_v16 = vld [vmem:[#allocation8_spill] sm:$0xff] }
 0x5bb   :  { %6499 = vmatpush1.msra.mxu1 %v20650_v34  ;;  %6429 = vmatprep.subr.mxu0 %v20651_v53  ;;  %v20690_v34 = vld [vmem:[#allocation117_spill] sm:$0xff]  ;;  %v20691_v53 = vld [vmem:[#allocation100_spill] sm:$0xff] }
 0x5bc   :  { %6500 = vmatprep.subr.mxu1 %v20652_v40  ;;  %6430 = vmatpush1.msra.mxu0 %v20653_v7  ;;  %v20692_v40 = vld [vmem:[#allocation119_spill] sm:$0xff]  ;;  %v17457_v7 = vpop.permute.xlu1 %8410 }
 0x5bd   :  { %6501 = vmatpush1.msra.mxu1 %v20654_v60  ;;  %6431 = vmatprep.subr.mxu0 %v20655_v21  ;;  %v20693_v60 = vld [vmem:[#allocation102_spill] sm:$0xff]  ;;  %v20694_v21 = vld [vmem:[#allocation123_spill] sm:$0xff] }
 0x5be   :  { %6502 = vmatprep.subr.mxu1 %v20656_v1  ;;  %6432 = vmatpush1.msra.mxu0 %v20657_v13  ;;  %v20695_v1 = vld [vmem:[#allocation104_spill] sm:$0xff]  ;;  %v20696_v13 = vld [vmem:[#allocation125_spill] sm:$0xff] }
 0x5bf   :  { %6503 = vmatpush1.msra.mxu1 %v20658_v41  ;;  %6433 = vmatprep.subr.mxu0 %v20659_v6  ;;  %v10819_v41 = vrot.slane %v17450_v23, %v15039_v4  ;;  %v20697_v6 = vld [vmem:[#allocation65_spill] sm:$0xff] }
 0x5c0   :  { %6504 = vmatprep.subr.mxu1 %v20660_v24  ;;  %6434 = vmatpush1.msra.mxu0 %v20661_v49  ;;  %v20698_v24 = vld [vmem:[#allocation15_spill] sm:$0xff] }
 0x5c1   :  { %6505 = vmatpush1.msra.mxu1 %v20662_v63  ;;  %6435 = vmatprep.subr.mxu0 %v20663_v18  ;;  %v6686_v49 = vsel %vm6685_vm11, %v20698_v24, %v20697_v6  ;;  %v20699_v63 = vld [vmem:[#allocation106_spill] sm:$0xff] }
 0x5c2   :  { %6506 = vmatprep.subr.mxu1 %v20664_v32  ;;  %6436 = vmatpush1.msra.mxu0 %v20665_v17  ;;  %v20700_v18 = vld [vmem:[#allocation126_spill] sm:$0xff]  ;;  %v20702_v17 = vld [vmem:[#allocation112_spill] sm:$0xff] }
 0x5c3   :  { %6507 = vmatpush1.msra.mxu1 %v20666_v43  ;;  %6437 = vmatprep.subr.mxu0 %v20667_v62  ;;  %v20701_v32 = vld [vmem:[#allocation110_spill] sm:$0xff]  ;;  %v20703_v43 = vld [vmem:[#allocation16_spill] sm:$0xff]  ;;  %v20704_v62 = vld [vmem:[#allocation7_spill] sm:$0xff] }
 0x5c4   :  { %6508 = vmatprep.subr.mxu1 %v20668_v14  ;;  %6438 = vmatpush2.msra.mxu0 %v20669_v51  ;;  %v6844_v14 = vsel %vm6843_vm12, %v20704_v62, %v20703_v43  ;;  %v20705_v51 = vld [vmem:[#allocation114_spill] sm:$0xff] }
 0x5c5   :  { %6509 = vmatpush2.msra.mxu1 %v20670_v57  ;;  %6439 = vmatprep.subr.mxu0 %v20671_v37  ;;  %v17480_v37 = vpop.permute.xlu1 %7619  ;;  %v20726_v24 = vld [vmem:[#allocation130_spill] sm:$0xff] }
 0x5c6   :  { %6510 = vmatprep.subr.mxu1 %v20672_v22  ;;  %6440 = vmatpush2.msra.mxu0 %v20673_v27  ;;  %v20706_v22 = vld [vmem:[#allocation131_spill] sm:$0xff]  ;;  %v20707_v27 = vld [vmem:[#allocation116_spill] sm:$0xff] }
 0x5c7   :  { %6511 = vmatpush2.msra.mxu1 %v20674_v44  ;;  %6441 = vmatprep.subr.mxu0 %v20675_v31  ;;  %v20708_v44 = vld [vmem:[#allocation79_spill] sm:$0xff] }
 0x5c8   :  { %6512 = vmatprep.subr.mxu1 %v20676_v45  ;;  %6442 = vmatpush2.msra.mxu0 %v20677_v8  ;;  %v20710_v45 = vld [vmem:[#allocation135_spill] sm:$0xff]  ;;  %v20711_v8 = vld [vmem:[#allocation118_spill] sm:$0xff] }
 0x5c9   :  { %6513 = vmatpush2.msra.mxu1 %v20678_v10  ;;  %6443 = vmatprep.subr.mxu0 %v20679_v26  ;;  %v20712_v26 = vld [vmem:[#allocation137_spill] sm:$0xff] }
 0x5ca   :  { %6514 = vmatprep.subr.mxu1 %v20680_v52  ;;  %6444 = vmatpush2.msra.mxu0 %v20681_v12  ;;  %v20713_v52 = vld [vmem:[#allocation120_spill] sm:$0xff]  ;;  %v20714_v12 = vld [vmem:[#allocation139_spill] sm:$0xff] }
 0x5cb   :  { %6515 = vmatpush2.msra.mxu1 %v20682_v2  ;;  %6445 = vmatprep.subr.mxu0 %v20683_v36  ;;  %v17441_v3 = vpop.f32.mrf.mxu0  ;;  %v20715_v2 = vld [vmem:[#allocation17_spill] sm:$0xff] }
 0x5cc   :  { %6516 = vmatprep.subr.mxu1 %v20684_v55  ;;  %6446 = vmatpush2.msra.mxu0 %v20685_v38  ;;  %6547 = vst [vmem:[#allocation2 + $0x8] sm:$0xff] %v17441_v3  ;;  %v6719_v57 = vmul.f32 %v6686_v49, %v17441_v3  ;;  %v6846_v54 = vsel %vm6843_vm12, %v20716_v16, %v20715_v2  ;;  %v20717_v55 = vld [vmem:[#allocation124_spill] sm:$0xff] }
 0x5cd   :  { %6517 = vmatpush2.msra.mxu1 %v20686_v33  ;;  %6447 = vmatprep.subr.mxu0 %v20687_v50  ;;  %v17448_v25 = vpop.f32.mrf.mxu0  ;;  %v20718_v33 = vld [vmem:[#allocation141_spill] sm:$0xff]  ;;  %v20719_v50 = vld [vmem:[#allocation127_spill] sm:$0xff]  ;;  %v20727_v49 = vld [vmem:[#allocation148_spill] sm:$0xff] }
 0x5ce   :  { %6518 = vmatprep.subr.mxu1 %v20688_v20  ;;  %6448 = vmatpush2.msra.mxu0 %v20689_v28  ;;  %6548 = vst [vmem:[#allocation2 + $0x10] sm:$0xff] %v17448_v25  ;;  %v9282_v28 = vpop.permute.xlu1 %9281 }
 0x5cf   :  { %6519 = vmatpush2.msra.mxu1 %v20690_v34  ;;  %6449 = vmatprep.subr.mxu0 %v20691_v53  ;;  %v20720_v34 = vld [vmem:[#allocation144_spill] sm:$0xff] }
 0x5d0   :  { %6520 = vmatprep.subr.mxu1 %v20692_v40  ;;  %6450 = vmatpush2.msra.mxu0 %v20693_v60  ;;  %v20721_v53 = vld [vmem:[#allocation128_spill] sm:$0xff]  ;;  %v20722_v40 = vld [vmem:[#allocation145_spill] sm:$0xff] }
 0x5d1   :  { %6521 = vmatpush2.msra.mxu1 %v20694_v21  ;;  %6451 = vmatprep.subr.mxu0 %v20695_v1  ;;  %v20723_v60 = vld [vmem:[#allocation129_spill] sm:$0xff]  ;;  %v20724_v21 = vld [vmem:[#allocation143_spill] sm:$0xff] }
 0x5d2   :  { %6522 = vmatprep.subr.mxu1 %v20696_v13  ;;  %6452 = vmatpush2.msra.mxu0 %v20699_v63  ;;  %v8415_v1 = vsel %vm8414_vm13, %v17245_v30, %v20724_v21  ;;  %v20725_v13 = vld [vmem:[#allocation147_spill] sm:$0xff]  ;;  %v20728_v63 = vld [vmem:[#allocation132_spill] sm:$0xff] }
 0x5d3   :  { %6523 = vmatpush2.msra.mxu1 %v20700_v18  ;;  %6453 = vmatprep.subr.mxu0 %v20701_v32  ;;  %v20729_v18 = vld [vmem:[#allocation150_spill] sm:$0xff]  ;;  %v20730_v32 = vld [vmem:[#allocation136_spill] sm:$0xff]  ;;  %v8448_v30 = vmul.f32 %v8415_v1, %v17441_v3 }
 0x5d4   :  { %6524 = vmatprep.subr.mxu1 %v17123_v9  ;;  %6454 = vmatpush2.msra.mxu0 %v20702_v17  ;;  %v6877_v9 = vmul.f32 %v6844_v14, %v17441_v3  ;;  %v20731_v17 = vld [vmem:[#allocation149_spill] sm:$0xff]  ;;  %v9284_v14 = vpop.permute.xlu0 %9283  ;;  %v20742_v1 = vld [vmem:[#allocation18_spill] sm:$0xff] }
 0x5d5   :  { %6525 = vmatpush2.msra.mxu1 %v17138_v0  ;;  %10864 = vrot.lane.b32.xlu0 %v10819_v41, %s14947_s26  ;;  %v20709_v0 = vld [vmem:[#allocation40_spill] sm:$0xff]  ;;  %v9311_v41 = vsel %vm752_vm5, %v17279_v39, %v9282_v28  ;;  %v8417_v62 = vsel %vm8414_vm13, %v17360_v15, %v20731_v17  ;;  %v9286_v39 = vpop.permute.xlu1 %9285 }
 0x5d6   :  { %6455 = vmatprep.subr.mxu0 %v20705_v51  ;;  %6526 = vmatprep.subr.mxu1 %v20706_v22  ;;  %v6688_v31 = vsel %vm6685_vm11, %v20709_v0, %v20708_v44  ;;  %v20732_v51 = vld [vmem:[#allocation151_spill] sm:$0xff]  ;;  %v9344_v22 = vmul.f32 %v9311_v41, %v17441_v3  ;;  %v20743_v41 = vld [vmem:[#allocation93_spill] sm:$0xff] }
 0x5d7   :  { %6456 = vmatpush2.msra.mxu0 %v20707_v27  ;;  %6527 = vmatpush2.msra.mxu1 %v20710_v45  ;;  %v9313_v27 = vsel %vm752_vm5, %v9284_v14, %v9286_v39  ;;  %v20736_v45 = vld [vmem:[#allocation153_spill] sm:$0xff] }
 0x5d8   :  { %6457 = vmatprep.subr.mxu0 %v20711_v8  ;;  %v17490_v10 = vpop.f32.mrf.mxu1  ;;  %6528 = vmatprep.subr.mxu1 %v20712_v26  ;;  %v20737_v8 = vld [vmem:[#allocation142_spill] sm:$0xff] }
 0x5d9   :  { %6458 = vmatpush2.msra.mxu0 %v20713_v52  ;;  %6549 = vst [vmem:[#allocation2 + $0x18] sm:$0xff] %v17490_v10  ;;  %6529 = vmatpush2.msra.mxu1 %v20714_v12  ;;  %v6721_v38 = vmul.f32 %v6688_v31, %v17490_v10  ;;  %v6879_v20 = vmul.f32 %v6846_v54, %v17490_v10  ;;  %v20735_v31 = vld [vmem:[#allocation140_spill] sm:$0xff] }
 0x5da   :  { %7621 = vrot.lane.b32.xlu1 %v6719_v57, %s14956_s6  ;;  %v17500_v36 = vpop.f32.mrf.mxu1  ;;  %6915 = vrot.lane.b32.xlu0 %v6877_v9, %s14955_s23  ;;  %v20733_v57 = vld [vmem:[#allocation138_spill] sm:$0xff]  ;;  %v20734_v9 = vld [vmem:[#allocation152_spill] sm:$0xff]  ;;  %v8450_v26 = vmul.f32 %v8417_v62, %v17490_v10  ;;  %v6687_v52 = vsel %vm6685_vm11, %v20697_v6, %v20709_v0  ;;  %v9346_v54 = vmul.f32 %v9313_v27, %v17490_v10  ;;  %v20744_v62 = vld [vmem:[#allocation19_spill] sm:$0xff] }
 0x5db   :  { %6459 = vmatprep.subr.mxu0 %v20717_v55  ;;  %6550 = vst [vmem:[#allocation2 + $0x20] sm:$0xff] %v17500_v36  ;;  %6530 = vmatprep.subr.mxu1 %v20718_v33  ;;  %v20738_v12 = vld [vmem:[#allocation156_spill] sm:$0xff]  ;;  %v20739_v55 = vmov 0.0   ;;  %v6720_v6 = vmul.f32 %v6687_v52, %v17448_v25  ;;  %v20740_v0 = vld [vmem:[#allocation54_spill] sm:$0xff] }
 0x5dc   :  { %6460 = vmatpush2.msra.mxu0 %v20719_v50  ;;  %6531 = vmatpush2.msra.mxu1 %v20720_v34  ;;  %v6689_v33 = vsel %vm6685_vm11, %v20708_v44, %v20740_v0  ;;  %v20741_v50 = vld [vmem:[#allocation9_spill] sm:$0xff]  ;;  %v8416_v44 = vsel %vm8414_vm13, %v20724_v21, %v17360_v15  ;;  %62 = vst.msk [vmem:[#allocation2 + $0x88] sm:$0xff] %vm61_vm15, %v20739_v55 }
 0x5dd   :  { %6461 = vmatprep.subr.mxu0 %v20721_v53  ;;  %6532 = vmatprep.subr.mxu1 %v20722_v40  ;;  %v9288_v53 = vpop.permute.xlu0 %9287 }
 0x5de   :  { %6462 = vmatpush2.msra.mxu0 %v20723_v60  ;;  %6533 = vmatpush2.msra.mxu1 %v20725_v13  ;;  %v9314_v60 = vsel %vm752_vm5, %v9286_v39, %v9288_v53  ;;  %v6848_v13 = vsel %vm6843_vm12, %v20741_v50, %v20742_v1 }
 0x5df   :  { %7625 = vrot.lane.b32.xlu1 %v6721_v38, %s14956_s6  ;;  %6919 = vrot.lane.b32.xlu0 %v6879_v20, %s14955_s23  ;;  %v6845_v38 = vsel %vm6843_vm12, %v20703_v43, %v20716_v16  ;;  %v6847_v20 = vsel %vm6843_vm12, %v20715_v2, %v20741_v50  ;;  %v6722_v43 = vmul.f32 %v6689_v33, %v17500_v36 }
 0x5e0   :  { %6463 = vmatprep.subr.mxu0 %v20726_v24  ;;  %6534 = vmatprep.subr.mxu1 %v20727_v49  ;;  %v9312_v16 = vsel %vm752_vm5, %v9282_v28, %v9284_v14  ;;  %v6880_v34 = vmul.f32 %v6847_v20, %v17500_v36  ;;  %v8449_v2 = vmul.f32 %v8416_v44, %v17448_v25  ;;  %v20745_v14 = vld [vmem:[#allocation10_spill] sm:$0xff] }
 0x5e1   :  { %6464 = vmatpush2.msra.mxu0 %v20728_v63  ;;  %6535 = vmatpush2.msra.mxu1 %v20729_v18  ;;  %v9345_v40 = vmul.f32 %v9312_v16, %v17448_v25  ;;  %v8418_v28 = vsel %vm8414_vm13, %v20731_v17, %v17373_v58  ;;  %v9347_v15 = vmul.f32 %v9314_v60, %v17500_v36  ;;  %v9290_v63 = vpop.permute.xlu1 %9289 }
 0x5e2   :  { %6465 = vmatprep.subr.mxu0 %v20730_v32  ;;  %6536 = vmatprep.subr.mxu1 %v20732_v51  ;;  %v8451_v21 = vmul.f32 %v8418_v28, %v17500_v36  ;;  %v6690_v24 = vsel %vm6685_vm11, %v20740_v0, %v20743_v41  ;;  %v6850_v39 = vsel %vm6843_vm12, %v20745_v14, %v20744_v62  ;;  %v20746_v51 = vld [vmem:[#allocation107_spill] sm:$0xff]  ;;  %v20750_v0 = vld [vmem:[#allocation82_spill] sm:$0xff] }
 0x5e3   :  { %6466 = vmatpush2.msra.mxu0 %v20733_v57  ;;  %6537 = vmatpush2.msra.mxu1 %v20734_v9  ;;  %v20747_v57 = vld [vmem:[#allocation68_spill] sm:$0xff]  ;;  %v6693_v33 = vsel %vm6685_vm11, %v20746_v51, %v20750_v0 }
 0x5e4   :  { %8486 = vrot.lane.b32.xlu0 %v8448_v30, %s14957_s30  ;;  %9382 = vrot.lane.b32.xlu1 %v9344_v22, %s14947_s26  ;;  %v6692_v22 = vsel %vm6685_vm11, %v20747_v57, %v20746_v51  ;;  %v6691_v52 = vsel %vm6685_vm11, %v20743_v41, %v20747_v57 }
 0x5e5   :  { %6467 = vmatprep.subr.mxu0 %v20735_v31  ;;  %6538 = vmatprep.subr.mxu1 %v20736_v45  ;;  %v9294_v17 = vpop.permute.xlu1 %9293  ;;  %v20748_v45 = vld [vmem:[#allocation155_spill] sm:$0xff] }
 0x5e6   :  { %6468 = vmatpush2.msra.mxu0 %v20737_v8  ;;  %6539 = vmatpush2.msra.mxu1 %v20738_v12  ;;  %v8419_v8 = vsel %vm8414_vm13, %v17373_v58, %v20748_v45  ;;  %v8420_v20 = vsel %vm8414_vm13, %v20748_v45, %v17387_v56 }
 0x5e7   :  { %6470 = vmatmul.mubr.f32.vlgmr.msra.gmra.mxu0 %v17347_v61  ;;  %6541 = vmatmul.mubr.f32.vlgmr.msra.gmra.mxu1 %v17347_v61  ;;  %v6878_v61 = vmul.f32 %v6845_v38, %v17448_v25 }
 0x5e8   :  { %8490 = vrot.lane.b32.xlu0 %v8450_v26, %s14957_s30  ;;  %9386 = vrot.lane.b32.xlu1 %v9346_v54, %s14947_s26 }
 0x5e9   :  { %7050 = vmatprep.mubr.f32.mxu0 %v20739_v55  ;;  %7127 = vmatprep.mubr.f32.mxu1 %v20739_v55  ;;  %v17623_v12 = vpop.permute.xlu1 %9297 }
 0x5ec   :  { %7623 = vrot.lane.b32.xlu0 %v6720_v6, %s14956_s6  ;;  %6917 = vrot.lane.b32.xlu1 %v6878_v61, %s14955_s23  ;;  %v20749_v6 = vld [vmem:[#allocation157_spill] sm:$0xff] }
 0x5ed   :  { %v8421_v58 = vsel %vm8414_vm13, %v17387_v56, %v20749_v6  ;;  %v17641_v16 = vpop.permute.xlu1 %9301  ;;  %v8422_v60 = vsel %vm8414_vm13, %v20749_v6, %v17401_v59 }
 0x5f0   :  { %7627 = vrot.lane.b32.xlu0 %v6722_v43, %s14956_s6  ;;  %6921 = vrot.lane.b32.xlu1 %v6880_v34, %s14955_s23  ;;  %v9315_v43 = vsel %vm752_vm5, %v9288_v53, %v9290_v63  ;;  %v9292_v34 = vpop.permute.xlu0 %9291 }
 0x5f1   :  { %v17653_v56 = vpop.permute.xlu1 %9305 }
 0x5f4   :  { %9384 = vrot.lane.b32.xlu0 %v9345_v40, %s14947_s26  ;;  %8488 = vrot.lane.b32.xlu1 %v8449_v2, %s14957_s30  ;;  %v9317_v2 = vsel %vm752_vm5, %v9292_v34, %v9294_v17  ;;  %v17655_v53 = vpop.permute.xlu0 %9295 }
 0x5f8   :  { %9388 = vrot.lane.b32.xlu0 %v9347_v15, %s14947_s26  ;;  %8492 = vrot.lane.b32.xlu1 %v8451_v21, %s14957_s30  ;;  %v9316_v21 = vsel %vm752_vm5, %v9290_v63, %v9292_v34  ;;  %v20751_v63 = vld [vmem:[#allocation11_spill] sm:$0xff] }
 0x5f9   :  { %v6851_v51 = vsel %vm6843_vm12, %v20744_v62, %v20751_v63 }
 0x60f   :  { %v17591_v49 = vpop.f32.mrf.mxu0 }
 0x610   :  { %6551 = vst [vmem:[#allocation2 + $0x28] sm:$0xff] %v17591_v49  ;;  %v6881_v18 = vmul.f32 %v6848_v13, %v17591_v49  ;;  %v6723_v32 = vmul.f32 %v6690_v24, %v17591_v49  ;;  %v8452_v38 = vmul.f32 %v8419_v8, %v17591_v49  ;;  %v9348_v40 = vmul.f32 %v9315_v43, %v17591_v49 }
 0x611   :  { %v17596_v30 = vpop.f32.mrf.mxu0  ;;  %v6849_v13 = vsel %vm6843_vm12, %v20742_v1, %v20745_v14 }
 0x612   :  { %6552 = vst [vmem:[#allocation2 + $0x30] sm:$0xff] %v17596_v30  ;;  %6923 = vrot.lane.b32.xlu0 %v6881_v18, %s14955_s23  ;;  %7629 = vrot.lane.b32.xlu1 %v6723_v32, %s14956_s6  ;;  %v6724_v54 = vmul.f32 %v6691_v52, %v17596_v30  ;;  %v8453_v44 = vmul.f32 %v8420_v20, %v17596_v30  ;;  %v17669_v32 = vpop.permute.xlu1 %9309 }
 0x613   :  { %v9349_v41 = vmul.f32 %v9316_v21, %v17596_v30  ;;  %v6882_v24 = vmul.f32 %v6849_v13, %v17596_v30  ;;  %v9318_v18 = vsel %vm752_vm5, %v9294_v17, %v17655_v53  ;;  %v20758_v13 = vld [vmem:[#allocation121_spill] sm:$0xff] }
 0x616   :  { %v17682_v17 = vpop.permute.xlu1 %9380 }
 0x617   :  { %20752 = vst [vmem:[#allocation22_spill] sm:$0xff] %v17682_v17 }
 0x619   :  { %v17607_v27 = vpop.f32.mrf.mxu1 }
 0x61a   :  { %6553 = vst [vmem:[#allocation2 + $0x38] sm:$0xff] %v17607_v27  ;;  %v6883_v9 = vmul.f32 %v6850_v39, %v17607_v27  ;;  %v6725_v31 = vmul.f32 %v6692_v22, %v17607_v27  ;;  %v8454_v50 = vmul.f32 %v8421_v58, %v17607_v27  ;;  %v9350_v15 = vmul.f32 %v9317_v2, %v17607_v27  ;;  %v17671_v39 = vpop.permute.xlu0 %9299  ;;  %v17686_v22 = vpop.permute.xlu1 %10850 }
 0x61b   :  { %v17615_v26 = vpop.f32.mrf.mxu1 }
 0x61c   :  { %6554 = vst [vmem:[#allocation2 + $0x40] sm:$0xff] %v17615_v26  ;;  %6927 = vrot.lane.b32.xlu0 %v6883_v9, %s14955_s23  ;;  %7633 = vrot.lane.b32.xlu1 %v6725_v31, %s14956_s6  ;;  %v6726_v61 = vmul.f32 %v6693_v33, %v17615_v26  ;;  %v8455_v28 = vmul.f32 %v8422_v60, %v17615_v26  ;;  %v20756_v60 = vld [vmem:[#allocation134_spill] sm:$0xff] }
 0x61d   :  { %v9351_v1 = vmul.f32 %v9318_v18, %v17615_v26  ;;  %v6884_v14 = vmul.f32 %v6851_v51, %v17615_v26 }
 0x61e   :  { %v17684_v57 = vpop.permute.xlu0 %9303  ;;  %v17690_v31 = vpop.permute.xlu1 %10854 }
 0x620   :  { %7631 = vrot.lane.b32.xlu0 %v6724_v54, %s14956_s6  ;;  %8494 = vrot.lane.b32.xlu1 %v8452_v38, %s14957_s30 }
 0x622   :  { %v17688_v9 = vpop.permute.xlu0 %9307  ;;  %v17694_v62 = vpop.permute.xlu1 %10858 }
 0x624   :  { %7635 = vrot.lane.b32.xlu0 %v6726_v61, %s14956_s6  ;;  %8498 = vrot.lane.b32.xlu1 %v8454_v50, %s14957_s30 }
 0x626   :  { %v17692_v45 = vpop.permute.xlu0 %8484  ;;  %v17698_v52 = vpop.permute.xlu1 %10862 }
 0x627   :  { %20753 = vst [vmem:[#allocation25_spill] sm:$0xff] %v17692_v45 }
 0x628   :  { %8496 = vrot.lane.b32.xlu0 %v8453_v44, %s14957_s30  ;;  %9390 = vrot.lane.b32.xlu1 %v9348_v40, %s14947_s26  ;;  %v17720_v40 = vld [vmem:[%s20275_s4 + $0x10] sm:$0xff] }
 0x62a   :  { %v17696_v8 = vpop.permute.xlu0 %10848 }
 0x62c   :  { %8500 = vrot.lane.b32.xlu0 %v8455_v28, %s14957_s30  ;;  %9394 = vrot.lane.b32.xlu1 %v9350_v15, %s14947_s26  ;;  %v20757_v15 = vld [vmem:[#allocation20_spill] sm:$0xff] }
 0x62d   :  { %v6852_v21 = vsel %vm6843_vm12, %v20751_v63, %v20757_v15 }
 0x62e   :  { %v17700_v54 = vpop.permute.xlu0 %10852 }
 0x630   :  { %9392 = vrot.lane.b32.xlu0 %v9349_v41, %s14947_s26  ;;  %6925 = vrot.lane.b32.xlu1 %v6882_v24, %s14955_s23  ;;  %v6694_v41 = vsel %vm6685_vm11, %v20750_v0, %v20758_v13 }
 0x632   :  { %v17704_v6 = vpop.permute.xlu0 %10856 }
 0x634   :  { %9396 = vrot.lane.b32.xlu0 %v9351_v1, %s14947_s26  ;;  %6929 = vrot.lane.b32.xlu1 %v6884_v14, %s14955_s23 }
 0x636   :  { %v17708_v33 = vpop.permute.xlu0 %10860 }
 0x647   :  { %v17712_v50 = vpop.permute.xlu0 %10864 }
 0x64c   :  { %v17702_v38 = vpop.permute.xlu1 %7621  ;;  %v6916_v43 = vpop.permute.xlu0 %6915 }
 0x64d   :  { %v6948_v2 = vsel %vm6947_vm14, %v20756_v60, %v6916_v43  ;;  %v20761_v60 = vld [vmem:[#allocation24_spill] sm:$0xff] }
 0x651   :  { %v17706_v58 = vpop.permute.xlu1 %7625  ;;  %v6920_v28 = vpop.permute.xlu0 %6919 }
 0x656   :  { %v17710_v61 = vpop.permute.xlu1 %9382 }
 0x657   :  { %20754 = vst [vmem:[#allocation27_spill] sm:$0xff] %v17710_v61 }
 0x65a   :  { %v17714_v20 = vpop.permute.xlu1 %9386 }
 0x65b   :  { %20755 = vst [vmem:[#allocation29_spill] sm:$0xff] %v17714_v20 }
 0x65e   :  { %v6918_v34 = vpop.permute.xlu1 %6917 }
 0x65f   :  { %v6949_v44 = vsel %vm6947_vm14, %v6916_v43, %v6918_v34  ;;  %v6950_v0 = vsel %vm6947_vm14, %v6918_v34, %v6920_v28  ;;  %v20763_v34 = vld [vmem:[#allocation133_spill] sm:$0xff] }
 0x660   :  { %7016 = vmatprep.subr.mxu0 %v6949_v44 }
 0x661   :  { %7017 = vmatpush1.msra.mxu0 %v6948_v2  ;;  %v20762_v2 = vld [vmem:[#allocation12_spill] sm:$0xff] }
 0x662   :  { %v17730_v24 = vpop.permute.xlu1 %6921  ;;  %v17732_v18 = vpop.f32.mrf.mxu0  ;;  %14576 = vmatmul.mubr.msk.f32.vlgmr.msra.gmra.mxu0 %vm194_vm10, %v17720_v40 }
 0x663   :  { %v6951_v51 = vsel %vm6947_vm14, %v6920_v28, %v17730_v24  ;;  %6555 = vst [vmem:[#allocation2 + $0x48] sm:$0xff] %v17732_v18  ;;  %v17739_v1 = vpop.f32.mrf.mxu1  ;;  %v6885_v63 = vmul.f32 %v6852_v21, %v17732_v18  ;;  %v6727_v14 = vmul.f32 %v6694_v41, %v17732_v18  ;;  %7056 = vmatprep.mubr.f32.mxu0 %v20739_v55  ;;  %v20764_v28 = vld [vmem:[#allocation95_spill] sm:$0xff] }
 0x664   :  { %20759 = vst [vmem:[#allocation31_spill] sm:$0xff] %v17739_v1  ;;  %7093 = vmatprep.subr.mxu1 %v6951_v51  ;;  %6557 = vst [vmem:[#allocation2 + $0x58] sm:$0xff] %v17739_v1  ;;  %v17746_v43 = vpop.f32.mrf.mxu0  ;;  %v6854_v21 = vsel %vm6843_vm12, %v20762_v2, %v20761_v60  ;;  %v6696_v41 = vsel %vm6685_vm11, %v20764_v28, %v20763_v34 }
 0x665   :  { %7094 = vmatpush1.msra.mxu1 %v6950_v0  ;;  %6556 = vst [vmem:[#allocation2 + $0x50] sm:$0xff] %v17746_v43  ;;  %v17749_v44 = vpop.f32.mrf.mxu1  ;;  %6931 = vrot.lane.b32.xlu0 %v6885_v63, %s14955_s23  ;;  %v6887_v51 = vmul.f32 %v6854_v21, %v17739_v1  ;;  %v6729_v0 = vmul.f32 %v6696_v41, %v17739_v1  ;;  %v20766_v41 = vld [vmem:[#allocation109_spill] sm:$0xff] }
 0x666   :  { %20760 = vst [vmem:[#allocation33_spill] sm:$0xff] %v17749_v44  ;;  %6558 = vst [vmem:[#allocation2 + $0x60] sm:$0xff] %v17749_v44  ;;  %7637 = vrot.lane.b32.xlu1 %v6727_v14, %s14956_s6  ;;  %14578 = vmatmul.mubr.msk.f32.vlgmr.msra.gmra.mxu1 %vm194_vm10, %v17720_v40  ;;  %v6695_v63 = vsel %vm6685_vm11, %v20758_v13, %v20764_v28  ;;  %v20765_v14 = vld [vmem:[#allocation158_spill] sm:$0xff]  ;;  %v8425_v13 = vsel %vm8414_vm13, %v17415_v42, %v17266_v46 }
 0x667   :  { %7133 = vmatprep.mubr.f32.mxu1 %v20739_v55  ;;  %v8423_v20 = vsel %vm8414_vm13, %v17401_v59, %v20765_v14  ;;  %v6728_v21 = vmul.f32 %v6695_v63, %v17746_v43  ;;  %v8458_v59 = vmul.f32 %v8425_v13, %v17739_v1  ;;  %v8426_v63 = vsel %vm8414_vm13, %v17266_v46, %v17429_v19 }
 0x668   :  { %v8456_v17 = vmul.f32 %v8423_v20, %v17732_v18  ;;  %v9319_v20 = vsel %vm752_vm5, %v17655_v53, %v17623_v12  ;;  %v6853_v13 = vsel %vm6843_vm12, %v20757_v15, %v20762_v2 }
 0x669   :  { %6935 = vrot.lane.b32.xlu0 %v6887_v51, %s14955_s23  ;;  %v6697_v51 = vsel %vm6685_vm11, %v20763_v34, %v20766_v41  ;;  %v8424_v34 = vsel %vm8414_vm13, %v20765_v14, %v17415_v42  ;;  %v9352_v53 = vmul.f32 %v9319_v20, %v17732_v18  ;;  %v9321_v42 = vsel %vm752_vm5, %v17671_v39, %v17641_v16 }
 0x66a   :  { %7641 = vrot.lane.b32.xlu1 %v6729_v0, %s14956_s6  ;;  %v6730_v28 = vmul.f32 %v6697_v51, %v17749_v44  ;;  %v8457_v0 = vmul.f32 %v8424_v34, %v17746_v43  ;;  %v8459_v14 = vmul.f32 %v8426_v63, %v17749_v44  ;;  %v9354_v51 = vmul.f32 %v9321_v42, %v17739_v1  ;;  %v17836_v34 = vpop.permute.xlu1 %8488 }
 0x66b   :  { %20769 = vst [vmem:[#allocation38_spill] sm:$0xff] %v17836_v34 }
 0x66d   :  { %7639 = vrot.lane.b32.xlu0 %v6728_v21, %s14956_s6  ;;  %v9320_v21 = vsel %vm752_vm5, %v17623_v12, %v17671_v39  ;;  %v17830_v12 = vpop.permute.xlu0 %8486  ;;  %v20768_v39 = vld [vmem:[#allocation13_spill] sm:$0xff] }
 0x66e   :  { %8502 = vrot.lane.b32.xlu1 %v8456_v17, %s14957_s30  ;;  %v17796_v17 = vld [vmem:[%s20275_s4 + $0x18] sm:$0xff]  ;;  %v9353_v46 = vmul.f32 %v9320_v21, %v17746_v43  ;;  %20767 = vst [vmem:[#allocation35_spill] sm:$0xff] %v17830_v12  ;;  %v6855_v20 = vsel %vm6843_vm12, %v20761_v60, %v20768_v39  ;;  %v20786_v12 = vld [vmem:[#allocation159_spill] sm:$0xff] }
 0x66f   :  { %14577 = vmatmul.mubr.msk.f32.gmra.mxu0 %vm194_vm10, %v17796_v17  ;;  %14579 = vmatmul.mubr.msk.f32.gmra.mxu1 %vm194_vm10, %v17796_v17  ;;  %v6888_v2 = vmul.f32 %v6855_v20, %v17749_v44  ;;  %v8427_v34 = vsel %vm8414_vm13, %v17429_v19, %v20786_v12  ;;  %v14692_v19 = vld [vmem:[%s20281_s10 + $0x5] ss:$8 sm:$0xf] }
 0x670   :  { %7204 = vmatprep.mubr.f32.mxu0 %v20739_v55  ;;  %7281 = vmatprep.mubr.f32.mxu1 %v20739_v55 }
 0x671   :  { %7643 = vrot.lane.b32.xlu0 %v6730_v28, %s14956_s6  ;;  %v9322_v28 = vsel %vm752_vm5, %v17641_v16, %v17684_v57  ;;  %v17842_v16 = vpop.permute.xlu0 %8490 }
 0x672   :  { %8506 = vrot.lane.b32.xlu1 %v8458_v59, %s14957_s30  ;;  %v6886_v59 = vmul.f32 %v6853_v13, %v17746_v43  ;;  %v9355_v15 = vmul.f32 %v9322_v28, %v17749_v44  ;;  %20770 = vst [vmem:[#allocation21_spill] sm:$0xff] %v17842_v16 }
 0x675   :  { %8504 = vrot.lane.b32.xlu0 %v8457_v0, %s14957_s30  ;;  %v17844_v0 = vpop.permute.xlu1 %8492  ;;  %v17848_v42 = vpop.permute.xlu0 %7623 }
 0x676   :  { %9398 = vrot.lane.b32.xlu1 %v9352_v53, %s14947_s26  ;;  %20771 = vst [vmem:[#allocation41_spill] sm:$0xff] %v17844_v0  ;;  %v20782_v0 = vld [vmem:[#allocation14_spill] sm:$0xff] }
 0x679   :  { %8508 = vrot.lane.b32.xlu0 %v8459_v14, %s14957_s30  ;;  %v17852_v60 = vpop.permute.xlu0 %7627 }
 0x67a   :  { %9402 = vrot.lane.b32.xlu1 %v9354_v51, %s14947_s26 }
 0x67d   :  { %9400 = vrot.lane.b32.xlu0 %v9353_v46, %s14947_s26  ;;  %v17858_v51 = vpop.permute.xlu0 %9384 }
 0x67e   :  { %6933 = vrot.lane.b32.xlu1 %v6886_v59, %s14955_s23  ;;  %20775 = vst [vmem:[#allocation45_spill] sm:$0xff] %v17858_v51 }
 0x681   :  { %9404 = vrot.lane.b32.xlu0 %v9355_v15, %s14947_s26  ;;  %v17862_v46 = vpop.permute.xlu0 %9388 }
 0x682   :  { %6937 = vrot.lane.b32.xlu1 %v6888_v2, %s14955_s23  ;;  %20777 = vst [vmem:[#allocation47_spill] sm:$0xff] %v17862_v46 }
 0x684   :  { %v17846_v53 = vpop.permute.xlu1 %7629 }
 0x685   :  { %v6924_v59 = vpop.permute.xlu0 %6923 }
 0x686   :  { %v6952_v2 = vsel %vm6947_vm14, %v17730_v24, %v6924_v59 }
 0x68e   :  { %v17850_v63 = vpop.permute.xlu1 %7633  ;;  %v6928_v61 = vpop.permute.xlu0 %6927 }
 0x68f   :  { %20772 = vst [vmem:[#allocation23_spill] sm:$0xff] %v17850_v63 }
 0x692   :  { %v17854_v14 = vpop.permute.xlu1 %8494 }
 0x693   :  { %20773 = vst [vmem:[#allocation43_spill] sm:$0xff] %v17854_v14 }
 0x696   :  { %v17856_v21 = vpop.permute.xlu1 %8498 }
 0x697   :  { %20774 = vst [vmem:[#allocation26_spill] sm:$0xff] %v17856_v21 }
 0x69a   :  { %v17860_v13 = vpop.permute.xlu1 %9390 }
 0x69b   :  { %20776 = vst [vmem:[#allocation28_spill] sm:$0xff] %v17860_v13  ;;  %v20779_v13 = vld [vmem:[#allocation37_spill] sm:$0xff] }
 0x69c   :  { %v6856_v46 = vsel %vm6843_vm12, %v20768_v39, %v20779_v13  ;;  %v6857_v63 = vsel %vm6843_vm12, %v20779_v13, %v20782_v0  ;;  %v14694_v13 = vld [vmem:[%s20281_s10 + $0x45] ss:$8 sm:$0xf] }
 0x69e   :  { %v17864_v28 = vpop.permute.xlu1 %9394 }
 0x69f   :  { %20778 = vst [vmem:[#allocation30_spill] sm:$0xff] %v17864_v28  ;;  %v20780_v28 = vld [vmem:[#allocation146_spill] sm:$0xff] }
 0x6a0   :  { %v6698_v51 = vsel %vm6685_vm11, %v20766_v41, %v20780_v28 }
 0x6a2   :  { %v6926_v20 = vpop.permute.xlu1 %6925 }
 0x6a3   :  { %v6953_v15 = vsel %vm6947_vm14, %v6924_v59, %v6926_v20 }
 0x6a4   :  { %7170 = vmatprep.subr.mxu0 %v6953_v15  ;;  %v6954_v15 = vsel %vm6947_vm14, %v6926_v20, %v6928_v61  ;;  %v20784_v20 = vld [vmem:[#allocation122_spill] sm:$0xff] }
 0x6a5   :  { %7171 = vmatpush1.msra.mxu0 %v6952_v2 }
 0x6a6   :  { %v17869_v14 = vpop.permute.xlu1 %6929  ;;  %14580 = vmatmul.mubr.msk.f32.vlgmr.msra.gmra.mxu0 %vm194_vm10, %v17720_v40 }
 0x6a7   :  { %v17879_v21 = vpop.f32.mrf.mxu0  ;;  %v6955_v24 = vsel %vm6947_vm14, %v6928_v61, %v17869_v14  ;;  %7210 = vmatprep.mubr.f32.mxu0 %v20739_v55  ;;  %v17885_v59 = vpop.f32.mrf.mxu1 }
 0x6a8   :  { %6559 = vst [vmem:[#allocation2 + $0x68] sm:$0xff] %v17879_v21  ;;  %7247 = vmatprep.subr.mxu1 %v6955_v24  ;;  %v6889_v39 = vmul.f32 %v6856_v46, %v17879_v21  ;;  %v6731_v2 = vmul.f32 %v6698_v51, %v17879_v21  ;;  %6561 = vst [vmem:[#allocation2 + $0x78] sm:$0xff] %v17885_v59  ;;  %v20781_v24 = vld [vmem:[#allocation51_spill] sm:$0xff]  ;;  %v20783_v46 = vld [vmem:[#allocation154_spill] sm:$0xff] }
 0x6a9   :  { %v17891_v41 = vpop.f32.mrf.mxu0  ;;  %7248 = vmatpush1.msra.mxu1 %v6954_v15  ;;  %v17894_v16 = vpop.f32.mrf.mxu1  ;;  %v6858_v61 = vsel %vm6843_vm12, %v20782_v0, %v20781_v24  ;;  %v6700_v51 = vsel %vm6685_vm11, %v20784_v20, %v20783_v46  ;;  %v10823_v0 = vrot.slane %v17450_v23, %v15042_v5 }
 0x6aa   :  { %6560 = vst [vmem:[#allocation2 + $0x70] sm:$0xff] %v17891_v41  ;;  %6939 = vrot.lane.b32.xlu0 %v6889_v39, %s14955_s23  ;;  %7645 = vrot.lane.b32.xlu1 %v6731_v2, %s14956_s6  ;;  %6562 = vst [vmem:[#allocation2 + $0x80] sm:$0xff] %v17894_v16  ;;  %v6891_v15 = vmul.f32 %v6858_v61, %v17885_v59  ;;  %v6733_v39 = vmul.f32 %v6700_v51, %v17885_v59  ;;  %v20785_v2 = vld [vmem:[#allocation6_spill] sm:$0xff] }
 0x6ab   :  { %14582 = vmatmul.mubr.msk.f32.vlgmr.msra.gmra.mxu1 %vm194_vm10, %v17720_v40  ;;  %14581 = vmatmul.mubr.msk.f32.gmra.mxu0 %vm194_vm10, %v17796_v17  ;;  %v10827_v45 = vrot.slane %v17450_v23, %v20785_v2  ;;  %v8460_v61 = vmul.f32 %v8427_v34, %v17879_v21  ;;  %v10835_v51 = vrot.slane %v17450_v23, %v16391_v11  ;;  %v14693_v34 = vld [vmem:[%s20281_s10 + $0x5] ss:$8 sm:$0xf0] }
 0x6ac   :  { %7287 = vmatprep.mubr.f32.mxu1 %v20739_v55  ;;  %7358 = vmatprep.mubr.f32.mxu0 %v20739_v55  ;;  %v6890_v1 = vmul.f32 %v6857_v63, %v17891_v41  ;;  %v10831_v63 = vrot.slane %v17450_v23, %v15092_v29 }
 0x6ae   :  { %6943 = vrot.lane.b32.xlu0 %v6891_v15, %s14955_s23  ;;  %7649 = vrot.lane.b32.xlu1 %v6733_v39, %s14956_s6  ;;  %v20787_v15 = vld [vmem:[#allocation160_spill] sm:$0xff] }
 0x6af   :  { %14583 = vmatmul.mubr.msk.f32.gmra.mxu1 %vm194_vm10, %v17796_v17  ;;  %v8429_v39 = vsel %vm8414_vm13, %v17457_v7, %v20787_v15 }
 0x6b0   :  { %7435 = vmatprep.mubr.f32.mxu1 %v20739_v55  ;;  %v8462_v44 = vmul.f32 %v8429_v39, %v17885_v59 }
 0x6b2   :  { %10868 = vrot.lane.b32.xlu0 %v10827_v45, %s14947_s26  ;;  %8510 = vrot.lane.b32.xlu1 %v8460_v61, %s14957_s30  ;;  %v10843_v45 = vrot.slane %v17450_v23, %v16399_v47  ;;  %v17942_v61 = vor.u32 %v14693_v34, %v14692_v19 }
 0x6b4   :  { %v11690_v39 = vrot.slane %v17942_v61, %v20785_v2  ;;  %v11706_v19 = vrot.slane %v17942_v61, %v16399_v47 }
 0x6b6   :  { %10872 = vrot.lane.b32.xlu0 %v10835_v51, %s14947_s26  ;;  %8514 = vrot.lane.b32.xlu1 %v8462_v44, %s14957_s30  ;;  %v11682_v51 = vrot.slane %v17942_v61, %v15039_v4  ;;  %v6892_v44 = vmul.f32 %v20781_v24, %v17894_v16  ;;  %v14695_v24 = vld [vmem:[%s20281_s10 + $0x45] ss:$8 sm:$0xf0] }
 0x6b7   :  { %v17976_v34 = vor.u32 %v14695_v24, %v14694_v13  ;;  %v10847_v24 = vrot.slane %v17450_v23, %v16422_v48 }
 0x6ba   :  { %10876 = vrot.lane.b32.xlu0 %v10843_v45, %s14947_s26  ;;  %6941 = vrot.lane.b32.xlu1 %v6890_v1, %s14955_s23  ;;  %v11698_v1 = vrot.slane %v17942_v61, %v16391_v11  ;;  %v9323_v45 = vsel %vm752_vm5, %v17684_v57, %v17653_v56 }
 0x6be   :  { %11743 = vrot.lane.b32.xlu0 %v11682_v51, %s14957_s30  ;;  %6945 = vrot.lane.b32.xlu1 %v6892_v44, %s14955_s23  ;;  %v9356_v51 = vmul.f32 %v9323_v45, %v17879_v21  ;;  %v11714_v44 = vrot.slane %v17976_v34, %v15039_v4 }
 0x6c2   :  { %11747 = vrot.lane.b32.xlu0 %v11690_v39, %s14957_s30  ;;  %10866 = vrot.lane.b32.xlu1 %v10823_v0, %s14947_s26  ;;  %v9325_v39 = vsel %vm752_vm5, %v17688_v9, %v17669_v32  ;;  %v17990_v0 = vpop.permute.xlu0 %7631 }
 0x6c3   :  { %v9358_v57 = vmul.f32 %v9325_v39, %v17885_v59  ;;  %v6734_v39 = vmul.f32 %v20783_v46, %v17894_v16  ;;  %v11738_v46 = vrot.slane %v17976_v34, %v16399_v47 }
 0x6c6   :  { %11751 = vrot.lane.b32.xlu0 %v11698_v1, %s14957_s30  ;;  %10870 = vrot.lane.b32.xlu1 %v10831_v63, %s14947_s26  ;;  %v11722_v1 = vrot.slane %v17976_v34, %v20785_v2  ;;  %v10839_v63 = vrot.slane %v17450_v23, %v16411_v35  ;;  %v17999_v13 = vpop.permute.xlu0 %7635  ;;  %v11730_v23 = vrot.slane %v17976_v34, %v16391_v11 }
 0x6ca   :  { %11755 = vrot.lane.b32.xlu0 %v11706_v19, %s14957_s30  ;;  %9406 = vrot.lane.b32.xlu1 %v9356_v51, %s14947_s26  ;;  %v6699_v19 = vsel %vm6685_vm11, %v20780_v28, %v20784_v20  ;;  %v11686_v51 = vrot.slane %v17942_v61, %v15042_v5  ;;  %v11694_v28 = vrot.slane %v17942_v61, %v15092_v29 }
 0x6cb   :  { %v6732_v45 = vmul.f32 %v6699_v19, %v17891_v41 }
 0x6ce   :  { %11759 = vrot.lane.b32.xlu0 %v11714_v44, %s14957_s30  ;;  %9410 = vrot.lane.b32.xlu1 %v9358_v57, %s14947_s26  ;;  %v18013_v44 = vpop.permute.xlu0 %8496 }
 0x6d2   :  { %11763 = vrot.lane.b32.xlu0 %v11722_v1, %s14957_s30  ;;  %10874 = vrot.lane.b32.xlu1 %v10839_v63, %s14947_s26  ;;  %v18027_v1 = vpop.permute.xlu0 %8500  ;;  %v11702_v63 = vrot.slane %v17942_v61, %v16411_v35 }
 0x6d3   :  { %20788 = vst [vmem:[#allocation49_spill] sm:$0xff] %v18027_v1 }
 0x6d6   :  { %7647 = vrot.lane.b32.xlu0 %v6732_v45, %s14956_s6  ;;  %10878 = vrot.lane.b32.xlu1 %v10847_v24, %s14947_s26  ;;  %v10880_v24 = vsel %vm783_vm6, %v17696_v8, %v17686_v22  ;;  %v11710_v45 = vrot.slane %v17942_v61, %v16422_v48  ;;  %v14714_v61 = vld [vmem:[%s20281_s10 + $0x6] ss:$8 sm:$0xf] }
 0x6d8   :  { %v18017_v57 = vpop.permute.xlu1 %7637 }
 0x6da   :  { %7651 = vrot.lane.b32.xlu0 %v6734_v39, %s14956_s6  ;;  %11745 = vrot.lane.b32.xlu1 %v11686_v51, %s14957_s30  ;;  %v10913_v51 = vmul.f32 %v10880_v24, %v17448_v25  ;;  %v18045_v39 = vpop.permute.xlu0 %9392  ;;  %v14715_v25 = vld [vmem:[%s20281_s10 + $0x6] ss:$8 sm:$0xf0] }
 0x6db   :  { %20790 = vst [vmem:[#allocation52_spill] sm:$0xff] %v18045_v39 }
 0x6dc   :  { %v18025_v20 = vpop.permute.xlu1 %7641 }
 0x6de   :  { %11767 = vrot.lane.b32.xlu0 %v11730_v23, %s14957_s30  ;;  %11749 = vrot.lane.b32.xlu1 %v11694_v28, %s14957_s30  ;;  %v10882_v23 = vsel %vm783_vm6, %v17700_v54, %v17690_v31  ;;  %v18065_v39 = vpop.permute.xlu0 %9396 }
 0x6e0   :  { %v18038_v19 = vpop.permute.xlu1 %8502 }
 0x6e1   :  { %20789 = vst [vmem:[#allocation32_spill] sm:$0xff] %v18038_v19 }
 0x6e2   :  { %11771 = vrot.lane.b32.xlu0 %v11738_v46, %s14957_s30  ;;  %11753 = vrot.lane.b32.xlu1 %v11702_v63, %s14957_s30  ;;  %v11718_v46 = vrot.slane %v17976_v34, %v15042_v5  ;;  %v10915_v63 = vmul.f32 %v10882_v23, %v17500_v36  ;;  %v6932_v1 = vpop.permute.xlu0 %6931  ;;  %v11734_v36 = vrot.slane %v17976_v34, %v16411_v35 }
 0x6e4   :  { %v18050_v28 = vpop.permute.xlu1 %8506 }
 0x6e5   :  { %20791 = vst [vmem:[#allocation34_spill] sm:$0xff] %v18050_v28  ;;  %v10912_v28 = vmul.f32 %v17696_v8, %v17441_v3  ;;  %v11742_v3 = vrot.slane %v17976_v34, %v16422_v48 }
 0x6e6   :  { %11757 = vrot.lane.b32.xlu1 %v11710_v45, %s14957_s30  ;;  %10951 = vrot.lane.b32.xlu0 %v10913_v51, %s14946_s0  ;;  %v11726_v45 = vrot.slane %v17976_v34, %v15092_v29  ;;  %v18071_v51 = vor.u32 %v14715_v25, %v14714_v61  ;;  %v6956_v61 = vsel %vm6947_vm14, %v17869_v14, %v6932_v1  ;;  %v6936_v25 = vpop.permute.xlu0 %6935 }
 0x6e8   :  { %v18063_v24 = vpop.permute.xlu1 %9398  ;;  %v12581_v23 = vrot.slane %v18071_v51, %v15042_v5 }
 0x6ea   :  { %11761 = vrot.lane.b32.xlu1 %v11718_v46, %s14957_s30  ;;  %10955 = vrot.lane.b32.xlu0 %v10915_v63, %s14946_s0  ;;  %v18117_v34 = vpop.permute.xlu0 %7639 }
 0x6ec   :  { %v18075_v19 = vpop.permute.xlu1 %9402 }
 0x6ee   :  { %11765 = vrot.lane.b32.xlu1 %v11726_v45, %s14957_s30  ;;  %10949 = vrot.lane.b32.xlu0 %v10912_v28, %s14946_s0  ;;  %v8428_v28 = vsel %vm8414_vm13, %v20786_v12, %v17457_v7  ;;  %v10881_v45 = vsel %vm783_vm6, %v17686_v22, %v17700_v54  ;;  %v8463_v22 = vmul.f32 %v20787_v15, %v17894_v16 }
 0x6ef   :  { %v8461_v63 = vmul.f32 %v8428_v28, %v17891_v41  ;;  %v10914_v14 = vmul.f32 %v10881_v45, %v17490_v10  ;;  %v10883_v54 = vsel %vm783_vm6, %v17690_v31, %v17704_v6  ;;  %v12589_v10 = vrot.slane %v18071_v51, %v15092_v29 }
 0x6f0   :  { %v6934_v46 = vpop.permute.xlu1 %6933  ;;  %v10916_v31 = vmul.f32 %v10883_v54, %v17591_v49  ;;  %v10884_v15 = vsel %vm783_vm6, %v17704_v6, %v17694_v62  ;;  %v10886_v49 = vsel %vm783_vm6, %v17708_v33, %v17698_v52  ;;  %v12585_v6 = vrot.slane %v18071_v51, %v20785_v2 }
 0x6f1   :  { %v6957_v8 = vsel %vm6947_vm14, %v6932_v1, %v6934_v46  ;;  %v6958_v12 = vsel %vm6947_vm14, %v6934_v46, %v6936_v25  ;;  %v12577_v1 = vrot.slane %v18071_v51, %v15039_v4  ;;  %v18137_v46 = vpop.permute.xlu0 %7643  ;;  %v12593_v28 = vrot.slane %v18071_v51, %v16391_v11 }
 0x6f2   :  { %11769 = vrot.lane.b32.xlu1 %v11734_v36, %s14957_s30  ;;  %12640 = vrot.lane.b32.xlu0 %v12581_v23, %s14955_s23  ;;  %v10917_v23 = vmul.f32 %v10884_v15, %v17596_v30  ;;  %v12597_v30 = vrot.slane %v18071_v51, %v16411_v35  ;;  %v10887_v45 = vsel %vm783_vm6, %v17698_v52, %v17712_v50 }
 0x6f3   :  { %7324 = vmatprep.subr.mxu0 %v6957_v8  ;;  %v12601_v52 = vrot.slane %v18071_v51, %v16399_v47 }
 0x6f4   :  { %7325 = vmatpush1.msra.mxu0 %v6956_v61  ;;  %v18097_v36 = vpop.permute.xlu1 %6937  ;;  %v10885_v61 = vsel %vm783_vm6, %v17694_v62, %v17708_v33  ;;  %v14716_v62 = vld [vmem:[%s20281_s10 + $0x46] ss:$8 sm:$0xf] }
 0x6f5   :  { %14584 = vmatmul.mubr.msk.f32.vlgmr.msra.gmra.mxu0 %vm194_vm10, %v17720_v40  ;;  %v6959_v7 = vsel %vm6947_vm14, %v6936_v25, %v18097_v36  ;;  %v18147_v8 = vpop.permute.xlu0 %8504  ;;  %v10918_v25 = vmul.f32 %v10885_v61, %v17607_v27  ;;  %v14717_v33 = vld [vmem:[%s20281_s10 + $0x46] ss:$8 sm:$0xf0]  ;;  %v10920_v27 = vmul.f32 %v10887_v45, %v17732_v18 }
 0x6f6   :  { %11773 = vrot.lane.b32.xlu1 %v11742_v3, %s14957_s30  ;;  %8512 = vrot.lane.b32.xlu0 %v8461_v63, %s14957_s30  ;;  %v10919_v3 = vmul.f32 %v10886_v49, %v17615_v26  ;;  %v12605_v26 = vrot.slane %v18071_v51, %v16422_v48 }
 0x6f7   :  { %7401 = vmatprep.subr.mxu1 %v6959_v7  ;;  %7364 = vmatprep.mubr.f32.mxu0 %v20739_v55 }
 0x6f8   :  { %7402 = vmatpush1.msra.mxu1 %v6958_v12  ;;  %v18182_v12 = vor.u32 %v14717_v33, %v14716_v62 }
 0x6f9   :  { %14585 = vmatmul.mubr.msk.f32.gmra.mxu0 %vm194_vm10, %v17796_v17  ;;  %14586 = vmatmul.mubr.msk.f32.vlgmr.msra.gmra.mxu1 %vm194_vm10, %v17720_v40  ;;  %v18163_v63 = vpop.permute.xlu0 %8508 }
 0x6fa   :  { %10953 = vrot.lane.b32.xlu1 %v10914_v14, %s14946_s0  ;;  %8516 = vrot.lane.b32.xlu0 %v8463_v22, %s14957_s30  ;;  %v12609_v14 = vrot.slane %v18182_v12, %v15039_v4 }
 0x6fb   :  { %7441 = vmatprep.mubr.f32.mxu1 %v20739_v55  ;;  %7512 = vmatprep.mubr.f32.mxu0 %v20739_v55 }
 0x6fd   :  { %14587 = vmatmul.mubr.msk.f32.gmra.mxu1 %vm194_vm10, %v17796_v17  ;;  %v18177_v7 = vpop.permute.xlu0 %9400 }
 0x6fe   :  { %10957 = vrot.lane.b32.xlu1 %v10916_v31, %s14946_s0  ;;  %12644 = vrot.lane.b32.xlu0 %v12589_v10, %s14955_s23 }
 0x6ff   :  { %7589 = vmatprep.mubr.f32.mxu1 %v20739_v55 }
 0x701   :  { %v18187_v22 = vpop.permute.xlu0 %9404 }
 0x702   :  { %12638 = vrot.lane.b32.xlu1 %v12577_v1, %s14955_s23  ;;  %10959 = vrot.lane.b32.xlu0 %v10917_v23, %s14946_s0 }
 0x706   :  { %12642 = vrot.lane.b32.xlu1 %v12585_v6, %s14955_s23  ;;  %10963 = vrot.lane.b32.xlu0 %v10919_v3, %s14946_s0 }
 0x70a   :  { %12648 = vrot.lane.b32.xlu0 %v12597_v30, %s14955_s23  ;;  %12646 = vrot.lane.b32.xlu1 %v12593_v28, %s14955_s23  ;;  %v7655_v28 = vsel %vm7653_vm0, %v17702_v38, %v17848_v42 }
 0x70e   :  { %10961 = vrot.lane.b32.xlu1 %v10918_v25, %s14946_s0  ;;  %12652 = vrot.lane.b32.xlu0 %v12605_v26, %s14955_s23  ;;  %v7654_v25 = vsel %vm7653_vm0, %v17480_v37, %v17702_v38  ;;  %v7657_v37 = vsel %vm7653_vm0, %v17706_v58, %v17852_v60 }
 0x712   :  { %10965 = vrot.lane.b32.xlu1 %v10920_v27, %s14946_s0 }
 0x716   :  { %12650 = vrot.lane.b32.xlu1 %v12601_v52, %s14955_s23 }
 0x71a   :  { %12654 = vrot.lane.b32.xlu1 %v12609_v14, %s14955_s23  ;;  %v7656_v14 = vsel %vm7653_vm0, %v17848_v42, %v17706_v58 }
 0x71c   :  { %v6940_v54 = vpop.permute.xlu0 %6939  ;;  %v18190_v18 = vpop.permute.xlu1 %7645 }
 0x71d   :  { %v6960_v30 = vsel %vm6947_vm14, %v18097_v36, %v6940_v54  ;;  %v7659_v36 = vsel %vm7653_vm0, %v17846_v53, %v17990_v0 }
 0x720   :  { %v6944_v10 = vpop.permute.xlu0 %6943  ;;  %v18192_v31 = vpop.permute.xlu1 %7649 }
 0x724   :  { %v18194_v15 = vpop.permute.xlu0 %10868  ;;  %v18196_v51 = vpop.permute.xlu1 %8510 }
 0x728   :  { %v18198_v1 = vpop.permute.xlu0 %10872  ;;  %v18200_v23 = vpop.permute.xlu1 %8514 }
 0x72c   :  { %v18202_v49 = vpop.permute.xlu0 %10876  ;;  %v6942_v6 = vpop.permute.xlu1 %6941 }
 0x72d   :  { %v6961_v3 = vsel %vm6947_vm14, %v6940_v54, %v6942_v6  ;;  %v6962_v62 = vsel %vm6947_vm14, %v6942_v6, %v6944_v10 }
 0x72e   :  { %7478 = vmatprep.subr.mxu0 %v6961_v3 }
 0x72f   :  { %7479 = vmatpush1.msra.mxu0 %v6960_v30 }
 0x730   :  { %v18210_v61 = vpop.permute.xlu0 %11743  ;;  %14588 = vmatmul.mubr.msk.f32.vlgmr.msra.gmra.mxu0 %vm194_vm10, %v17720_v40  ;;  %7722 = vmatprep.subr.mxu0 %v7655_v28  ;;  %v6946_v26 = vpop.permute.xlu1 %6945  ;;  %v7663_v28 = vsel %vm7653_vm0, %v18017_v57, %v18117_v34 }
 0x731   :  { %7723 = vmatpush1.msra.mxu0 %v7654_v25  ;;  %v6963_v45 = vsel %vm6947_vm14, %v6944_v10, %v6946_v26  ;;  %7518 = vmatprep.mubr.f32.mxu0 %v20739_v55  ;;  %v20792_v10 = vld [vmem:[#allocation31_spill] sm:$0xff] }
 0x732   :  { %7555 = vmatprep.subr.mxu1 %v6963_v45  ;;  %7876 = vmatprep.subr.mxu0 %v7659_v36  ;;  %v7662_v36 = vsel %vm7653_vm0, %v17999_v13, %v18017_v57 }
 0x733   :  { %7556 = vmatpush1.msra.mxu1 %v6962_v62  ;;  %v9359_v62 = vmul.f32 %v17669_v32, %v17894_v16 }
 0x734   :  { %v18223_v33 = vpop.permute.xlu0 %11747  ;;  %14589 = vmatmul.mubr.msk.f32.gmra.mxu0 %vm194_vm10, %v17796_v17  ;;  %14590 = vmatmul.mubr.msk.f32.vlgmr.msra.gmra.mxu1 %vm194_vm10, %v17720_v40  ;;  %v10867_v38 = vpop.permute.xlu1 %10866  ;;  %v18243_v40 = vld [vmem:[%s20275_s4] sm:$0xff] }
 0x735   :  { %7799 = vmatprep.subr.mxu1 %v7657_v37  ;;  %v10888_v27 = vsel %vm783_vm6, %v17712_v50, %v10867_v38  ;;  %v10889_v52 = vsel %vm783_vm6, %v10867_v38, %v18194_v15  ;;  %7595 = vmatprep.mubr.f32.mxu1 %v20739_v55  ;;  %v20793_v50 = vld [vmem:[#allocation23_spill] sm:$0xff] }
 0x736   :  { %v10921_v54 = vmul.f32 %v10888_v27, %v17746_v43  ;;  %v10922_v6 = vmul.f32 %v10889_v52, %v20792_v10  ;;  %7800 = vmatpush1.msra.mxu1 %v7656_v14  ;;  %v7661_v3 = vsel %vm7653_vm0, %v20793_v50, %v17999_v13  ;;  %7756 = vmatprep.mubr.f32.mxu0 %v20739_v55  ;;  %v20794_v13 = vld [vmem:[#allocation33_spill] sm:$0xff] }
 0x737   :  { %7953 = vmatprep.subr.mxu1 %v7661_v3  ;;  %v7658_v43 = vsel %vm7653_vm0, %v17852_v60, %v17846_v53  ;;  %v9324_v60 = vsel %vm752_vm5, %v17653_v56, %v17688_v9  ;;  %v7665_v56 = vsel %vm7653_vm0, %v18025_v20, %v18137_v46  ;;  %v12617_v9 = vrot.slane %v18182_v12, %v20785_v2 }
 0x738   :  { %v18251_v58 = vpop.permute.xlu0 %11751  ;;  %14591 = vmatmul.mubr.msk.f32.gmra.mxu1 %vm194_vm10, %v17796_v17  ;;  %14592 = vmatmul.mubr.msk.f32.vlgmr.msra.gmra.mxu0 %vm194_vm10, %v18243_v40  ;;  %v10871_v42 = vpop.permute.xlu1 %10870  ;;  %v18269_v17 = vld [vmem:[%s20275_s4 + $0x8] sm:$0xff]  ;;  %v9357_v25 = vmul.f32 %v9324_v60, %v17891_v41  ;;  %v12625_v27 = vrot.slane %v18182_v12, %v16391_v11  ;;  %v12613_v10 = vrot.slane %v18182_v12, %v15042_v5 }
 0x739   :  { %7877 = vmatpush1.msra.mxu0 %v7658_v43  ;;  %10969 = vrot.lane.b32.xlu1 %v10922_v6, %s14946_s0  ;;  %v10891_v30 = vsel %vm783_vm6, %v10871_v42, %v18198_v1  ;;  %v10890_v38 = vsel %vm783_vm6, %v18194_v15, %v10871_v42  ;;  %v7664_v15 = vsel %vm7653_vm0, %v18117_v34, %v18025_v20  ;;  %v18341_v6 = vld [vmem:[#allocation2 + $0x88] sm:$0xff] }
 0x73a   :  { %10967 = vrot.lane.b32.xlu0 %v10921_v54, %s14946_s0  ;;  %v10924_v53 = vmul.f32 %v10891_v30, %v17879_v21  ;;  %8030 = vmatprep.subr.mxu0 %v7663_v28  ;;  %v7660_v21 = vsel %vm7653_vm0, %v17990_v0, %v20793_v50  ;;  %v10923_v57 = vmul.f32 %v10890_v38, %v20794_v13  ;;  %v20795_v30 = vld [vmem:[#allocation38_spill] sm:$0xff]  ;;  %v20796_v28 = vld [vmem:[#allocation35_spill] sm:$0xff]  ;;  %v20798_v38 = vld [vmem:[#allocation41_spill] sm:$0xff] }
 0x73b   :  { %7762 = vmatprep.mubr.f32.mxu0 %v20739_v55  ;;  %7833 = vmatprep.mubr.f32.mxu1 %v20739_v55  ;;  %v7666_v3 = vsel %vm7653_vm0, %v18137_v46, %v18190_v18  ;;  %v12621_v43 = vrot.slane %v18182_v12, %v15092_v29 }
 0x73c   :  { %v18278_v26 = vpop.permute.xlu0 %11755  ;;  %14593 = vmatmul.mubr.msk.f32.gmra.mxu0 %vm194_vm10, %v18269_v17  ;;  %14594 = vmatmul.mubr.msk.f32.vlgmr.msra.gmra.mxu1 %vm194_vm10, %v18243_v40  ;;  %v18288_v45 = vpop.permute.xlu1 %9406 }
 0x73d   :  { %7954 = vmatpush1.msra.mxu1 %v7660_v21  ;;  %10973 = vrot.lane.b32.xlu1 %v10924_v53, %s14946_s0  ;;  %v8520_v53 = vsel %vm8518_vm1, %v20796_v28, %v20795_v30 }
 0x73e   :  { %9408 = vrot.lane.b32.xlu0 %v9357_v25, %s14947_s26  ;;  %8107 = vmatprep.subr.mxu1 %v7665_v56  ;;  %v12633_v25 = vrot.slane %v18182_v12, %v16399_v47 }
 0x73f   :  { %7839 = vmatprep.mubr.f32.mxu1 %v20739_v55  ;;  %7910 = vmatprep.mubr.f32.mxu0 %v20739_v55 }
 0x740   :  { %v18299_v0 = vpop.permute.xlu0 %11759  ;;  %14595 = vmatmul.mubr.msk.f32.gmra.mxu1 %vm194_vm10, %v18269_v17  ;;  %14596 = vmatmul.mubr.msk.f32.vlgmr.msra.gmra.mxu0 %vm194_vm10, %v18243_v40  ;;  %v18310_v37 = vpop.permute.xlu1 %9410 }
 0x741   :  { %8031 = vmatpush1.msra.mxu0 %v7662_v36  ;;  %12658 = vrot.lane.b32.xlu1 %v12617_v9, %s14955_s23  ;;  %v20797_v9 = vld [vmem:[#allocation25_spill] sm:$0xff] }
 0x742   :  { %9412 = vrot.lane.b32.xlu0 %v9359_v62, %s14947_s26  ;;  %7916 = vmatprep.mubr.f32.mxu0 %v20739_v55  ;;  %v8519_v36 = vsel %vm8518_vm1, %v20797_v9, %v20796_v28 }
 0x743   :  { %7987 = vmatprep.mubr.f32.mxu1 %v20739_v55 }
 0x744   :  { %v18321_v32 = vpop.permute.xlu0 %11763  ;;  %14597 = vmatmul.mubr.msk.f32.gmra.mxu0 %vm194_vm10, %v18269_v17  ;;  %14598 = vmatmul.mubr.msk.f32.vlgmr.msra.gmra.mxu1 %vm194_vm10, %v18243_v40  ;;  %v18330_v52 = vpop.permute.xlu1 %10874 }
 0x745   :  { %8108 = vmatpush1.msra.mxu1 %v7664_v15  ;;  %12662 = vrot.lane.b32.xlu1 %v12625_v27, %s14955_s23  ;;  %v10893_v14 = vsel %vm783_vm6, %v18330_v52, %v18202_v49 }
 0x746   :  { %10971 = vrot.lane.b32.xlu0 %v10923_v57, %s14946_s0  ;;  %v10926_v54 = vmul.f32 %v10893_v14, %v17885_v59  ;;  %7993 = vmatprep.mubr.f32.mxu1 %v20739_v55  ;;  %v20800_v57 = vld [vmem:[#allocation43_spill] sm:$0xff]  ;;  %v12637_v14 = vrot.slane %v18182_v12, %v16422_v48 }
 0x747   :  { %8064 = vmatprep.mubr.f32.mxu0 %v20739_v55  ;;  %v8524_v15 = vsel %vm8518_vm1, %v20800_v57, %v18013_v44 }
 0x748   :  { %v7648_v20 = vpop.permute.xlu0 %7647  ;;  %14599 = vmatmul.mubr.msk.f32.gmra.mxu1 %vm194_vm10, %v18269_v17  ;;  %14600 = vmatmul.mubr.msk.f32.vlgmr.msra.gmra.mxu0 %vm194_vm10, %v18243_v40  ;;  %v18348_v34 = vpop.permute.xlu1 %10878 }
 0x749   :  { %10977 = vrot.lane.b32.xlu1 %v10926_v54, %s14946_s0  ;;  %v10928_v59 = vmul.f32 %v18348_v34, %v18341_v6  ;;  %v7667_v50 = vsel %vm7653_vm0, %v18190_v18, %v7648_v20  ;;  %8070 = vmatprep.mubr.f32.mxu0 %v20739_v55  ;;  %v12629_v18 = vrot.slane %v18182_v12, %v16411_v35 }
 0x74a   :  { %12656 = vrot.lane.b32.xlu0 %v12613_v10, %s14955_s23  ;;  %8184 = vmatprep.subr.mxu0 %v7667_v50  ;;  %v7668_v21 = vsel %vm7653_vm0, %v7648_v20, %v18192_v31 }
 0x74b   :  { %8141 = vmatprep.mubr.f32.mxu1 %v20739_v55  ;;  %8185 = vmatpush1.msra.mxu0 %v7666_v3 }
 0x74c   :  { %v7652_v42 = vpop.permute.xlu0 %7651  ;;  %14601 = vmatmul.mubr.msk.f32.gmra.mxu0 %vm194_vm10, %v18269_v17  ;;  %14602 = vmatmul.mubr.msk.f32.vlgmr.msra.gmra.mxu1 %vm194_vm10, %v18243_v40  ;;  %v11746_v60 = vpop.permute.xlu1 %11745 }
 0x74d   :  { %8587 = vmatprep.subr.mxu0 %v8520_v53  ;;  %10981 = vrot.lane.b32.xlu1 %v10928_v59, %s14946_s0  ;;  %v7669_v46 = vsel %vm7653_vm0, %v18192_v31, %v7652_v42  ;;  %v20799_v31 = vld [vmem:[#allocation21_spill] sm:$0xff]  ;;  %v11775_v13 = vsel %vm8518_vm1, %v18210_v61, %v11746_v60  ;;  %v11776_v20 = vsel %vm8518_vm1, %v11746_v60, %v18223_v33  ;;  %v18411_v59 = vld [vmem:[#allocation2 + $0x10] sm:$0xff]  ;;  %v20802_v42 = vld [vmem:[#allocation26_spill] sm:$0xff] }
 0x74e   :  { %12660 = vrot.lane.b32.xlu0 %v12621_v43, %s14955_s23  ;;  %8261 = vmatprep.subr.mxu1 %v7669_v46  ;;  %v8522_v27 = vsel %vm8518_vm1, %v20799_v31, %v20798_v38  ;;  %v11808_v50 = vmul.f32 %v18411_v59, %v11775_v13  ;;  %v8521_v12 = vsel %vm8518_vm1, %v20795_v30, %v20799_v31  ;;  %v20801_v43 = vld [vmem:[#allocation49_spill] sm:$0xff]  ;;  %v18430_v53 = vld [vmem:[%s20275_s4 + $0x20] sm:$0xff]  ;;  %v20803_v31 = vld [vmem:[#allocation32_spill] sm:$0xff] }
 0x74f   :  { %8147 = vmatprep.mubr.f32.mxu1 %v20739_v55  ;;  %8218 = vmatprep.mubr.f32.mxu0 %v20739_v55  ;;  %v8526_v28 = vsel %vm8518_vm1, %v20802_v42, %v20801_v43  ;;  %v18439_v30 = vld [vmem:[#allocation2 + $0x18] sm:$0xff]  ;;  %v18472_v13 = vld [vmem:[#allocation2 + $0x28] sm:$0xff] }
 0x750   :  { %8262 = vmatpush1.msra.mxu1 %v7668_v21  ;;  %v18382_v56 = vpop.permute.xlu0 %11767  ;;  %14604 = vmatmul.mubr.msk.f32.vlgmr.msra.gmra.mxu0 %vm194_vm10, %v18243_v40  ;;  %v11750_v62 = vpop.permute.xlu1 %11749  ;;  %v11809_v60 = vmul.f32 %v18439_v30, %v11776_v20 }
 0x751   :  { %14603 = vmatmul.mubr.msk.f32.gmra.mxu1 %vm194_vm10, %v18269_v17  ;;  %8588 = vmatpush1.msra.mxu0 %v8519_v36  ;;  %v11777_v3 = vsel %vm8518_vm1, %v18223_v33, %v11750_v62  ;;  %v14737_v33 = vld [vmem:[%s20281_s10 + $0x7] ss:$8 sm:$0xf0]  ;;  %v11778_v21 = vsel %vm8518_vm1, %v11750_v62, %v18251_v58  ;;  %v8523_v36 = vsel %vm8518_vm1, %v20798_v38, %v20800_v57 }
 0x752   :  { %8664 = vmatprep.subr.mxu1 %v8522_v27  ;;  %12664 = vrot.lane.b32.xlu0 %v12629_v18, %s14955_s23  ;;  %v8528_v62 = vsel %vm8518_vm1, %v20803_v31, %v18147_v8  ;;  %v18467_v27 = vld [vmem:[%s20275_s4 + $0x28] sm:$0xff]  ;;  %v11811_v38 = vmul.f32 %v18472_v13, %v11778_v21 }
 0x753   :  { %12666 = vrot.lane.b32.xlu1 %v12633_v25, %s14955_s23  ;;  %8741 = vmatprep.subr.mxu0 %v8524_v15  ;;  %v18450_v25 = vld [vmem:[#allocation2 + $0x20] sm:$0xff] }
 0x754   :  { %8224 = vmatprep.mubr.f32.mxu0 %v20739_v55  ;;  %8295 = vmatprep.mubr.f32.mxu1 %v20739_v55  ;;  %v18405_v54 = vpop.permute.xlu0 %11771  ;;  %v18407_v10 = vpop.permute.xlu1 %11753  ;;  %v11810_v9 = vmul.f32 %v18450_v25, %v11777_v3 }
 0x755   :  { %14605 = vmatmul.mubr.msk.f32.gmra.mxu0 %vm194_vm10, %v18269_v17  ;;  %14606 = vmatmul.mubr.msk.f32.vlgmr.msra.gmra.mxu1 %vm194_vm10, %v18243_v40  ;;  %v14736_v40 = vld [vmem:[%s20281_s10 + $0x7] ss:$8 sm:$0xf] }
 0x756   :  { %8665 = vmatpush1.msra.mxu1 %v8521_v12  ;;  %12668 = vrot.lane.b32.xlu0 %v12637_v14, %s14955_s23  ;;  %v18481_v14 = vld [vmem:[#allocation2 + $0x8] sm:$0xff]  ;;  %v20804_v12 = vld [vmem:[#allocation34_spill] sm:$0xff] }
 0x757   :  { %11846 = vrot.lane.b32.xlu1 %v11808_v50, %s14954_s2  ;;  %8818 = vmatprep.subr.mxu1 %v8526_v28  ;;  %v11807_v20 = vmul.f32 %v18481_v14, %v18210_v61  ;;  %v8525_v50 = vsel %vm8518_vm1, %v18013_v44, %v20802_v42  ;;  %v8530_v3 = vsel %vm8518_vm1, %v20804_v12, %v18163_v63 }
 0x758   :  { %8301 = vmatprep.mubr.f32.mxu1 %v20739_v55  ;;  %8621 = vmatprep.mubr.f32.mxu0 %v20739_v55  ;;  %v18444_v46 = vpop.permute.xlu0 %10951  ;;  %v18446_v18 = vpop.permute.xlu1 %11757 }
 0x759   :  { %14607 = vmatmul.mubr.msk.f32.gmra.mxu1 %vm194_vm10, %v18269_v17  ;;  %14614 = vmatmul.mubr.msk.f32.vlgmr.msra.gmra.mxu0 %vm194_vm10, %v18430_v53  ;;  %v18469_v17 = vor.u32 %v14737_v33, %v14736_v40  ;;  %v8527_v40 = vsel %vm8518_vm1, %v20801_v43, %v20803_v31  ;;  %v8529_v43 = vsel %vm8518_vm1, %v18147_v8, %v20804_v12 }
 0x75a   :  { %8742 = vmatpush1.msra.mxu0 %v8523_v36  ;;  %11848 = vrot.lane.b32.xlu0 %v11809_v60, %s14954_s2  ;;  %v11779_v36 = vsel %vm8518_vm1, %v18251_v58, %v18407_v10  ;;  %v11780_v8 = vsel %vm8518_vm1, %v18407_v10, %v18278_v26  ;;  %v18547_v58 = vld [vmem:[#allocation2 + $0x30] sm:$0xff]  ;;  %v11781_v12 = vsel %vm8518_vm1, %v18278_v26, %v18446_v18 }
 0x75b   :  { %11850 = vrot.lane.b32.xlu1 %v11810_v9, %s14954_s2  ;;  %8895 = vmatprep.subr.mxu0 %v8528_v62  ;;  %v13472_v61 = vrot.slane %v18469_v17, %v15039_v4  ;;  %v13476_v28 = vrot.slane %v18469_v17, %v15042_v5  ;;  %v13480_v33 = vrot.slane %v18469_v17, %v20785_v2 }
 0x75c   :  { %8627 = vmatprep.mubr.f32.mxu0 %v20739_v55  ;;  %8698 = vmatprep.mubr.f32.mxu1 %v20739_v55  ;;  %v18477_v57 = vpop.permute.xlu0 %10955  ;;  %v18479_v15 = vpop.permute.xlu1 %11761  ;;  %v13484_v60 = vrot.slane %v18469_v17, %v15092_v29  ;;  %v13488_v31 = vrot.slane %v18469_v17, %v16391_v11  ;;  %v8531_v10 = vsel %vm8518_vm1, %v18163_v63, %v18196_v51  ;;  %v20806_v63 = vld [vmem:[#allocation45_spill] sm:$0xff] }
 0x75d   :  { %14615 = vmatmul.mubr.msk.f32.gmra.mxu0 %vm194_vm10, %v18467_v27  ;;  %14616 = vmatmul.mubr.msk.f32.vlgmr.msra.gmra.mxu1 %vm194_vm10, %v18430_v53 }
 0x75e   :  { %8819 = vmatpush1.msra.mxu1 %v8525_v50  ;;  %11852 = vrot.lane.b32.xlu0 %v11811_v38, %s14954_s2 }
 0x75f   :  { %11844 = vrot.lane.b32.xlu1 %v11807_v20, %s14954_s2  ;;  %8972 = vmatprep.subr.mxu1 %v8530_v3  ;;  %v11812_v20 = vmul.f32 %v18547_v58, %v11779_v36  ;;  %v18565_v3 = vld [vmem:[#allocation2 + $0x38] sm:$0xff]  ;;  %v11782_v36 = vsel %vm8518_vm1, %v18446_v18, %v18299_v0 }
 0x760   :  { %8704 = vmatprep.mubr.f32.mxu1 %v20739_v55  ;;  %8775 = vmatprep.mubr.f32.mxu0 %v20739_v55  ;;  %v18503_v44 = vpop.permute.xlu0 %10949  ;;  %v18505_v42 = vpop.permute.xlu1 %11765  ;;  %v14738_v18 = vld [vmem:[%s20281_s10 + $0x47] ss:$8 sm:$0xf] }
 0x761   :  { %20805 = vst [vmem:[#allocation55_spill] sm:$0xff] %v18503_v44  ;;  %14617 = vmatmul.mubr.msk.f32.gmra.mxu1 %vm194_vm10, %v18467_v27  ;;  %14618 = vmatmul.mubr.msk.f32.vlgmr.msra.gmra.mxu0 %vm194_vm10, %v18430_v53 }
 0x762   :  { %8896 = vmatpush1.msra.mxu0 %v8527_v40  ;;  %13533 = vrot.lane.b32.xlu0 %v13472_v61, %s14956_s6  ;;  %v11813_v61 = vmul.f32 %v18565_v3, %v11780_v8  ;;  %v18571_v40 = vld [vmem:[#allocation2 + $0x40] sm:$0xff]  ;;  %v13492_v8 = vrot.slane %v18469_v17, %v16411_v35 }
 0x763   :  { %13535 = vrot.lane.b32.xlu1 %v13476_v28, %s14956_s6  ;;  %8781 = vmatprep.mubr.f32.mxu0 %v20739_v55 }
 0x764   :  { %8852 = vmatprep.mubr.f32.mxu1 %v20739_v55  ;;  %v18522_v21 = vpop.permute.xlu0 %12640  ;;  %v18524_v9 = vpop.permute.xlu1 %11769 }
 0x765   :  { %14619 = vmatmul.mubr.msk.f32.gmra.mxu0 %vm194_vm10, %v18467_v27  ;;  %14620 = vmatmul.mubr.msk.f32.vlgmr.msra.gmra.mxu1 %vm194_vm10, %v18430_v53 }
 0x766   :  { %8973 = vmatpush1.msra.mxu1 %v8529_v43  ;;  %13537 = vrot.lane.b32.xlu0 %v13480_v33, %s14956_s6  ;;  %v11814_v33 = vmul.f32 %v18571_v40, %v11781_v12  ;;  %v18602_v12 = vld [vmem:[#allocation2 + $0x48] sm:$0xff] }
 0x767   :  { %13539 = vrot.lane.b32.xlu1 %v13484_v60, %s14956_s6  ;;  %8858 = vmatprep.mubr.f32.mxu1 %v20739_v55 }
 0x768   :  { %8929 = vmatprep.mubr.f32.mxu0 %v20739_v55  ;;  %v8513_v62 = vpop.permute.xlu0 %8512  ;;  %v18542_v38 = vpop.permute.xlu1 %11773 }
 0x769   :  { %14621 = vmatmul.mubr.msk.f32.gmra.mxu1 %vm194_vm10, %v18467_v27  ;;  %14622 = vmatmul.mubr.msk.f32.vlgmr.msra.gmra.mxu0 %vm194_vm10, %v18430_v53  ;;  %v8532_v50 = vsel %vm8518_vm1, %v18196_v51, %v8513_v62  ;;  %v20807_v51 = vld [vmem:[#allocation27_spill] sm:$0xff] }
 0x76a   :  { %13541 = vrot.lane.b32.xlu0 %v13488_v31, %s14956_s6  ;;  %9049 = vmatprep.subr.mxu0 %v8532_v50  ;;  %v9415_v60 = vsel %vm783_vm6, %v20807_v51, %v20806_v63  ;;  %v8533_v31 = vsel %vm8518_vm1, %v8513_v62, %v18200_v23  ;;  %v14739_v50 = vld [vmem:[%s20281_s10 + $0x47] ss:$8 sm:$0xf0] }
 0x76b   :  { %11854 = vrot.lane.b32.xlu1 %v11812_v20, %s14954_s2  ;;  %8935 = vmatprep.mubr.f32.mxu0 %v20739_v55  ;;  %v18621_v44 = vor.u32 %v14739_v50, %v14738_v18  ;;  %v20813_v18 = vld [vmem:[#allocation30_spill] sm:$0xff] }
 0x76c   :  { %9006 = vmatprep.mubr.f32.mxu1 %v20739_v55  ;;  %9050 = vmatpush1.msra.mxu0 %v8531_v10  ;;  %v8517_v28 = vpop.permute.xlu0 %8516  ;;  %v18569_v26 = vpop.permute.xlu1 %10953  ;;  %v11815_v10 = vmul.f32 %v18602_v12, %v11782_v36  ;;  %v9421_v50 = vsel %vm783_vm6, %v20813_v18, %v18065_v39 }
 0x76d   :  { %14623 = vmatmul.mubr.msk.f32.gmra.mxu0 %vm194_vm10, %v18467_v27  ;;  %14624 = vmatmul.mubr.msk.f32.vlgmr.msra.gmra.mxu1 %vm194_vm10, %v18430_v53  ;;  %v8534_v43 = vsel %vm8518_vm1, %v18200_v23, %v8517_v28  ;;  %v20808_v23 = vld [vmem:[#allocation22_spill] sm:$0xff]  ;;  %v20810_v28 = vld [vmem:[#allocation29_spill] sm:$0xff] }
 0x76e   :  { %9482 = vmatprep.subr.mxu0 %v9415_v60  ;;  %11856 = vrot.lane.b32.xlu0 %v11813_v61, %s14954_s2  ;;  %v9414_v62 = vsel %vm783_vm6, %v20808_v23, %v20807_v51  ;;  %v20809_v61 = vld [vmem:[#allocation47_spill] sm:$0xff]  ;;  %v20811_v60 = vld [vmem:[#allocation52_spill] sm:$0xff]  ;;  %v13500_v23 = vrot.slane %v18469_v17, %v16422_v48 }
 0x76f   :  { %11858 = vrot.lane.b32.xlu1 %v11814_v33, %s14954_s2  ;;  %9126 = vmatprep.subr.mxu1 %v8534_v43  ;;  %v9417_v33 = vsel %vm783_vm6, %v20810_v28, %v20809_v61  ;;  %v20812_v43 = vld [vmem:[#allocation28_spill] sm:$0xff] }
 0x770   :  { %9012 = vmatprep.mubr.f32.mxu1 %v20739_v55  ;;  %9083 = vmatprep.mubr.f32.mxu0 %v20739_v55  ;;  %v18594_v20 = vpop.permute.xlu1 %10957  ;;  %v9419_v36 = vsel %vm783_vm6, %v20812_v43, %v20811_v60  ;;  %v18623_v51 = vpop.permute.xlu0 %12644 }
 0x771   :  { %9127 = vmatpush1.msra.mxu1 %v8533_v31  ;;  %14626 = vmatmul.mubr.msk.f32.vlgmr.msra.gmra.mxu0 %vm194_vm10, %v18430_v53  ;;  %v13496_v31 = vrot.slane %v18469_v17, %v16399_v47  ;;  %v11783_v17 = vsel %vm8518_vm1, %v18299_v0, %v18479_v15  ;;  %v10892_v0 = vsel %vm783_vm6, %v18198_v1, %v18330_v52 }
 0x772   :  { %14625 = vmatmul.mubr.msk.f32.gmra.mxu1 %vm194_vm10, %v18467_v27  ;;  %9483 = vmatpush1.msra.mxu0 %v9414_v62  ;;  %v11785_v1 = vsel %vm8518_vm1, %v18321_v32, %v18505_v42  ;;  %v9423_v52 = vsel %vm783_vm6, %v18063_v24, %v18177_v7 }
 0x773   :  { %9559 = vmatprep.subr.mxu1 %v9417_v33  ;;  %11860 = vrot.lane.b32.xlu0 %v11815_v10, %s14954_s2  ;;  %v18649_v10 = vld [vmem:[%s20275_s4 + $0x30] sm:$0xff] }
 0x774   :  { %13543 = vrot.lane.b32.xlu1 %v13492_v8, %s14956_s6  ;;  %9636 = vmatprep.subr.mxu0 %v9419_v36  ;;  %v18628_v62 = vpop.permute.xlu1 %12638  ;;  %v9416_v8 = vsel %vm783_vm6, %v20806_v63, %v20810_v28  ;;  %v18661_v28 = vld [vmem:[#allocation2 + $0x50] sm:$0xff]  ;;  %v18664_v36 = vpop.permute.xlu0 %10959 }
 0x775   :  { %9089 = vmatprep.mubr.f32.mxu0 %v20739_v55  ;;  %9160 = vmatprep.mubr.f32.mxu1 %v20739_v55  ;;  %v11816_v33 = vmul.f32 %v18661_v28, %v11783_v17  ;;  %v13508_v17 = vrot.slane %v18621_v44, %v15042_v5  ;;  %v9422_v5 = vsel %vm783_vm6, %v18065_v39, %v18063_v24 }
 0x776   :  { %14627 = vmatmul.mubr.msk.f32.gmra.mxu0 %vm194_vm10, %v18467_v27  ;;  %14628 = vmatmul.mubr.msk.f32.vlgmr.msra.gmra.mxu1 %vm194_vm10, %v18430_v53  ;;  %v13504_v53 = vrot.slane %v18621_v44, %v15039_v4  ;;  %v9418_v4 = vsel %vm783_vm6, %v20809_v61, %v20812_v43  ;;  %v10925_v43 = vmul.f32 %v10892_v0, %v17891_v41 }
 0x777   :  { %9560 = vmatpush1.msra.mxu1 %v9416_v8  ;;  %13545 = vrot.lane.b32.xlu0 %v13496_v31, %s14956_s6  ;;  %v10894_v31 = vsel %vm783_vm6, %v18202_v49, %v18348_v34  ;;  %v9420_v41 = vsel %vm783_vm6, %v20811_v60, %v20813_v18  ;;  %v9425_v49 = vsel %vm783_vm6, %v18075_v19, %v18187_v22 }
 0x778   :  { %13547 = vrot.lane.b32.xlu1 %v13500_v23, %s14956_s6  ;;  %9713 = vmatprep.subr.mxu1 %v9421_v50  ;;  %v18654_v63 = vpop.permute.xlu1 %12642  ;;  %v18694_v23 = vld [vmem:[#allocation2 + $0x60] sm:$0xff]  ;;  %v18708_v34 = vpop.permute.xlu0 %10963  ;;  %v11784_v18 = vsel %vm8518_vm1, %v18479_v15, %v18321_v32  ;;  %v18738_v32 = vld [vmem:[#allocation2 + $0x58] sm:$0xff]  ;;  %v11786_v39 = vsel %vm8518_vm1, %v18505_v42, %v18382_v56  ;;  %v9424_v24 = vsel %vm783_vm6, %v18177_v7, %v18075_v19  ;;  %v18757_v42 = vld [vmem:[#allocation2 + $0x68] sm:$0xff] }
 0x779   :  { %9166 = vmatprep.mubr.f32.mxu1 %v20739_v55  ;;  %9516 = vmatprep.mubr.f32.mxu0 %v20739_v55  ;;  %v11818_v8 = vmul.f32 %v18694_v23, %v11785_v1  ;;  %v11817_v15 = vmul.f32 %v18738_v32, %v11784_v18  ;;  %v11819_v0 = vmul.f32 %v18757_v42, %v11786_v39 }
 0x77a   :  { %14629 = vmatmul.mubr.msk.f32.gmra.mxu1 %vm194_vm10, %v18467_v27  ;;  %14636 = vmatmul.mubr.msk.f32.vlgmr.msra.gmra.mxu0 %vm194_vm10, %v18649_v10  ;;  %v18683_v27 = vld [vmem:[%s20275_s4 + $0x38] sm:$0xff]  ;;  %v13512_v19 = vrot.slane %v18621_v44, %v20785_v2  ;;  %v12671_v7 = vsel %vm6947_vm14, %v18522_v21, %v18654_v63  ;;  %v13520_v2 = vrot.slane %v18621_v44, %v16391_v11 }
 0x77b   :  { %9637 = vmatpush1.msra.mxu0 %v9418_v4  ;;  %13549 = vrot.lane.b32.xlu0 %v13504_v53, %s14956_s6  ;;  %v10927_v53 = vmul.f32 %v10894_v31, %v17894_v16  ;;  %v13516_v16 = vrot.slane %v18621_v44, %v15092_v29  ;;  %v13524_v29 = vrot.slane %v18621_v44, %v16411_v35  ;;  %v18798_v11 = vld [vmem:[#allocation2 + $0x78] sm:$0xff] }
 0x77c   :  { %11862 = vrot.lane.b32.xlu1 %v11816_v33, %s14954_s2  ;;  %9790 = vmatprep.subr.mxu0 %v9423_v52  ;;  %v18686_v61 = vpop.permute.xlu1 %12646  ;;  %v13532_v35 = vrot.slane %v18621_v44, %v16422_v48  ;;  %v11788_v48 = vsel %vm8518_vm1, %v18524_v9, %v18405_v54  ;;  %v12704_v33 = vmul.f32 %v18439_v30, %v12671_v7  ;;  %v18801_v52 = vld [vmem:[#allocation2 + $0x70] sm:$0xff] }
 0x77d   :  { %9522 = vmatprep.mubr.f32.mxu0 %v20739_v55  ;;  %9593 = vmatprep.mubr.f32.mxu1 %v20739_v55  ;;  %v11787_v4 = vsel %vm8518_vm1, %v18382_v56, %v18524_v9  ;;  %v11821_v1 = vmul.f32 %v18798_v11, %v11788_v48  ;;  %v11789_v31 = vsel %vm8518_vm1, %v18405_v54, %v18542_v38  ;;  %v18811_v9 = vld [vmem:[#allocation2 + $0x80] sm:$0xff] }
 0x77e   :  { %14637 = vmatmul.mubr.msk.f32.gmra.mxu0 %vm194_vm10, %v18683_v27  ;;  %14638 = vmatmul.mubr.msk.f32.vlgmr.msra.gmra.mxu1 %vm194_vm10, %v18649_v10  ;;  %v11823_v56 = vmul.f32 %v18542_v38, %v18341_v6  ;;  %v13528_v54 = vrot.slane %v18621_v44, %v16399_v47  ;;  %v12649_v38 = vpop.permute.xlu0 %12648  ;;  %v12672_v44 = vsel %vm6947_vm14, %v18654_v63, %v18623_v51 }
 0x77f   :  { %9714 = vmatpush1.msra.mxu1 %v9420_v41  ;;  %10975 = vrot.lane.b32.xlu0 %v10925_v43, %s14946_s0  ;;  %v11820_v43 = vmul.f32 %v18801_v52, %v11787_v4  ;;  %v12674_v18 = vsel %vm6947_vm14, %v18686_v61, %v12649_v38 }
 0x780   :  { %11866 = vrot.lane.b32.xlu1 %v11818_v8, %s14954_s2  ;;  %9867 = vmatprep.subr.mxu1 %v9425_v49  ;;  %v18713_v50 = vpop.permute.xlu1 %10961  ;;  %v11822_v8 = vmul.f32 %v18811_v9, %v11789_v31  ;;  %v12673_v49 = vsel %vm6947_vm14, %v18623_v51, %v18686_v61  ;;  %v12705_v61 = vmul.f32 %v18450_v25, %v12672_v44 }
 0x781   :  { %9599 = vmatprep.mubr.f32.mxu1 %v20739_v55  ;;  %9670 = vmatprep.mubr.f32.mxu0 %v20739_v55  ;;  %v18721_v60 = vsel %vm752_vm5, %v18713_v50, %v18708_v34  ;;  %v12702_v51 = vmul.f32 %v18481_v14, %v18628_v62 }
 0x782   :  { %14639 = vmatmul.mubr.msk.f32.gmra.mxu1 %vm194_vm10, %v18683_v27  ;;  %14640 = vmatmul.mubr.msk.f32.vlgmr.msra.gmra.mxu0 %vm194_vm10, %v18649_v10 }
 0x783   :  { %9791 = vmatpush1.msra.mxu0 %v9422_v5  ;;  %10979 = vrot.lane.b32.xlu0 %v10927_v53, %s14946_s0  ;;  %v12706_v53 = vmul.f32 %v18472_v13, %v12673_v49  ;;  %v12653_v5 = vpop.permute.xlu0 %12652 }
 0x784   :  { %13551 = vrot.lane.b32.xlu1 %v13508_v17, %s14956_s6  ;;  %9747 = vmatprep.mubr.f32.mxu1 %v20739_v55  ;;  %v18814_v41 = vpop.permute.xlu1 %10965  ;;  %v12670_v17 = vsel %vm6947_vm14, %v18628_v62, %v18522_v21 }
 0x785   :  { %9676 = vmatprep.mubr.f32.mxu0 %v20739_v55  ;;  %v12703_v47 = vmul.f32 %v18411_v59, %v12670_v17 }
 0x786   :  { %14642 = vmatmul.mubr.msk.f32.vlgmr.msra.gmra.mxu1 %vm194_vm10, %v18649_v10  ;;  %14641 = vmatmul.mubr.msk.f32.gmra.mxu0 %vm194_vm10, %v18683_v27 }
 0x787   :  { %9868 = vmatpush1.msra.mxu1 %v9424_v24  ;;  %11864 = vrot.lane.b32.xlu0 %v11817_v15, %s14954_s2  ;;  %v12707_v15 = vmul.f32 %v18547_v58, %v12674_v18  ;;  %v18916_v18 = vpop.f32.mrf.mxu0 }
 0x788   :  { %13555 = vrot.lane.b32.xlu1 %v13516_v16, %s14956_s6  ;;  %9753 = vmatprep.mubr.f32.mxu1 %v20739_v55  ;;  %v12651_v16 = vpop.permute.xlu1 %12650 }
 0x789   :  { %9824 = vmatprep.mubr.f32.mxu0 %v20739_v55  ;;  %v12676_v21 = vsel %vm6947_vm14, %v12651_v16, %v12653_v5  ;;  %v12675_v63 = vsel %vm6947_vm14, %v12649_v38, %v12651_v16 }
 0x78a   :  { %14643 = vmatmul.mubr.msk.f32.gmra.mxu1 %vm194_vm10, %v18683_v27  ;;  %14644 = vmatmul.mubr.msk.f32.vlgmr.msra.gmra.mxu0 %vm194_vm10, %v18649_v10  ;;  %v12709_v39 = vmul.f32 %v18571_v40, %v12676_v21 }
 0x78b   :  { %11868 = vrot.lane.b32.xlu0 %v11819_v0, %s14954_s2  ;;  %9901 = vmatprep.mubr.f32.mxu1 %v20739_v55 }
 0x78c   :  { %13559 = vrot.lane.b32.xlu1 %v13524_v29, %s14956_s6  ;;  %9830 = vmatprep.mubr.f32.mxu0 %v20739_v55  ;;  %v12655_v24 = vpop.permute.xlu1 %12654 }
 0x78e   :  { %14646 = vmatmul.mubr.msk.f32.vlgmr.msra.gmra.mxu1 %vm194_vm10, %v18649_v10  ;;  %14645 = vmatmul.mubr.msk.f32.gmra.mxu0 %vm194_vm10, %v18683_v27 }
 0x78f   :  { %13553 = vrot.lane.b32.xlu0 %v13512_v19, %s14956_s6  ;;  %9907 = vmatprep.mubr.f32.mxu1 %v20739_v55  ;;  %v12708_v19 = vmul.f32 %v18565_v3, %v12675_v63 }
 0x790   :  { %13563 = vrot.lane.b32.xlu1 %v13532_v35, %s14956_s6  ;;  %9978 = vmatprep.mubr.f32.mxu0 %v20739_v55  ;;  %v12677_v35 = vsel %vm6947_vm14, %v12653_v5, %v12655_v24 }
 0x791   :  { %v12710_v48 = vmul.f32 %v18602_v12, %v12677_v35 }
 0x792   :  { %14647 = vmatmul.mubr.msk.f32.gmra.mxu1 %vm194_vm10, %v18683_v27 }
 0x793   :  { %13557 = vrot.lane.b32.xlu0 %v13520_v2, %s14956_s6  ;;  %10055 = vmatprep.mubr.f32.mxu1 %v20739_v55 }
 0x794   :  { %12743 = vrot.lane.b32.xlu1 %v12704_v33, %s14952_s19  ;;  %v9426_v33 = vsel %vm783_vm6, %v18187_v22, %v18288_v45 }
 0x797   :  { %11872 = vrot.lane.b32.xlu0 %v11821_v1, %s14954_s2 }
 0x798   :  { %11870 = vrot.lane.b32.xlu1 %v11820_v43, %s14954_s2 }
 0x79b   :  { %11876 = vrot.lane.b32.xlu0 %v11823_v56, %s14954_s2 }
 0x79c   :  { %11874 = vrot.lane.b32.xlu1 %v11822_v8, %s14954_s2 }
 0x79f   :  { %13561 = vrot.lane.b32.xlu0 %v13528_v54, %s14956_s6  ;;  %v18904_v54 = vld [vmem:[%s20275_s4 + $0x48] sm:$0xff] }
 0x7a0   :  { %12747 = vrot.lane.b32.xlu1 %v12706_v53, %s14952_s19 }
 0x7a3   :  { %12741 = vrot.lane.b32.xlu0 %v12703_v47, %s14952_s19 }
 0x7a4   :  { %12749 = vrot.lane.b32.xlu1 %v12707_v15, %s14952_s19  ;;  %v18929_v15 = vpop.f32.mrf.mxu1 }
 0x7a6   :  { %v18951_v63 = vpop.f32.mrf.mxu1 }
 0x7a7   :  { %12745 = vrot.lane.b32.xlu0 %v12705_v61, %s14952_s19  ;;  %v18937_v61 = vpop.f32.mrf.mxu0 }
 0x7a8   :  { %12753 = vrot.lane.b32.xlu1 %v12709_v39, %s14952_s19 }
 0x7a9   :  { %v18959_v35 = vpop.f32.mrf.mxu0 }
 0x7ab   :  { %12739 = vrot.lane.b32.xlu0 %v12702_v51, %s14952_s19  ;;  %v18847_v29 = vpop.permute.xlu1 %10969 }
 0x7ac   :  { %v18849_v0 = vpop.permute.xlu0 %10967 }
 0x7af   :  { %12751 = vrot.lane.b32.xlu0 %v12708_v19, %s14952_s19  ;;  %v18854_v7 = vpop.permute.xlu1 %10973 }
 0x7b0   :  { %v9409_v2 = vpop.permute.xlu0 %9408 }
 0x7b1   :  { %v9427_v62 = vsel %vm783_vm6, %v18288_v45, %v9409_v2  ;;  %v9428_v22 = vsel %vm783_vm6, %v9409_v2, %v18310_v37 }
 0x7b2   :  { %9944 = vmatprep.subr.mxu0 %v9427_v62  ;;  %v18970_v62 = vpop.f32.mrf.mxu1 }
 0x7b3   :  { %12755 = vrot.lane.b32.xlu0 %v12710_v48, %s14952_s19  ;;  %9945 = vmatpush1.msra.mxu0 %v9426_v33  ;;  %v12659_v4 = vpop.permute.xlu1 %12658 }
 0x7b4   :  { %v9413_v1 = vpop.permute.xlu0 %9412  ;;  %14648 = vmatmul.mubr.msk.f32.vlgmr.msra.gmra.mxu0 %vm194_vm10, %v18649_v10  ;;  %10139 = vmatprep.subr.mxu0 %v18411_v59 }
 0x7b5   :  { %10140 = vmatpush1.msra.mxu0 %v18481_v14  ;;  %v9429_v43 = vsel %vm783_vm6, %v18310_v37, %v9413_v1  ;;  %9984 = vmatprep.mubr.f32.mxu0 %v20739_v55  ;;  %v18886_v37 = vld [vmem:[%s20275_s4 + $0x40] sm:$0xff]  ;;  %v10984_v1 = vsel %vm752_vm5, %v18444_v46, %v18569_v26 }
 0x7b6   :  { %10021 = vmatprep.subr.mxu1 %v9429_v43  ;;  %10293 = vmatprep.subr.mxu0 %v18547_v58  ;;  %v18989_v43 = vpop.f32.mrf.mxu1 }
 0x7b7   :  { %10022 = vmatpush1.msra.mxu1 %v9428_v22  ;;  %v18873_v45 = vpop.permute.xlu1 %12662 }
 0x7b8   :  { %v18875_v31 = vpop.permute.xlu0 %10971  ;;  %14649 = vmatmul.mubr.msk.f32.gmra.mxu0 %vm194_vm10, %v18683_v27  ;;  %14650 = vmatmul.mubr.msk.f32.vlgmr.msra.gmra.mxu1 %vm194_vm10, %v18649_v10 }
 0x7b9   :  { %10216 = vmatprep.subr.mxu1 %v18450_v25  ;;  %10061 = vmatprep.mubr.f32.mxu1 %v20739_v55 }
 0x7ba   :  { %10217 = vmatpush1.msra.mxu1 %v18439_v30  ;;  %10173 = vmatprep.mubr.f32.mxu0 %v20739_v55 }
 0x7bb   :  { %10370 = vmatprep.subr.mxu1 %v18571_v40  ;;  %v18891_v56 = vpop.permute.xlu1 %10977 }
 0x7bc   :  { %v12657_v8 = vpop.permute.xlu0 %12656  ;;  %14651 = vmatmul.mubr.msk.f32.gmra.mxu1 %vm194_vm10, %v18683_v27  ;;  %14654 = vmatmul.mubr.msk.f32.vlgmr.msra.gmra.mxu0 %vm194_vm10, %v18886_v37 }
 0x7bd   :  { %v12678_v10 = vsel %vm6947_vm14, %v12655_v24, %v12657_v8  ;;  %v12679_v49 = vsel %vm6947_vm14, %v12657_v8, %v12659_v4  ;;  %10294 = vmatpush1.msra.mxu0 %v18472_v13  ;;  %10179 = vmatprep.mubr.f32.mxu0 %v20739_v55 }
 0x7be   :  { %v12711_v38 = vmul.f32 %v18661_v28, %v12678_v10  ;;  %v12712_v27 = vmul.f32 %v18738_v32, %v12679_v49  ;;  %10447 = vmatprep.subr.mxu0 %v18661_v28  ;;  %10250 = vmatprep.mubr.f32.mxu1 %v20739_v55  ;;  %v10986_v49 = vsel %vm752_vm5, %v18477_v57, %v18594_v20 }
 0x7bf   :  { %v18910_v17 = vpop.permute.xlu1 %10981 }
 0x7c0   :  { %v12661_v53 = vpop.permute.xlu0 %12660  ;;  %14655 = vmatmul.mubr.msk.f32.gmra.mxu0 %vm194_vm10, %v18904_v54  ;;  %14656 = vmatmul.mubr.msk.f32.vlgmr.msra.gmra.mxu1 %vm194_vm10, %v18886_v37 }
 0x7c1   :  { %v12680_v5 = vsel %vm6947_vm14, %v12659_v4, %v12661_v53  ;;  %v12681_v16 = vsel %vm6947_vm14, %v12661_v53, %v18873_v45  ;;  %10371 = vmatpush1.msra.mxu1 %v18565_v3  ;;  %12757 = vrot.lane.b32.xlu1 %v12711_v38, %s14952_s19  ;;  %v18978_v4 = vpop.f32.mrf.mxu0  ;;  %v19007_v38 = vpop.f32.mrf.mxu1 }
 0x7c2   :  { %v12713_v47 = vmul.f32 %v18694_v23, %v12680_v5  ;;  %v12714_v44 = vmul.f32 %v18757_v42, %v12681_v16  ;;  %12759 = vrot.lane.b32.xlu0 %v12712_v27, %s14952_s19  ;;  %10524 = vmatprep.subr.mxu1 %v18694_v23  ;;  %v20814_v27 = vld [vmem:[#allocation55_spill] sm:$0xff] }
 0x7c3   :  { %10256 = vmatprep.mubr.f32.mxu1 %v20739_v55  ;;  %10327 = vmatprep.mubr.f32.mxu0 %v20739_v55  ;;  %v18997_v8 = vpop.f32.mrf.mxu0  ;;  %v10983_v53 = vsel %vm752_vm5, %v20814_v27, %v18444_v46 }
 0x7c4   :  { %v18931_v21 = vpop.permute.xlu0 %12664  ;;  %14657 = vmatmul.mubr.msk.f32.gmra.mxu1 %vm194_vm10, %v18904_v54  ;;  %14658 = vmatmul.mubr.msk.f32.vlgmr.msra.gmra.mxu0 %vm194_vm10, %v18886_v37 }
 0x7c5   :  { %10448 = vmatpush1.msra.mxu0 %v18602_v12  ;;  %12761 = vrot.lane.b32.xlu1 %v12713_v47, %s14952_s19  ;;  %v18941_v39 = vpop.permute.xlu1 %12666  ;;  %v19018_v16 = vpop.f32.mrf.mxu0 }
 0x7c6   :  { %12763 = vrot.lane.b32.xlu0 %v12714_v44, %s14952_s19  ;;  %v12683_v24 = vsel %vm6947_vm14, %v18931_v21, %v18941_v39  ;;  %10601 = vmatprep.subr.mxu0 %v18801_v52  ;;  %v10988_v44 = vsel %vm752_vm5, %v18664_v36, %v18713_v50  ;;  %v10985_v50 = vsel %vm752_vm5, %v18569_v26, %v18477_v57  ;;  %v19050_v57 = vld [vmem:[%s20275_s4 + $0x50] sm:$0xff] }
 0x7c7   :  { %v12716_v51 = vmul.f32 %v18798_v11, %v12683_v24  ;;  %10333 = vmatprep.mubr.f32.mxu0 %v20739_v55  ;;  %10404 = vmatprep.mubr.f32.mxu1 %v20739_v55 }
 0x7c8   :  { %v18953_v19 = vpop.permute.xlu0 %12668  ;;  %14659 = vmatmul.mubr.msk.f32.gmra.mxu0 %vm194_vm10, %v18904_v54  ;;  %14660 = vmatmul.mubr.msk.f32.vlgmr.msra.gmra.mxu1 %vm194_vm10, %v18886_v37 }
 0x7c9   :  { %10525 = vmatpush1.msra.mxu1 %v18738_v32  ;;  %v18962_v2 = vpop.permute.xlu1 %11846  ;;  %10410 = vmatprep.mubr.f32.mxu1 %v20739_v55  ;;  %v12718_v48 = vmul.f32 %v18953_v19, %v18341_v6 }
 0x7ca   :  { %12767 = vrot.lane.b32.xlu0 %v12716_v51, %s14952_s19  ;;  %10678 = vmatprep.subr.mxu1 %v18811_v9  ;;  %v19028_v51 = vpop.f32.mrf.mxu1 }
 0x7cb   :  { %10481 = vmatprep.mubr.f32.mxu0 %v20739_v55 }
 0x7cc   :  { %14661 = vmatmul.mubr.msk.f32.gmra.mxu1 %vm194_vm10, %v18904_v54  ;;  %14662 = vmatmul.mubr.msk.f32.vlgmr.msra.gmra.mxu0 %vm194_vm10, %v18886_v37  ;;  %v18976_v33 = vpop.permute.xlu0 %11848 }
 0x7cd   :  { %10602 = vmatpush1.msra.mxu0 %v18757_v42  ;;  %v18981_v6 = vpop.permute.xlu1 %11850  ;;  %10487 = vmatprep.mubr.f32.mxu0 %v20739_v55 }
 0x7ce   :  { %12771 = vrot.lane.b32.xlu0 %v12718_v48, %s14952_s19  ;;  %11051 = vmatprep.subr.mxu0 %v10984_v1  ;;  %v19037_v1 = vpop.f32.mrf.mxu0 }
 0x7cf   :  { %10558 = vmatprep.mubr.f32.mxu1 %v20739_v55 }
 0x7d0   :  { %14663 = vmatmul.mubr.msk.f32.gmra.mxu0 %vm194_vm10, %v18904_v54  ;;  %14664 = vmatmul.mubr.msk.f32.vlgmr.msra.gmra.mxu1 %vm194_vm10, %v18886_v37  ;;  %v18995_v22 = vpop.permute.xlu0 %11852 }
 0x7d1   :  { %10679 = vmatpush1.msra.mxu1 %v18798_v11  ;;  %v19000_v10 = vpop.permute.xlu1 %11844  ;;  %10564 = vmatprep.mubr.f32.mxu1 %v20739_v55 }
 0x7d2   :  { %11128 = vmatprep.subr.mxu1 %v10986_v49  ;;  %10635 = vmatprep.mubr.f32.mxu0 %v20739_v55  ;;  %v12682_v49 = vsel %vm6947_vm14, %v18873_v45, %v18931_v21  ;;  %v19055_v45 = vpop.f32.mrf.mxu1  ;;  %v10987_v21 = vsel %vm752_vm5, %v18594_v20, %v18664_v36  ;;  %v10992_v36 = vsel %vm752_vm5, %v18849_v0, %v18847_v29 }
 0x7d4   :  { %14665 = vmatmul.mubr.msk.f32.gmra.mxu1 %vm194_vm10, %v18904_v54  ;;  %14666 = vmatmul.mubr.msk.f32.vlgmr.msra.gmra.mxu0 %vm194_vm10, %v18886_v37  ;;  %v19016_v5 = vpop.permute.xlu0 %13533 }
 0x7d5   :  { %11052 = vmatpush1.msra.mxu0 %v10983_v53  ;;  %v13536_v47 = vpop.permute.xlu1 %13535  ;;  %10641 = vmatprep.mubr.f32.mxu0 %v20739_v55 }
 0x7d6   :  { %v13565_v46 = vsel %vm7653_vm0, %v19016_v5, %v13536_v47  ;;  %11205 = vmatprep.subr.mxu0 %v10988_v44  ;;  %10712 = vmatprep.mubr.f32.mxu1 %v20739_v55 }
 0x7d7   :  { %v13598_v24 = vmul.f32 %v18411_v59, %v13565_v46 }
 0x7d8   :  { %14667 = vmatmul.mubr.msk.f32.gmra.mxu0 %vm194_vm10, %v18904_v54  ;;  %14668 = vmatmul.mubr.msk.f32.vlgmr.msra.gmra.mxu1 %vm194_vm10, %v18886_v37  ;;  %v13538_v48 = vpop.permute.xlu0 %13537  ;;  %v10990_v37 = vsel %vm752_vm5, %v18708_v34, %v18814_v41  ;;  %v12715_v34 = vmul.f32 %v18801_v52, %v12682_v49 }
 0x7d9   :  { %v13566_v59 = vsel %vm7653_vm0, %v13536_v47, %v13538_v48  ;;  %11129 = vmatpush1.msra.mxu1 %v10985_v50  ;;  %13636 = vrot.lane.b32.xlu1 %v13598_v24, %s14953_s5  ;;  %v13540_v27 = vpop.permute.xlu1 %13539  ;;  %v12684_v47 = vsel %vm6947_vm14, %v18941_v39, %v18953_v19  ;;  %v19086_v39 = vpop.f32.mrf.mxu1 }
 0x7da   :  { %v13599_v26 = vmul.f32 %v18439_v30, %v13566_v59  ;;  %11282 = vmatprep.subr.mxu1 %v10990_v37  ;;  %10718 = vmatprep.mubr.f32.mxu1 %v20739_v55  ;;  %v19065_v30 = vpop.f32.mrf.mxu0  ;;  %v12717_v19 = vmul.f32 %v18811_v9, %v12684_v47  ;;  %v13567_v50 = vsel %vm7653_vm0, %v13538_v48, %v13540_v27 }
 0x7db   :  { %11085 = vmatprep.mubr.f32.mxu0 %v20739_v55  ;;  %v10994_v59 = vsel %vm752_vm5, %v18875_v31, %v18854_v7  ;;  %v10991_v48 = vsel %vm752_vm5, %v18814_v41, %v18849_v0  ;;  %v10993_v0 = vsel %vm752_vm5, %v18847_v29, %v18875_v31 }
 0x7dc   :  { %14669 = vmatmul.mubr.msk.f32.gmra.mxu1 %vm194_vm10, %v18904_v54  ;;  %v13542_v53 = vpop.permute.xlu0 %13541  ;;  %14676 = vmatmul.mubr.msk.f32.vlgmr.msra.gmra.mxu0 %vm194_vm10, %v19050_v57  ;;  %v19080_v54 = vld [vmem:[%s20275_s4 + $0x58] sm:$0xff] }
 0x7dd   :  { %v13568_v44 = vsel %vm7653_vm0, %v13540_v27, %v13542_v53  ;;  %11206 = vmatpush1.msra.mxu0 %v10987_v21  ;;  %13638 = vrot.lane.b32.xlu0 %v13599_v26, %s14953_s5  ;;  %v19072_v20 = vpop.permute.xlu1 %11854  ;;  %v19116_v27 = vpop.f32.mrf.mxu1  ;;  %v13597_v21 = vmul.f32 %v18481_v14, %v19016_v5 }
 0x7de   :  { %v13601_v46 = vmul.f32 %v18472_v13, %v13568_v44  ;;  %12765 = vrot.lane.b32.xlu1 %v12715_v34, %s14952_s19  ;;  %11359 = vmatprep.subr.mxu0 %v10992_v36  ;;  %v19095_v13 = vpop.f32.mrf.mxu0 }
 0x7df   :  { %11091 = vmatprep.mubr.f32.mxu0 %v20739_v55  ;;  %11162 = vmatprep.mubr.f32.mxu1 %v20739_v55  ;;  %v19136_v47 = vpop.f32.mrf.mxu1 }
 0x7e0   :  { %v19089_v24 = vpop.permute.xlu0 %11856  ;;  %14677 = vmatmul.mubr.msk.f32.gmra.mxu0 %vm194_vm10, %v19080_v54  ;;  %14678 = vmatmul.mubr.msk.f32.vlgmr.msra.gmra.mxu1 %vm194_vm10, %v19050_v57  ;;  %v19118_v37 = vpop.f32.mrf.mxu0  ;;  %20815 = vst [vmem:[#allocation36_spill] sm:$0xff] %v19136_v47 }
 0x7e1   :  { %11283 = vmatpush1.msra.mxu1 %v18721_v60  ;;  %13642 = vrot.lane.b32.xlu0 %v13601_v46, %s14953_s5  ;;  %v19100_v49 = vpop.permute.xlu1 %11858  ;;  %v13600_v60 = vmul.f32 %v18450_v25, %v13567_v50  ;;  %v19152_v36 = vpop.f32.mrf.mxu1 }
 0x7e2   :  { %12769 = vrot.lane.b32.xlu1 %v12717_v19, %s14952_s19  ;;  %11436 = vmatprep.subr.mxu1 %v10994_v59  ;;  %v19138_v44 = vpop.f32.mrf.mxu0 }
 0x7e3   :  { %11168 = vmatprep.mubr.f32.mxu1 %v20739_v55  ;;  %11239 = vmatprep.mubr.f32.mxu0 %v20739_v55  ;;  %v19168_v59 = vpop.f32.mrf.mxu1 }
 0x7e4   :  { %14679 = vmatmul.mubr.msk.f32.gmra.mxu1 %vm194_vm10, %v19080_v54  ;;  %14680 = vmatmul.mubr.msk.f32.vlgmr.msra.gmra.mxu0 %vm194_vm10, %v19050_v57  ;;  %v19154_v46 = vpop.f32.mrf.mxu0  ;;  %20817 = vst [vmem:[#allocation39_spill] sm:$0xff] %v19168_v59 }
 0x7e5   :  { %v19120_v26 = vpop.permute.xlu0 %11860  ;;  %11360 = vmatpush1.msra.mxu0 %v10991_v48  ;;  %11245 = vmatprep.mubr.f32.mxu0 %v20739_v55  ;;  %20816 = vst [vmem:[#allocation57_spill] sm:$0xff] %v19154_v46 }
 0x7e6   :  { %13640 = vrot.lane.b32.xlu1 %v13600_v60, %s14953_s5  ;;  %v13544_v41 = vpop.permute.xlu1 %13543  ;;  %11316 = vmatprep.mubr.f32.mxu1 %v20739_v55 }
 0x7e7   :  { %v13569_v25 = vsel %vm7653_vm0, %v13542_v53, %v13544_v41 }
 0x7e8   :  { %v13602_v34 = vmul.f32 %v18547_v58, %v13569_v25  ;;  %14681 = vmatmul.mubr.msk.f32.gmra.mxu0 %vm194_vm10, %v19080_v54  ;;  %14682 = vmatmul.mubr.msk.f32.vlgmr.msra.gmra.mxu1 %vm194_vm10, %v19050_v57 }
 0x7e9   :  { %v13546_v53 = vpop.permute.xlu0 %13545  ;;  %11437 = vmatpush1.msra.mxu1 %v10993_v0  ;;  %11322 = vmatprep.mubr.f32.mxu1 %v20739_v55 }
 0x7ea   :  { %v13570_v29 = vsel %vm7653_vm0, %v13544_v41, %v13546_v53  ;;  %13634 = vrot.lane.b32.xlu1 %v13597_v21, %s14953_s5  ;;  %13644 = vrot.lane.b32.xlu0 %v13602_v34, %s14953_s5  ;;  %v13548_v14 = vpop.permute.xlu1 %13547  ;;  %v11879_v21 = vsel %vm8414_vm13, %v18962_v2, %v18976_v33 }
 0x7eb   :  { %v13603_v58 = vmul.f32 %v18565_v3, %v13570_v29  ;;  %v13571_v31 = vsel %vm7653_vm0, %v13546_v53, %v13548_v14  ;;  %11393 = vmatprep.mubr.f32.mxu0 %v20739_v55  ;;  %v11878_v53 = vsel %vm8414_vm13, %v19000_v10, %v18962_v2 }
 0x7ec   :  { %v13604_v5 = vmul.f32 %v18571_v40, %v13571_v31  ;;  %14683 = vmatmul.mubr.msk.f32.gmra.mxu1 %vm194_vm10, %v19080_v54  ;;  %14684 = vmatmul.mubr.msk.f32.vlgmr.msra.gmra.mxu0 %vm194_vm10, %v19050_v57 }
 0x7ed   :  { %v13550_v19 = vpop.permute.xlu0 %13549  ;;  %11399 = vmatprep.mubr.f32.mxu0 %v20739_v55  ;;  %11470 = vmatprep.mubr.f32.mxu1 %v20739_v55 }
 0x7ee   :  { %v13572_v3 = vsel %vm7653_vm0, %v13548_v14, %v13550_v19  ;;  %13646 = vrot.lane.b32.xlu1 %v13603_v58, %s14953_s5  ;;  %13648 = vrot.lane.b32.xlu0 %v13604_v5, %s14953_s5  ;;  %v19161_v40 = vpop.permute.xlu1 %11862  ;;  %v11883_v5 = vsel %vm8414_vm13, %v19072_v20, %v19089_v24 }
 0x7ef   :  { %v13605_v50 = vmul.f32 %v18602_v12, %v13572_v3 }
 0x7f0   :  { %14685 = vmatmul.mubr.msk.f32.gmra.mxu0 %vm194_vm10, %v19080_v54  ;;  %14686 = vmatmul.mubr.msk.f32.vlgmr.msra.gmra.mxu1 %vm194_vm10, %v19050_v57  ;;  %v19170_v48 = vpop.f32.mrf.mxu0 }
 0x7f1   :  { %v10976_v60 = vpop.permute.xlu0 %10975  ;;  %11476 = vmatprep.mubr.f32.mxu1 %v20739_v55  ;;  %11547 = vmatprep.mubr.f32.mxu0 %v20739_v55 }
 0x7f2   :  { %v10995_v41 = vsel %vm752_vm5, %v18854_v7, %v10976_v60  ;;  %13650 = vrot.lane.b32.xlu1 %v13605_v50, %s14953_s5  ;;  %v19177_v12 = vpop.permute.xlu1 %11866  ;;  %v10996_v25 = vsel %vm752_vm5, %v10976_v60, %v18891_v56  ;;  %v19181_v0 = vpop.f32.mrf.mxu0 }
 0x7f3   :  { %20818 = vst [vmem:[#allocation59_spill] sm:$0xff] %v19181_v0  ;;  %11513 = vmatprep.subr.mxu0 %v10996_v25  ;;  %v19232_v25 = vld [vmem:[%s20275_s4 + $0x60] sm:$0xff] }
 0x7f4   :  { %11514 = vmatpush1.msra.mxu0 %v10995_v41  ;;  %14687 = vmatmul.mubr.msk.f32.gmra.mxu1 %vm194_vm10, %v19080_v54  ;;  %v19188_v34 = vpop.f32.mrf.mxu1  ;;  %v19190_v7 = vpop.f32.mrf.mxu0 }
 0x7f5   :  { %v10980_v29 = vpop.permute.xlu0 %10979  ;;  %14688 = vmatmul.mubr.msk.f32.vlgmr.msra.gmra.mxu0 %vm194_vm10, %v19050_v57  ;;  %11946 = vmatprep.subr.mxu0 %v11879_v21  ;;  %v11885_v21 = vsel %vm8414_vm13, %v19100_v49, %v19120_v26 }
 0x7f6   :  { %v10997_v14 = vsel %vm752_vm5, %v18891_v56, %v10980_v29  ;;  %v13552_v58 = vpop.permute.xlu1 %13551  ;;  %11947 = vmatpush1.msra.mxu0 %v11878_v53  ;;  %v10998_v31 = vsel %vm752_vm5, %v10980_v29, %v18910_v17  ;;  %11553 = vmatprep.mubr.f32.mxu0 %v20739_v55  ;;  %v19205_v2 = vpop.f32.mrf.mxu1 }
 0x7f7   :  { %20819 = vst [vmem:[#allocation42_spill] sm:$0xff] %v19205_v2  ;;  %v13573_v10 = vsel %vm7653_vm0, %v13550_v19, %v13552_v58  ;;  %11590 = vmatprep.subr.mxu1 %v10998_v31  ;;  %12100 = vmatprep.subr.mxu0 %v11883_v5  ;;  %v19208_v3 = vpop.f32.mrf.mxu0  ;;  %v11881_v19 = vsel %vm8414_vm13, %v18981_v6, %v18995_v22 }
 0x7f8   :  { %20820 = vst [vmem:[#allocation61_spill] sm:$0xff] %v19208_v3  ;;  %v13606_v56 = vmul.f32 %v18661_v28, %v13573_v10  ;;  %11591 = vmatpush1.msra.mxu1 %v10997_v14  ;;  %11624 = vmatprep.mubr.f32.mxu1 %v20739_v55  ;;  %v19212_v17 = vpop.f32.mrf.mxu1  ;;  %v11880_v28 = vsel %vm8414_vm13, %v18976_v33, %v18981_v6 }
 0x7f9   :  { %v19214_v50 = vpop.permute.xlu0 %11864  ;;  %14689 = vmatmul.mubr.msk.f32.gmra.mxu0 %vm194_vm10, %v19080_v54  ;;  %14690 = vmatmul.mubr.msk.f32.vlgmr.msra.gmra.mxu1 %vm194_vm10, %v19050_v57  ;;  %v19223_v60 = vpop.f32.mrf.mxu0  ;;  %v11882_v6 = vsel %vm8414_vm13, %v18995_v22, %v19072_v20  ;;  %v19265_v22 = vld [vmem:[%s20275_s4 + $0x68] sm:$0xff] }
 0x7fa   :  { %12023 = vmatprep.subr.mxu1 %v11881_v19  ;;  %13652 = vrot.lane.b32.xlu0 %v13606_v56, %s14953_s5  ;;  %v13556_v41 = vpop.permute.xlu1 %13555  ;;  %v19234_v57 = vpop.f32.mrf.mxu1  ;;  %v11887_v5 = vsel %vm8414_vm13, %v19161_v40, %v19214_v50  ;;  %v11884_v56 = vsel %vm8414_vm13, %v19089_v24, %v19100_v49 }
 0x7fb   :  { %20821 = vst [vmem:[#allocation44_spill] sm:$0xff] %v19234_v57  ;;  %12024 = vmatpush1.msra.mxu1 %v11880_v28  ;;  %11630 = vmatprep.mubr.f32.mxu1 %v20739_v55  ;;  %v19240_v53 = vpop.f32.mrf.mxu0 }
 0x7fc   :  { %12177 = vmatprep.subr.mxu1 %v11885_v21  ;;  %11980 = vmatprep.mubr.f32.mxu0 %v20739_v55  ;;  %v19243_v33 = vpop.f32.mrf.mxu1 }
 0x7fd   :  { %v19248_v29 = vpop.permute.xlu0 %11868  ;;  %14691 = vmatmul.mubr.msk.f32.gmra.mxu1 %vm194_vm10, %v19080_v54  ;;  %14698 = vmatmul.mubr.msk.f32.vlgmr.msra.gmra.mxu0 %vm194_vm10, %v19232_v25  ;;  %v19254_v14 = vpop.f32.mrf.mxu0 }
 0x7fe   :  { %12101 = vmatpush1.msra.mxu0 %v11882_v6  ;;  %v19256_v31 = vpop.permute.xlu1 %13559  ;;  %11986 = vmatprep.mubr.f32.mxu0 %v20739_v55  ;;  %v19267_v20 = vpop.f32.mrf.mxu1  ;;  %v11889_v24 = vsel %vm8414_vm13, %v19177_v12, %v19248_v29 }
 0x7ff   :  { %12254 = vmatprep.subr.mxu0 %v11887_v5  ;;  %12057 = vmatprep.mubr.f32.mxu1 %v20739_v55  ;;  %v19270_v54 = vpop.f32.mrf.mxu0 }
 0x800   :  { %v19272_v10 = vpop.f32.mrf.mxu1 }
 0x801   :  { %v13554_v19 = vpop.permute.xlu0 %13553  ;;  %14699 = vmatmul.mubr.msk.f32.gmra.mxu0 %vm194_vm10, %v19265_v22  ;;  %14700 = vmatmul.mubr.msk.f32.vlgmr.msra.gmra.mxu1 %vm194_vm10, %v19232_v25  ;;  %v19281_v28 = vpop.f32.mrf.mxu0 }
 0x802   :  { %v13574_v21 = vsel %vm7653_vm0, %v13552_v58, %v13554_v19  ;;  %v13575_v6 = vsel %vm7653_vm0, %v13554_v19, %v13556_v41  ;;  %12178 = vmatpush1.msra.mxu1 %v11884_v56  ;;  %v19285_v5 = vpop.permute.xlu1 %13563  ;;  %12063 = vmatprep.mubr.f32.mxu1 %v20739_v55  ;;  %v19291_v49 = vpop.f32.mrf.mxu1  ;;  %v11886_v19 = vsel %vm8414_vm13, %v19120_v26, %v19161_v40 }
 0x803   :  { %v13607_v57 = vmul.f32 %v18738_v32, %v13574_v21  ;;  %v13608_v2 = vmul.f32 %v18694_v23, %v13575_v6  ;;  %12331 = vmatprep.subr.mxu1 %v11889_v24  ;;  %12134 = vmatprep.mubr.f32.mxu0 %v20739_v55  ;;  %v19296_v58 = vpop.f32.mrf.mxu0 }
 0x804   :  { %v19298_v56 = vpop.f32.mrf.mxu1 }
 0x805   :  { %v13558_v3 = vpop.permute.xlu0 %13557  ;;  %14701 = vmatmul.mubr.msk.f32.gmra.mxu1 %vm194_vm10, %v19265_v22  ;;  %14702 = vmatmul.mubr.msk.f32.vlgmr.msra.gmra.mxu0 %vm194_vm10, %v19232_v25  ;;  %v19307_v32 = vpop.f32.mrf.mxu0 }
 0x806   :  { %v13576_v23 = vsel %vm7653_vm0, %v13556_v41, %v13558_v3  ;;  %v13577_v21 = vsel %vm7653_vm0, %v13558_v3, %v19256_v31  ;;  %12255 = vmatpush1.msra.mxu0 %v11886_v19  ;;  %13654 = vrot.lane.b32.xlu1 %v13607_v57, %s14953_s5  ;;  %v19313_v6 = vpop.permute.xlu1 %12743  ;;  %v19315_v26 = vpop.f32.mrf.mxu1  ;;  %v11888_v41 = vsel %vm8414_vm13, %v19214_v50, %v19177_v12 }
 0x807   :  { %v13609_v40 = vmul.f32 %v18757_v42, %v13576_v23  ;;  %v13610_v24 = vmul.f32 %v18801_v52, %v13577_v21  ;;  %13656 = vrot.lane.b32.xlu0 %v13608_v2, %s14953_s5  ;;  %12140 = vmatprep.mubr.f32.mxu0 %v20739_v55  ;;  %v19321_v0 = vpop.f32.mrf.mxu0 }
 0x808   :  { %12211 = vmatprep.mubr.f32.mxu1 %v20739_v55  ;;  %v19324_v3 = vpop.f32.mrf.mxu1 }
 0x809   :  { %v11873_v57 = vpop.permute.xlu0 %11872  ;;  %14703 = vmatmul.mubr.msk.f32.gmra.mxu0 %vm194_vm10, %v19265_v22  ;;  %14704 = vmatmul.mubr.msk.f32.vlgmr.msra.gmra.mxu1 %vm194_vm10, %v19232_v25  ;;  %v19333_v42 = vpop.f32.mrf.mxu0 }
 0x80a   :  { %12332 = vmatpush1.msra.mxu1 %v11888_v41  ;;  %13658 = vrot.lane.b32.xlu1 %v13609_v40, %s14953_s5  ;;  %v11871_v52 = vpop.permute.xlu1 %11870  ;;  %v19336_v2 = vpop.f32.mrf.mxu1 }
 0x80b   :  { %13660 = vrot.lane.b32.xlu0 %v13610_v24, %s14953_s5  ;;  %v11891_v19 = vsel %vm8414_vm13, %v11871_v52, %v11873_v57  ;;  %12217 = vmatprep.mubr.f32.mxu1 %v20739_v55  ;;  %v19341_v12 = vpop.f32.mrf.mxu0  ;;  %v11890_v23 = vsel %vm8414_vm13, %v19248_v29, %v11871_v52 }
 0x80c   :  { %12408 = vmatprep.subr.mxu0 %v11891_v19  ;;  %12288 = vmatprep.mubr.f32.mxu0 %v20739_v55  ;;  %v19344_v50 = vpop.f32.mrf.mxu1 }
 0x80d   :  { %v11877_v21 = vpop.permute.xlu0 %11876  ;;  %14705 = vmatmul.mubr.msk.f32.gmra.mxu1 %vm194_vm10, %v19265_v22  ;;  %14706 = vmatmul.mubr.msk.f32.vlgmr.msra.gmra.mxu0 %vm194_vm10, %v19232_v25  ;;  %v19352_v40 = vpop.f32.mrf.mxu0 }
 0x80e   :  { %12409 = vmatpush1.msra.mxu0 %v11890_v23  ;;  %v11875_v24 = vpop.permute.xlu1 %11874  ;;  %12294 = vmatprep.mubr.f32.mxu0 %v20739_v55  ;;  %v19355_v41 = vpop.f32.mrf.mxu1 }
 0x80f   :  { %20822 = vst [vmem:[#allocation63_spill] sm:$0xff] %v19355_v41  ;;  %v11893_v19 = vsel %vm8414_vm13, %v11875_v24, %v11877_v21  ;;  %12365 = vmatprep.mubr.f32.mxu1 %v20739_v55  ;;  %v19359_v29 = vpop.f32.mrf.mxu0  ;;  %v11892_v52 = vsel %vm8414_vm13, %v11873_v57, %v11875_v24 }
 0x810   :  { %20823 = vst [vmem:[#allocation46_spill] sm:$0xff] %v19359_v29  ;;  %12485 = vmatprep.subr.mxu1 %v11893_v19 }
 0x811   :  { %v13562_v59 = vpop.permute.xlu0 %13561  ;;  %14707 = vmatmul.mubr.msk.f32.gmra.mxu0 %vm194_vm10, %v19265_v22  ;;  %14708 = vmatmul.mubr.msk.f32.vlgmr.msra.gmra.mxu1 %vm194_vm10, %v19232_v25  ;;  %v19366_v23 = vpop.f32.mrf.mxu1 }
 0x812   :  { %v13578_v46 = vsel %vm7653_vm0, %v19256_v31, %v13562_v59  ;;  %v13579_v21 = vsel %vm7653_vm0, %v13562_v59, %v19285_v5  ;;  %12486 = vmatpush1.msra.mxu1 %v11892_v52  ;;  %12371 = vmatprep.mubr.f32.mxu1 %v20739_v55  ;;  %v8220_v19 = vpop.f32.mrf.mxu0  ;;  %v14916_v31 = vld [vmem:[#allocation2 + $0x88] sm:$0xff] }
 0x813   :  { %v13611_v57 = vmul.f32 %v18798_v11, %v13578_v46  ;;  %v13612_v24 = vmul.f32 %v18811_v9, %v13579_v21  ;;  %12442 = vmatprep.mubr.f32.mxu0 %v20739_v55  ;;  %v19376_v29 = vpop.f32.mrf.mxu1  ;;  %v19379_v41 = vadd.f32 %v8220_v19, %v19170_v48  ;;  %v13613_v59 = vmul.f32 %v14916_v31, %v19285_v5  ;;  %v14354_v21 = vld [vmem:[%s20279_s8] sm:$0xff] }
 0x814   :  { %v19381_v47 = vpop.f32.mrf.mxu0  ;;  %v7759_v5 = vadd.f32 %v19223_v60, %v18916_v18  ;;  %v7836_v18 = vadd.f32 %v19243_v33, %v18929_v15  ;;  %v14355_v15 = vld [vmem:[%s20279_s8 + $0x8] sm:$0xff] }
 0x815   :  { %v12742_v52 = vpop.permute.xlu0 %12741  ;;  %14709 = vmatmul.mubr.msk.f32.gmra.mxu1 %vm194_vm10, %v19265_v22  ;;  %13662 = vrot.lane.b32.xlu1 %v13611_v57, %s14953_s5  ;;  %v8297_v11 = vpop.f32.mrf.mxu1 }
 0x816   :  { %13664 = vrot.lane.b32.xlu0 %v13612_v24, %s14953_s5  ;;  %14710 = vmatmul.mubr.msk.f32.vlgmr.msra.gmra.mxu0 %vm194_vm10, %v19232_v25  ;;  %v12774_v9 = vsel %vm6843_vm12, %v12742_v52, %v19313_v6  ;;  %v19393_v46 = vadd.f32 %v8297_v11, %v19188_v34  ;;  %v8226_v48 = vpop.f32.mrf.mxu0  ;;  %v12748_v24 = vpop.permute.xlu1 %12747 }
 0x817   :  { %12841 = vmatprep.subr.mxu0 %v12774_v9  ;;  %12448 = vmatprep.mubr.f32.mxu0 %v20739_v55  ;;  %v19401_v19 = vpop.f32.mrf.mxu1  ;;  %v19404_v57 = vadd.f32 %v8226_v48, %v19190_v7 }
 0x818   :  { %20824 = vst [vmem:[#allocation66_spill] sm:$0xff] %v19401_v19  ;;  %12519 = vmatprep.mubr.f32.mxu1 %v20739_v55  ;;  %v19407_v34 = vpop.f32.mrf.mxu0 }
 0x819   :  { %20825 = vst [vmem:[#allocation48_spill] sm:$0xff] %v19407_v34  ;;  %v12746_v60 = vpop.permute.xlu0 %12745  ;;  %13666 = vrot.lane.b32.xlu1 %v13613_v59, %s14953_s5  ;;  %14712 = vmatmul.mubr.msk.f32.vlgmr.msra.gmra.mxu1 %vm194_vm10, %v19232_v25  ;;  %v8303_v31 = vpop.f32.mrf.mxu1  ;;  %v7765_v25 = vadd.f32 %v19254_v14, %v18959_v35  ;;  %v19440_v35 = vld [vmem:[%s20275_s4 + $0x70] sm:$0xff]  ;;  %v7842_v14 = vadd.f32 %v19272_v10, %v18970_v62 }
 0x81a   :  { %v12775_v11 = vsel %vm6843_vm12, %v19313_v6, %v12746_v60  ;;  %14358 = vperm.xlu0 %14793, %v14354_v21   ;;  %14711 = vmatmul.mubr.msk.f32.gmra.mxu0 %vm194_vm10, %v19265_v22  ;;  %v12776_v7 = vsel %vm6843_vm12, %v12746_v60, %v12748_v24  ;;  %v19420_v9 = vadd.f32 %v8303_v31, %v19212_v17  ;;  %v8623_v33 = vpop.f32.mrf.mxu0 }
 0x81b   :  { %12918 = vmatprep.subr.mxu1 %v12776_v7  ;;  %12525 = vmatprep.mubr.f32.mxu1 %v20739_v55  ;;  %v19428_v6 = vpop.f32.mrf.mxu1  ;;  %v19430_v59 = vadd.f32 %v8623_v33, %v7759_v5  ;;  %v12750_v5 = vpop.permute.xlu1 %12749 }
 0x81c   :  { %20826 = vst [vmem:[#allocation69_spill] sm:$0xff] %v19428_v6  ;;  %12919 = vmatpush1.msra.mxu1 %v12775_v11  ;;  %12875 = vmatprep.mubr.f32.mxu0 %v20739_v55  ;;  %v19433_v17 = vpop.f32.mrf.mxu0 }
 0x81d   :  { %v12740_v48 = vpop.permute.xlu0 %12739  ;;  %14363 = vperm.xlu1 %14794, %v14355_v15   ;;  %14713 = vmatmul.mubr.msk.f32.gmra.mxu1 %vm194_vm10, %v19265_v22  ;;  %v8700_v21 = vpop.f32.mrf.mxu1  ;;  %v7913_v22 = vadd.f32 %v19281_v28, %v18997_v8  ;;  %v19464_v8 = vld [vmem:[%s20275_s4 + $0x78] sm:$0xff]  ;;  %v7990_v28 = vadd.f32 %v19298_v56, %v19007_v38 }
 0x81e   :  { %v12773_v60 = vsel %vm6843_vm12, %v12740_v48, %v12742_v52  ;;  %v19445_v31 = vadd.f32 %v8700_v21, %v7836_v18  ;;  %12952 = vmatprep.mubr.f32.mxu1 %v20739_v55  ;;  %v8629_v11 = vpop.f32.mrf.mxu0  ;;  %v7919_v48 = vadd.f32 %v19307_v32, %v19037_v1  ;;  %v7996_v1 = vadd.f32 %v19324_v3, %v19055_v45 }
 0x81f   :  { %12842 = vmatpush1.msra.mxu0 %v12773_v60  ;;  %v19450_v7 = vpop.f32.mrf.mxu1  ;;  %v19452_v15 = vadd.f32 %v8629_v11, %v7765_v25  ;;  %v12777_v11 = vsel %vm6843_vm12, %v12748_v24, %v12750_v5  ;;  %v12754_v6 = vpop.permute.xlu1 %12753 }
 0x820   :  { %14720 = vmatmul.mubr.msk.f32.vlgmr.msra.gmra.mxu0 %vm194_vm10, %v19440_v35  ;;  %v19456_v62 = vpop.f32.mrf.mxu0 }
 0x821   :  { %v12752_v10 = vpop.permute.xlu0 %12751  ;;  %14722 = vmatmul.mubr.msk.f32.vlgmr.msra.gmra.mxu1 %vm194_vm10, %v19440_v35  ;;  %12881 = vmatprep.mubr.f32.mxu0 %v20739_v55  ;;  %v8706_v52 = vpop.f32.mrf.mxu1 }
 0x822   :  { %v12778_v18 = vsel %vm6843_vm12, %v12750_v5, %v12752_v10  ;;  %v19469_v33 = vadd.f32 %v8706_v52, %v7842_v14  ;;  %12958 = vmatprep.mubr.f32.mxu1 %v20739_v55  ;;  %v8777_v25 = vpop.f32.mrf.mxu0  ;;  %v12779_v52 = vsel %vm6843_vm12, %v12752_v10, %v12754_v6  ;;  %v8073_v10 = vadd.f32 %v19352_v40, %v19138_v44 }
 0x823   :  { %12995 = vmatprep.subr.mxu0 %v12778_v18  ;;  %v19474_v21 = vpop.f32.mrf.mxu1  ;;  %v19476_v60 = vadd.f32 %v8777_v25, %v7913_v22  ;;  %v8067_v22 = vadd.f32 %v19333_v42, %v19095_v13  ;;  %v8144_v13 = vadd.f32 %v19344_v50, %v19116_v27  ;;  %v8150_v44 = vadd.f32 %v19366_v23, %v19152_v36 }
 0x824   :  { %14721 = vmatmul.mubr.msk.f32.gmra.mxu0 %vm194_vm10, %v19464_v8  ;;  %v19481_v38 = vpop.f32.mrf.mxu0 }
 0x825   :  { %12996 = vmatpush1.msra.mxu0 %v12777_v11  ;;  %v12756_v56 = vpop.permute.xlu0 %12755  ;;  %14723 = vmatmul.mubr.msk.f32.gmra.mxu1 %vm194_vm10, %v19464_v8  ;;  %v8854_v14 = vpop.f32.mrf.mxu1 }
 0x826   :  { %13029 = vmatprep.mubr.f32.mxu0 %v20739_v55  ;;  %v12780_v32 = vsel %vm6843_vm12, %v12754_v6, %v12756_v56  ;;  %v19489_v24 = vadd.f32 %v8854_v14, %v7990_v28  ;;  %13106 = vmatprep.mubr.f32.mxu1 %v20739_v55  ;;  %v8783_v5 = vpop.f32.mrf.mxu0 }
 0x827   :  { %13072 = vmatprep.subr.mxu1 %v12780_v32  ;;  %v19495_v18 = vpop.f32.mrf.mxu1  ;;  %v19497_v25 = vadd.f32 %v8783_v5, %v7919_v48 }
 0x828   :  { %14724 = vmatmul.mubr.msk.f32.vlgmr.msra.gmra.mxu0 %vm194_vm10, %v19440_v35  ;;  %13073 = vmatpush1.msra.mxu1 %v12779_v52  ;;  %v19501_v45 = vpop.f32.mrf.mxu0 }
 0x829   :  { %14726 = vmatmul.mubr.msk.f32.vlgmr.msra.gmra.mxu1 %vm194_vm10, %v19440_v35  ;;  %13035 = vmatprep.mubr.f32.mxu0 %v20739_v55  ;;  %v8860_v3 = vpop.f32.mrf.mxu1 }
 0x82a   :  { %v19508_v42 = vadd.f32 %v8860_v3, %v7996_v1  ;;  %13112 = vmatprep.mubr.f32.mxu1 %v20739_v55  ;;  %v8931_v6 = vpop.f32.mrf.mxu0 }
 0x82b   :  { %v19513_v28 = vpop.f32.mrf.mxu1  ;;  %v19515_v48 = vadd.f32 %v8931_v6, %v8067_v22 }
 0x82c   :  { %14725 = vmatmul.mubr.msk.f32.gmra.mxu0 %vm194_vm10, %v19464_v8  ;;  %v19519_v11 = vpop.f32.mrf.mxu0 }
 0x82d   :  { %14727 = vmatmul.mubr.msk.f32.gmra.mxu1 %vm194_vm10, %v19464_v8  ;;  %v9008_v27 = vpop.f32.mrf.mxu1  ;;  %13183 = vmatprep.mubr.f32.mxu0 %v20739_v55 }
 0x82e   :  { %v19524_v50 = vadd.f32 %v9008_v27, %v8144_v13  ;;  %v8937_v14 = vpop.f32.mrf.mxu0  ;;  %13260 = vmatprep.mubr.f32.mxu1 %v20739_v55 }
 0x82f   :  { %v19529_v40 = vpop.f32.mrf.mxu1  ;;  %v19531_v1 = vadd.f32 %v8937_v14, %v8073_v10 }
 0x830   :  { %v19533_v32 = vpop.f32.mrf.mxu0 }
 0x832   :  { %v9014_v5 = vpop.f32.mrf.mxu1  ;;  %v9085_v22 = vpop.f32.mrf.mxu0 }
 0x833   :  { %v12758_v52 = vpop.permute.xlu1 %12757  ;;  %v19535_v3 = vadd.f32 %v9014_v5, %v8150_v44  ;;  %v19538_v13 = vadd.f32 %v9085_v22, %v19379_v41  ;;  %v7761_v41 = vadd.f32 %v19240_v53, %v18937_v61  ;;  %v7838_v53 = vadd.f32 %v19267_v20, %v18951_v63 }
 0x834   :  { %v12760_v6 = vpop.permute.xlu0 %12759  ;;  %v12781_v27 = vsel %vm6843_vm12, %v12756_v56, %v12758_v52  ;;  %v19541_v19 = vpop.f32.mrf.mxu1 }
 0x835   :  { %v12782_v36 = vsel %vm6843_vm12, %v12758_v52, %v12760_v6  ;;  %v19544_v23 = vpop.f32.mrf.mxu0 }
 0x836   :  { %13149 = vmatprep.subr.mxu0 %v12782_v36  ;;  %v9162_v10 = vpop.f32.mrf.mxu1 }
 0x837   :  { %13150 = vmatpush1.msra.mxu0 %v12781_v27  ;;  %v12762_v14 = vpop.permute.xlu1 %12761  ;;  %v19547_v34 = vadd.f32 %v9162_v10, %v19393_v46  ;;  %v9091_v44 = vpop.f32.mrf.mxu0  ;;  %v9174_v10 = vadd.f32 %v19433_v17, %v7761_v41  ;;  %v9176_v17 = vadd.f32 %v19450_v7, %v7838_v53 }
 0x838   :  { %v19551_v5 = vpop.permute.xlu0 %12763  ;;  %14728 = vmatmul.mubr.msk.f32.vlgmr.msra.gmra.mxu0 %vm194_vm10, %v19440_v35  ;;  %v12783_v56 = vsel %vm6843_vm12, %v12760_v6, %v12762_v14  ;;  %v19556_v22 = vpop.f32.mrf.mxu1  ;;  %v19559_v52 = vadd.f32 %v9091_v44, %v19404_v57  ;;  %v7767_v57 = vadd.f32 %v19270_v54, %v18978_v4  ;;  %v7844_v54 = vadd.f32 %v19291_v49, %v18989_v43 }
 0x839   :  { %v12784_v46 = vsel %vm6843_vm12, %v12762_v14, %v19551_v5  ;;  %13189 = vmatprep.mubr.f32.mxu0 %v20739_v55  ;;  %v19564_v27 = vpop.f32.mrf.mxu0 }
 0x83a   :  { %13226 = vmatprep.subr.mxu1 %v12784_v46  ;;  %v9168_v61 = vpop.f32.mrf.mxu1 }
 0x83b   :  { %13227 = vmatpush1.msra.mxu1 %v12783_v56  ;;  %v19569_v6 = vadd.f32 %v9168_v61, %v19420_v9  ;;  %v9518_v36 = vpop.f32.mrf.mxu0  ;;  %v9190_v56 = vadd.f32 %v19456_v62, %v7767_v57 }
 0x83c   :  { %14729 = vmatmul.mubr.msk.f32.gmra.mxu0 %vm194_vm10, %v19464_v8  ;;  %14730 = vmatmul.mubr.msk.f32.vlgmr.msra.gmra.mxu1 %vm194_vm10, %v19440_v35  ;;  %v19578_v14 = vpop.f32.mrf.mxu1  ;;  %v19581_v63 = vadd.f32 %v9518_v36, %v19430_v59  ;;  %v7915_v59 = vadd.f32 %v19296_v58, %v19018_v16  ;;  %v7992_v16 = vadd.f32 %v19315_v26, %v19028_v51  ;;  %v12768_v57 = vpop.permute.xlu0 %12767 }
 0x83d   :  { %13266 = vmatprep.mubr.f32.mxu1 %v20739_v55  ;;  %v9520_v20 = vpop.f32.mrf.mxu0  ;;  %13337 = vmatprep.mubr.f32.mxu0 %v20739_v55  ;;  %v9192_v58 = vadd.f32 %v19474_v21, %v7844_v54 }
 0x83e   :  { %v9595_v9 = vpop.f32.mrf.mxu1  ;;  %v19585_v4 = vadd.f32 %v9520_v20, %v9174_v10  ;;  %v9178_v53 = vadd.f32 %v19481_v38, %v7915_v59  ;;  %v9180_v21 = vadd.f32 %v19495_v18, %v7992_v16  ;;  %v8069_v38 = vadd.f32 %v19341_v12, %v19118_v37  ;;  %v20827_v18 = vld [vmem:[#allocation36_spill] sm:$0xff] }
 0x83f   :  { %v19591_v44 = vadd.f32 %v9595_v9, %v19445_v31  ;;  %v9524_v41 = vpop.f32.mrf.mxu0 }
 0x840   :  { %14731 = vmatmul.mubr.msk.f32.gmra.mxu1 %vm194_vm10, %v19464_v8  ;;  %v9597_v46 = vpop.f32.mrf.mxu1  ;;  %v19599_v61 = vadd.f32 %v9524_v41, %v19452_v15  ;;  %v7921_v15 = vadd.f32 %v19321_v0, %v19065_v30 }
 0x841   :  { %v19601_v36 = vadd.f32 %v9597_v46, %v9176_v17  ;;  %v9526_v43 = vpop.f32.mrf.mxu0  ;;  %13414 = vmatprep.mubr.f32.mxu1 %v20739_v55  ;;  %v12772_v46 = vpop.permute.xlu0 %12771 }
 0x842   :  { %v9601_v49 = vpop.f32.mrf.mxu1  ;;  %v19604_v31 = vadd.f32 %v9526_v43, %v9190_v56 }
 0x843   :  { %v19610_v7 = vadd.f32 %v9601_v49, %v19469_v33  ;;  %v9672_v62 = vpop.f32.mrf.mxu0  ;;  %v7998_v33 = vadd.f32 %v19336_v2, %v19086_v39 }
 0x844   :  { %v9603_v10 = vpop.f32.mrf.mxu1  ;;  %v19616_v20 = vadd.f32 %v9672_v62, %v19476_v60  ;;  %v9194_v60 = vadd.f32 %v19501_v45, %v7921_v15  ;;  %v20829_v45 = vld [vmem:[#allocation57_spill] sm:$0xff]  ;;  %v9182_v62 = vadd.f32 %v19519_v11, %v8069_v38 }
 0x845   :  { %v19618_v9 = vadd.f32 %v9603_v10, %v9192_v58  ;;  %v9674_v17 = vpop.f32.mrf.mxu0  ;;  %v9196_v49 = vadd.f32 %v19513_v28, %v7998_v33  ;;  %v20831_v28 = vld [vmem:[#allocation39_spill] sm:$0xff] }
 0x846   :  { %v9749_v51 = vpop.f32.mrf.mxu1  ;;  %v19620_v26 = vadd.f32 %v9674_v17, %v9178_v53 }
 0x847   :  { %v19626_v30 = vadd.f32 %v9749_v51, %v19489_v24  ;;  %v9678_v0 = vpop.f32.mrf.mxu0  ;;  %v20828_v24 = vld [vmem:[#allocation63_spill] sm:$0xff] }
 0x848   :  { %v9751_v54 = vpop.f32.mrf.mxu1  ;;  %v19632_v41 = vadd.f32 %v9678_v0, %v19497_v25  ;;  %v8146_v43 = vadd.f32 %v20828_v24, %v20827_v18  ;;  %v20830_v25 = vld [vmem:[#allocation46_spill] sm:$0xff] }
 0x849   :  { %v19634_v59 = vadd.f32 %v9751_v54, %v9180_v21  ;;  %v9680_v56 = vpop.f32.mrf.mxu0  ;;  %v8075_v58 = vadd.f32 %v20830_v25, %v20829_v45 }
 0x84a   :  { %v9755_v39 = vpop.f32.mrf.mxu1  ;;  %v19636_v2 = vadd.f32 %v9680_v56, %v9194_v60  ;;  %v9184_v33 = vadd.f32 %v19529_v40, %v8146_v43 }
 0x84b   :  { %v13637_v16 = vpop.permute.xlu1 %13636  ;;  %v19642_v37 = vadd.f32 %v9755_v39, %v19508_v42  ;;  %v9826_v12 = vpop.f32.mrf.mxu0  ;;  %v8152_v42 = vadd.f32 %v19376_v29, %v20831_v28  ;;  %v9198_v38 = vadd.f32 %v19533_v32, %v8075_v58 }
 0x84c   :  { %v9757_v15 = vpop.f32.mrf.mxu1  ;;  %v19648_v53 = vadd.f32 %v9826_v12, %v19515_v48 }
 0x84d   :  { %v19650_v10 = vadd.f32 %v9757_v15, %v9196_v49  ;;  %v9828_v17 = vpop.f32.mrf.mxu0  ;;  %v9200_v43 = vadd.f32 %v19541_v19, %v8152_v42 }
 0x84e   :  { %v9903_v51 = vpop.f32.mrf.mxu1  ;;  %v19652_v21 = vadd.f32 %v9828_v17, %v9182_v62  ;;  %v19696_v62 = vld [vmem:[%s20275_s4 + $0x80] sm:$0xff] }
 0x84f   :  { %v13639_v0 = vpop.permute.xlu0 %13638  ;;  %v19658_v60 = vadd.f32 %v9903_v51, %v19524_v50  ;;  %v9832_v11 = vpop.f32.mrf.mxu0 }
 0x850   :  { %v12766_v48 = vpop.permute.xlu1 %12765  ;;  %v9905_v54 = vpop.f32.mrf.mxu1  ;;  %v19662_v56 = vadd.f32 %v9832_v11, %v19531_v1  ;;  %v13669_v32 = vsel %vm6685_vm11, %v13637_v16, %v13639_v0  ;;  %v20832_v11 = vld [vmem:[#allocation59_spill] sm:$0xff] }
 0x851   :  { %v12785_v39 = vsel %vm6843_vm12, %v19551_v5, %v12766_v48  ;;  %v12786_v18 = vsel %vm6843_vm12, %v12766_v48, %v12768_v57  ;;  %v19667_v29 = vadd.f32 %v9905_v54, %v9184_v33  ;;  %v9834_v40 = vpop.f32.mrf.mxu0  ;;  %v20833_v54 = vld [vmem:[#allocation61_spill] sm:$0xff] }
 0x852   :  { %13303 = vmatprep.subr.mxu0 %v12786_v18  ;;  %v9909_v24 = vpop.f32.mrf.mxu1  ;;  %v19669_v50 = vadd.f32 %v9834_v40, %v9198_v38  ;;  %v8223_v38 = vadd.f32 %v19381_v47, %v20832_v11 }
 0x853   :  { %13304 = vmatpush1.msra.mxu0 %v12785_v39  ;;  %v19674_v1 = vadd.f32 %v9909_v24, %v19535_v3  ;;  %v13643_v19 = vpop.permute.xlu0 %13642  ;;  %v20834_v39 = vld [vmem:[#allocation48_spill] sm:$0xff] }
 0x854   :  { %14732 = vmatmul.mubr.msk.f32.vlgmr.msra.gmra.mxu0 %vm194_vm10, %v19440_v35  ;;  %13736 = vmatprep.subr.mxu0 %v13669_v32  ;;  %v12770_v5 = vpop.permute.xlu1 %12769  ;;  %v9911_v49 = vpop.f32.mrf.mxu1  ;;  %v8229_v18 = vadd.f32 %v20834_v39, %v20833_v54  ;;  %v9186_v40 = vadd.f32 %v19544_v23, %v8223_v38  ;;  %v20836_v32 = vld [vmem:[#allocation66_spill] sm:$0xff] }
 0x855   :  { %v12787_v12 = vsel %vm6843_vm12, %v12768_v57, %v12770_v5  ;;  %v12788_v45 = vsel %vm6843_vm12, %v12770_v5, %v12772_v46  ;;  %v19680_v25 = vadd.f32 %v9911_v49, %v9200_v43  ;;  %13343 = vmatprep.mubr.f32.mxu0 %v20739_v55  ;;  %v20835_v43 = vld [vmem:[#allocation42_spill] sm:$0xff] }
 0x856   :  { %13380 = vmatprep.subr.mxu1 %v12788_v45  ;;  %v8300_v5 = vadd.f32 %v20836_v32, %v20835_v43  ;;  %v9202_v47 = vadd.f32 %v19564_v27, %v8229_v18 }
 0x857   :  { %13381 = vmatpush1.msra.mxu1 %v12787_v12 }
 0x858   :  { %14733 = vmatmul.mubr.msk.f32.gmra.mxu0 %vm194_vm10, %v19464_v8  ;;  %14734 = vmatmul.mubr.msk.f32.vlgmr.msra.gmra.mxu1 %vm194_vm10, %v19440_v35  ;;  %v13641_v3 = vpop.permute.xlu1 %13640 }
 0x859   :  { %v13670_v58 = vsel %vm6685_vm11, %v13639_v0, %v13641_v3  ;;  %v13671_v57 = vsel %vm6685_vm11, %v13641_v3, %v13643_v19  ;;  %13420 = vmatprep.mubr.f32.mxu1 %v20739_v55  ;;  %13770 = vmatprep.mubr.f32.mxu0 %v20739_v55 }
 0x85a   :  { %13813 = vmatprep.subr.mxu1 %v13671_v57 }
 0x85b   :  { %13814 = vmatpush1.msra.mxu1 %v13670_v58 }
 0x85c   :  { %14735 = vmatmul.mubr.msk.f32.gmra.mxu1 %vm194_vm10, %v19464_v8  ;;  %v13635_v46 = vpop.permute.xlu1 %13634  ;;  %v13645_v35 = vpop.permute.xlu0 %13644  ;;  %v19708_v8 = vld [vmem:[%s20275_s4 + $0x88] sm:$0xff] }
 0x85d   :  { %v13668_v15 = vsel %vm6685_vm11, %v13635_v46, %v13637_v16  ;;  %13847 = vmatprep.mubr.f32.mxu1 %v20739_v55  ;;  %v13672_v16 = vsel %vm6685_vm11, %v13643_v19, %v13645_v35  ;;  %v20837_v46 = vld [vmem:[#allocation44_spill] sm:$0xff] }
 0x85e   :  { %13737 = vmatpush1.msra.mxu0 %v13668_v15  ;;  %v9188_v15 = vadd.f32 %v19556_v22, %v8300_v5 }
 0x85f   :  { %14742 = vmatmul.mubr.msk.f32.vlgmr.msra.gmra.mxu0 %vm194_vm10, %v19696_v62 }
 0x860   :  { %14744 = vmatmul.mubr.msk.f32.vlgmr.msra.gmra.mxu1 %vm194_vm10, %v19696_v62  ;;  %v13647_v17 = vpop.permute.xlu1 %13646  ;;  %13776 = vmatprep.mubr.f32.mxu0 %v20739_v55  ;;  %v13649_v28 = vpop.permute.xlu0 %13648 }
 0x861   :  { %v13673_v51 = vsel %vm6685_vm11, %v13645_v35, %v13647_v17  ;;  %13853 = vmatprep.mubr.f32.mxu1 %v20739_v55  ;;  %v13674_v0 = vsel %vm6685_vm11, %v13647_v17, %v13649_v28 }
 0x862   :  { %13890 = vmatprep.subr.mxu0 %v13673_v51 }
 0x863   :  { %14743 = vmatmul.mubr.msk.f32.gmra.mxu0 %vm194_vm10, %v19708_v8 }
 0x864   :  { %13891 = vmatpush1.msra.mxu0 %v13672_v16  ;;  %14745 = vmatmul.mubr.msk.f32.gmra.mxu1 %vm194_vm10, %v19708_v8  ;;  %v13651_v42 = vpop.permute.xlu1 %13650 }
 0x865   :  { %13924 = vmatprep.mubr.f32.mxu0 %v20739_v55  ;;  %v13675_v33 = vsel %vm6685_vm11, %v13649_v28, %v13651_v42  ;;  %14001 = vmatprep.mubr.f32.mxu1 %v20739_v55 }
 0x866   :  { %13967 = vmatprep.subr.mxu1 %v13675_v33 }
 0x867   :  { %14746 = vmatmul.mubr.msk.f32.vlgmr.msra.gmra.mxu0 %vm194_vm10, %v19696_v62  ;;  %13968 = vmatpush1.msra.mxu1 %v13674_v0 }
 0x868   :  { %14748 = vmatmul.mubr.msk.f32.vlgmr.msra.gmra.mxu1 %vm194_vm10, %v19696_v62  ;;  %13930 = vmatprep.mubr.f32.mxu0 %v20739_v55 }
 0x869   :  { %14007 = vmatprep.mubr.f32.mxu1 %v20739_v55 }
 0x86b   :  { %14747 = vmatmul.mubr.msk.f32.gmra.mxu0 %vm194_vm10, %v19708_v8 }
 0x86c   :  { %14749 = vmatmul.mubr.msk.f32.gmra.mxu1 %vm194_vm10, %v19708_v8  ;;  %14078 = vmatprep.mubr.f32.mxu0 %v20739_v55  ;;  %v13653_v12 = vpop.permute.xlu0 %13652 }
 0x86d   :  { %14155 = vmatprep.mubr.f32.mxu1 %v20739_v55  ;;  %v13676_v17 = vsel %vm6685_vm11, %v13651_v42, %v13653_v12 }
 0x874   :  { %v9980_v48 = vpop.f32.mrf.mxu0 }
 0x875   :  { %v19739_v24 = vadd.f32 %v9980_v48, %v19538_v13  ;;  %v20838_v13 = vld [vmem:[#allocation69_spill] sm:$0xff] }
 0x876   :  { %v9982_v49 = vpop.f32.mrf.mxu0  ;;  %v8306_v35 = vadd.f32 %v20838_v13, %v20837_v46 }
 0x877   :  { %v19743_v45 = vadd.f32 %v9982_v49, %v9186_v40 }
 0x878   :  { %v13655_v19 = vpop.permute.xlu1 %13654  ;;  %v9986_v3 = vpop.f32.mrf.mxu0  ;;  %v9204_v38 = vadd.f32 %v19578_v14, %v8306_v35 }
 0x879   :  { %v19747_v58 = vadd.f32 %v9986_v3, %v19559_v52  ;;  %v10057_v57 = vpop.f32.mrf.mxu1  ;;  %v13677_v23 = vsel %vm6685_vm11, %v13653_v12, %v13655_v19  ;;  %v13657_v28 = vpop.permute.xlu0 %13656 }
 0x87a   :  { %v19755_v51 = vadd.f32 %v10057_v57, %v19547_v34  ;;  %14044 = vmatprep.subr.mxu0 %v13677_v23  ;;  %v9988_v16 = vpop.f32.mrf.mxu0  ;;  %v13678_v48 = vsel %vm6685_vm11, %v13655_v19, %v13657_v28 }
 0x87b   :  { %14045 = vmatpush1.msra.mxu0 %v13676_v17  ;;  %v19757_v27 = vadd.f32 %v9988_v16, %v9202_v47  ;;  %v10059_v52 = vpop.f32.mrf.mxu1 }
 0x87c   :  { %v19759_v33 = vadd.f32 %v10059_v52, %v9188_v15  ;;  %14750 = vmatmul.mubr.msk.f32.vlgmr.msra.gmra.mxu0 %vm194_vm10, %v19696_v62  ;;  %v13659_v0 = vpop.permute.xlu1 %13658  ;;  %v10175_v11 = vpop.f32.mrf.mxu0 }
 0x87d   :  { %v10063_v22 = vpop.f32.mrf.mxu1  ;;  %v19764_v42 = vadd.f32 %v10175_v11, %v19581_v63  ;;  %v13679_v34 = vsel %vm6685_vm11, %v13657_v28, %v13659_v0  ;;  %14084 = vmatprep.mubr.f32.mxu0 %v20739_v55 }
 0x87e   :  { %v19771_v54 = vadd.f32 %v10063_v22, %v19569_v6  ;;  %14121 = vmatprep.subr.mxu1 %v13679_v34  ;;  %v10177_v39 = vpop.f32.mrf.mxu0 }
 0x87f   :  { %14122 = vmatpush1.msra.mxu1 %v13678_v48  ;;  %v10065_v18 = vpop.f32.mrf.mxu1  ;;  %v19774_v40 = vadd.f32 %v10177_v39, %v19585_v4 }
 0x880   :  { %v19776_v63 = vadd.f32 %v10065_v18, %v9204_v38  ;;  %14751 = vmatmul.mubr.msk.f32.gmra.mxu0 %vm194_vm10, %v19708_v8  ;;  %14752 = vmatmul.mubr.msk.f32.vlgmr.msra.gmra.mxu1 %vm194_vm10, %v19696_v62  ;;  %v10181_v14 = vpop.f32.mrf.mxu0 }
 0x881   :  { %v19783_v43 = vadd.f32 %v10181_v14, %v19599_v61  ;;  %v10252_v6 = vpop.f32.mrf.mxu1  ;;  %14161 = vmatprep.mubr.f32.mxu1 %v20739_v55  ;;  %14232 = vmatprep.mubr.f32.mxu0 %v20739_v55 }
 0x882   :  { %v19788_v4 = vadd.f32 %v10252_v6, %v19591_v44  ;;  %v10183_v32 = vpop.f32.mrf.mxu0  ;;  %v13661_v44 = vpop.permute.xlu0 %13660 }
 0x883   :  { %v19791_v5 = vadd.f32 %v10183_v32, %v19604_v31  ;;  %v10254_v49 = vpop.f32.mrf.mxu1 }
 0x884   :  { %v19794_v12 = vadd.f32 %v10254_v49, %v19601_v36  ;;  %14753 = vmatmul.mubr.msk.f32.gmra.mxu1 %vm194_vm10, %v19708_v8  ;;  %v10329_v61 = vpop.f32.mrf.mxu0 }
 0x885   :  { %v10258_v19 = vpop.f32.mrf.mxu1  ;;  %v19799_v3 = vadd.f32 %v10329_v61, %v19616_v20  ;;  %14309 = vmatprep.mubr.f32.mxu1 %v20739_v55  ;;  %v13680_v20 = vsel %vm6685_vm11, %v13659_v0, %v13661_v44 }
 0x886   :  { %v19803_v47 = vadd.f32 %v10258_v19, %v19610_v7  ;;  %v10331_v31 = vpop.f32.mrf.mxu0 }
 0x887   :  { %v10260_v57 = vpop.f32.mrf.mxu1  ;;  %v19806_v23 = vadd.f32 %v10331_v31, %v19620_v26  ;;  %v13663_v36 = vpop.permute.xlu1 %13662 }
 0x888   :  { %v19809_v46 = vadd.f32 %v10260_v57, %v19618_v9  ;;  %v10335_v13 = vpop.f32.mrf.mxu0  ;;  %v13681_v35 = vsel %vm6685_vm11, %v13661_v44, %v13663_v36  ;;  %v13665_v7 = vpop.permute.xlu0 %13664 }
 0x889   :  { %v19814_v15 = vadd.f32 %v10335_v13, %v19632_v41  ;;  %v10406_v17 = vpop.f32.mrf.mxu1  ;;  %14198 = vmatprep.subr.mxu0 %v13681_v35 }
 0x88a   :  { %v19817_v16 = vadd.f32 %v10406_v17, %v19626_v30  ;;  %14199 = vmatpush1.msra.mxu0 %v13680_v20  ;;  %v10337_v26 = vpop.f32.mrf.mxu0  ;;  %v13682_v30 = vsel %vm6685_vm11, %v13663_v36, %v13665_v7 }
 0x88b   :  { %v19820_v28 = vadd.f32 %v10337_v26, %v19636_v2  ;;  %v10408_v9 = vpop.f32.mrf.mxu1  ;;  %14754 = vmatmul.mubr.msk.f32.vlgmr.msra.gmra.mxu0 %vm194_vm10, %v19696_v62  ;;  %v13667_v52 = vpop.permute.xlu1 %13666 }
 0x88c   :  { %v19825_v0 = vadd.f32 %v10408_v9, %v19634_v59  ;;  %v10483_v41 = vpop.f32.mrf.mxu0  ;;  %v13683_v11 = vsel %vm6685_vm11, %v13665_v7, %v13667_v52  ;;  %14238 = vmatprep.mubr.f32.mxu0 %v20739_v55 }
 0x88d   :  { %v10412_v22 = vpop.f32.mrf.mxu1  ;;  %v19831_v34 = vadd.f32 %v10483_v41, %v19648_v53  ;;  %14275 = vmatprep.subr.mxu1 %v13683_v11 }
 0x88e   :  { %v19834_v2 = vadd.f32 %v10412_v22, %v19642_v37  ;;  %14276 = vmatpush1.msra.mxu1 %v13682_v30  ;;  %v10485_v38 = vpop.f32.mrf.mxu0 }
 0x88f   :  { %v10414_v48 = vpop.f32.mrf.mxu1  ;;  %v19837_v59 = vadd.f32 %v10485_v38, %v19652_v21  ;;  %14755 = vmatmul.mubr.msk.f32.gmra.mxu0 %vm194_vm10, %v19708_v8  ;;  %14756 = vmatmul.mubr.msk.f32.vlgmr.msra.gmra.mxu1 %vm194_vm10, %v19696_v62 }
 0x890   :  { %v19844_v39 = vadd.f32 %v10414_v48, %v19650_v10  ;;  %v10489_v53 = vpop.f32.mrf.mxu0  ;;  %14315 = vmatprep.mubr.f32.mxu1 %v20739_v55 }
 0x891   :  { %v19848_v37 = vadd.f32 %v10489_v53, %v19662_v56  ;;  %v10560_v18 = vpop.f32.mrf.mxu1 }
 0x892   :  { %v19851_v14 = vadd.f32 %v10560_v18, %v19658_v60  ;;  %v10491_v21 = vpop.f32.mrf.mxu0 }
 0x893   :  { %v19854_v6 = vadd.f32 %v10491_v21, %v19669_v50  ;;  %v10562_v32 = vpop.f32.mrf.mxu1  ;;  %14757 = vmatmul.mubr.msk.f32.gmra.mxu1 %vm194_vm10, %v19708_v8 }
 0x894   :  { %v19859_v10 = vadd.f32 %v10562_v32, %v19667_v29  ;;  %v10637_v62 = vpop.f32.mrf.mxu0 }
 0x895   :  { %v10566_v55 = vpop.f32.mrf.mxu1  ;;  %v19862_v56 = vadd.f32 %v10637_v62, %v19739_v24 }
 0x896   :  { %v19865_v49 = vadd.f32 %v10566_v55, %v19674_v1  ;;  %v10639_v60 = vpop.f32.mrf.mxu0 }
 0x897   :  { %v10568_v61 = vpop.f32.mrf.mxu1  ;;  %v19868_v50 = vadd.f32 %v10639_v60, %v19743_v45 }
 0x898   :  { %v19871_v19 = vadd.f32 %v10568_v61, %v19680_v25  ;;  %v10643_v8 = vpop.f32.mrf.mxu0 }
 0x899   :  { %v19874_v29 = vadd.f32 %v10643_v8, %v19747_v58  ;;  %v10714_v44 = vpop.f32.mrf.mxu1 }
 0x89a   :  { %v19877_v31 = vadd.f32 %v10714_v44, %v19755_v51  ;;  %v10645_v24 = vpop.f32.mrf.mxu0 }
 0x89b   :  { %v19880_v1 = vadd.f32 %v10645_v24, %v19757_v27  ;;  %v10716_v57 = vpop.f32.mrf.mxu1 }
 0x89c   :  { %v19883_v36 = vadd.f32 %v10716_v57, %v19759_v33  ;;  %v11087_v45 = vpop.f32.mrf.mxu0 }
 0x89d   :  { %v10720_v13 = vpop.f32.mrf.mxu1  ;;  %v19886_v25 = vadd.f32 %v11087_v45, %v19764_v42 }
 0x89e   :  { %v19889_v58 = vadd.f32 %v10720_v13, %v19771_v54  ;;  %v11089_v35 = vpop.f32.mrf.mxu0 }
 0x89f   :  { %v10722_v20 = vpop.f32.mrf.mxu1  ;;  %v19892_v51 = vadd.f32 %v11089_v35, %v19774_v40 }
 0x8a0   :  { %v10756_v27 = vadd.f32 %v10722_v20, %v19776_v63  ;;  %v11093_v17 = vpop.f32.mrf.mxu0 }
 0x8a1   :  { %v19896_v7 = vadd.f32 %v11093_v17, %v19783_v43  ;;  %v11164_v33 = vpop.f32.mrf.mxu1 }
 0x8a2   :  { %v19899_v26 = vadd.f32 %v11164_v33, %v19788_v4  ;;  %v11095_v42 = vpop.f32.mrf.mxu0 }
 0x8a3   :  { %v19902_v9 = vadd.f32 %v11095_v42, %v19791_v5  ;;  %v11166_v54 = vpop.f32.mrf.mxu1 }
 0x8a4   :  { %v19905_v52 = vadd.f32 %v11166_v54, %v19794_v12  ;;  %v11241_v40 = vpop.f32.mrf.mxu0 }
 0x8a5   :  { %v11170_v41 = vpop.f32.mrf.mxu1  ;;  %v19908_v63 = vadd.f32 %v11241_v40, %v19799_v3 }
 0x8a6   :  { %v19911_v43 = vadd.f32 %v11170_v41, %v19803_v47  ;;  %v11243_v11 = vpop.f32.mrf.mxu0 }
 0x8a7   :  { %v11172_v30 = vpop.f32.mrf.mxu1  ;;  %v19914_v4 = vadd.f32 %v11243_v11, %v19806_v23 }
 0x8a8   :  { %v19917_v5 = vadd.f32 %v11172_v30, %v19809_v46  ;;  %v11247_v22 = vpop.f32.mrf.mxu0 }
 0x8a9   :  { %v19920_v12 = vadd.f32 %v11247_v22, %v19814_v15  ;;  %v11318_v38 = vpop.f32.mrf.mxu1 }
 0x8aa   :  { %v19923_v48 = vadd.f32 %v11318_v38, %v19817_v16  ;;  %v11249_v3 = vpop.f32.mrf.mxu0 }
 0x8ab   :  { %v19926_v47 = vadd.f32 %v11249_v3, %v19820_v28  ;;  %v11320_v53 = vpop.f32.mrf.mxu1 }
 0x8ac   :  { %v19929_v18 = vadd.f32 %v11320_v53, %v19825_v0  ;;  %v11395_v23 = vpop.f32.mrf.mxu0 }
 0x8ad   :  { %v11324_v21 = vpop.f32.mrf.mxu1  ;;  %v11645_v46 = vadd.f32 %v11395_v23, %v19831_v34 }
 0x8ae   :  { %v19933_v32 = vadd.f32 %v11324_v21, %v19834_v2  ;;  %v11397_v15 = vpop.f32.mrf.mxu0 }
 0x8af   :  { %v11326_v62 = vpop.f32.mrf.mxu1  ;;  %v11646_v16 = vadd.f32 %v11397_v15, %v19837_v59 }
 0x8b0   :  { %v19937_v55 = vadd.f32 %v11326_v62, %v19844_v39  ;;  %v11401_v28 = vpop.f32.mrf.mxu0 }
 0x8b1   :  { %v11661_v60 = vadd.f32 %v11401_v28, %v19848_v37  ;;  %v11472_v61 = vpop.f32.mrf.mxu1 }
 0x8b2   :  { %v11647_v0 = vadd.f32 %v11472_v61, %v19851_v14  ;;  %v11403_v8 = vpop.f32.mrf.mxu0 }
 0x8b3   :  { %v11662_v44 = vadd.f32 %v11403_v8, %v19854_v6  ;;  %v11474_v34 = vpop.f32.mrf.mxu1 }
 0x8b4   :  { %v11648_v2 = vadd.f32 %v11474_v34, %v19859_v10 }
 0x8b5   :  { %v11478_v24 = vpop.f32.mrf.mxu1  ;;  %v11549_v57 = vpop.f32.mrf.mxu0 }
 0x8b6   :  { %v11663_v45 = vadd.f32 %v11478_v24, %v19865_v49  ;;  %v11649_v59 = vadd.f32 %v11549_v57, %v19862_v56 }
 0x8b7   :  { %v11480_v39 = vpop.f32.mrf.mxu1  ;;  %v11551_v13 = vpop.f32.mrf.mxu0 }
 0x8b8   :  { %v11664_v35 = vadd.f32 %v11480_v39, %v19871_v19  ;;  %v11650_v37 = vadd.f32 %v11551_v13, %v19868_v50 }
 0x8b9   :  { %v11555_v20 = vpop.f32.mrf.mxu0  ;;  %v11626_v14 = vpop.f32.mrf.mxu1 }
 0x8ba   :  { %v11665_v17 = vadd.f32 %v11555_v20, %v19874_v29  ;;  %v11651_v6 = vadd.f32 %v11626_v14, %v19877_v31 }
 0x8bb   :  { %v11557_v33 = vpop.f32.mrf.mxu0  ;;  %v11628_v10 = vpop.f32.mrf.mxu1 }
 0x8bc   :  { %v11666_v42 = vadd.f32 %v11557_v33, %v19880_v1  ;;  %v11652_v49 = vadd.f32 %v11628_v10, %v19883_v36 }
 0x8bd   :  { %v11632_v54 = vpop.f32.mrf.mxu1  ;;  %v19951_v56 = vpop.f32.mrf.mxu0 }
 0x8be   :  { %v11667_v40 = vadd.f32 %v11632_v54, %v19889_v58 }
 0x8bf   :  { %v11634_v19 = vpop.f32.mrf.mxu1  ;;  %v19954_v41 = vpop.f32.mrf.mxu0 }
 0x8c0   :  { %v11668_v50 = vadd.f32 %v11634_v19, %v10756_v27 }
 0x8c1   :  { %v19956_v11 = vpop.f32.mrf.mxu0  ;;  %v19958_v29 = vpop.f32.mrf.mxu1 }
 0x8c3   :  { %v19960_v31 = vpop.f32.mrf.mxu0  ;;  %v19962_v30 = vpop.f32.mrf.mxu1 }
 0x8c5   :  { %v19964_v1 = vpop.f32.mrf.mxu1  ;;  %v19966_v36 = vpop.f32.mrf.mxu0 }
 0x8c7   :  { %v19968_v22 = vpop.f32.mrf.mxu1  ;;  %v19970_v38 = vpop.f32.mrf.mxu0 }
 0x8c9   :  { %v19972_v58 = vpop.f32.mrf.mxu0  ;;  %v19974_v3 = vpop.f32.mrf.mxu1 }
 0x8cb   :  { %v19976_v27 = vpop.f32.mrf.mxu0  ;;  %v19978_v53 = vpop.f32.mrf.mxu1 }
 0x8cd   :  { %v19980_v23 = vpop.f32.mrf.mxu1  ;;  %v12290_v21 = vpop.f32.mrf.mxu0 }
 0x8ce   :  { %v19982_v15 = vadd.f32 %v12290_v21, %v11645_v46 }
 0x8cf   :  { %v19984_v62 = vpop.f32.mrf.mxu1  ;;  %v12292_v28 = vpop.f32.mrf.mxu0 }
 0x8d0   :  { %v19986_v61 = vadd.f32 %v12292_v28, %v11646_v16 }
 0x8d1   :  { %v12296_v8 = vpop.f32.mrf.mxu0  ;;  %v12367_v34 = vpop.f32.mrf.mxu1 }
 0x8d2   :  { %v19988_v24 = vadd.f32 %v12296_v8, %v11661_v60  ;;  %v19990_v57 = vadd.f32 %v12367_v34, %v11647_v0 }
 0x8d3   :  { %v12298_v39 = vpop.f32.mrf.mxu0  ;;  %v12369_v13 = vpop.f32.mrf.mxu1 }
 0x8d4   :  { %20839 = vst [vmem:[#allocation50_spill] sm:$0xff] %v19990_v57  ;;  %v19992_v20 = vadd.f32 %v12298_v39, %v11662_v44  ;;  %v19994_v14 = vadd.f32 %v12369_v13, %v11648_v2 }
 0x8d5   :  { %v12373_v33 = vpop.f32.mrf.mxu1 }
 0x8d6   :  { %20840 = vst [vmem:[#allocation71_spill] sm:$0xff] %v19992_v20  ;;  %20841 = vst [vmem:[#allocation53_spill] sm:$0xff] %v19994_v14  ;;  %v19996_v46 = vadd.f32 %v12373_v33, %v11663_v45  ;;  %v12444_v10 = vpop.f32.mrf.mxu0 }
 0x8d7   :  { %v19998_v54 = vadd.f32 %v12444_v10, %v11649_v59  ;;  %v12375_v16 = vpop.f32.mrf.mxu1 }
 0x8d8   :  { %20842 = vst [vmem:[#allocation73_spill] sm:$0xff] %v19996_v46  ;;  %v20000_v19 = vadd.f32 %v12375_v16, %v11664_v35  ;;  %v12446_v21 = vpop.f32.mrf.mxu0 }
 0x8d9   :  { %20843 = vst [vmem:[#allocation56_spill] sm:$0xff] %v19998_v54  ;;  %v20002_v60 = vadd.f32 %v12446_v21, %v11650_v37  ;;  %v12521_v0 = vpop.f32.mrf.mxu1 }
 0x8da   :  { %20844 = vst [vmem:[#allocation75_spill] sm:$0xff] %v20000_v19  ;;  %v12450_v28 = vpop.f32.mrf.mxu0  ;;  %v20004_v8 = vadd.f32 %v12521_v0, %v11651_v6 }
 0x8db   :  { %20845 = vst [vmem:[#allocation58_spill] sm:$0xff] %v20002_v60  ;;  %v20006_v44 = vadd.f32 %v12450_v28, %v11665_v17  ;;  %v12523_v2 = vpop.f32.mrf.mxu1 }
 0x8dc   :  { %20846 = vst [vmem:[#allocation77_spill] sm:$0xff] %v20004_v8  ;;  %v12452_v34 = vpop.f32.mrf.mxu0  ;;  %v20008_v39 = vadd.f32 %v12523_v2, %v11652_v49 }
 0x8dd   :  { %20847 = vst [vmem:[#allocation60_spill] sm:$0xff] %v20006_v44  ;;  %v20010_v45 = vadd.f32 %v12452_v34, %v11666_v42  ;;  %v12527_v59 = vpop.f32.mrf.mxu1 }
 0x8de   :  { %20848 = vst [vmem:[#allocation80_spill] sm:$0xff] %v20008_v39  ;;  %v20012_v13 = vadd.f32 %v12527_v59, %v11667_v40 }
 0x8df   :  { %20849 = vst [vmem:[#allocation62_spill] sm:$0xff] %v20010_v45  ;;  %v12529_v35 = vpop.f32.mrf.mxu1 }
 0x8e0   :  { %20850 = vst [vmem:[#allocation83_spill] sm:$0xff] %v20012_v13  ;;  %v20014_v33 = vadd.f32 %v12529_v35, %v11668_v50  ;;  %v12877_v37 = vpop.f32.mrf.mxu0 }
 0x8e1   :  { %v12954_v10 = vpop.f32.mrf.mxu1 }
 0x8e2   :  { %20851 = vst [vmem:[#allocation64_spill] sm:$0xff] %v20014_v33  ;;  %v12879_v16 = vpop.f32.mrf.mxu0 }
 0x8e3   :  { %v12956_v21 = vpop.f32.mrf.mxu1 }
 0x8e4   :  { %v12883_v6 = vpop.f32.mrf.mxu0 }
 0x8e5   :  { %v12960_v0 = vpop.f32.mrf.mxu1 }
 0x8e6   :  { %v12885_v17 = vpop.f32.mrf.mxu0 }
 0x8e7   :  { %v20016_v28 = vpop.f32.mrf.mxu1 }
 0x8e8   :  { %v20018_v8 = vpop.f32.mrf.mxu0 }
 0x8e9   :  { %v20020_v49 = vpop.f32.mrf.mxu1 }
 0x8ea   :  { %v20022_v42 = vpop.f32.mrf.mxu0 }
 0x8eb   :  { %v20024_v40 = vpop.f32.mrf.mxu1 }
 0x8ec   :  { %v20026_v2 = vpop.f32.mrf.mxu0 }
 0x8ed   :  { %v20028_v50 = vpop.f32.mrf.mxu1 }
 0x8ee   :  { %v20030_v34 = vpop.f32.mrf.mxu0 }
 0x8ef   :  { %v20034_v35 = vpop.f32.mrf.mxu1 }
 0x8f8   :  { %v20032_v59 = vpop.f32.mrf.mxu0 }
 0x8fa   :  { %v20036_v33 = vpop.f32.mrf.mxu0 }
 0x8fc   :  { %v20038_v13 = vpop.f32.mrf.mxu1  ;;  %v20040_v39 = vpop.f32.mrf.mxu0 }
 0x8fd   :  { %20852 = vst [vmem:[#allocation85_spill] sm:$0xff] %v20038_v13  ;;  %v12532_v13 = vadd.f32 %v19951_v56, %v19886_v25  ;;  %v12550_v25 = vadd.f32 %v19964_v1, %v19911_v43  ;;  %v12538_v43 = vadd.f32 %v19974_v3, %v19923_v48  ;;  %v12555_v3 = vadd.f32 %v19984_v62, %v19937_v55 }
 0x8fe   :  { %v20042_v45 = vpop.f32.mrf.mxu1  ;;  %v20044_v44 = vpop.f32.mrf.mxu0 }
 0x8ff   :  { %20853 = vst [vmem:[#allocation67_spill] sm:$0xff] %v20042_v45  ;;  %v13427_v56 = vadd.f32 %v12877_v37, %v12532_v13 }
 0x900   :  { %v20046_v60 = vpop.f32.mrf.mxu1 }
 0x901   :  { %20854 = vst [vmem:[#allocation87_spill] sm:$0xff] %v20046_v60  ;;  %v12533_v60 = vadd.f32 %v19954_v41, %v19892_v51  ;;  %v12536_v51 = vadd.f32 %v19966_v36, %v19908_v63  ;;  %v12553_v63 = vadd.f32 %v19976_v27, %v19926_v47 }
 0x902   :  { %v20050_v19 = vpop.f32.mrf.mxu1 }
 0x903   :  { %20856 = vst [vmem:[#allocation89_spill] sm:$0xff] %v20050_v19  ;;  %v13431_v62 = vadd.f32 %v20018_v8, %v12536_v51 }
 0x914   :  { %v20048_v54 = vpop.f32.mrf.mxu0 }
 0x915   :  { %20855 = vst [vmem:[#allocation70_spill] sm:$0xff] %v20048_v54  ;;  %v12548_v54 = vadd.f32 %v19956_v11, %v19896_v7  ;;  %v12551_v7 = vadd.f32 %v19968_v22, %v19917_v5  ;;  %v13428_v11 = vadd.f32 %v12879_v16, %v12533_v60  ;;  %v12539_v5 = vadd.f32 %v19978_v53, %v19929_v18 }
 0x916   :  { %v20052_v46 = vpop.f32.mrf.mxu0 }
 0x917   :  { %20857 = vst [vmem:[#allocation72_spill] sm:$0xff] %v20052_v46  ;;  %v12534_v46 = vadd.f32 %v19958_v29, %v19899_v26  ;;  %v12537_v26 = vadd.f32 %v19970_v38, %v19914_v4  ;;  %v13443_v22 = vadd.f32 %v12883_v6, %v12548_v54 }
 0x918   :  { %v20054_v14 = vpop.f32.mrf.mxu1  ;;  %v20056_v20 = vpop.f32.mrf.mxu0 }
 0x919   :  { %20858 = vst [vmem:[#allocation91_spill] sm:$0xff] %v20054_v14  ;;  %v12549_v14 = vadd.f32 %v19960_v31, %v19902_v9  ;;  %v13429_v41 = vadd.f32 %v12954_v10, %v12534_v46  ;;  %v13445_v46 = vadd.f32 %v12960_v0, %v12550_v25  ;;  %v13432_v51 = vadd.f32 %v20022_v42, %v12537_v26 }
 0x91a   :  { %v20058_v57 = vpop.f32.mrf.mxu1  ;;  %v20070_v19 = vpop.f32.mrf.mxu0 }
 0x91b   :  { %20859 = vst [vmem:[#allocation74_spill] sm:$0xff] %v20058_v57  ;;  %v12535_v57 = vadd.f32 %v19962_v30, %v19905_v52  ;;  %v12552_v52 = vadd.f32 %v19972_v58, %v19920_v12  ;;  %v20090_v30 = vpop.permute.xlu0 %14358  ;;  %v12554_v12 = vadd.f32 %v19980_v23, %v19933_v32  ;;  %v13444_v18 = vadd.f32 %v12885_v17, %v12549_v14  ;;  %v20103_v32 = vpop.permute.xlu1 %14363 }
 0x91c   :  { %v20062_v45 = vpop.f32.mrf.mxu1  ;;  %v13446_v23 = vadd.f32 %v20016_v28, %v12551_v7  ;;  %v13433_v17 = vadd.f32 %v20020_v49, %v12538_v43  ;;  %v13434_v43 = vadd.f32 %v20024_v40, %v12539_v5 }
 0x91d   :  { %20860 = vst [vmem:[#allocation94_spill] sm:$0xff] %v20062_v45  ;;  %v13430_v4 = vadd.f32 %v12956_v21, %v12535_v57  ;;  %v13447_v26 = vadd.f32 %v20026_v2, %v12552_v52  ;;  %v13449_v5 = vadd.f32 %v20028_v50, %v12554_v12  ;;  %v13448_v52 = vadd.f32 %v20030_v34, %v12553_v63 }
 0x91e   :  { %v20078_v45 = vpop.f32.mrf.mxu1  ;;  %v13450_v12 = vadd.f32 %v20034_v35, %v12555_v3 }
 0x91f   :  { %v13772_v9 = vpop.f32.mrf.mxu0 }
 0x920   :  { %v14322_v29 = vadd.f32 %v13772_v9, %v13427_v56  ;;  %v13849_v31 = vpop.f32.mrf.mxu1 }
 0x921   :  { %v14324_v1 = vadd.f32 %v13849_v31, %v13429_v41  ;;  %v13774_v36 = vpop.f32.mrf.mxu0 }
 0x922   :  { %v14366_v48 = vadd.f32 %v20090_v30, %v14322_v29  ;;  %v14323_v38 = vadd.f32 %v13774_v36, %v13428_v11  ;;  %v13851_v58 = vpop.f32.mrf.mxu1 }
 0x923   :  { %v14368_v47 = vadd.f32 %v20090_v30, %v14324_v1  ;;  %v14325_v27 = vadd.f32 %v13851_v58, %v13430_v4  ;;  %v13778_v60 = vpop.f32.mrf.mxu0 }
 0x924   :  { %v14398_v53 = vmax.f32 %v14366_v48, 0.0  ;;  %v14367_v57 = vadd.f32 %v20090_v30, %v14323_v38  ;;  %v14338_v13 = vadd.f32 %v13778_v60, %v13443_v22  ;;  %v13855_v37 = vpop.f32.mrf.mxu1 }
 0x925   :  { %v14400_v54 = vmax.f32 %v14368_v47, 0.0  ;;  %v14369_v10 = vadd.f32 %v20090_v30, %v14325_v27  ;;  %v14340_v16 = vadd.f32 %v13855_v37, %v13445_v46  ;;  %v13780_v55 = vpop.f32.mrf.mxu0 }
 0x926   :  { %14430 = vst [vmem:[%s20283_s12] sm:$0xff] %v14398_v53  ;;  %v14399_v14 = vmax.f32 %v14367_v57, 0.0  ;;  %v14382_v21 = vadd.f32 %v20103_v32, %v14338_v13  ;;  %v14339_v6 = vadd.f32 %v13780_v55, %v13444_v18  ;;  %v13857_v0 = vpop.f32.mrf.mxu1 }
 0x927   :  { %14432 = vst [vmem:[%s20283_s12 + $0x10] sm:$0xff] %v14400_v54  ;;  %v14401_v28 = vmax.f32 %v14369_v10, 0.0  ;;  %v14384_v25 = vadd.f32 %v20103_v32, %v14340_v16  ;;  %v14341_v56 = vadd.f32 %v13857_v0, %v13446_v23  ;;  %v13926_v8 = vpop.f32.mrf.mxu0 }
 0x928   :  { %14431 = vst [vmem:[%s20283_s12 + $0x8] sm:$0xff] %v14399_v14  ;;  %v14414_v7 = vmax.f32 %v14382_v21, 0.0  ;;  %v14383_v41 = vadd.f32 %v20103_v32, %v14339_v6  ;;  %v14326_v9 = vadd.f32 %v13926_v8, %v13431_v62  ;;  %v14003_v49 = vpop.f32.mrf.mxu1  ;;  %v13435_v14 = vadd.f32 %v20032_v59, %v19982_v15 }
 0x929   :  { %14433 = vst [vmem:[%s20283_s12 + $0x18] sm:$0xff] %v14401_v28  ;;  %v14416_v11 = vmax.f32 %v14384_v25, 0.0  ;;  %v14385_v29 = vadd.f32 %v20103_v32, %v14341_v56  ;;  %v14328_v31 = vadd.f32 %v14003_v49, %v13433_v17  ;;  %v13928_v42 = vpop.f32.mrf.mxu0  ;;  %v13436_v6 = vadd.f32 %v20036_v33, %v19986_v61  ;;  %v20861_v25 = vld [vmem:[#allocation50_spill] sm:$0xff]  ;;  %v20862_v56 = vld [vmem:[#allocation85_spill] sm:$0xff] }
 0x92a   :  { %14438 = vst [vmem:[%s20283_s12 + $0x40] sm:$0xff] %v14414_v7  ;;  %v14415_v4 = vmax.f32 %v14383_v41, 0.0  ;;  %v14370_v1 = vadd.f32 %v20090_v30, %v14326_v9  ;;  %v14327_v36 = vadd.f32 %v13928_v42, %v13432_v51  ;;  %v14005_v40 = vpop.f32.mrf.mxu1  ;;  %v13451_v28 = vadd.f32 %v20040_v39, %v19988_v24  ;;  %v20863_v41 = vld [vmem:[#allocation71_spill] sm:$0xff]  ;;  %v20866_v24 = vld [vmem:[#allocation73_spill] sm:$0xff] }
 0x92b   :  { %14440 = vst [vmem:[%s20283_s12 + $0x50] sm:$0xff] %v14416_v11  ;;  %v14417_v22 = vmax.f32 %v14385_v29, 0.0  ;;  %v14372_v48 = vadd.f32 %v20090_v30, %v14328_v31  ;;  %v14329_v38 = vadd.f32 %v14005_v40, %v13434_v43  ;;  %v13932_v2 = vpop.f32.mrf.mxu0  ;;  %v13437_v8 = vadd.f32 %v20862_v56, %v20861_v25  ;;  %v20864_v11 = vld [vmem:[#allocation53_spill] sm:$0xff]  ;;  %v20865_v29 = vld [vmem:[#allocation67_spill] sm:$0xff]  ;;  %v20877_v25 = vld [vmem:[#allocation62_spill] sm:$0xff] }
 0x92c   :  { %14439 = vst [vmem:[%s20283_s12 + $0x48] sm:$0xff] %v14415_v4  ;;  %v14402_v58 = vmax.f32 %v14370_v1, 0.0  ;;  %v14371_v46 = vadd.f32 %v20090_v30, %v14327_v36  ;;  %v14342_v47 = vadd.f32 %v13932_v2, %v13447_v26  ;;  %v14009_v50 = vpop.f32.mrf.mxu1  ;;  %v13452_v9 = vadd.f32 %v20044_v44, %v20863_v41  ;;  %v20867_v39 = vld [vmem:[#allocation87_spill] sm:$0xff] }
 0x92d   :  { %14441 = vst [vmem:[%s20283_s12 + $0x58] sm:$0xff] %v14417_v22  ;;  %v14404_v27 = vmax.f32 %v14372_v48, 0.0  ;;  %v14373_v60 = vadd.f32 %v20090_v30, %v14329_v38  ;;  %v14344_v18 = vadd.f32 %v14009_v50, %v13449_v5  ;;  %v13934_v34 = vpop.f32.mrf.mxu0  ;;  %v13438_v31 = vadd.f32 %v20865_v29, %v20864_v11  ;;  %v20868_v5 = vld [vmem:[#allocation75_spill] sm:$0xff]  ;;  %v20869_v22 = vld [vmem:[#allocation89_spill] sm:$0xff] }
 0x92e   :  { %14434 = vst [vmem:[%s20283_s12 + $0x20] sm:$0xff] %v14402_v58  ;;  %v14403_v63 = vmax.f32 %v14371_v46, 0.0  ;;  %v14386_v53 = vadd.f32 %v20103_v32, %v14342_v47  ;;  %v14343_v57 = vadd.f32 %v13934_v34, %v13448_v52  ;;  %v14011_v13 = vpop.f32.mrf.mxu1  ;;  %v13453_v42 = vadd.f32 %v20867_v39, %v20866_v24 }
 0x92f   :  { %14436 = vst [vmem:[%s20283_s12 + $0x30] sm:$0xff] %v14404_v27  ;;  %v14405_v35 = vmax.f32 %v14373_v60, 0.0  ;;  %v14388_v3 = vadd.f32 %v20103_v32, %v14344_v18  ;;  %v14345_v37 = vadd.f32 %v14011_v13, %v13450_v12  ;;  %v13454_v48 = vadd.f32 %v20869_v22, %v20868_v5  ;;  %v20871_v13 = vld [vmem:[#allocation70_spill] sm:$0xff] }
 0x930   :  { %14435 = vst [vmem:[%s20283_s12 + $0x28] sm:$0xff] %v14403_v63  ;;  %v14418_v23 = vmax.f32 %v14386_v53, 0.0  ;;  %v14387_v54 = vadd.f32 %v20103_v32, %v14343_v57  ;;  %v20870_v57 = vld [vmem:[#allocation56_spill] sm:$0xff]  ;;  %v13456_v56 = vadd.f32 %v20070_v19, %v20877_v25 }
 0x931   :  { %14437 = vst [vmem:[%s20283_s12 + $0x38] sm:$0xff] %v14405_v35  ;;  %v14420_v10 = vmax.f32 %v14388_v3, 0.0  ;;  %v14389_v16 = vadd.f32 %v20103_v32, %v14345_v37  ;;  %v13439_v35 = vadd.f32 %v20871_v13, %v20870_v57 }
 0x932   :  { %14442 = vst [vmem:[%s20283_s12 + $0x60] sm:$0xff] %v14418_v23  ;;  %v14419_v55 = vmax.f32 %v14387_v54, 0.0  ;;  %v20872_v23 = vld [vmem:[#allocation58_spill] sm:$0xff]  ;;  %v20873_v54 = vld [vmem:[#allocation72_spill] sm:$0xff] }
 0x933   :  { %14444 = vst [vmem:[%s20283_s12 + $0x70] sm:$0xff] %v14420_v10  ;;  %v14421_v62 = vmax.f32 %v14389_v16, 0.0  ;;  %v13440_v10 = vadd.f32 %v20873_v54, %v20872_v23 }
 0x934   :  { %14443 = vst [vmem:[%s20283_s12 + $0x68] sm:$0xff] %v14419_v55 }
 0x935   :  { %14445 = vst [vmem:[%s20283_s12 + $0x78] sm:$0xff] %v14421_v62  ;;  %v20874_v62 = vld [vmem:[#allocation60_spill] sm:$0xff] }
 0x93c   :  { %v14080_v21 = vpop.f32.mrf.mxu0 }
 0x93d   :  { %v14330_v0 = vadd.f32 %v14080_v21, %v13435_v14  ;;  %v13455_v14 = vadd.f32 %v20056_v20, %v20874_v62  ;;  %v20875_v21 = vld [vmem:[#allocation77_spill] sm:$0xff]  ;;  %v20880_v20 = vld [vmem:[#allocation83_spill] sm:$0xff] }
 0x93e   :  { %v14082_v17 = vpop.f32.mrf.mxu0 }
 0x93f   :  { %v14374_v51 = vadd.f32 %v20090_v30, %v14330_v0  ;;  %v14331_v7 = vadd.f32 %v14082_v17, %v13436_v6  ;;  %v20876_v6 = vld [vmem:[#allocation91_spill] sm:$0xff] }
 0x940   :  { %v14086_v49 = vpop.f32.mrf.mxu0  ;;  %v14157_v15 = vpop.f32.mrf.mxu1  ;;  %v13441_v0 = vadd.f32 %v20876_v6, %v20875_v21 }
 0x941   :  { %v14406_v59 = vmax.f32 %v14374_v51, 0.0  ;;  %v14375_v43 = vadd.f32 %v20090_v30, %v14331_v7  ;;  %v14346_v61 = vadd.f32 %v14086_v49, %v13451_v28  ;;  %v14332_v33 = vadd.f32 %v14157_v15, %v13437_v8  ;;  %v20878_v15 = vld [vmem:[#allocation80_spill] sm:$0xff] }
 0x942   :  { %v14088_v26 = vpop.f32.mrf.mxu0  ;;  %v14159_v4 = vpop.f32.mrf.mxu1 }
 0x943   :  { %14758 = vst [vmem:[%s20283_s12 + $0x80] sm:$0xff] %v14406_v59  ;;  %v14407_v44 = vmax.f32 %v14375_v43, 0.0  ;;  %v14390_v1 = vadd.f32 %v20103_v32, %v14346_v61  ;;  %v14376_v36 = vadd.f32 %v20090_v30, %v14332_v33  ;;  %v14347_v40 = vadd.f32 %v14088_v26, %v13452_v9  ;;  %v20879_v59 = vld [vmem:[#allocation74_spill] sm:$0xff] }
 0x944   :  { %v14333_v38 = vadd.f32 %v14159_v4, %v13438_v31  ;;  %v14163_v2 = vpop.f32.mrf.mxu1  ;;  %v13442_v43 = vadd.f32 %v20879_v59, %v20878_v15  ;;  %v20881_v61 = vld [vmem:[#allocation94_spill] sm:$0xff] }
 0x945   :  { %14759 = vst [vmem:[%s20283_s12 + $0x88] sm:$0xff] %v14407_v44  ;;  %v14422_v52 = vmax.f32 %v14390_v1, 0.0  ;;  %v14408_v58 = vmax.f32 %v14376_v36, 0.0  ;;  %v14391_v46 = vadd.f32 %v20103_v32, %v14347_v40  ;;  %v14348_v47 = vadd.f32 %v14163_v2, %v13453_v42  ;;  %v20882_v42 = vld [vmem:[#allocation64_spill] sm:$0xff] }
 0x946   :  { %v14377_v50 = vadd.f32 %v20090_v30, %v14333_v38  ;;  %v14165_v12 = vpop.f32.mrf.mxu1  ;;  %v13457_v33 = vadd.f32 %v20881_v61, %v20880_v20  ;;  %v13458_v26 = vadd.f32 %v20078_v45, %v20882_v42 }
 0x947   :  { %14766 = vst [vmem:[%s20283_s12 + $0xc0] sm:$0xff] %v14422_v52  ;;  %14760 = vst [vmem:[%s20283_s12 + $0x90] sm:$0xff] %v14408_v58  ;;  %v14423_v27 = vmax.f32 %v14391_v46, 0.0  ;;  %v14392_v60 = vadd.f32 %v20103_v32, %v14348_v47  ;;  %v14349_v18 = vadd.f32 %v14165_v12, %v13454_v48 }
 0x948   :  { %v14409_v34 = vmax.f32 %v14377_v50, 0.0 }
 0x949   :  { %14767 = vst [vmem:[%s20283_s12 + $0xc8] sm:$0xff] %v14423_v27  ;;  %v14424_v63 = vmax.f32 %v14392_v60, 0.0  ;;  %v14393_v53 = vadd.f32 %v20103_v32, %v14349_v18 }
 0x94a   :  { %14761 = vst [vmem:[%s20283_s12 + $0x98] sm:$0xff] %v14409_v34 }
 0x94b   :  { %14768 = vst [vmem:[%s20283_s12 + $0xd0] sm:$0xff] %v14424_v63  ;;  %v14425_v3 = vmax.f32 %v14393_v53, 0.0  ;;  %v14234_v37 = vpop.f32.mrf.mxu0 }
 0x94c   :  { %v14334_v16 = vadd.f32 %v14234_v37, %v13439_v35 }
 0x94d   :  { %14769 = vst [vmem:[%s20283_s12 + $0xd8] sm:$0xff] %v14425_v3  ;;  %v14236_v55 = vpop.f32.mrf.mxu0 }
 0x94e   :  { %v14378_v17 = vadd.f32 %v20090_v30, %v14334_v16  ;;  %v14335_v28 = vadd.f32 %v14236_v55, %v13440_v10 }
 0x94f   :  { %v14240_v8 = vpop.f32.mrf.mxu0  ;;  %v14311_v51 = vpop.f32.mrf.mxu1 }
 0x950   :  { %v14410_v7 = vmax.f32 %v14378_v17, 0.0  ;;  %v14379_v41 = vadd.f32 %v20090_v30, %v14335_v28  ;;  %v14350_v9 = vadd.f32 %v14240_v8, %v13455_v14  ;;  %v14336_v49 = vadd.f32 %v14311_v51, %v13441_v0 }
 0x951   :  { %v14242_v11 = vpop.f32.mrf.mxu0  ;;  %v14313_v29 = vpop.f32.mrf.mxu1 }
 0x952   :  { %14762 = vst [vmem:[%s20283_s12 + $0xa0] sm:$0xff] %v14410_v7  ;;  %v14411_v19 = vmax.f32 %v14379_v41, 0.0  ;;  %v14394_v31 = vadd.f32 %v20103_v32, %v14350_v9  ;;  %v14380_v24 = vadd.f32 %v20090_v30, %v14336_v49  ;;  %v14351_v39 = vadd.f32 %v14242_v11, %v13456_v56 }
 0x953   :  { %v14337_v4 = vadd.f32 %v14313_v29, %v13442_v43  ;;  %v14317_v44 = vpop.f32.mrf.mxu1 }
 0x954   :  { %14763 = vst [vmem:[%s20283_s12 + $0xa8] sm:$0xff] %v14411_v19  ;;  %v14426_v1 = vmax.f32 %v14394_v31, 0.0  ;;  %v14412_v36 = vmax.f32 %v14380_v24, 0.0  ;;  %v14395_v40 = vadd.f32 %v20103_v32, %v14351_v39  ;;  %v14352_v5 = vadd.f32 %v14317_v44, %v13457_v33 }
 0x955   :  { %v14381_v22 = vadd.f32 %v20090_v30, %v14337_v4  ;;  %v14319_v48 = vpop.f32.mrf.mxu1 }
 0x956   :  { %14770 = vst [vmem:[%s20283_s12 + $0xe0] sm:$0xff] %v14426_v1  ;;  %14764 = vst [vmem:[%s20283_s12 + $0xb0] sm:$0xff] %v14412_v36  ;;  %v14427_v45 = vmax.f32 %v14395_v40, 0.0  ;;  %v14396_v38 = vadd.f32 %v20103_v32, %v14352_v5  ;;  %v14353_v2 = vadd.f32 %v14319_v48, %v13458_v26 }
 0x957   :  { %v14413_v52 = vmax.f32 %v14381_v22, 0.0 }
 0x958   :  { %14771 = vst [vmem:[%s20283_s12 + $0xe8] sm:$0xff] %v14427_v45  ;;  %v14428_v58 = vmax.f32 %v14396_v38, 0.0  ;;  %v14397_v30 = vadd.f32 %v20103_v32, %v14353_v2 }
 0x959   :  { %14765 = vst [vmem:[%s20283_s12 + $0xb8] sm:$0xff] %v14413_v52 }
 0x95a   :  { %14772 = vst [vmem:[%s20283_s12 + $0xf0] sm:$0xff] %v14428_v58  ;;  %v14429_v46 = vmax.f32 %v14397_v30, 0.0 }
 0x95c   :  { %14773 = vst [vmem:[%s20283_s12 + $0xf8] sm:$0xff] %v14429_v46 }
 0x95d   :  { %14467 = vsyncpa [#allocation4], 1 }

</bundles_post_ra>
